<compile_context>
chip_gen: v6e
topology: v6e:2x2x1
jax: 0.10.0
libtpu: 0.0.40
codegen_flags: <defaults>
</compile_context>

<pallas_src>
import numpy as np
import jax
import jax.numpy as jnp
from jax import lax
from jax.experimental import pallas as pl
from jax.experimental.pallas import tpu as pltpu

EPS = 1e-5
LANE = 128                      # TPU lane width -> channel padding target
MXU_DTYPE = jnp.bfloat16        # matmul operand dtype (f32 accumulation)


def _round_up(x, m):
    return (x + m - 1) // m * m


# ------------------------------ Pallas kernel --------------------------------

def _unet_block_kernel(x_ref, w1_ref, w2_ref, g1_ref, bt1_ref, g2_ref, bt2_ref,
                       o_ref, s1_ref, s2_ref, sum1, sq1, sum2, sq2):
    """Fused Conv3x3+BN+ReLU -> Conv3x3+BN+ReLU -> MaxPool2x2(ceil).

    x_ref  : (N, H, W, Cp)   f32   input (channels zero-padded to Cp=128)
    wX_ref : (3, 3*Cp, Cp)   bf16  per-ky weight slab, row index = kx*Cp + c_in
    gX/btX : (1, Cp)         f32   BN affine parameters
    o_ref  : (N, Hp, Wp, Cp) f32   pooled output
    s1/s2  : VMEM scratch feature maps (never touch HBM)
    sumX/sqX: (1, Cp) f32 per-channel sum / sum-of-squares accumulators
    """
    N, H, W, Cp = x_ref.shape
    H1, W1 = H - 2, W - 2
    H2, W2 = H1 - 2, W1 - 2
    Hp, Wp = o_ref.shape[1], o_ref.shape[2]

    sum1[...] = jnp.zeros(sum1.shape, jnp.float32)
    sq1[...] = jnp.zeros(sq1.shape, jnp.float32)
    sum2[...] = jnp.zeros(sum2.shape, jnp.float32)
    sq2[...] = jnp.zeros(sq2.shape, jnp.float32)

    def conv3x3(src_ref, w_ref, dst_ref, sum_ref, sq_ref, n, h_out, w_out):
        """3x3 VALID conv of image `n`; one output row per loop iteration."""
        def row_body(h, carry):
            acc = jnp.zeros((w_out, Cp), jnp.float32)
            for ky in range(3):
                # In-kernel "im2col": 3 shifted lane-dense slices of one input
                # row concatenated along lanes -> (w_out, 3*Cp), K = 3*Cp.
                patch = jnp.concatenate(
                    [src_ref[n, h + ky, kx:kx + w_out, :] for kx in range(3)],
                    axis=1)
                acc = acc + jnp.dot(patch.astype(MXU_DTYPE), w_ref[ky],
                                    preferred_element_type=jnp.float32)
            dst_ref[n, h, :, :] = acc
            # Per-channel running sums for the batch BN statistics (f32).
            sum_ref[...] += jnp.sum(acc, axis=0, keepdims=True)
            sq_ref[...] += jnp.sum(acc * acc, axis=0, keepdims=True)
            return carry
        lax.fori_loop(0, h_out, row_body, 0)

    def bn_scale_shift(sum_ref, sq_ref, g_ref, bt_ref, count):
        mean = sum_ref[...] * (1.0 / count)
        var = sq_ref[...] * (1.0 / count) - mean * mean     # biased variance
        scale = g_ref[...] * lax.rsqrt(var + EPS)
        shift = bt_ref[...] - mean * scale
        return scale.reshape(1, 1, Cp), shift.reshape(1, 1, Cp)

    # ---- block 1: Conv3x3 -> BN (folded scale/shift) -> ReLU ----------------
    for n in range(N):
        conv3x3(x_ref, w1_ref, s1_ref, sum1, sq1, n, H1, W1)
    sc1, sh1 = bn_scale_shift(sum1, sq1, g1_ref, bt1_ref, N * H1 * W1)
    for n in range(N):
        s1_ref[n, :, :, :] = jnp.maximum(s1_ref[n, :, :, :] * sc1 + sh1, 0.0)

    # ---- block 2 -------------------------------------------------------------
    for n in range(N):
        conv3x3(s1_ref, w2_ref, s2_ref, sum2, sq2, n, H2, W2)
    sc2, sh2 = bn_scale_shift(sum2, sq2, g2_ref, bt2_ref, N * H2 * W2)
    for n in range(N):
        s2_ref[n, :, :, :] = jnp.maximum(s2_ref[n, :, :, :] * sc2 + sh2, 0.0)

    # ---- MaxPool2d(2, stride=2, ceil_mode=True) fused epilogue ---------------
    for n in range(N):
        for hp in range(Hp):
            h0 = 2 * hp
            r = s2_ref[n, h0, :, :]
            if h0 + 1 < H2:                      # ceil_mode edge handling
                r = jnp.maximum(r, s2_ref[n, h0 + 1, :, :])
            for wp in range(Wp):
                w0 = 2 * wp
                w_end = min(w0 + 2, W2)          # ceil_mode edge handling
                o_ref[n, hp, wp:wp + 1, :] = jnp.max(
                    r[w0:w_end, :], axis=0, keepdims=True)


# -------------------------------- wrapper ------------------------------------

def unet_decoder_forward(x_nchw, params):
    """NCHW in / NCHW out, matching the PyTorch UNetDecoder forward."""
    w1, w2 = params["w1"], params["w2"]          # (3,3,Cin,Cout), (3,3,Cout,Cout)
    c_in, c_out = w1.shape[2], w1.shape[3]
    N, _, H, W = x_nchw.shape
    Cp = _round_up(max(c_in, c_out), LANE)

    H1, W1 = H - 2, W - 2
    H2, W2 = H1 - 2, W1 - 2
    Hp, Wp = -(-H2 // 2), -(-W2 // 2)            # ceil_mode=True

    # NCHW -> NHWC, channels zero-padded to the lane width (lane-dense layout).
    x = jnp.transpose(x_nchw, (0, 2, 3, 1)).astype(jnp.float32)
    x = jnp.pad(x, ((0, 0), (0, 0), (0, 0), (0, Cp - c_in)))

    def pack_w(w):
        ci, co = w.shape[2], w.shape[3]
        wpad = jnp.pad(w.astype(jnp.float32),
                       ((0, 0), (0, 0), (0, Cp - ci), (0, Cp - co)))
        # (3, 3, Cp, Cp) -> (3, 3*Cp, Cp): per-ky slab, rows = kx*Cp + c_in.
        return wpad.reshape(3, 3 * Cp, Cp).astype(MXU_DTYPE)

    def pad_vec(v):
        v = v.reshape(1, -1).astype(jnp.float32)
        return jnp.pad(v, ((0, 0), (0, Cp - v.shape[1])))

    w1m, w2m = pack_w(w1), pack_w(w2)
    g1, bt1 = pad_vec(params["g1"]), pad_vec(params["beta1"])
    g2, bt2 = pad_vec(params["g2"]), pad_vec(params["beta2"])
    # NOTE: conv biases b1/b2 are intentionally NOT passed: a per-channel bias
    # is cancelled exactly by the training-mode BatchNorm mean subtraction.

    out = pl.pallas_call(
        _unet_block_kernel,
        out_shape=jax.ShapeDtypeStruct((N, Hp, Wp, Cp), jnp.float32),
        grid=(1,),
        in_specs=[
            pl.BlockSpec((N, H, W, Cp), lambda i: (0, 0, 0, 0)),
            pl.BlockSpec((3, 3 * Cp, Cp), lambda i: (0, 0, 0)),
            pl.BlockSpec((3, 3 * Cp, Cp), lambda i: (0, 0, 0)),
            pl.BlockSpec((1, Cp), lambda i: (0, 0)),
            pl.BlockSpec((1, Cp), lambda i: (0, 0)),
            pl.BlockSpec((1, Cp), lambda i: (0, 0)),
            pl.BlockSpec((1, Cp), lambda i: (0, 0)),
        ],
        out_specs=pl.BlockSpec((N, Hp, Wp, Cp), lambda i: (0, 0, 0, 0)),
        scratch_shapes=[
            pltpu.VMEM((N, H1, W1, Cp), jnp.float32),   # conv1 feature map
            pltpu.VMEM((N, H2, W2, Cp), jnp.float32),   # conv2 feature map
            pltpu.VMEM((1, Cp), jnp.float32),           # sum1
            pltpu.VMEM((1, Cp), jnp.float32),           # sumsq1
            pltpu.VMEM((1, Cp), jnp.float32),           # sum2
            pltpu.VMEM((1, Cp), jnp.float32),           # sumsq2
        ],
        compiler_params=pltpu.CompilerParams(
            dimension_semantics=("arbitrary",)),
    )(x, w1m, w2m, g1, bt1, g2, bt2)

    # Drop channel padding, NHWC -> NCHW.
    return jnp.transpose(out[:, :, :, :c_out], (0, 3, 1, 2))


# --------------------------- params & reference ------------------------------

def init_params(key, c_in, c_out):
    ks = jax.random.split(key, 8)

    def conv_w(k, cin, cout):
        fan_in = 9 * cin
        return jax.random.normal(k, (3, 3, cin, cout), jnp.float32) / np.sqrt(fan_in)

    return {
        "w1": conv_w(ks[0], c_in, c_out),
        "b1": 0.1 * jax.random.normal(ks[1], (1, c_out), jnp.float32),
        "g1": 1.0 + 0.1 * jax.random.normal(ks[2], (1, c_out), jnp.float32),
        "beta1": 0.1 * jax.random.normal(ks[3], (1, c_out), jnp.float32),
        "w2": conv_w(ks[4], c_out, c_out),
        "b2": 0.1 * jax.random.normal(ks[5], (1, c_out), jnp.float32),
        "g2": 1.0 + 0.1 * jax.random.normal(ks[6], (1, c_out), jnp.float32),
        "beta2": 0.1 * jax.random.normal(ks[7], (1, c_out), jnp.float32),
    }


def reference_forward(x_nchw, params, matmul_dtype=jnp.float32):
    """Pure-XLA reference; matmul_dtype=bf16 mirrors the kernel's MXU policy."""
    x = jnp.transpose(x_nchw, (0, 2, 3, 1)).astype(jnp.float32)

    def block(x, w, b, g, beta):
        y = lax.conv_general_dilated(
            x.astype(matmul_dtype), w.astype(matmul_dtype),
            window_strides=(1, 1), padding="VALID",
            dimension_numbers=("NHWC", "HWIO", "NHWC"),
            preferred_element_type=jnp.float32)
        y = y + b.reshape(1, 1, 1, -1)
        mean = y.mean(axis=(0, 1, 2), keepdims=True)
        var = ((y - mean) ** 2).mean(axis=(0, 1, 2), keepdims=True)
        y = g.reshape(1, 1, 1, -1) * (y - mean) / jnp.sqrt(var + EPS) \
            + beta.reshape(1, 1, 1, -1)
        return jnp.maximum(y, 0.0)

    y = block(x, params["w1"], params["b1"], params["g1"], params["beta1"])
    y = block(y, params["w2"], params["b2"], params["g2"], params["beta2"])
    N, H, W, C = y.shape
    Hp, Wp = -(-H // 2), -(-W // 2)
    y = lax.reduce_window(y, -jnp.inf, lax.max, (1, 2, 2, 1), (1, 2, 2, 1),
                          ((0, 0), (0, Hp * 2 - H), (0, Wp * 2 - W), (0, 0)))
    return jnp.transpose(y, (0, 3, 1, 2))


# ----------------------------------- main -------------------------------------

if __name__ == "__main__":
    N, C_IN, C_OUT, H, W = 2, 4, 8, 16, 16
    key = jax.random.PRNGKey(0)
    kx, kp = jax.random.split(key)
    x = jax.random.normal(kx, (N, C_IN, H, W), jnp.float32)
    params = init_params(kp, C_IN, C_OUT)

    fwd = jax.jit(unet_decoder_forward)
    out = jax.block_until_ready(fwd(x, params))
    assert out.shape == (N, C_OUT, 6, 6), out.shape

    # Tight check vs a reference using the same precision policy as the kernel
    # (bf16 matmul operands, f32 accumulation, f32 BatchNorm).
    ref_bf16 = jax.block_until_ready(
        reference_forward(x, params, matmul_dtype=jnp.bfloat16))
    np.testing.assert_allclose(np.asarray(out), np.asarray(ref_bf16),
                               rtol=5e-3, atol=5e-3)

    # Loose check vs the pure-f32 PyTorch-equivalent reference; the only
    # deviation is the deliberate bf16 rounding of the MXU operands.
    ref_f32 = jax.block_until_ready(
        reference_forward(x, params, matmul_dtype=jnp.float32))
    np.testing.assert_allclose(np.asarray(out), np.asarray(ref_f32),
                               rtol=3e-2, atol=3e-2)

    print("KERNEL_OK")
</pallas_src>

<mosaic_0001>
module attributes {stable_mosaic.version = 11 : i64} {
  func.func @_unet_block_kernel(%arg0: i32, %arg1: memref<2x16x16x128xf32, #tpu.memory_space<vmem>>, %arg2: memref<3x384x128xbf16, #tpu.memory_space<vmem>>, %arg3: memref<3x384x128xbf16, #tpu.memory_space<vmem>>, %arg4: memref<1x128xf32, #tpu.memory_space<vmem>>, %arg5: memref<1x128xf32, #tpu.memory_space<vmem>>, %arg6: memref<1x128xf32, #tpu.memory_space<vmem>>, %arg7: memref<1x128xf32, #tpu.memory_space<vmem>>, %arg8: memref<2x6x6x128xf32, #tpu.memory_space<vmem>>, %arg9: memref<2x14x14x128xf32, #tpu.memory_space<vmem>>, %arg10: memref<2x12x12x128xf32, #tpu.memory_space<vmem>>, %arg11: memref<1x128xf32, #tpu.memory_space<vmem>>, %arg12: memref<1x128xf32, #tpu.memory_space<vmem>>, %arg13: memref<1x128xf32, #tpu.memory_space<vmem>>, %arg14: memref<1x128xf32, #tpu.memory_space<vmem>>) attributes {dimension_semantics = [#tpu.dimension_semantics<arbitrary>], iteration_bounds = array<i64: 1>, scalar_prefetch = 0 : i64, scratch_operands = 6 : i64, tpu.core_type = #tpu.core_type<tc>, window_params = [{pipeline_mode = #tpu.pipeline_mode<synchronous>, transform_indices = @transform_0, window_bounds = array<i64: 2, 16, 16, 128>}, {pipeline_mode = #tpu.pipeline_mode<synchronous>, transform_indices = @transform_1, window_bounds = array<i64: 3, 384, 128>}, {pipeline_mode = #tpu.pipeline_mode<synchronous>, transform_indices = @transform_2, window_bounds = array<i64: 3, 384, 128>}, {pipeline_mode = #tpu.pipeline_mode<synchronous>, transform_indices = @transform_3, window_bounds = array<i64: 1, 128>}, {pipeline_mode = #tpu.pipeline_mode<synchronous>, transform_indices = @transform_4, window_bounds = array<i64: 1, 128>}, {pipeline_mode = #tpu.pipeline_mode<synchronous>, transform_indices = @transform_5, window_bounds = array<i64: 1, 128>}, {pipeline_mode = #tpu.pipeline_mode<synchronous>, transform_indices = @transform_6, window_bounds = array<i64: 1, 128>}, {pipeline_mode = #tpu.pipeline_mode<synchronous>, transform_indices = @transform_7, window_bounds = array<i64: 2, 6, 6, 128>}]} {
    %cst = arith.constant 0.000000e+00 : f32
    %0 = vector.broadcast %cst : f32 to vector<1x128xf32>
    %c0 = arith.constant 0 : index
    %c0_0 = arith.constant 0 : index
    %1 = vector.load %arg11[%c0, %c0_0] : memref<1x128xf32, #tpu.memory_space<vmem>>, vector<1x128xf32>
    tpu.vector_store %arg11[%c0, %c0_0], %0 {strides = array<i32>} : memref<1x128xf32, #tpu.memory_space<vmem>>, vector<1x128xf32>,
    %cst_1 = arith.constant 0.000000e+00 : f32
    %2 = vector.broadcast %cst_1 : f32 to vector<1x128xf32>
    %c0_2 = arith.constant 0 : index
    %c0_3 = arith.constant 0 : index
    %3 = vector.load %arg12[%c0_2, %c0_3] : memref<1x128xf32, #tpu.memory_space<vmem>>, vector<1x128xf32>
    tpu.vector_store %arg12[%c0_2, %c0_3], %2 {strides = array<i32>} : memref<1x128xf32, #tpu.memory_space<vmem>>, vector<1x128xf32>,
    %cst_4 = arith.constant 0.000000e+00 : f32
    %4 = vector.broadcast %cst_4 : f32 to vector<1x128xf32>
    %c0_5 = arith.constant 0 : index
    %c0_6 = arith.constant 0 : index
    %5 = vector.load %arg13[%c0_5, %c0_6] : memref<1x128xf32, #tpu.memory_space<vmem>>, vector<1x128xf32>
    tpu.vector_store %arg13[%c0_5, %c0_6], %4 {strides = array<i32>} : memref<1x128xf32, #tpu.memory_space<vmem>>, vector<1x128xf32>,
    %cst_7 = arith.constant 0.000000e+00 : f32
    %6 = vector.broadcast %cst_7 : f32 to vector<1x128xf32>
    %c0_8 = arith.constant 0 : index
    %c0_9 = arith.constant 0 : index
    %7 = vector.load %arg14[%c0_8, %c0_9] : memref<1x128xf32, #tpu.memory_space<vmem>>, vector<1x128xf32>
    tpu.vector_store %arg14[%c0_8, %c0_9], %6 {strides = array<i32>} : memref<1x128xf32, #tpu.memory_space<vmem>>, vector<1x128xf32>,
    %c0_i32 = arith.constant 0 : i32
    %c14_i32 = arith.constant 14 : i32
    %8 = arith.addi %c0_i32, %c14_i32 : i32
    %c1_i32 = arith.constant 1 : i32
    scf.for %arg15 = %c0_i32 to %8 step %c1_i32  : i32 {
      %cst_525 = arith.constant 0.000000e+00 : f32
      %584 = vector.broadcast %cst_525 : f32 to vector<14x128xf32>
      %c0_i32_526 = arith.constant 0 : i32
      %585 = arith.addi %arg15, %c0_i32_526 : i32
      %c0_527 = arith.constant 0 : index
      %586 = arith.index_cast %585 : i32 to index
      %c0_528 = arith.constant 0 : index
      %c0_529 = arith.constant 0 : index
      %587 = vector.load %arg1[%c0_527, %586, %c0_528, %c0_529] : memref<2x16x16x128xf32, #tpu.memory_space<vmem>>, vector<1x1x14x128xf32>
      %588 = vector.shape_cast %587 : vector<1x1x14x128xf32> to vector<14x128xf32>
      %c0_i32_530 = arith.constant 0 : i32
      %589 = arith.addi %arg15, %c0_i32_530 : i32
      %c0_531 = arith.constant 0 : index
      %590 = arith.index_cast %589 : i32 to index
      %c1_532 = arith.constant 1 : index
      %c0_533 = arith.constant 0 : index
      %591 = vector.load %arg1[%c0_531, %590, %c1_532, %c0_533] : memref<2x16x16x128xf32, #tpu.memory_space<vmem>>, vector<1x1x14x128xf32>
      %592 = vector.shape_cast %591 : vector<1x1x14x128xf32> to vector<14x128xf32>
      %c0_i32_534 = arith.constant 0 : i32
      %593 = arith.addi %arg15, %c0_i32_534 : i32
      %c0_535 = arith.constant 0 : index
      %594 = arith.index_cast %593 : i32 to index
      %c2_536 = arith.constant 2 : index
      %c0_537 = arith.constant 0 : index
      %595 = vector.load %arg1[%c0_535, %594, %c2_536, %c0_537] : memref<2x16x16x128xf32, #tpu.memory_space<vmem>>, vector<1x1x14x128xf32>
      %596 = vector.shape_cast %595 : vector<1x1x14x128xf32> to vector<14x128xf32>
      %597 = tpu.concatenate %588, %592, %596 in 1 : vector<14x128xf32>, vector<14x128xf32>, vector<14x128xf32> -> vector<14x384xf32>
      %598 = arith.truncf %597 : vector<14x384xf32> to vector<14x384xbf16>
      %c0_538 = arith.constant 0 : index
      %c0_539 = arith.constant 0 : index
      %c0_540 = arith.constant 0 : index
      %599 = vector.load %arg2[%c0_538, %c0_539, %c0_540] : memref<3x384x128xbf16, #tpu.memory_space<vmem>>, vector<1x384x128xbf16>
      %600 = vector.shape_cast %599 : vector<1x384x128xbf16> to vector<384x128xbf16>
      %cst_541 = arith.constant dense<0.000000e+00> : vector<14x128xf32>
      %601 = tpu.matmul %598, %600, %cst_541 {dimension_numbers = #tpu.dot_dimension_numbers<[1], [0], [0], [1], [0, 0, 1, 1], [], []>} : vector<14x384xbf16>, vector<384x128xbf16>, vector<14x128xf32> -> vector<14x128xf32>
      %602 = arith.addf %584, %601 : vector<14x128xf32>
      %c1_i32_542 = arith.constant 1 : i32
      %603 = arith.addi %arg15, %c1_i32_542 : i32
      %c0_543 = arith.constant 0 : index
      %604 = arith.index_cast %603 : i32 to index
      %c0_544 = arith.constant 0 : index
      %c0_545 = arith.constant 0 : index
      %605 = vector.load %arg1[%c0_543, %604, %c0_544, %c0_545] : memref<2x16x16x128xf32, #tpu.memory_space<vmem>>, vector<1x1x14x128xf32>
      %606 = vector.shape_cast %605 : vector<1x1x14x128xf32> to vector<14x128xf32>
      %c1_i32_546 = arith.constant 1 : i32
      %607 = arith.addi %arg15, %c1_i32_546 : i32
      %c0_547 = arith.constant 0 : index
      %608 = arith.index_cast %607 : i32 to index
      %c1_548 = arith.constant 1 : index
      %c0_549 = arith.constant 0 : index
      %609 = vector.load %arg1[%c0_547, %608, %c1_548, %c0_549] : memref<2x16x16x128xf32, #tpu.memory_space<vmem>>, vector<1x1x14x128xf32>
      %610 = vector.shape_cast %609 : vector<1x1x14x128xf32> to vector<14x128xf32>
      %c1_i32_550 = arith.constant 1 : i32
      %611 = arith.addi %arg15, %c1_i32_550 : i32
      %c0_551 = arith.constant 0 : index
      %612 = arith.index_cast %611 : i32 to index
      %c2_552 = arith.constant 2 : index
      %c0_553 = arith.constant 0 : index
      %613 = vector.load %arg1[%c0_551, %612, %c2_552, %c0_553] : memref<2x16x16x128xf32, #tpu.memory_space<vmem>>, vector<1x1x14x128xf32>
      %614 = vector.shape_cast %613 : vector<1x1x14x128xf32> to vector<14x128xf32>
      %615 = tpu.concatenate %606, %610, %614 in 1 : vector<14x128xf32>, vector<14x128xf32>, vector<14x128xf32> -> vector<14x384xf32>
      %616 = arith.truncf %615 : vector<14x384xf32> to vector<14x384xbf16>
      %c1_554 = arith.constant 1 : index
      %c0_555 = arith.constant 0 : index
      %c0_556 = arith.constant 0 : index
      %617 = vector.load %arg2[%c1_554, %c0_555, %c0_556] : memref<3x384x128xbf16, #tpu.memory_space<vmem>>, vector<1x384x128xbf16>
      %618 = vector.shape_cast %617 : vector<1x384x128xbf16> to vector<384x128xbf16>
      %cst_557 = arith.constant dense<0.000000e+00> : vector<14x128xf32>
      %619 = tpu.matmul %616, %618, %cst_557 {dimension_numbers = #tpu.dot_dimension_numbers<[1], [0], [0], [1], [0, 0, 1, 1], [], []>} : vector<14x384xbf16>, vector<384x128xbf16>, vector<14x128xf32> -> vector<14x128xf32>
      %620 = arith.addf %602, %619 : vector<14x128xf32>
      %c2_i32 = arith.constant 2 : i32
      %621 = arith.addi %arg15, %c2_i32 : i32
      %c0_558 = arith.constant 0 : index
      %622 = arith.index_cast %621 : i32 to index
      %c0_559 = arith.constant 0 : index
      %c0_560 = arith.constant 0 : index
      %623 = vector.load %arg1[%c0_558, %622, %c0_559, %c0_560] : memref<2x16x16x128xf32, #tpu.memory_space<vmem>>, vector<1x1x14x128xf32>
      %624 = vector.shape_cast %623 : vector<1x1x14x128xf32> to vector<14x128xf32>
      %c2_i32_561 = arith.constant 2 : i32
      %625 = arith.addi %arg15, %c2_i32_561 : i32
      %c0_562 = arith.constant 0 : index
      %626 = arith.index_cast %625 : i32 to index
      %c1_563 = arith.constant 1 : index
      %c0_564 = arith.constant 0 : index
      %627 = vector.load %arg1[%c0_562, %626, %c1_563, %c0_564] : memref<2x16x16x128xf32, #tpu.memory_space<vmem>>, vector<1x1x14x128xf32>
      %628 = vector.shape_cast %627 : vector<1x1x14x128xf32> to vector<14x128xf32>
      %c2_i32_565 = arith.constant 2 : i32
      %629 = arith.addi %arg15, %c2_i32_565 : i32
      %c0_566 = arith.constant 0 : index
      %630 = arith.index_cast %629 : i32 to index
      %c2_567 = arith.constant 2 : index
      %c0_568 = arith.constant 0 : index
      %631 = vector.load %arg1[%c0_566, %630, %c2_567, %c0_568] : memref<2x16x16x128xf32, #tpu.memory_space<vmem>>, vector<1x1x14x128xf32>
      %632 = vector.shape_cast %631 : vector<1x1x14x128xf32> to vector<14x128xf32>
      %633 = tpu.concatenate %624, %628, %632 in 1 : vector<14x128xf32>, vector<14x128xf32>, vector<14x128xf32> -> vector<14x384xf32>
      %634 = arith.truncf %633 : vector<14x384xf32> to vector<14x384xbf16>
      %c2_569 = arith.constant 2 : index
      %c0_570 = arith.constant 0 : index
      %c0_571 = arith.constant 0 : index
      %635 = vector.load %arg2[%c2_569, %c0_570, %c0_571] : memref<3x384x128xbf16, #tpu.memory_space<vmem>>, vector<1x384x128xbf16>
      %636 = vector.shape_cast %635 : vector<1x384x128xbf16> to vector<384x128xbf16>
      %cst_572 = arith.constant dense<0.000000e+00> : vector<14x128xf32>
      %637 = tpu.matmul %634, %636, %cst_572 {dimension_numbers = #tpu.dot_dimension_numbers<[1], [0], [0], [1], [0, 0, 1, 1], [], []>} : vector<14x384xbf16>, vector<384x128xbf16>, vector<14x128xf32> -> vector<14x128xf32>
      %638 = arith.addf %620, %637 : vector<14x128xf32>
      %c0_573 = arith.constant 0 : index
      %639 = arith.index_cast %arg15 : i32 to index
      %c0_574 = arith.constant 0 : index
      %c0_575 = arith.constant 0 : index
      %640 = vector.load %arg9[%c0_573, %639, %c0_574, %c0_575] : memref<2x14x14x128xf32, #tpu.memory_space<vmem>>, vector<1x1x14x128xf32>
      %641 = vector.shape_cast %640 : vector<1x1x14x128xf32> to vector<14x128xf32>
      %642 = vector.shape_cast %638 : vector<14x128xf32> to vector<1x1x14x128xf32>
      tpu.vector_store %arg9[%c0_573, %639, %c0_574, %c0_575], %642 {strides = array<i32>} : memref<2x14x14x128xf32, #tpu.memory_space<vmem>>, vector<1x1x14x128xf32>,
      %c0_576 = arith.constant 0 : index
      %c0_577 = arith.constant 0 : index
      %643 = vector.load %arg11[%c0_576, %c0_577] : memref<1x128xf32, #tpu.memory_space<vmem>>, vector<1x128xf32>
      %cst_578 = arith.constant dense<0.000000e+00> : vector<128xf32>
      %644 = vector.multi_reduction <add>, %638, %cst_578 [0] : vector<14x128xf32> to vector<128xf32>
      %645 = vector.shape_cast %644 : vector<128xf32> to vector<1x128xf32>
      %646 = arith.addf %643, %645 : vector<1x128xf32>
      %c0_579 = arith.constant 0 : index
      %c0_580 = arith.constant 0 : index
      %647 = vector.load %arg11[%c0_579, %c0_580] : memref<1x128xf32, #tpu.memory_space<vmem>>, vector<1x128xf32>
      tpu.vector_store %arg11[%c0_579, %c0_580], %646 {strides = array<i32>} : memref<1x128xf32, #tpu.memory_space<vmem>>, vector<1x128xf32>,
      %c0_581 = arith.constant 0 : index
      %c0_582 = arith.constant 0 : index
      %648 = vector.load %arg12[%c0_581, %c0_582] : memref<1x128xf32, #tpu.memory_space<vmem>>, vector<1x128xf32>
      %649 = arith.mulf %638, %638 : vector<14x128xf32>
      %cst_583 = arith.constant dense<0.000000e+00> : vector<128xf32>
      %650 = vector.multi_reduction <add>, %649, %cst_583 [0] : vector<14x128xf32> to vector<128xf32>
      %651 = vector.shape_cast %650 : vector<128xf32> to vector<1x128xf32>
      %652 = arith.addf %648, %651 : vector<1x128xf32>
      %c0_584 = arith.constant 0 : index
      %c0_585 = arith.constant 0 : index
      %653 = vector.load %arg12[%c0_584, %c0_585] : memref<1x128xf32, #tpu.memory_space<vmem>>, vector<1x128xf32>
      tpu.vector_store %arg12[%c0_584, %c0_585], %652 {strides = array<i32>} : memref<1x128xf32, #tpu.memory_space<vmem>>, vector<1x128xf32>,
    }
    %c14_i32_10 = arith.constant 14 : i32
    %c0_i32_11 = arith.constant 0 : i32
    %c14_i32_12 = arith.constant 14 : i32
    %9 = arith.addi %c0_i32_11, %c14_i32_12 : i32
    %c1_i32_13 = arith.constant 1 : i32
    scf.for %arg15 = %c0_i32_11 to %9 step %c1_i32_13  : i32 {
      %cst_525 = arith.constant 0.000000e+00 : f32
      %584 = vector.broadcast %cst_525 : f32 to vector<14x128xf32>
      %c0_i32_526 = arith.constant 0 : i32
      %585 = arith.addi %arg15, %c0_i32_526 : i32
      %c1_527 = arith.constant 1 : index
      %586 = arith.index_cast %585 : i32 to index
      %c0_528 = arith.constant 0 : index
      %c0_529 = arith.constant 0 : index
      %587 = vector.load %arg1[%c1_527, %586, %c0_528, %c0_529] : memref<2x16x16x128xf32, #tpu.memory_space<vmem>>, vector<1x1x14x128xf32>
      %588 = vector.shape_cast %587 : vector<1x1x14x128xf32> to vector<14x128xf32>
      %c0_i32_530 = arith.constant 0 : i32
      %589 = arith.addi %arg15, %c0_i32_530 : i32
      %c1_531 = arith.constant 1 : index
      %590 = arith.index_cast %589 : i32 to index
      %c1_532 = arith.constant 1 : index
      %c0_533 = arith.constant 0 : index
      %591 = vector.load %arg1[%c1_531, %590, %c1_532, %c0_533] : memref<2x16x16x128xf32, #tpu.memory_space<vmem>>, vector<1x1x14x128xf32>
      %592 = vector.shape_cast %591 : vector<1x1x14x128xf32> to vector<14x128xf32>
      %c0_i32_534 = arith.constant 0 : i32
      %593 = arith.addi %arg15, %c0_i32_534 : i32
      %c1_535 = arith.constant 1 : index
      %594 = arith.index_cast %593 : i32 to index
      %c2_536 = arith.constant 2 : index
      %c0_537 = arith.constant 0 : index
      %595 = vector.load %arg1[%c1_535, %594, %c2_536, %c0_537] : memref<2x16x16x128xf32, #tpu.memory_space<vmem>>, vector<1x1x14x128xf32>
      %596 = vector.shape_cast %595 : vector<1x1x14x128xf32> to vector<14x128xf32>
      %597 = tpu.concatenate %588, %592, %596 in 1 : vector<14x128xf32>, vector<14x128xf32>, vector<14x128xf32> -> vector<14x384xf32>
      %598 = arith.truncf %597 : vector<14x384xf32> to vector<14x384xbf16>
      %c0_538 = arith.constant 0 : index
      %c0_539 = arith.constant 0 : index
      %c0_540 = arith.constant 0 : index
      %599 = vector.load %arg2[%c0_538, %c0_539, %c0_540] : memref<3x384x128xbf16, #tpu.memory_space<vmem>>, vector<1x384x128xbf16>
      %600 = vector.shape_cast %599 : vector<1x384x128xbf16> to vector<384x128xbf16>
      %cst_541 = arith.constant dense<0.000000e+00> : vector<14x128xf32>
      %601 = tpu.matmul %598, %600, %cst_541 {dimension_numbers = #tpu.dot_dimension_numbers<[1], [0], [0], [1], [0, 0, 1, 1], [], []>} : vector<14x384xbf16>, vector<384x128xbf16>, vector<14x128xf32> -> vector<14x128xf32>
      %602 = arith.addf %584, %601 : vector<14x128xf32>
      %c1_i32_542 = arith.constant 1 : i32
      %603 = arith.addi %arg15, %c1_i32_542 : i32
      %c1_543 = arith.constant 1 : index
      %604 = arith.index_cast %603 : i32 to index
      %c0_544 = arith.constant 0 : index
      %c0_545 = arith.constant 0 : index
      %605 = vector.load %arg1[%c1_543, %604, %c0_544, %c0_545] : memref<2x16x16x128xf32, #tpu.memory_space<vmem>>, vector<1x1x14x128xf32>
      %606 = vector.shape_cast %605 : vector<1x1x14x128xf32> to vector<14x128xf32>
      %c1_i32_546 = arith.constant 1 : i32
      %607 = arith.addi %arg15, %c1_i32_546 : i32
      %c1_547 = arith.constant 1 : index
      %608 = arith.index_cast %607 : i32 to index
      %c1_548 = arith.constant 1 : index
      %c0_549 = arith.constant 0 : index
      %609 = vector.load %arg1[%c1_547, %608, %c1_548, %c0_549] : memref<2x16x16x128xf32, #tpu.memory_space<vmem>>, vector<1x1x14x128xf32>
      %610 = vector.shape_cast %609 : vector<1x1x14x128xf32> to vector<14x128xf32>
      %c1_i32_550 = arith.constant 1 : i32
      %611 = arith.addi %arg15, %c1_i32_550 : i32
      %c1_551 = arith.constant 1 : index
      %612 = arith.index_cast %611 : i32 to index
      %c2_552 = arith.constant 2 : index
      %c0_553 = arith.constant 0 : index
      %613 = vector.load %arg1[%c1_551, %612, %c2_552, %c0_553] : memref<2x16x16x128xf32, #tpu.memory_space<vmem>>, vector<1x1x14x128xf32>
      %614 = vector.shape_cast %613 : vector<1x1x14x128xf32> to vector<14x128xf32>
      %615 = tpu.concatenate %606, %610, %614 in 1 : vector<14x128xf32>, vector<14x128xf32>, vector<14x128xf32> -> vector<14x384xf32>
      %616 = arith.truncf %615 : vector<14x384xf32> to vector<14x384xbf16>
      %c1_554 = arith.constant 1 : index
      %c0_555 = arith.constant 0 : index
      %c0_556 = arith.constant 0 : index
      %617 = vector.load %arg2[%c1_554, %c0_555, %c0_556] : memref<3x384x128xbf16, #tpu.memory_space<vmem>>, vector<1x384x128xbf16>
      %618 = vector.shape_cast %617 : vector<1x384x128xbf16> to vector<384x128xbf16>
      %cst_557 = arith.constant dense<0.000000e+00> : vector<14x128xf32>
      %619 = tpu.matmul %616, %618, %cst_557 {dimension_numbers = #tpu.dot_dimension_numbers<[1], [0], [0], [1], [0, 0, 1, 1], [], []>} : vector<14x384xbf16>, vector<384x128xbf16>, vector<14x128xf32> -> vector<14x128xf32>
      %620 = arith.addf %602, %619 : vector<14x128xf32>
      %c2_i32 = arith.constant 2 : i32
      %621 = arith.addi %arg15, %c2_i32 : i32
      %c1_558 = arith.constant 1 : index
      %622 = arith.index_cast %621 : i32 to index
      %c0_559 = arith.constant 0 : index
      %c0_560 = arith.constant 0 : index
      %623 = vector.load %arg1[%c1_558, %622, %c0_559, %c0_560] : memref<2x16x16x128xf32, #tpu.memory_space<vmem>>, vector<1x1x14x128xf32>
      %624 = vector.shape_cast %623 : vector<1x1x14x128xf32> to vector<14x128xf32>
      %c2_i32_561 = arith.constant 2 : i32
      %625 = arith.addi %arg15, %c2_i32_561 : i32
      %c1_562 = arith.constant 1 : index
      %626 = arith.index_cast %625 : i32 to index
      %c1_563 = arith.constant 1 : index
      %c0_564 = arith.constant 0 : index
      %627 = vector.load %arg1[%c1_562, %626, %c1_563, %c0_564] : memref<2x16x16x128xf32, #tpu.memory_space<vmem>>, vector<1x1x14x128xf32>
      %628 = vector.shape_cast %627 : vector<1x1x14x128xf32> to vector<14x128xf32>
      %c2_i32_565 = arith.constant 2 : i32
      %629 = arith.addi %arg15, %c2_i32_565 : i32
      %c1_566 = arith.constant 1 : index
      %630 = arith.index_cast %629 : i32 to index
      %c2_567 = arith.constant 2 : index
      %c0_568 = arith.constant 0 : index
      %631 = vector.load %arg1[%c1_566, %630, %c2_567, %c0_568] : memref<2x16x16x128xf32, #tpu.memory_space<vmem>>, vector<1x1x14x128xf32>
      %632 = vector.shape_cast %631 : vector<1x1x14x128xf32> to vector<14x128xf32>
      %633 = tpu.concatenate %624, %628, %632 in 1 : vector<14x128xf32>, vector<14x128xf32>, vector<14x128xf32> -> vector<14x384xf32>
      %634 = arith.truncf %633 : vector<14x384xf32> to vector<14x384xbf16>
      %c2_569 = arith.constant 2 : index
      %c0_570 = arith.constant 0 : index
      %c0_571 = arith.constant 0 : index
      %635 = vector.load %arg2[%c2_569, %c0_570, %c0_571] : memref<3x384x128xbf16, #tpu.memory_space<vmem>>, vector<1x384x128xbf16>
      %636 = vector.shape_cast %635 : vector<1x384x128xbf16> to vector<384x128xbf16>
      %cst_572 = arith.constant dense<0.000000e+00> : vector<14x128xf32>
      %637 = tpu.matmul %634, %636, %cst_572 {dimension_numbers = #tpu.dot_dimension_numbers<[1], [0], [0], [1], [0, 0, 1, 1], [], []>} : vector<14x384xbf16>, vector<384x128xbf16>, vector<14x128xf32> -> vector<14x128xf32>
      %638 = arith.addf %620, %637 : vector<14x128xf32>
      %c1_573 = arith.constant 1 : index
      %639 = arith.index_cast %arg15 : i32 to index
      %c0_574 = arith.constant 0 : index
      %c0_575 = arith.constant 0 : index
      %640 = vector.load %arg9[%c1_573, %639, %c0_574, %c0_575] : memref<2x14x14x128xf32, #tpu.memory_space<vmem>>, vector<1x1x14x128xf32>
      %641 = vector.shape_cast %640 : vector<1x1x14x128xf32> to vector<14x128xf32>
      %642 = vector.shape_cast %638 : vector<14x128xf32> to vector<1x1x14x128xf32>
      tpu.vector_store %arg9[%c1_573, %639, %c0_574, %c0_575], %642 {strides = array<i32>} : memref<2x14x14x128xf32, #tpu.memory_space<vmem>>, vector<1x1x14x128xf32>,
      %c0_576 = arith.constant 0 : index
      %c0_577 = arith.constant 0 : index
      %643 = vector.load %arg11[%c0_576, %c0_577] : memref<1x128xf32, #tpu.memory_space<vmem>>, vector<1x128xf32>
      %cst_578 = arith.constant dense<0.000000e+00> : vector<128xf32>
      %644 = vector.multi_reduction <add>, %638, %cst_578 [0] : vector<14x128xf32> to vector<128xf32>
      %645 = vector.shape_cast %644 : vector<128xf32> to vector<1x128xf32>
      %646 = arith.addf %643, %645 : vector<1x128xf32>
      %c0_579 = arith.constant 0 : index
      %c0_580 = arith.constant 0 : index
      %647 = vector.load %arg11[%c0_579, %c0_580] : memref<1x128xf32, #tpu.memory_space<vmem>>, vector<1x128xf32>
      tpu.vector_store %arg11[%c0_579, %c0_580], %646 {strides = array<i32>} : memref<1x128xf32, #tpu.memory_space<vmem>>, vector<1x128xf32>,
      %c0_581 = arith.constant 0 : index
      %c0_582 = arith.constant 0 : index
      %648 = vector.load %arg12[%c0_581, %c0_582] : memref<1x128xf32, #tpu.memory_space<vmem>>, vector<1x128xf32>
      %649 = arith.mulf %638, %638 : vector<14x128xf32>
      %cst_583 = arith.constant dense<0.000000e+00> : vector<128xf32>
      %650 = vector.multi_reduction <add>, %649, %cst_583 [0] : vector<14x128xf32> to vector<128xf32>
      %651 = vector.shape_cast %650 : vector<128xf32> to vector<1x128xf32>
      %652 = arith.addf %648, %651 : vector<1x128xf32>
      %c0_584 = arith.constant 0 : index
      %c0_585 = arith.constant 0 : index
      %653 = vector.load %arg12[%c0_584, %c0_585] : memref<1x128xf32, #tpu.memory_space<vmem>>, vector<1x128xf32>
      tpu.vector_store %arg12[%c0_584, %c0_585], %652 {strides = array<i32>} : memref<1x128xf32, #tpu.memory_space<vmem>>, vector<1x128xf32>,
    }
    %c14_i32_14 = arith.constant 14 : i32
    %c0_15 = arith.constant 0 : index
    %c0_16 = arith.constant 0 : index
    %10 = vector.load %arg11[%c0_15, %c0_16] : memref<1x128xf32, #tpu.memory_space<vmem>>, vector<1x128xf32>
    %cst_17 = arith.constant 0.00255102036 : f32
    %11 = vector.broadcast %cst_17 : f32 to vector<1x128xf32>
    %12 = arith.mulf %10, %11 : vector<1x128xf32>
    %c0_18 = arith.constant 0 : index
    %c0_19 = arith.constant 0 : index
    %13 = vector.load %arg12[%c0_18, %c0_19] : memref<1x128xf32, #tpu.memory_space<vmem>>, vector<1x128xf32>
    %cst_20 = arith.constant 0.00255102036 : f32
    %14 = vector.broadcast %cst_20 : f32 to vector<1x128xf32>
    %15 = arith.mulf %13, %14 : vector<1x128xf32>
    %16 = arith.mulf %12, %12 : vector<1x128xf32>
    %17 = arith.subf %15, %16 : vector<1x128xf32>
    %c0_21 = arith.constant 0 : index
    %c0_22 = arith.constant 0 : index
    %18 = vector.load %arg4[%c0_21, %c0_22] : memref<1x128xf32, #tpu.memory_space<vmem>>, vector<1x128xf32>
    %cst_23 = arith.constant 9.99999974E-6 : f32
    %19 = vector.broadcast %cst_23 : f32 to vector<1x128xf32>
    %20 = arith.addf %17, %19 : vector<1x128xf32>
    %21 = math.rsqrt %20 : vector<1x128xf32>
    %22 = arith.mulf %18, %21 : vector<1x128xf32>
    %c0_24 = arith.constant 0 : index
    %c0_25 = arith.constant 0 : index
    %23 = vector.load %arg5[%c0_24, %c0_25] : memref<1x128xf32, #tpu.memory_space<vmem>>, vector<1x128xf32>
    %24 = arith.mulf %12, %22 : vector<1x128xf32>
    %25 = arith.subf %23, %24 : vector<1x128xf32>
    %26 = vector.shape_cast %22 : vector<1x128xf32> to vector<1x1x128xf32>
    %27 = vector.shape_cast %25 : vector<1x128xf32> to vector<1x1x128xf32>
    %c0_26 = arith.constant 0 : index
    %c0_27 = arith.constant 0 : index
    %c0_28 = arith.constant 0 : index
    %c0_29 = arith.constant 0 : index
    %28 = vector.load %arg9[%c0_26, %c0_27, %c0_28, %c0_29] : memref<2x14x14x128xf32, #tpu.memory_space<vmem>>, vector<1x14x14x128xf32>
    %29 = vector.shape_cast %28 : vector<1x14x14x128xf32> to vector<14x14x128xf32>
    %30 = vector.broadcast %26 : vector<1x1x128xf32> to vector<14x14x128xf32>
    %31 = arith.mulf %29, %30 : vector<14x14x128xf32>
    %32 = vector.broadcast %27 : vector<1x1x128xf32> to vector<14x14x128xf32>
    %33 = arith.addf %31, %32 : vector<14x14x128xf32>
    %cst_30 = arith.constant 0.000000e+00 : f32
    %34 = vector.broadcast %cst_30 : f32 to vector<14x14x128xf32>
    %35 = arith.maximumf %33, %34 : vector<14x14x128xf32>
    %c0_31 = arith.constant 0 : index
    %c0_32 = arith.constant 0 : index
    %c0_33 = arith.constant 0 : index
    %c0_34 = arith.constant 0 : index
    %36 = vector.load %arg9[%c0_31, %c0_32, %c0_33, %c0_34] : memref<2x14x14x128xf32, #tpu.memory_space<vmem>>, vector<1x14x14x128xf32>
    %37 = vector.shape_cast %36 : vector<1x14x14x128xf32> to vector<14x14x128xf32>
    %38 = vector.shape_cast %35 : vector<14x14x128xf32> to vector<1x14x14x128xf32>
    tpu.vector_store %arg9[%c0_31, %c0_32, %c0_33, %c0_34], %38 {strides = array<i32>} : memref<2x14x14x128xf32, #tpu.memory_space<vmem>>, vector<1x14x14x128xf32>,
    %c1 = arith.constant 1 : index
    %c0_35 = arith.constant 0 : index
    %c0_36 = arith.constant 0 : index
    %c0_37 = arith.constant 0 : index
    %39 = vector.load %arg9[%c1, %c0_35, %c0_36, %c0_37] : memref<2x14x14x128xf32, #tpu.memory_space<vmem>>, vector<1x14x14x128xf32>
    %40 = vector.shape_cast %39 : vector<1x14x14x128xf32> to vector<14x14x128xf32>
    %41 = vector.broadcast %26 : vector<1x1x128xf32> to vector<14x14x128xf32>
    %42 = arith.mulf %40, %41 : vector<14x14x128xf32>
    %43 = vector.broadcast %27 : vector<1x1x128xf32> to vector<14x14x128xf32>
    %44 = arith.addf %42, %43 : vector<14x14x128xf32>
    %cst_38 = arith.constant 0.000000e+00 : f32
    %45 = vector.broadcast %cst_38 : f32 to vector<14x14x128xf32>
    %46 = arith.maximumf %44, %45 : vector<14x14x128xf32>
    %c1_39 = arith.constant 1 : index
    %c0_40 = arith.constant 0 : index
    %c0_41 = arith.constant 0 : index
    %c0_42 = arith.constant 0 : index
    %47 = vector.load %arg9[%c1_39, %c0_40, %c0_41, %c0_42] : memref<2x14x14x128xf32, #tpu.memory_space<vmem>>, vector<1x14x14x128xf32>
    %48 = vector.shape_cast %47 : vector<1x14x14x128xf32> to vector<14x14x128xf32>
    %49 = vector.shape_cast %46 : vector<14x14x128xf32> to vector<1x14x14x128xf32>
    tpu.vector_store %arg9[%c1_39, %c0_40, %c0_41, %c0_42], %49 {strides = array<i32>} : memref<2x14x14x128xf32, #tpu.memory_space<vmem>>, vector<1x14x14x128xf32>,
    %c0_i32_43 = arith.constant 0 : i32
    %c12_i32 = arith.constant 12 : i32
    %50 = arith.addi %c0_i32_43, %c12_i32 : i32
    %c1_i32_44 = arith.constant 1 : i32
    scf.for %arg15 = %c0_i32_43 to %50 step %c1_i32_44  : i32 {
      %cst_525 = arith.constant 0.000000e+00 : f32
      %584 = vector.broadcast %cst_525 : f32 to vector<12x128xf32>
      %c0_i32_526 = arith.constant 0 : i32
      %585 = arith.addi %arg15, %c0_i32_526 : i32
      %c0_527 = arith.constant 0 : index
      %586 = arith.index_cast %585 : i32 to index
      %c0_528 = arith.constant 0 : index
      %c0_529 = arith.constant 0 : index
      %587 = vector.load %arg9[%c0_527, %586, %c0_528, %c0_529] : memref<2x14x14x128xf32, #tpu.memory_space<vmem>>, vector<1x1x12x128xf32>
      %588 = vector.shape_cast %587 : vector<1x1x12x128xf32> to vector<12x128xf32>
      %c0_i32_530 = arith.constant 0 : i32
      %589 = arith.addi %arg15, %c0_i32_530 : i32
      %c0_531 = arith.constant 0 : index
      %590 = arith.index_cast %589 : i32 to index
      %c1_532 = arith.constant 1 : index
      %c0_533 = arith.constant 0 : index
      %591 = vector.load %arg9[%c0_531, %590, %c1_532, %c0_533] : memref<2x14x14x128xf32, #tpu.memory_space<vmem>>, vector<1x1x12x128xf32>
      %592 = vector.shape_cast %591 : vector<1x1x12x128xf32> to vector<12x128xf32>
      %c0_i32_534 = arith.constant 0 : i32
      %593 = arith.addi %arg15, %c0_i32_534 : i32
      %c0_535 = arith.constant 0 : index
      %594 = arith.index_cast %593 : i32 to index
      %c2_536 = arith.constant 2 : index
      %c0_537 = arith.constant 0 : index
      %595 = vector.load %arg9[%c0_535, %594, %c2_536, %c0_537] : memref<2x14x14x128xf32, #tpu.memory_space<vmem>>, vector<1x1x12x128xf32>
      %596 = vector.shape_cast %595 : vector<1x1x12x128xf32> to vector<12x128xf32>
      %597 = tpu.concatenate %588, %592, %596 in 1 : vector<12x128xf32>, vector<12x128xf32>, vector<12x128xf32> -> vector<12x384xf32>
      %598 = arith.truncf %597 : vector<12x384xf32> to vector<12x384xbf16>
      %c0_538 = arith.constant 0 : index
      %c0_539 = arith.constant 0 : index
      %c0_540 = arith.constant 0 : index
      %599 = vector.load %arg3[%c0_538, %c0_539, %c0_540] : memref<3x384x128xbf16, #tpu.memory_space<vmem>>, vector<1x384x128xbf16>
      %600 = vector.shape_cast %599 : vector<1x384x128xbf16> to vector<384x128xbf16>
      %cst_541 = arith.constant dense<0.000000e+00> : vector<12x128xf32>
      %601 = tpu.matmul %598, %600, %cst_541 {dimension_numbers = #tpu.dot_dimension_numbers<[1], [0], [0], [1], [0, 0, 1, 1], [], []>} : vector<12x384xbf16>, vector<384x128xbf16>, vector<12x128xf32> -> vector<12x128xf32>
      %602 = arith.addf %584, %601 : vector<12x128xf32>
      %c1_i32_542 = arith.constant 1 : i32
      %603 = arith.addi %arg15, %c1_i32_542 : i32
      %c0_543 = arith.constant 0 : index
      %604 = arith.index_cast %603 : i32 to index
      %c0_544 = arith.constant 0 : index
      %c0_545 = arith.constant 0 : index
      %605 = vector.load %arg9[%c0_543, %604, %c0_544, %c0_545] : memref<2x14x14x128xf32, #tpu.memory_space<vmem>>, vector<1x1x12x128xf32>
      %606 = vector.shape_cast %605 : vector<1x1x12x128xf32> to vector<12x128xf32>
      %c1_i32_546 = arith.constant 1 : i32
      %607 = arith.addi %arg15, %c1_i32_546 : i32
      %c0_547 = arith.constant 0 : index
      %608 = arith.index_cast %607 : i32 to index
      %c1_548 = arith.constant 1 : index
      %c0_549 = arith.constant 0 : index
      %609 = vector.load %arg9[%c0_547, %608, %c1_548, %c0_549] : memref<2x14x14x128xf32, #tpu.memory_space<vmem>>, vector<1x1x12x128xf32>
      %610 = vector.shape_cast %609 : vector<1x1x12x128xf32> to vector<12x128xf32>
      %c1_i32_550 = arith.constant 1 : i32
      %611 = arith.addi %arg15, %c1_i32_550 : i32
      %c0_551 = arith.constant 0 : index
      %612 = arith.index_cast %611 : i32 to index
      %c2_552 = arith.constant 2 : index
      %c0_553 = arith.constant 0 : index
      %613 = vector.load %arg9[%c0_551, %612, %c2_552, %c0_553] : memref<2x14x14x128xf32, #tpu.memory_space<vmem>>, vector<1x1x12x128xf32>
      %614 = vector.shape_cast %613 : vector<1x1x12x128xf32> to vector<12x128xf32>
      %615 = tpu.concatenate %606, %610, %614 in 1 : vector<12x128xf32>, vector<12x128xf32>, vector<12x128xf32> -> vector<12x384xf32>
      %616 = arith.truncf %615 : vector<12x384xf32> to vector<12x384xbf16>
      %c1_554 = arith.constant 1 : index
      %c0_555 = arith.constant 0 : index
      %c0_556 = arith.constant 0 : index
      %617 = vector.load %arg3[%c1_554, %c0_555, %c0_556] : memref<3x384x128xbf16, #tpu.memory_space<vmem>>, vector<1x384x128xbf16>
      %618 = vector.shape_cast %617 : vector<1x384x128xbf16> to vector<384x128xbf16>
      %cst_557 = arith.constant dense<0.000000e+00> : vector<12x128xf32>
      %619 = tpu.matmul %616, %618, %cst_557 {dimension_numbers = #tpu.dot_dimension_numbers<[1], [0], [0], [1], [0, 0, 1, 1], [], []>} : vector<12x384xbf16>, vector<384x128xbf16>, vector<12x128xf32> -> vector<12x128xf32>
      %620 = arith.addf %602, %619 : vector<12x128xf32>
      %c2_i32 = arith.constant 2 : i32
      %621 = arith.addi %arg15, %c2_i32 : i32
      %c0_558 = arith.constant 0 : index
      %622 = arith.index_cast %621 : i32 to index
      %c0_559 = arith.constant 0 : index
      %c0_560 = arith.constant 0 : index
      %623 = vector.load %arg9[%c0_558, %622, %c0_559, %c0_560] : memref<2x14x14x128xf32, #tpu.memory_space<vmem>>, vector<1x1x12x128xf32>
      %624 = vector.shape_cast %623 : vector<1x1x12x128xf32> to vector<12x128xf32>
      %c2_i32_561 = arith.constant 2 : i32
      %625 = arith.addi %arg15, %c2_i32_561 : i32
      %c0_562 = arith.constant 0 : index
      %626 = arith.index_cast %625 : i32 to index
      %c1_563 = arith.constant 1 : index
      %c0_564 = arith.constant 0 : index
      %627 = vector.load %arg9[%c0_562, %626, %c1_563, %c0_564] : memref<2x14x14x128xf32, #tpu.memory_space<vmem>>, vector<1x1x12x128xf32>
      %628 = vector.shape_cast %627 : vector<1x1x12x128xf32> to vector<12x128xf32>
      %c2_i32_565 = arith.constant 2 : i32
      %629 = arith.addi %arg15, %c2_i32_565 : i32
      %c0_566 = arith.constant 0 : index
      %630 = arith.index_cast %629 : i32 to index
      %c2_567 = arith.constant 2 : index
      %c0_568 = arith.constant 0 : index
      %631 = vector.load %arg9[%c0_566, %630, %c2_567, %c0_568] : memref<2x14x14x128xf32, #tpu.memory_space<vmem>>, vector<1x1x12x128xf32>
      %632 = vector.shape_cast %631 : vector<1x1x12x128xf32> to vector<12x128xf32>
      %633 = tpu.concatenate %624, %628, %632 in 1 : vector<12x128xf32>, vector<12x128xf32>, vector<12x128xf32> -> vector<12x384xf32>
      %634 = arith.truncf %633 : vector<12x384xf32> to vector<12x384xbf16>
      %c2_569 = arith.constant 2 : index
      %c0_570 = arith.constant 0 : index
      %c0_571 = arith.constant 0 : index
      %635 = vector.load %arg3[%c2_569, %c0_570, %c0_571] : memref<3x384x128xbf16, #tpu.memory_space<vmem>>, vector<1x384x128xbf16>
      %636 = vector.shape_cast %635 : vector<1x384x128xbf16> to vector<384x128xbf16>
      %cst_572 = arith.constant dense<0.000000e+00> : vector<12x128xf32>
      %637 = tpu.matmul %634, %636, %cst_572 {dimension_numbers = #tpu.dot_dimension_numbers<[1], [0], [0], [1], [0, 0, 1, 1], [], []>} : vector<12x384xbf16>, vector<384x128xbf16>, vector<12x128xf32> -> vector<12x128xf32>
      %638 = arith.addf %620, %637 : vector<12x128xf32>
      %c0_573 = arith.constant 0 : index
      %639 = arith.index_cast %arg15 : i32 to index
      %c0_574 = arith.constant 0 : index
      %c0_575 = arith.constant 0 : index
      %640 = vector.load %arg10[%c0_573, %639, %c0_574, %c0_575] : memref<2x12x12x128xf32, #tpu.memory_space<vmem>>, vector<1x1x12x128xf32>
      %641 = vector.shape_cast %640 : vector<1x1x12x128xf32> to vector<12x128xf32>
      %642 = vector.shape_cast %638 : vector<12x128xf32> to vector<1x1x12x128xf32>
      tpu.vector_store %arg10[%c0_573, %639, %c0_574, %c0_575], %642 {strides = array<i32>} : memref<2x12x12x128xf32, #tpu.memory_space<vmem>>, vector<1x1x12x128xf32>,
      %c0_576 = arith.constant 0 : index
      %c0_577 = arith.constant 0 : index
      %643 = vector.load %arg13[%c0_576, %c0_577] : memref<1x128xf32, #tpu.memory_space<vmem>>, vector<1x128xf32>
      %cst_578 = arith.constant dense<0.000000e+00> : vector<128xf32>
      %644 = vector.multi_reduction <add>, %638, %cst_578 [0] : vector<12x128xf32> to vector<128xf32>
      %645 = vector.shape_cast %644 : vector<128xf32> to vector<1x128xf32>
      %646 = arith.addf %643, %645 : vector<1x128xf32>
      %c0_579 = arith.constant 0 : index
      %c0_580 = arith.constant 0 : index
      %647 = vector.load %arg13[%c0_579, %c0_580] : memref<1x128xf32, #tpu.memory_space<vmem>>, vector<1x128xf32>
      tpu.vector_store %arg13[%c0_579, %c0_580], %646 {strides = array<i32>} : memref<1x128xf32, #tpu.memory_space<vmem>>, vector<1x128xf32>,
      %c0_581 = arith.constant 0 : index
      %c0_582 = arith.constant 0 : index
      %648 = vector.load %arg14[%c0_581, %c0_582] : memref<1x128xf32, #tpu.memory_space<vmem>>, vector<1x128xf32>
      %649 = arith.mulf %638, %638 : vector<12x128xf32>
      %cst_583 = arith.constant dense<0.000000e+00> : vector<128xf32>
      %650 = vector.multi_reduction <add>, %649, %cst_583 [0] : vector<12x128xf32> to vector<128xf32>
      %651 = vector.shape_cast %650 : vector<128xf32> to vector<1x128xf32>
      %652 = arith.addf %648, %651 : vector<1x128xf32>
      %c0_584 = arith.constant 0 : index
      %c0_585 = arith.constant 0 : index
      %653 = vector.load %arg14[%c0_584, %c0_585] : memref<1x128xf32, #tpu.memory_space<vmem>>, vector<1x128xf32>
      tpu.vector_store %arg14[%c0_584, %c0_585], %652 {strides = array<i32>} : memref<1x128xf32, #tpu.memory_space<vmem>>, vector<1x128xf32>,
    }
    %c12_i32_45 = arith.constant 12 : i32
    %c0_i32_46 = arith.constant 0 : i32
    %c12_i32_47 = arith.constant 12 : i32
    %51 = arith.addi %c0_i32_46, %c12_i32_47 : i32
    %c1_i32_48 = arith.constant 1 : i32
    scf.for %arg15 = %c0_i32_46 to %51 step %c1_i32_48  : i32 {
      %cst_525 = arith.constant 0.000000e+00 : f32
      %584 = vector.broadcast %cst_525 : f32 to vector<12x128xf32>
      %c0_i32_526 = arith.constant 0 : i32
      %585 = arith.addi %arg15, %c0_i32_526 : i32
      %c1_527 = arith.constant 1 : index
      %586 = arith.index_cast %585 : i32 to index
      %c0_528 = arith.constant 0 : index
      %c0_529 = arith.constant 0 : index
      %587 = vector.load %arg9[%c1_527, %586, %c0_528, %c0_529] : memref<2x14x14x128xf32, #tpu.memory_space<vmem>>, vector<1x1x12x128xf32>
      %588 = vector.shape_cast %587 : vector<1x1x12x128xf32> to vector<12x128xf32>
      %c0_i32_530 = arith.constant 0 : i32
      %589 = arith.addi %arg15, %c0_i32_530 : i32
      %c1_531 = arith.constant 1 : index
      %590 = arith.index_cast %589 : i32 to index
      %c1_532 = arith.constant 1 : index
      %c0_533 = arith.constant 0 : index
      %591 = vector.load %arg9[%c1_531, %590, %c1_532, %c0_533] : memref<2x14x14x128xf32, #tpu.memory_space<vmem>>, vector<1x1x12x128xf32>
      %592 = vector.shape_cast %591 : vector<1x1x12x128xf32> to vector<12x128xf32>
      %c0_i32_534 = arith.constant 0 : i32
      %593 = arith.addi %arg15, %c0_i32_534 : i32
      %c1_535 = arith.constant 1 : index
      %594 = arith.index_cast %593 : i32 to index
      %c2_536 = arith.constant 2 : index
      %c0_537 = arith.constant 0 : index
      %595 = vector.load %arg9[%c1_535, %594, %c2_536, %c0_537] : memref<2x14x14x128xf32, #tpu.memory_space<vmem>>, vector<1x1x12x128xf32>
      %596 = vector.shape_cast %595 : vector<1x1x12x128xf32> to vector<12x128xf32>
      %597 = tpu.concatenate %588, %592, %596 in 1 : vector<12x128xf32>, vector<12x128xf32>, vector<12x128xf32> -> vector<12x384xf32>
      %598 = arith.truncf %597 : vector<12x384xf32> to vector<12x384xbf16>
      %c0_538 = arith.constant 0 : index
      %c0_539 = arith.constant 0 : index
      %c0_540 = arith.constant 0 : index
      %599 = vector.load %arg3[%c0_538, %c0_539, %c0_540] : memref<3x384x128xbf16, #tpu.memory_space<vmem>>, vector<1x384x128xbf16>
      %600 = vector.shape_cast %599 : vector<1x384x128xbf16> to vector<384x128xbf16>
      %cst_541 = arith.constant dense<0.000000e+00> : vector<12x128xf32>
      %601 = tpu.matmul %598, %600, %cst_541 {dimension_numbers = #tpu.dot_dimension_numbers<[1], [0], [0], [1], [0, 0, 1, 1], [], []>} : vector<12x384xbf16>, vector<384x128xbf16>, vector<12x128xf32> -> vector<12x128xf32>
      %602 = arith.addf %584, %601 : vector<12x128xf32>
      %c1_i32_542 = arith.constant 1 : i32
      %603 = arith.addi %arg15, %c1_i32_542 : i32
      %c1_543 = arith.constant 1 : index
      %604 = arith.index_cast %603 : i32 to index
      %c0_544 = arith.constant 0 : index
      %c0_545 = arith.constant 0 : index
      %605 = vector.load %arg9[%c1_543, %604, %c0_544, %c0_545] : memref<2x14x14x128xf32, #tpu.memory_space<vmem>>, vector<1x1x12x128xf32>
      %606 = vector.shape_cast %605 : vector<1x1x12x128xf32> to vector<12x128xf32>
      %c1_i32_546 = arith.constant 1 : i32
      %607 = arith.addi %arg15, %c1_i32_546 : i32
      %c1_547 = arith.constant 1 : index
      %608 = arith.index_cast %607 : i32 to index
      %c1_548 = arith.constant 1 : index
      %c0_549 = arith.constant 0 : index
      %609 = vector.load %arg9[%c1_547, %608, %c1_548, %c0_549] : memref<2x14x14x128xf32, #tpu.memory_space<vmem>>, vector<1x1x12x128xf32>
      %610 = vector.shape_cast %609 : vector<1x1x12x128xf32> to vector<12x128xf32>
      %c1_i32_550 = arith.constant 1 : i32
      %611 = arith.addi %arg15, %c1_i32_550 : i32
      %c1_551 = arith.constant 1 : index
      %612 = arith.index_cast %611 : i32 to index
      %c2_552 = arith.constant 2 : index
      %c0_553 = arith.constant 0 : index
      %613 = vector.load %arg9[%c1_551, %612, %c2_552, %c0_553] : memref<2x14x14x128xf32, #tpu.memory_space<vmem>>, vector<1x1x12x128xf32>
      %614 = vector.shape_cast %613 : vector<1x1x12x128xf32> to vector<12x128xf32>
      %615 = tpu.concatenate %606, %610, %614 in 1 : vector<12x128xf32>, vector<12x128xf32>, vector<12x128xf32> -> vector<12x384xf32>
      %616 = arith.truncf %615 : vector<12x384xf32> to vector<12x384xbf16>
      %c1_554 = arith.constant 1 : index
      %c0_555 = arith.constant 0 : index
      %c0_556 = arith.constant 0 : index
      %617 = vector.load %arg3[%c1_554, %c0_555, %c0_556] : memref<3x384x128xbf16, #tpu.memory_space<vmem>>, vector<1x384x128xbf16>
      %618 = vector.shape_cast %617 : vector<1x384x128xbf16> to vector<384x128xbf16>
      %cst_557 = arith.constant dense<0.000000e+00> : vector<12x128xf32>
      %619 = tpu.matmul %616, %618, %cst_557 {dimension_numbers = #tpu.dot_dimension_numbers<[1], [0], [0], [1], [0, 0, 1, 1], [], []>} : vector<12x384xbf16>, vector<384x128xbf16>, vector<12x128xf32> -> vector<12x128xf32>
      %620 = arith.addf %602, %619 : vector<12x128xf32>
      %c2_i32 = arith.constant 2 : i32
      %621 = arith.addi %arg15, %c2_i32 : i32
      %c1_558 = arith.constant 1 : index
      %622 = arith.index_cast %621 : i32 to index
      %c0_559 = arith.constant 0 : index
      %c0_560 = arith.constant 0 : index
      %623 = vector.load %arg9[%c1_558, %622, %c0_559, %c0_560] : memref<2x14x14x128xf32, #tpu.memory_space<vmem>>, vector<1x1x12x128xf32>
      %624 = vector.shape_cast %623 : vector<1x1x12x128xf32> to vector<12x128xf32>
      %c2_i32_561 = arith.constant 2 : i32
      %625 = arith.addi %arg15, %c2_i32_561 : i32
      %c1_562 = arith.constant 1 : index
      %626 = arith.index_cast %625 : i32 to index
      %c1_563 = arith.constant 1 : index
      %c0_564 = arith.constant 0 : index
      %627 = vector.load %arg9[%c1_562, %626, %c1_563, %c0_564] : memref<2x14x14x128xf32, #tpu.memory_space<vmem>>, vector<1x1x12x128xf32>
      %628 = vector.shape_cast %627 : vector<1x1x12x128xf32> to vector<12x128xf32>
      %c2_i32_565 = arith.constant 2 : i32
      %629 = arith.addi %arg15, %c2_i32_565 : i32
      %c1_566 = arith.constant 1 : index
      %630 = arith.index_cast %629 : i32 to index
      %c2_567 = arith.constant 2 : index
      %c0_568 = arith.constant 0 : index
      %631 = vector.load %arg9[%c1_566, %630, %c2_567, %c0_568] : memref<2x14x14x128xf32, #tpu.memory_space<vmem>>, vector<1x1x12x128xf32>
      %632 = vector.shape_cast %631 : vector<1x1x12x128xf32> to vector<12x128xf32>
      %633 = tpu.concatenate %624, %628, %632 in 1 : vector<12x128xf32>, vector<12x128xf32>, vector<12x128xf32> -> vector<12x384xf32>
      %634 = arith.truncf %633 : vector<12x384xf32> to vector<12x384xbf16>
      %c2_569 = arith.constant 2 : index
      %c0_570 = arith.constant 0 : index
      %c0_571 = arith.constant 0 : index
      %635 = vector.load %arg3[%c2_569, %c0_570, %c0_571] : memref<3x384x128xbf16, #tpu.memory_space<vmem>>, vector<1x384x128xbf16>
      %636 = vector.shape_cast %635 : vector<1x384x128xbf16> to vector<384x128xbf16>
      %cst_572 = arith.constant dense<0.000000e+00> : vector<12x128xf32>
      %637 = tpu.matmul %634, %636, %cst_572 {dimension_numbers = #tpu.dot_dimension_numbers<[1], [0], [0], [1], [0, 0, 1, 1], [], []>} : vector<12x384xbf16>, vector<384x128xbf16>, vector<12x128xf32> -> vector<12x128xf32>
      %638 = arith.addf %620, %637 : vector<12x128xf32>
      %c1_573 = arith.constant 1 : index
      %639 = arith.index_cast %arg15 : i32 to index
      %c0_574 = arith.constant 0 : index
      %c0_575 = arith.constant 0 : index
      %640 = vector.load %arg10[%c1_573, %639, %c0_574, %c0_575] : memref<2x12x12x128xf32, #tpu.memory_space<vmem>>, vector<1x1x12x128xf32>
      %641 = vector.shape_cast %640 : vector<1x1x12x128xf32> to vector<12x128xf32>
      %642 = vector.shape_cast %638 : vector<12x128xf32> to vector<1x1x12x128xf32>
      tpu.vector_store %arg10[%c1_573, %639, %c0_574, %c0_575], %642 {strides = array<i32>} : memref<2x12x12x128xf32, #tpu.memory_space<vmem>>, vector<1x1x12x128xf32>,
      %c0_576 = arith.constant 0 : index
      %c0_577 = arith.constant 0 : index
      %643 = vector.load %arg13[%c0_576, %c0_577] : memref<1x128xf32, #tpu.memory_space<vmem>>, vector<1x128xf32>
      %cst_578 = arith.constant dense<0.000000e+00> : vector<128xf32>
      %644 = vector.multi_reduction <add>, %638, %cst_578 [0] : vector<12x128xf32> to vector<128xf32>
      %645 = vector.shape_cast %644 : vector<128xf32> to vector<1x128xf32>
      %646 = arith.addf %643, %645 : vector<1x128xf32>
      %c0_579 = arith.constant 0 : index
      %c0_580 = arith.constant 0 : index
      %647 = vector.load %arg13[%c0_579, %c0_580] : memref<1x128xf32, #tpu.memory_space<vmem>>, vector<1x128xf32>
      tpu.vector_store %arg13[%c0_579, %c0_580], %646 {strides = array<i32>} : memref<1x128xf32, #tpu.memory_space<vmem>>, vector<1x128xf32>,
      %c0_581 = arith.constant 0 : index
      %c0_582 = arith.constant 0 : index
      %648 = vector.load %arg14[%c0_581, %c0_582] : memref<1x128xf32, #tpu.memory_space<vmem>>, vector<1x128xf32>
      %649 = arith.mulf %638, %638 : vector<12x128xf32>
      %cst_583 = arith.constant dense<0.000000e+00> : vector<128xf32>
      %650 = vector.multi_reduction <add>, %649, %cst_583 [0] : vector<12x128xf32> to vector<128xf32>
      %651 = vector.shape_cast %650 : vector<128xf32> to vector<1x128xf32>
      %652 = arith.addf %648, %651 : vector<1x128xf32>
      %c0_584 = arith.constant 0 : index
      %c0_585 = arith.constant 0 : index
      %653 = vector.load %arg14[%c0_584, %c0_585] : memref<1x128xf32, #tpu.memory_space<vmem>>, vector<1x128xf32>
      tpu.vector_store %arg14[%c0_584, %c0_585], %652 {strides = array<i32>} : memref<1x128xf32, #tpu.memory_space<vmem>>, vector<1x128xf32>,
    }
    %c12_i32_49 = arith.constant 12 : i32
    %c0_50 = arith.constant 0 : index
    %c0_51 = arith.constant 0 : index
    %52 = vector.load %arg13[%c0_50, %c0_51] : memref<1x128xf32, #tpu.memory_space<vmem>>, vector<1x128xf32>
    %cst_52 = arith.constant 0.00347222225 : f32
    %53 = vector.broadcast %cst_52 : f32 to vector<1x128xf32>
    %54 = arith.mulf %52, %53 : vector<1x128xf32>
    %c0_53 = arith.constant 0 : index
    %c0_54 = arith.constant 0 : index
    %55 = vector.load %arg14[%c0_53, %c0_54] : memref<1x128xf32, #tpu.memory_space<vmem>>, vector<1x128xf32>
    %cst_55 = arith.constant 0.00347222225 : f32
    %56 = vector.broadcast %cst_55 : f32 to vector<1x128xf32>
    %57 = arith.mulf %55, %56 : vector<1x128xf32>
    %58 = arith.mulf %54, %54 : vector<1x128xf32>
    %59 = arith.subf %57, %58 : vector<1x128xf32>
    %c0_56 = arith.constant 0 : index
    %c0_57 = arith.constant 0 : index
    %60 = vector.load %arg6[%c0_56, %c0_57] : memref<1x128xf32, #tpu.memory_space<vmem>>, vector<1x128xf32>
    %cst_58 = arith.constant 9.99999974E-6 : f32
    %61 = vector.broadcast %cst_58 : f32 to vector<1x128xf32>
    %62 = arith.addf %59, %61 : vector<1x128xf32>
    %63 = math.rsqrt %62 : vector<1x128xf32>
    %64 = arith.mulf %60, %63 : vector<1x128xf32>
    %c0_59 = arith.constant 0 : index
    %c0_60 = arith.constant 0 : index
    %65 = vector.load %arg7[%c0_59, %c0_60] : memref<1x128xf32, #tpu.memory_space<vmem>>, vector<1x128xf32>
    %66 = arith.mulf %54, %64 : vector<1x128xf32>
    %67 = arith.subf %65, %66 : vector<1x128xf32>
    %68 = vector.shape_cast %64 : vector<1x128xf32> to vector<1x1x128xf32>
    %69 = vector.shape_cast %67 : vector<1x128xf32> to vector<1x1x128xf32>
    %c0_61 = arith.constant 0 : index
    %c0_62 = arith.constant 0 : index
    %c0_63 = arith.constant 0 : index
    %c0_64 = arith.constant 0 : index
    %70 = vector.load %arg10[%c0_61, %c0_62, %c0_63, %c0_64] : memref<2x12x12x128xf32, #tpu.memory_space<vmem>>, vector<1x12x12x128xf32>
    %71 = vector.shape_cast %70 : vector<1x12x12x128xf32> to vector<12x12x128xf32>
    %72 = vector.broadcast %68 : vector<1x1x128xf32> to vector<12x12x128xf32>
    %73 = arith.mulf %71, %72 : vector<12x12x128xf32>
    %74 = vector.broadcast %69 : vector<1x1x128xf32> to vector<12x12x128xf32>
    %75 = arith.addf %73, %74 : vector<12x12x128xf32>
    %cst_65 = arith.constant 0.000000e+00 : f32
    %76 = vector.broadcast %cst_65 : f32 to vector<12x12x128xf32>
    %77 = arith.maximumf %75, %76 : vector<12x12x128xf32>
    %c0_66 = arith.constant 0 : index
    %c0_67 = arith.constant 0 : index
    %c0_68 = arith.constant 0 : index
    %c0_69 = arith.constant 0 : index
    %78 = vector.load %arg10[%c0_66, %c0_67, %c0_68, %c0_69] : memref<2x12x12x128xf32, #tpu.memory_space<vmem>>, vector<1x12x12x128xf32>
    %79 = vector.shape_cast %78 : vector<1x12x12x128xf32> to vector<12x12x128xf32>
    %80 = vector.shape_cast %77 : vector<12x12x128xf32> to vector<1x12x12x128xf32>
    tpu.vector_store %arg10[%c0_66, %c0_67, %c0_68, %c0_69], %80 {strides = array<i32>} : memref<2x12x12x128xf32, #tpu.memory_space<vmem>>, vector<1x12x12x128xf32>,
    %c1_70 = arith.constant 1 : index
    %c0_71 = arith.constant 0 : index
    %c0_72 = arith.constant 0 : index
    %c0_73 = arith.constant 0 : index
    %81 = vector.load %arg10[%c1_70, %c0_71, %c0_72, %c0_73] : memref<2x12x12x128xf32, #tpu.memory_space<vmem>>, vector<1x12x12x128xf32>
    %82 = vector.shape_cast %81 : vector<1x12x12x128xf32> to vector<12x12x128xf32>
    %83 = vector.broadcast %68 : vector<1x1x128xf32> to vector<12x12x128xf32>
    %84 = arith.mulf %82, %83 : vector<12x12x128xf32>
    %85 = vector.broadcast %69 : vector<1x1x128xf32> to vector<12x12x128xf32>
    %86 = arith.addf %84, %85 : vector<12x12x128xf32>
    %cst_74 = arith.constant 0.000000e+00 : f32
    %87 = vector.broadcast %cst_74 : f32 to vector<12x12x128xf32>
    %88 = arith.maximumf %86, %87 : vector<12x12x128xf32>
    %c1_75 = arith.constant 1 : index
    %c0_76 = arith.constant 0 : index
    %c0_77 = arith.constant 0 : index
    %c0_78 = arith.constant 0 : index
    %89 = vector.load %arg10[%c1_75, %c0_76, %c0_77, %c0_78] : memref<2x12x12x128xf32, #tpu.memory_space<vmem>>, vector<1x12x12x128xf32>
    %90 = vector.shape_cast %89 : vector<1x12x12x128xf32> to vector<12x12x128xf32>
    %91 = vector.shape_cast %88 : vector<12x12x128xf32> to vector<1x12x12x128xf32>
    tpu.vector_store %arg10[%c1_75, %c0_76, %c0_77, %c0_78], %91 {strides = array<i32>} : memref<2x12x12x128xf32, #tpu.memory_space<vmem>>, vector<1x12x12x128xf32>,
    %c0_79 = arith.constant 0 : index
    %c0_80 = arith.constant 0 : index
    %c0_81 = arith.constant 0 : index
    %c0_82 = arith.constant 0 : index
    %92 = vector.load %arg10[%c0_79, %c0_80, %c0_81, %c0_82] : memref<2x12x12x128xf32, #tpu.memory_space<vmem>>, vector<1x1x12x128xf32>
    %93 = vector.shape_cast %92 : vector<1x1x12x128xf32> to vector<12x128xf32>
    %c0_83 = arith.constant 0 : index
    %c1_84 = arith.constant 1 : index
    %c0_85 = arith.constant 0 : index
    %c0_86 = arith.constant 0 : index
    %94 = vector.load %arg10[%c0_83, %c1_84, %c0_85, %c0_86] : memref<2x12x12x128xf32, #tpu.memory_space<vmem>>, vector<1x1x12x128xf32>
    %95 = vector.shape_cast %94 : vector<1x1x12x128xf32> to vector<12x128xf32>
    %96 = arith.maximumf %93, %95 : vector<12x128xf32>
    %97 = vector.extract_strided_slice %96 {offsets = [0, 0], sizes = [2, 128], strides = [1, 1]} : vector<12x128xf32> to vector<2x128xf32>
    %cst_87 = arith.constant dense<0xFF800000> : vector<128xf32>
    %98 = vector.multi_reduction <maximumf>, %97, %cst_87 [0] : vector<2x128xf32> to vector<128xf32>
    %99 = vector.shape_cast %98 : vector<128xf32> to vector<1x128xf32>
    %c0_88 = arith.constant 0 : index
    %c0_89 = arith.constant 0 : index
    %c0_90 = arith.constant 0 : index
    %c0_91 = arith.constant 0 : index
    %100 = vector.load %arg8[%c0_88, %c0_89, %c0_90, %c0_91] : memref<2x6x6x128xf32, #tpu.memory_space<vmem>>, vector<1x1x1x128xf32>
    %101 = vector.shape_cast %100 : vector<1x1x1x128xf32> to vector<1x128xf32>
    %102 = vector.shape_cast %99 : vector<1x128xf32> to vector<1x1x1x128xf32>
    tpu.vector_store %arg8[%c0_88, %c0_89, %c0_90, %c0_91], %102 {strides = array<i32>} : memref<2x6x6x128xf32, #tpu.memory_space<vmem>>, vector<1x1x1x128xf32>,
    %103 = vector.extract_strided_slice %96 {offsets = [2, 0], sizes = [2, 128], strides = [1, 1]} : vector<12x128xf32> to vector<2x128xf32>
    %cst_92 = arith.constant dense<0xFF800000> : vector<128xf32>
    %104 = vector.multi_reduction <maximumf>, %103, %cst_92 [0] : vector<2x128xf32> to vector<128xf32>
    %105 = vector.shape_cast %104 : vector<128xf32> to vector<1x128xf32>
    %c0_93 = arith.constant 0 : index
    %c0_94 = arith.constant 0 : index
    %c1_95 = arith.constant 1 : index
    %c0_96 = arith.constant 0 : index
    %106 = vector.load %arg8[%c0_93, %c0_94, %c1_95, %c0_96] : memref<2x6x6x128xf32, #tpu.memory_space<vmem>>, vector<1x1x1x128xf32>
    %107 = vector.shape_cast %106 : vector<1x1x1x128xf32> to vector<1x128xf32>
    %108 = vector.shape_cast %105 : vector<1x128xf32> to vector<1x1x1x128xf32>
    tpu.vector_store %arg8[%c0_93, %c0_94, %c1_95, %c0_96], %108 {strides = array<i32>} : memref<2x6x6x128xf32, #tpu.memory_space<vmem>>, vector<1x1x1x128xf32>,
    %109 = vector.extract_strided_slice %96 {offsets = [4, 0], sizes = [2, 128], strides = [1, 1]} : vector<12x128xf32> to vector<2x128xf32>
    %cst_97 = arith.constant dense<0xFF800000> : vector<128xf32>
    %110 = vector.multi_reduction <maximumf>, %109, %cst_97 [0] : vector<2x128xf32> to vector<128xf32>
    %111 = vector.shape_cast %110 : vector<128xf32> to vector<1x128xf32>
    %c0_98 = arith.constant 0 : index
    %c0_99 = arith.constant 0 : index
    %c2 = arith.constant 2 : index
    %c0_100 = arith.constant 0 : index
    %112 = vector.load %arg8[%c0_98, %c0_99, %c2, %c0_100] : memref<2x6x6x128xf32, #tpu.memory_space<vmem>>, vector<1x1x1x128xf32>
    %113 = vector.shape_cast %112 : vector<1x1x1x128xf32> to vector<1x128xf32>
    %114 = vector.shape_cast %111 : vector<1x128xf32> to vector<1x1x1x128xf32>
    tpu.vector_store %arg8[%c0_98, %c0_99, %c2, %c0_100], %114 {strides = array<i32>} : memref<2x6x6x128xf32, #tpu.memory_space<vmem>>, vector<1x1x1x128xf32>,
    %115 = vector.extract_strided_slice %96 {offsets = [6, 0], sizes = [2, 128], strides = [1, 1]} : vector<12x128xf32> to vector<2x128xf32>
    %cst_101 = arith.constant dense<0xFF800000> : vector<128xf32>
    %116 = vector.multi_reduction <maximumf>, %115, %cst_101 [0] : vector<2x128xf32> to vector<128xf32>
    %117 = vector.shape_cast %116 : vector<128xf32> to vector<1x128xf32>
    %c0_102 = arith.constant 0 : index
    %c0_103 = arith.constant 0 : index
    %c3 = arith.constant 3 : index
    %c0_104 = arith.constant 0 : index
    %118 = vector.load %arg8[%c0_102, %c0_103, %c3, %c0_104] : memref<2x6x6x128xf32, #tpu.memory_space<vmem>>, vector<1x1x1x128xf32>
    %119 = vector.shape_cast %118 : vector<1x1x1x128xf32> to vector<1x128xf32>
    %120 = vector.shape_cast %117 : vector<1x128xf32> to vector<1x1x1x128xf32>
    tpu.vector_store %arg8[%c0_102, %c0_103, %c3, %c0_104], %120 {strides = array<i32>} : memref<2x6x6x128xf32, #tpu.memory_space<vmem>>, vector<1x1x1x128xf32>,
    %121 = vector.extract_strided_slice %96 {offsets = [8, 0], sizes = [2, 128], strides = [1, 1]} : vector<12x128xf32> to vector<2x128xf32>
    %cst_105 = arith.constant dense<0xFF800000> : vector<128xf32>
    %122 = vector.multi_reduction <maximumf>, %121, %cst_105 [0] : vector<2x128xf32> to vector<128xf32>
    %123 = vector.shape_cast %122 : vector<128xf32> to vector<1x128xf32>
    %c0_106 = arith.constant 0 : index
    %c0_107 = arith.constant 0 : index
    %c4 = arith.constant 4 : index
    %c0_108 = arith.constant 0 : index
    %124 = vector.load %arg8[%c0_106, %c0_107, %c4, %c0_108] : memref<2x6x6x128xf32, #tpu.memory_space<vmem>>, vector<1x1x1x128xf32>
    %125 = vector.shape_cast %124 : vector<1x1x1x128xf32> to vector<1x128xf32>
    %126 = vector.shape_cast %123 : vector<1x128xf32> to vector<1x1x1x128xf32>
    tpu.vector_store %arg8[%c0_106, %c0_107, %c4, %c0_108], %126 {strides = array<i32>} : memref<2x6x6x128xf32, #tpu.memory_space<vmem>>, vector<1x1x1x128xf32>,
    %127 = vector.extract_strided_slice %96 {offsets = [10, 0], sizes = [2, 128], strides = [1, 1]} : vector<12x128xf32> to vector<2x128xf32>
    %cst_109 = arith.constant dense<0xFF800000> : vector<128xf32>
    %128 = vector.multi_reduction <maximumf>, %127, %cst_109 [0] : vector<2x128xf32> to vector<128xf32>
    %129 = vector.shape_cast %128 : vector<128xf32> to vector<1x128xf32>
    %c0_110 = arith.constant 0 : index
    %c0_111 = arith.constant 0 : index
    %c5 = arith.constant 5 : index
    %c0_112 = arith.constant 0 : index
    %130 = vector.load %arg8[%c0_110, %c0_111, %c5, %c0_112] : memref<2x6x6x128xf32, #tpu.memory_space<vmem>>, vector<1x1x1x128xf32>
    %131 = vector.shape_cast %130 : vector<1x1x1x128xf32> to vector<1x128xf32>
    %132 = vector.shape_cast %129 : vector<1x128xf32> to vector<1x1x1x128xf32>
    tpu.vector_store %arg8[%c0_110, %c0_111, %c5, %c0_112], %132 {strides = array<i32>} : memref<2x6x6x128xf32, #tpu.memory_space<vmem>>, vector<1x1x1x128xf32>,
    %c0_113 = arith.constant 0 : index
    %c2_114 = arith.constant 2 : index
    %c0_115 = arith.constant 0 : index
    %c0_116 = arith.constant 0 : index
    %133 = vector.load %arg10[%c0_113, %c2_114, %c0_115, %c0_116] : memref<2x12x12x128xf32, #tpu.memory_space<vmem>>, vector<1x1x12x128xf32>
    %134 = vector.shape_cast %133 : vector<1x1x12x128xf32> to vector<12x128xf32>
    %c0_117 = arith.constant 0 : index
    %c3_118 = arith.constant 3 : index
    %c0_119 = arith.constant 0 : index
    %c0_120 = arith.constant 0 : index
    %135 = vector.load %arg10[%c0_117, %c3_118, %c0_119, %c0_120] : memref<2x12x12x128xf32, #tpu.memory_space<vmem>>, vector<1x1x12x128xf32>
    %136 = vector.shape_cast %135 : vector<1x1x12x128xf32> to vector<12x128xf32>
    %137 = arith.maximumf %134, %136 : vector<12x128xf32>
    %138 = vector.extract_strided_slice %137 {offsets = [0, 0], sizes = [2, 128], strides = [1, 1]} : vector<12x128xf32> to vector<2x128xf32>
    %cst_121 = arith.constant dense<0xFF800000> : vector<128xf32>
    %139 = vector.multi_reduction <maximumf>, %138, %cst_121 [0] : vector<2x128xf32> to vector<128xf32>
    %140 = vector.shape_cast %139 : vector<128xf32> to vector<1x128xf32>
    %c0_122 = arith.constant 0 : index
    %c1_123 = arith.constant 1 : index
    %c0_124 = arith.constant 0 : index
    %c0_125 = arith.constant 0 : index
    %141 = vector.load %arg8[%c0_122, %c1_123, %c0_124, %c0_125] : memref<2x6x6x128xf32, #tpu.memory_space<vmem>>, vector<1x1x1x128xf32>
    %142 = vector.shape_cast %141 : vector<1x1x1x128xf32> to vector<1x128xf32>
    %143 = vector.shape_cast %140 : vector<1x128xf32> to vector<1x1x1x128xf32>
    tpu.vector_store %arg8[%c0_122, %c1_123, %c0_124, %c0_125], %143 {strides = array<i32>} : memref<2x6x6x128xf32, #tpu.memory_space<vmem>>, vector<1x1x1x128xf32>,
    %144 = vector.extract_strided_slice %137 {offsets = [2, 0], sizes = [2, 128], strides = [1, 1]} : vector<12x128xf32> to vector<2x128xf32>
    %cst_126 = arith.constant dense<0xFF800000> : vector<128xf32>
    %145 = vector.multi_reduction <maximumf>, %144, %cst_126 [0] : vector<2x128xf32> to vector<128xf32>
    %146 = vector.shape_cast %145 : vector<128xf32> to vector<1x128xf32>
    %c0_127 = arith.constant 0 : index
    %c1_128 = arith.constant 1 : index
    %c1_129 = arith.constant 1 : index
    %c0_130 = arith.constant 0 : index
    %147 = vector.load %arg8[%c0_127, %c1_128, %c1_129, %c0_130] : memref<2x6x6x128xf32, #tpu.memory_space<vmem>>, vector<1x1x1x128xf32>
    %148 = vector.shape_cast %147 : vector<1x1x1x128xf32> to vector<1x128xf32>
    %149 = vector.shape_cast %146 : vector<1x128xf32> to vector<1x1x1x128xf32>
    tpu.vector_store %arg8[%c0_127, %c1_128, %c1_129, %c0_130], %149 {strides = array<i32>} : memref<2x6x6x128xf32, #tpu.memory_space<vmem>>, vector<1x1x1x128xf32>,
    %150 = vector.extract_strided_slice %137 {offsets = [4, 0], sizes = [2, 128], strides = [1, 1]} : vector<12x128xf32> to vector<2x128xf32>
    %cst_131 = arith.constant dense<0xFF800000> : vector<128xf32>
    %151 = vector.multi_reduction <maximumf>, %150, %cst_131 [0] : vector<2x128xf32> to vector<128xf32>
    %152 = vector.shape_cast %151 : vector<128xf32> to vector<1x128xf32>
    %c0_132 = arith.constant 0 : index
    %c1_133 = arith.constant 1 : index
    %c2_134 = arith.constant 2 : index
    %c0_135 = arith.constant 0 : index
    %153 = vector.load %arg8[%c0_132, %c1_133, %c2_134, %c0_135] : memref<2x6x6x128xf32, #tpu.memory_space<vmem>>, vector<1x1x1x128xf32>
    %154 = vector.shape_cast %153 : vector<1x1x1x128xf32> to vector<1x128xf32>
    %155 = vector.shape_cast %152 : vector<1x128xf32> to vector<1x1x1x128xf32>
    tpu.vector_store %arg8[%c0_132, %c1_133, %c2_134, %c0_135], %155 {strides = array<i32>} : memref<2x6x6x128xf32, #tpu.memory_space<vmem>>, vector<1x1x1x128xf32>,
    %156 = vector.extract_strided_slice %137 {offsets = [6, 0], sizes = [2, 128], strides = [1, 1]} : vector<12x128xf32> to vector<2x128xf32>
    %cst_136 = arith.constant dense<0xFF800000> : vector<128xf32>
    %157 = vector.multi_reduction <maximumf>, %156, %cst_136 [0] : vector<2x128xf32> to vector<128xf32>
    %158 = vector.shape_cast %157 : vector<128xf32> to vector<1x128xf32>
    %c0_137 = arith.constant 0 : index
    %c1_138 = arith.constant 1 : index
    %c3_139 = arith.constant 3 : index
    %c0_140 = arith.constant 0 : index
    %159 = vector.load %arg8[%c0_137, %c1_138, %c3_139, %c0_140] : memref<2x6x6x128xf32, #tpu.memory_space<vmem>>, vector<1x1x1x128xf32>
    %160 = vector.shape_cast %159 : vector<1x1x1x128xf32> to vector<1x128xf32>
    %161 = vector.shape_cast %158 : vector<1x128xf32> to vector<1x1x1x128xf32>
    tpu.vector_store %arg8[%c0_137, %c1_138, %c3_139, %c0_140], %161 {strides = array<i32>} : memref<2x6x6x128xf32, #tpu.memory_space<vmem>>, vector<1x1x1x128xf32>,
    %162 = vector.extract_strided_slice %137 {offsets = [8, 0], sizes = [2, 128], strides = [1, 1]} : vector<12x128xf32> to vector<2x128xf32>
    %cst_141 = arith.constant dense<0xFF800000> : vector<128xf32>
    %163 = vector.multi_reduction <maximumf>, %162, %cst_141 [0] : vector<2x128xf32> to vector<128xf32>
    %164 = vector.shape_cast %163 : vector<128xf32> to vector<1x128xf32>
    %c0_142 = arith.constant 0 : index
    %c1_143 = arith.constant 1 : index
    %c4_144 = arith.constant 4 : index
    %c0_145 = arith.constant 0 : index
    %165 = vector.load %arg8[%c0_142, %c1_143, %c4_144, %c0_145] : memref<2x6x6x128xf32, #tpu.memory_space<vmem>>, vector<1x1x1x128xf32>
    %166 = vector.shape_cast %165 : vector<1x1x1x128xf32> to vector<1x128xf32>
    %167 = vector.shape_cast %164 : vector<1x128xf32> to vector<1x1x1x128xf32>
    tpu.vector_store %arg8[%c0_142, %c1_143, %c4_144, %c0_145], %167 {strides = array<i32>} : memref<2x6x6x128xf32, #tpu.memory_space<vmem>>, vector<1x1x1x128xf32>,
    %168 = vector.extract_strided_slice %137 {offsets = [10, 0], sizes = [2, 128], strides = [1, 1]} : vector<12x128xf32> to vector<2x128xf32>
    %cst_146 = arith.constant dense<0xFF800000> : vector<128xf32>
    %169 = vector.multi_reduction <maximumf>, %168, %cst_146 [0] : vector<2x128xf32> to vector<128xf32>
    %170 = vector.shape_cast %169 : vector<128xf32> to vector<1x128xf32>
    %c0_147 = arith.constant 0 : index
    %c1_148 = arith.constant 1 : index
    %c5_149 = arith.constant 5 : index
    %c0_150 = arith.constant 0 : index
    %171 = vector.load %arg8[%c0_147, %c1_148, %c5_149, %c0_150] : memref<2x6x6x128xf32, #tpu.memory_space<vmem>>, vector<1x1x1x128xf32>
    %172 = vector.shape_cast %171 : vector<1x1x1x128xf32> to vector<1x128xf32>
    %173 = vector.shape_cast %170 : vector<1x128xf32> to vector<1x1x1x128xf32>
    tpu.vector_store %arg8[%c0_147, %c1_148, %c5_149, %c0_150], %173 {strides = array<i32>} : memref<2x6x6x128xf32, #tpu.memory_space<vmem>>, vector<1x1x1x128xf32>,
    %c0_151 = arith.constant 0 : index
    %c4_152 = arith.constant 4 : index
    %c0_153 = arith.constant 0 : index
    %c0_154 = arith.constant 0 : index
    %174 = vector.load %arg10[%c0_151, %c4_152, %c0_153, %c0_154] : memref<2x12x12x128xf32, #tpu.memory_space<vmem>>, vector<1x1x12x128xf32>
    %175 = vector.shape_cast %174 : vector<1x1x12x128xf32> to vector<12x128xf32>
    %c0_155 = arith.constant 0 : index
    %c5_156 = arith.constant 5 : index
    %c0_157 = arith.constant 0 : index
    %c0_158 = arith.constant 0 : index
    %176 = vector.load %arg10[%c0_155, %c5_156, %c0_157, %c0_158] : memref<2x12x12x128xf32, #tpu.memory_space<vmem>>, vector<1x1x12x128xf32>
    %177 = vector.shape_cast %176 : vector<1x1x12x128xf32> to vector<12x128xf32>
    %178 = arith.maximumf %175, %177 : vector<12x128xf32>
    %179 = vector.extract_strided_slice %178 {offsets = [0, 0], sizes = [2, 128], strides = [1, 1]} : vector<12x128xf32> to vector<2x128xf32>
    %cst_159 = arith.constant dense<0xFF800000> : vector<128xf32>
    %180 = vector.multi_reduction <maximumf>, %179, %cst_159 [0] : vector<2x128xf32> to vector<128xf32>
    %181 = vector.shape_cast %180 : vector<128xf32> to vector<1x128xf32>
    %c0_160 = arith.constant 0 : index
    %c2_161 = arith.constant 2 : index
    %c0_162 = arith.constant 0 : index
    %c0_163 = arith.constant 0 : index
    %182 = vector.load %arg8[%c0_160, %c2_161, %c0_162, %c0_163] : memref<2x6x6x128xf32, #tpu.memory_space<vmem>>, vector<1x1x1x128xf32>
    %183 = vector.shape_cast %182 : vector<1x1x1x128xf32> to vector<1x128xf32>
    %184 = vector.shape_cast %181 : vector<1x128xf32> to vector<1x1x1x128xf32>
    tpu.vector_store %arg8[%c0_160, %c2_161, %c0_162, %c0_163], %184 {strides = array<i32>} : memref<2x6x6x128xf32, #tpu.memory_space<vmem>>, vector<1x1x1x128xf32>,
    %185 = vector.extract_strided_slice %178 {offsets = [2, 0], sizes = [2, 128], strides = [1, 1]} : vector<12x128xf32> to vector<2x128xf32>
    %cst_164 = arith.constant dense<0xFF800000> : vector<128xf32>
    %186 = vector.multi_reduction <maximumf>, %185, %cst_164 [0] : vector<2x128xf32> to vector<128xf32>
    %187 = vector.shape_cast %186 : vector<128xf32> to vector<1x128xf32>
    %c0_165 = arith.constant 0 : index
    %c2_166 = arith.constant 2 : index
    %c1_167 = arith.constant 1 : index
    %c0_168 = arith.constant 0 : index
    %188 = vector.load %arg8[%c0_165, %c2_166, %c1_167, %c0_168] : memref<2x6x6x128xf32, #tpu.memory_space<vmem>>, vector<1x1x1x128xf32>
    %189 = vector.shape_cast %188 : vector<1x1x1x128xf32> to vector<1x128xf32>
    %190 = vector.shape_cast %187 : vector<1x128xf32> to vector<1x1x1x128xf32>
    tpu.vector_store %arg8[%c0_165, %c2_166, %c1_167, %c0_168], %190 {strides = array<i32>} : memref<2x6x6x128xf32, #tpu.memory_space<vmem>>, vector<1x1x1x128xf32>,
    %191 = vector.extract_strided_slice %178 {offsets = [4, 0], sizes = [2, 128], strides = [1, 1]} : vector<12x128xf32> to vector<2x128xf32>
    %cst_169 = arith.constant dense<0xFF800000> : vector<128xf32>
    %192 = vector.multi_reduction <maximumf>, %191, %cst_169 [0] : vector<2x128xf32> to vector<128xf32>
    %193 = vector.shape_cast %192 : vector<128xf32> to vector<1x128xf32>
    %c0_170 = arith.constant 0 : index
    %c2_171 = arith.constant 2 : index
    %c2_172 = arith.constant 2 : index
    %c0_173 = arith.constant 0 : index
    %194 = vector.load %arg8[%c0_170, %c2_171, %c2_172, %c0_173] : memref<2x6x6x128xf32, #tpu.memory_space<vmem>>, vector<1x1x1x128xf32>
    %195 = vector.shape_cast %194 : vector<1x1x1x128xf32> to vector<1x128xf32>
    %196 = vector.shape_cast %193 : vector<1x128xf32> to vector<1x1x1x128xf32>
    tpu.vector_store %arg8[%c0_170, %c2_171, %c2_172, %c0_173], %196 {strides = array<i32>} : memref<2x6x6x128xf32, #tpu.memory_space<vmem>>, vector<1x1x1x128xf32>,
    %197 = vector.extract_strided_slice %178 {offsets = [6, 0], sizes = [2, 128], strides = [1, 1]} : vector<12x128xf32> to vector<2x128xf32>
    %cst_174 = arith.constant dense<0xFF800000> : vector<128xf32>
    %198 = vector.multi_reduction <maximumf>, %197, %cst_174 [0] : vector<2x128xf32> to vector<128xf32>
    %199 = vector.shape_cast %198 : vector<128xf32> to vector<1x128xf32>
    %c0_175 = arith.constant 0 : index
    %c2_176 = arith.constant 2 : index
    %c3_177 = arith.constant 3 : index
    %c0_178 = arith.constant 0 : index
    %200 = vector.load %arg8[%c0_175, %c2_176, %c3_177, %c0_178] : memref<2x6x6x128xf32, #tpu.memory_space<vmem>>, vector<1x1x1x128xf32>
    %201 = vector.shape_cast %200 : vector<1x1x1x128xf32> to vector<1x128xf32>
    %202 = vector.shape_cast %199 : vector<1x128xf32> to vector<1x1x1x128xf32>
    tpu.vector_store %arg8[%c0_175, %c2_176, %c3_177, %c0_178], %202 {strides = array<i32>} : memref<2x6x6x128xf32, #tpu.memory_space<vmem>>, vector<1x1x1x128xf32>,
    %203 = vector.extract_strided_slice %178 {offsets = [8, 0], sizes = [2, 128], strides = [1, 1]} : vector<12x128xf32> to vector<2x128xf32>
    %cst_179 = arith.constant dense<0xFF800000> : vector<128xf32>
    %204 = vector.multi_reduction <maximumf>, %203, %cst_179 [0] : vector<2x128xf32> to vector<128xf32>
    %205 = vector.shape_cast %204 : vector<128xf32> to vector<1x128xf32>
    %c0_180 = arith.constant 0 : index
    %c2_181 = arith.constant 2 : index
    %c4_182 = arith.constant 4 : index
    %c0_183 = arith.constant 0 : index
    %206 = vector.load %arg8[%c0_180, %c2_181, %c4_182, %c0_183] : memref<2x6x6x128xf32, #tpu.memory_space<vmem>>, vector<1x1x1x128xf32>
    %207 = vector.shape_cast %206 : vector<1x1x1x128xf32> to vector<1x128xf32>
    %208 = vector.shape_cast %205 : vector<1x128xf32> to vector<1x1x1x128xf32>
    tpu.vector_store %arg8[%c0_180, %c2_181, %c4_182, %c0_183], %208 {strides = array<i32>} : memref<2x6x6x128xf32, #tpu.memory_space<vmem>>, vector<1x1x1x128xf32>,
    %209 = vector.extract_strided_slice %178 {offsets = [10, 0], sizes = [2, 128], strides = [1, 1]} : vector<12x128xf32> to vector<2x128xf32>
    %cst_184 = arith.constant dense<0xFF800000> : vector<128xf32>
    %210 = vector.multi_reduction <maximumf>, %209, %cst_184 [0] : vector<2x128xf32> to vector<128xf32>
    %211 = vector.shape_cast %210 : vector<128xf32> to vector<1x128xf32>
    %c0_185 = arith.constant 0 : index
    %c2_186 = arith.constant 2 : index
    %c5_187 = arith.constant 5 : index
    %c0_188 = arith.constant 0 : index
    %212 = vector.load %arg8[%c0_185, %c2_186, %c5_187, %c0_188] : memref<2x6x6x128xf32, #tpu.memory_space<vmem>>, vector<1x1x1x128xf32>
    %213 = vector.shape_cast %212 : vector<1x1x1x128xf32> to vector<1x128xf32>
    %214 = vector.shape_cast %211 : vector<1x128xf32> to vector<1x1x1x128xf32>
    tpu.vector_store %arg8[%c0_185, %c2_186, %c5_187, %c0_188], %214 {strides = array<i32>} : memref<2x6x6x128xf32, #tpu.memory_space<vmem>>, vector<1x1x1x128xf32>,
    %c0_189 = arith.constant 0 : index
    %c6 = arith.constant 6 : index
    %c0_190 = arith.constant 0 : index
    %c0_191 = arith.constant 0 : index
    %215 = vector.load %arg10[%c0_189, %c6, %c0_190, %c0_191] : memref<2x12x12x128xf32, #tpu.memory_space<vmem>>, vector<1x1x12x128xf32>
    %216 = vector.shape_cast %215 : vector<1x1x12x128xf32> to vector<12x128xf32>
    %c0_192 = arith.constant 0 : index
    %c7 = arith.constant 7 : index
    %c0_193 = arith.constant 0 : index
    %c0_194 = arith.constant 0 : index
    %217 = vector.load %arg10[%c0_192, %c7, %c0_193, %c0_194] : memref<2x12x12x128xf32, #tpu.memory_space<vmem>>, vector<1x1x12x128xf32>
    %218 = vector.shape_cast %217 : vector<1x1x12x128xf32> to vector<12x128xf32>
    %219 = arith.maximumf %216, %218 : vector<12x128xf32>
    %220 = vector.extract_strided_slice %219 {offsets = [0, 0], sizes = [2, 128], strides = [1, 1]} : vector<12x128xf32> to vector<2x128xf32>
    %cst_195 = arith.constant dense<0xFF800000> : vector<128xf32>
    %221 = vector.multi_reduction <maximumf>, %220, %cst_195 [0] : vector<2x128xf32> to vector<128xf32>
    %222 = vector.shape_cast %221 : vector<128xf32> to vector<1x128xf32>
    %c0_196 = arith.constant 0 : index
    %c3_197 = arith.constant 3 : index
    %c0_198 = arith.constant 0 : index
    %c0_199 = arith.constant 0 : index
    %223 = vector.load %arg8[%c0_196, %c3_197, %c0_198, %c0_199] : memref<2x6x6x128xf32, #tpu.memory_space<vmem>>, vector<1x1x1x128xf32>
    %224 = vector.shape_cast %223 : vector<1x1x1x128xf32> to vector<1x128xf32>
    %225 = vector.shape_cast %222 : vector<1x128xf32> to vector<1x1x1x128xf32>
    tpu.vector_store %arg8[%c0_196, %c3_197, %c0_198, %c0_199], %225 {strides = array<i32>} : memref<2x6x6x128xf32, #tpu.memory_space<vmem>>, vector<1x1x1x128xf32>,
    %226 = vector.extract_strided_slice %219 {offsets = [2, 0], sizes = [2, 128], strides = [1, 1]} : vector<12x128xf32> to vector<2x128xf32>
    %cst_200 = arith.constant dense<0xFF800000> : vector<128xf32>
    %227 = vector.multi_reduction <maximumf>, %226, %cst_200 [0] : vector<2x128xf32> to vector<128xf32>
    %228 = vector.shape_cast %227 : vector<128xf32> to vector<1x128xf32>
    %c0_201 = arith.constant 0 : index
    %c3_202 = arith.constant 3 : index
    %c1_203 = arith.constant 1 : index
    %c0_204 = arith.constant 0 : index
    %229 = vector.load %arg8[%c0_201, %c3_202, %c1_203, %c0_204] : memref<2x6x6x128xf32, #tpu.memory_space<vmem>>, vector<1x1x1x128xf32>
    %230 = vector.shape_cast %229 : vector<1x1x1x128xf32> to vector<1x128xf32>
    %231 = vector.shape_cast %228 : vector<1x128xf32> to vector<1x1x1x128xf32>
    tpu.vector_store %arg8[%c0_201, %c3_202, %c1_203, %c0_204], %231 {strides = array<i32>} : memref<2x6x6x128xf32, #tpu.memory_space<vmem>>, vector<1x1x1x128xf32>,
    %232 = vector.extract_strided_slice %219 {offsets = [4, 0], sizes = [2, 128], strides = [1, 1]} : vector<12x128xf32> to vector<2x128xf32>
    %cst_205 = arith.constant dense<0xFF800000> : vector<128xf32>
    %233 = vector.multi_reduction <maximumf>, %232, %cst_205 [0] : vector<2x128xf32> to vector<128xf32>
    %234 = vector.shape_cast %233 : vector<128xf32> to vector<1x128xf32>
    %c0_206 = arith.constant 0 : index
    %c3_207 = arith.constant 3 : index
    %c2_208 = arith.constant 2 : index
    %c0_209 = arith.constant 0 : index
    %235 = vector.load %arg8[%c0_206, %c3_207, %c2_208, %c0_209] : memref<2x6x6x128xf32, #tpu.memory_space<vmem>>, vector<1x1x1x128xf32>
    %236 = vector.shape_cast %235 : vector<1x1x1x128xf32> to vector<1x128xf32>
    %237 = vector.shape_cast %234 : vector<1x128xf32> to vector<1x1x1x128xf32>
    tpu.vector_store %arg8[%c0_206, %c3_207, %c2_208, %c0_209], %237 {strides = array<i32>} : memref<2x6x6x128xf32, #tpu.memory_space<vmem>>, vector<1x1x1x128xf32>,
    %238 = vector.extract_strided_slice %219 {offsets = [6, 0], sizes = [2, 128], strides = [1, 1]} : vector<12x128xf32> to vector<2x128xf32>
    %cst_210 = arith.constant dense<0xFF800000> : vector<128xf32>
    %239 = vector.multi_reduction <maximumf>, %238, %cst_210 [0] : vector<2x128xf32> to vector<128xf32>
    %240 = vector.shape_cast %239 : vector<128xf32> to vector<1x128xf32>
    %c0_211 = arith.constant 0 : index
    %c3_212 = arith.constant 3 : index
    %c3_213 = arith.constant 3 : index
    %c0_214 = arith.constant 0 : index
    %241 = vector.load %arg8[%c0_211, %c3_212, %c3_213, %c0_214] : memref<2x6x6x128xf32, #tpu.memory_space<vmem>>, vector<1x1x1x128xf32>
    %242 = vector.shape_cast %241 : vector<1x1x1x128xf32> to vector<1x128xf32>
    %243 = vector.shape_cast %240 : vector<1x128xf32> to vector<1x1x1x128xf32>
    tpu.vector_store %arg8[%c0_211, %c3_212, %c3_213, %c0_214], %243 {strides = array<i32>} : memref<2x6x6x128xf32, #tpu.memory_space<vmem>>, vector<1x1x1x128xf32>,
    %244 = vector.extract_strided_slice %219 {offsets = [8, 0], sizes = [2, 128], strides = [1, 1]} : vector<12x128xf32> to vector<2x128xf32>
    %cst_215 = arith.constant dense<0xFF800000> : vector<128xf32>
    %245 = vector.multi_reduction <maximumf>, %244, %cst_215 [0] : vector<2x128xf32> to vector<128xf32>
    %246 = vector.shape_cast %245 : vector<128xf32> to vector<1x128xf32>
    %c0_216 = arith.constant 0 : index
    %c3_217 = arith.constant 3 : index
    %c4_218 = arith.constant 4 : index
    %c0_219 = arith.constant 0 : index
    %247 = vector.load %arg8[%c0_216, %c3_217, %c4_218, %c0_219] : memref<2x6x6x128xf32, #tpu.memory_space<vmem>>, vector<1x1x1x128xf32>
    %248 = vector.shape_cast %247 : vector<1x1x1x128xf32> to vector<1x128xf32>
    %249 = vector.shape_cast %246 : vector<1x128xf32> to vector<1x1x1x128xf32>
    tpu.vector_store %arg8[%c0_216, %c3_217, %c4_218, %c0_219], %249 {strides = array<i32>} : memref<2x6x6x128xf32, #tpu.memory_space<vmem>>, vector<1x1x1x128xf32>,
    %250 = vector.extract_strided_slice %219 {offsets = [10, 0], sizes = [2, 128], strides = [1, 1]} : vector<12x128xf32> to vector<2x128xf32>
    %cst_220 = arith.constant dense<0xFF800000> : vector<128xf32>
    %251 = vector.multi_reduction <maximumf>, %250, %cst_220 [0] : vector<2x128xf32> to vector<128xf32>
    %252 = vector.shape_cast %251 : vector<128xf32> to vector<1x128xf32>
    %c0_221 = arith.constant 0 : index
    %c3_222 = arith.constant 3 : index
    %c5_223 = arith.constant 5 : index
    %c0_224 = arith.constant 0 : index
    %253 = vector.load %arg8[%c0_221, %c3_222, %c5_223, %c0_224] : memref<2x6x6x128xf32, #tpu.memory_space<vmem>>, vector<1x1x1x128xf32>
    %254 = vector.shape_cast %253 : vector<1x1x1x128xf32> to vector<1x128xf32>
    %255 = vector.shape_cast %252 : vector<1x128xf32> to vector<1x1x1x128xf32>
    tpu.vector_store %arg8[%c0_221, %c3_222, %c5_223, %c0_224], %255 {strides = array<i32>} : memref<2x6x6x128xf32, #tpu.memory_space<vmem>>, vector<1x1x1x128xf32>,
    %c0_225 = arith.constant 0 : index
    %c8 = arith.constant 8 : index
    %c0_226 = arith.constant 0 : index
    %c0_227 = arith.constant 0 : index
    %256 = vector.load %arg10[%c0_225, %c8, %c0_226, %c0_227] : memref<2x12x12x128xf32, #tpu.memory_space<vmem>>, vector<1x1x12x128xf32>
    %257 = vector.shape_cast %256 : vector<1x1x12x128xf32> to vector<12x128xf32>
    %c0_228 = arith.constant 0 : index
    %c9 = arith.constant 9 : index
    %c0_229 = arith.constant 0 : index
    %c0_230 = arith.constant 0 : index
    %258 = vector.load %arg10[%c0_228, %c9, %c0_229, %c0_230] : memref<2x12x12x128xf32, #tpu.memory_space<vmem>>, vector<1x1x12x128xf32>
    %259 = vector.shape_cast %258 : vector<1x1x12x128xf32> to vector<12x128xf32>
    %260 = arith.maximumf %257, %259 : vector<12x128xf32>
    %261 = vector.extract_strided_slice %260 {offsets = [0, 0], sizes = [2, 128], strides = [1, 1]} : vector<12x128xf32> to vector<2x128xf32>
    %cst_231 = arith.constant dense<0xFF800000> : vector<128xf32>
    %262 = vector.multi_reduction <maximumf>, %261, %cst_231 [0] : vector<2x128xf32> to vector<128xf32>
    %263 = vector.shape_cast %262 : vector<128xf32> to vector<1x128xf32>
    %c0_232 = arith.constant 0 : index
    %c4_233 = arith.constant 4 : index
    %c0_234 = arith.constant 0 : index
    %c0_235 = arith.constant 0 : index
    %264 = vector.load %arg8[%c0_232, %c4_233, %c0_234, %c0_235] : memref<2x6x6x128xf32, #tpu.memory_space<vmem>>, vector<1x1x1x128xf32>
    %265 = vector.shape_cast %264 : vector<1x1x1x128xf32> to vector<1x128xf32>
    %266 = vector.shape_cast %263 : vector<1x128xf32> to vector<1x1x1x128xf32>
    tpu.vector_store %arg8[%c0_232, %c4_233, %c0_234, %c0_235], %266 {strides = array<i32>} : memref<2x6x6x128xf32, #tpu.memory_space<vmem>>, vector<1x1x1x128xf32>,
    %267 = vector.extract_strided_slice %260 {offsets = [2, 0], sizes = [2, 128], strides = [1, 1]} : vector<12x128xf32> to vector<2x128xf32>
    %cst_236 = arith.constant dense<0xFF800000> : vector<128xf32>
    %268 = vector.multi_reduction <maximumf>, %267, %cst_236 [0] : vector<2x128xf32> to vector<128xf32>
    %269 = vector.shape_cast %268 : vector<128xf32> to vector<1x128xf32>
    %c0_237 = arith.constant 0 : index
    %c4_238 = arith.constant 4 : index
    %c1_239 = arith.constant 1 : index
    %c0_240 = arith.constant 0 : index
    %270 = vector.load %arg8[%c0_237, %c4_238, %c1_239, %c0_240] : memref<2x6x6x128xf32, #tpu.memory_space<vmem>>, vector<1x1x1x128xf32>
    %271 = vector.shape_cast %270 : vector<1x1x1x128xf32> to vector<1x128xf32>
    %272 = vector.shape_cast %269 : vector<1x128xf32> to vector<1x1x1x128xf32>
    tpu.vector_store %arg8[%c0_237, %c4_238, %c1_239, %c0_240], %272 {strides = array<i32>} : memref<2x6x6x128xf32, #tpu.memory_space<vmem>>, vector<1x1x1x128xf32>,
    %273 = vector.extract_strided_slice %260 {offsets = [4, 0], sizes = [2, 128], strides = [1, 1]} : vector<12x128xf32> to vector<2x128xf32>
    %cst_241 = arith.constant dense<0xFF800000> : vector<128xf32>
    %274 = vector.multi_reduction <maximumf>, %273, %cst_241 [0] : vector<2x128xf32> to vector<128xf32>
    %275 = vector.shape_cast %274 : vector<128xf32> to vector<1x128xf32>
    %c0_242 = arith.constant 0 : index
    %c4_243 = arith.constant 4 : index
    %c2_244 = arith.constant 2 : index
    %c0_245 = arith.constant 0 : index
    %276 = vector.load %arg8[%c0_242, %c4_243, %c2_244, %c0_245] : memref<2x6x6x128xf32, #tpu.memory_space<vmem>>, vector<1x1x1x128xf32>
    %277 = vector.shape_cast %276 : vector<1x1x1x128xf32> to vector<1x128xf32>
    %278 = vector.shape_cast %275 : vector<1x128xf32> to vector<1x1x1x128xf32>
    tpu.vector_store %arg8[%c0_242, %c4_243, %c2_244, %c0_245], %278 {strides = array<i32>} : memref<2x6x6x128xf32, #tpu.memory_space<vmem>>, vector<1x1x1x128xf32>,
    %279 = vector.extract_strided_slice %260 {offsets = [6, 0], sizes = [2, 128], strides = [1, 1]} : vector<12x128xf32> to vector<2x128xf32>
    %cst_246 = arith.constant dense<0xFF800000> : vector<128xf32>
    %280 = vector.multi_reduction <maximumf>, %279, %cst_246 [0] : vector<2x128xf32> to vector<128xf32>
    %281 = vector.shape_cast %280 : vector<128xf32> to vector<1x128xf32>
    %c0_247 = arith.constant 0 : index
    %c4_248 = arith.constant 4 : index
    %c3_249 = arith.constant 3 : index
    %c0_250 = arith.constant 0 : index
    %282 = vector.load %arg8[%c0_247, %c4_248, %c3_249, %c0_250] : memref<2x6x6x128xf32, #tpu.memory_space<vmem>>, vector<1x1x1x128xf32>
    %283 = vector.shape_cast %282 : vector<1x1x1x128xf32> to vector<1x128xf32>
    %284 = vector.shape_cast %281 : vector<1x128xf32> to vector<1x1x1x128xf32>
    tpu.vector_store %arg8[%c0_247, %c4_248, %c3_249, %c0_250], %284 {strides = array<i32>} : memref<2x6x6x128xf32, #tpu.memory_space<vmem>>, vector<1x1x1x128xf32>,
    %285 = vector.extract_strided_slice %260 {offsets = [8, 0], sizes = [2, 128], strides = [1, 1]} : vector<12x128xf32> to vector<2x128xf32>
    %cst_251 = arith.constant dense<0xFF800000> : vector<128xf32>
    %286 = vector.multi_reduction <maximumf>, %285, %cst_251 [0] : vector<2x128xf32> to vector<128xf32>
    %287 = vector.shape_cast %286 : vector<128xf32> to vector<1x128xf32>
    %c0_252 = arith.constant 0 : index
    %c4_253 = arith.constant 4 : index
    %c4_254 = arith.constant 4 : index
    %c0_255 = arith.constant 0 : index
    %288 = vector.load %arg8[%c0_252, %c4_253, %c4_254, %c0_255] : memref<2x6x6x128xf32, #tpu.memory_space<vmem>>, vector<1x1x1x128xf32>
    %289 = vector.shape_cast %288 : vector<1x1x1x128xf32> to vector<1x128xf32>
    %290 = vector.shape_cast %287 : vector<1x128xf32> to vector<1x1x1x128xf32>
    tpu.vector_store %arg8[%c0_252, %c4_253, %c4_254, %c0_255], %290 {strides = array<i32>} : memref<2x6x6x128xf32, #tpu.memory_space<vmem>>, vector<1x1x1x128xf32>,
    %291 = vector.extract_strided_slice %260 {offsets = [10, 0], sizes = [2, 128], strides = [1, 1]} : vector<12x128xf32> to vector<2x128xf32>
    %cst_256 = arith.constant dense<0xFF800000> : vector<128xf32>
    %292 = vector.multi_reduction <maximumf>, %291, %cst_256 [0] : vector<2x128xf32> to vector<128xf32>
    %293 = vector.shape_cast %292 : vector<128xf32> to vector<1x128xf32>
    %c0_257 = arith.constant 0 : index
    %c4_258 = arith.constant 4 : index
    %c5_259 = arith.constant 5 : index
    %c0_260 = arith.constant 0 : index
    %294 = vector.load %arg8[%c0_257, %c4_258, %c5_259, %c0_260] : memref<2x6x6x128xf32, #tpu.memory_space<vmem>>, vector<1x1x1x128xf32>
    %295 = vector.shape_cast %294 : vector<1x1x1x128xf32> to vector<1x128xf32>
    %296 = vector.shape_cast %293 : vector<1x128xf32> to vector<1x1x1x128xf32>
    tpu.vector_store %arg8[%c0_257, %c4_258, %c5_259, %c0_260], %296 {strides = array<i32>} : memref<2x6x6x128xf32, #tpu.memory_space<vmem>>, vector<1x1x1x128xf32>,
    %c0_261 = arith.constant 0 : index
    %c10 = arith.constant 10 : index
    %c0_262 = arith.constant 0 : index
    %c0_263 = arith.constant 0 : index
    %297 = vector.load %arg10[%c0_261, %c10, %c0_262, %c0_263] : memref<2x12x12x128xf32, #tpu.memory_space<vmem>>, vector<1x1x12x128xf32>
    %298 = vector.shape_cast %297 : vector<1x1x12x128xf32> to vector<12x128xf32>
    %c0_264 = arith.constant 0 : index
    %c11 = arith.constant 11 : index
    %c0_265 = arith.constant 0 : index
    %c0_266 = arith.constant 0 : index
    %299 = vector.load %arg10[%c0_264, %c11, %c0_265, %c0_266] : memref<2x12x12x128xf32, #tpu.memory_space<vmem>>, vector<1x1x12x128xf32>
    %300 = vector.shape_cast %299 : vector<1x1x12x128xf32> to vector<12x128xf32>
    %301 = arith.maximumf %298, %300 : vector<12x128xf32>
    %302 = vector.extract_strided_slice %301 {offsets = [0, 0], sizes = [2, 128], strides = [1, 1]} : vector<12x128xf32> to vector<2x128xf32>
    %cst_267 = arith.constant dense<0xFF800000> : vector<128xf32>
    %303 = vector.multi_reduction <maximumf>, %302, %cst_267 [0] : vector<2x128xf32> to vector<128xf32>
    %304 = vector.shape_cast %303 : vector<128xf32> to vector<1x128xf32>
    %c0_268 = arith.constant 0 : index
    %c5_269 = arith.constant 5 : index
    %c0_270 = arith.constant 0 : index
    %c0_271 = arith.constant 0 : index
    %305 = vector.load %arg8[%c0_268, %c5_269, %c0_270, %c0_271] : memref<2x6x6x128xf32, #tpu.memory_space<vmem>>, vector<1x1x1x128xf32>
    %306 = vector.shape_cast %305 : vector<1x1x1x128xf32> to vector<1x128xf32>
    %307 = vector.shape_cast %304 : vector<1x128xf32> to vector<1x1x1x128xf32>
    tpu.vector_store %arg8[%c0_268, %c5_269, %c0_270, %c0_271], %307 {strides = array<i32>} : memref<2x6x6x128xf32, #tpu.memory_space<vmem>>, vector<1x1x1x128xf32>,
    %308 = vector.extract_strided_slice %301 {offsets = [2, 0], sizes = [2, 128], strides = [1, 1]} : vector<12x128xf32> to vector<2x128xf32>
    %cst_272 = arith.constant dense<0xFF800000> : vector<128xf32>
    %309 = vector.multi_reduction <maximumf>, %308, %cst_272 [0] : vector<2x128xf32> to vector<128xf32>
    %310 = vector.shape_cast %309 : vector<128xf32> to vector<1x128xf32>
    %c0_273 = arith.constant 0 : index
    %c5_274 = arith.constant 5 : index
    %c1_275 = arith.constant 1 : index
    %c0_276 = arith.constant 0 : index
    %311 = vector.load %arg8[%c0_273, %c5_274, %c1_275, %c0_276] : memref<2x6x6x128xf32, #tpu.memory_space<vmem>>, vector<1x1x1x128xf32>
    %312 = vector.shape_cast %311 : vector<1x1x1x128xf32> to vector<1x128xf32>
    %313 = vector.shape_cast %310 : vector<1x128xf32> to vector<1x1x1x128xf32>
    tpu.vector_store %arg8[%c0_273, %c5_274, %c1_275, %c0_276], %313 {strides = array<i32>} : memref<2x6x6x128xf32, #tpu.memory_space<vmem>>, vector<1x1x1x128xf32>,
    %314 = vector.extract_strided_slice %301 {offsets = [4, 0], sizes = [2, 128], strides = [1, 1]} : vector<12x128xf32> to vector<2x128xf32>
    %cst_277 = arith.constant dense<0xFF800000> : vector<128xf32>
    %315 = vector.multi_reduction <maximumf>, %314, %cst_277 [0] : vector<2x128xf32> to vector<128xf32>
    %316 = vector.shape_cast %315 : vector<128xf32> to vector<1x128xf32>
    %c0_278 = arith.constant 0 : index
    %c5_279 = arith.constant 5 : index
    %c2_280 = arith.constant 2 : index
    %c0_281 = arith.constant 0 : index
    %317 = vector.load %arg8[%c0_278, %c5_279, %c2_280, %c0_281] : memref<2x6x6x128xf32, #tpu.memory_space<vmem>>, vector<1x1x1x128xf32>
    %318 = vector.shape_cast %317 : vector<1x1x1x128xf32> to vector<1x128xf32>
    %319 = vector.shape_cast %316 : vector<1x128xf32> to vector<1x1x1x128xf32>
    tpu.vector_store %arg8[%c0_278, %c5_279, %c2_280, %c0_281], %319 {strides = array<i32>} : memref<2x6x6x128xf32, #tpu.memory_space<vmem>>, vector<1x1x1x128xf32>,
    %320 = vector.extract_strided_slice %301 {offsets = [6, 0], sizes = [2, 128], strides = [1, 1]} : vector<12x128xf32> to vector<2x128xf32>
    %cst_282 = arith.constant dense<0xFF800000> : vector<128xf32>
    %321 = vector.multi_reduction <maximumf>, %320, %cst_282 [0] : vector<2x128xf32> to vector<128xf32>
    %322 = vector.shape_cast %321 : vector<128xf32> to vector<1x128xf32>
    %c0_283 = arith.constant 0 : index
    %c5_284 = arith.constant 5 : index
    %c3_285 = arith.constant 3 : index
    %c0_286 = arith.constant 0 : index
    %323 = vector.load %arg8[%c0_283, %c5_284, %c3_285, %c0_286] : memref<2x6x6x128xf32, #tpu.memory_space<vmem>>, vector<1x1x1x128xf32>
    %324 = vector.shape_cast %323 : vector<1x1x1x128xf32> to vector<1x128xf32>
    %325 = vector.shape_cast %322 : vector<1x128xf32> to vector<1x1x1x128xf32>
    tpu.vector_store %arg8[%c0_283, %c5_284, %c3_285, %c0_286], %325 {strides = array<i32>} : memref<2x6x6x128xf32, #tpu.memory_space<vmem>>, vector<1x1x1x128xf32>,
    %326 = vector.extract_strided_slice %301 {offsets = [8, 0], sizes = [2, 128], strides = [1, 1]} : vector<12x128xf32> to vector<2x128xf32>
    %cst_287 = arith.constant dense<0xFF800000> : vector<128xf32>
    %327 = vector.multi_reduction <maximumf>, %326, %cst_287 [0] : vector<2x128xf32> to vector<128xf32>
    %328 = vector.shape_cast %327 : vector<128xf32> to vector<1x128xf32>
    %c0_288 = arith.constant 0 : index
    %c5_289 = arith.constant 5 : index
    %c4_290 = arith.constant 4 : index
    %c0_291 = arith.constant 0 : index
    %329 = vector.load %arg8[%c0_288, %c5_289, %c4_290, %c0_291] : memref<2x6x6x128xf32, #tpu.memory_space<vmem>>, vector<1x1x1x128xf32>
    %330 = vector.shape_cast %329 : vector<1x1x1x128xf32> to vector<1x128xf32>
    %331 = vector.shape_cast %328 : vector<1x128xf32> to vector<1x1x1x128xf32>
    tpu.vector_store %arg8[%c0_288, %c5_289, %c4_290, %c0_291], %331 {strides = array<i32>} : memref<2x6x6x128xf32, #tpu.memory_space<vmem>>, vector<1x1x1x128xf32>,
    %332 = vector.extract_strided_slice %301 {offsets = [10, 0], sizes = [2, 128], strides = [1, 1]} : vector<12x128xf32> to vector<2x128xf32>
    %cst_292 = arith.constant dense<0xFF800000> : vector<128xf32>
    %333 = vector.multi_reduction <maximumf>, %332, %cst_292 [0] : vector<2x128xf32> to vector<128xf32>
    %334 = vector.shape_cast %333 : vector<128xf32> to vector<1x128xf32>
    %c0_293 = arith.constant 0 : index
    %c5_294 = arith.constant 5 : index
    %c5_295 = arith.constant 5 : index
    %c0_296 = arith.constant 0 : index
    %335 = vector.load %arg8[%c0_293, %c5_294, %c5_295, %c0_296] : memref<2x6x6x128xf32, #tpu.memory_space<vmem>>, vector<1x1x1x128xf32>
    %336 = vector.shape_cast %335 : vector<1x1x1x128xf32> to vector<1x128xf32>
    %337 = vector.shape_cast %334 : vector<1x128xf32> to vector<1x1x1x128xf32>
    tpu.vector_store %arg8[%c0_293, %c5_294, %c5_295, %c0_296], %337 {strides = array<i32>} : memref<2x6x6x128xf32, #tpu.memory_space<vmem>>, vector<1x1x1x128xf32>,
    %c1_297 = arith.constant 1 : index
    %c0_298 = arith.constant 0 : index
    %c0_299 = arith.constant 0 : index
    %c0_300 = arith.constant 0 : index
    %338 = vector.load %arg10[%c1_297, %c0_298, %c0_299, %c0_300] : memref<2x12x12x128xf32, #tpu.memory_space<vmem>>, vector<1x1x12x128xf32>
    %339 = vector.shape_cast %338 : vector<1x1x12x128xf32> to vector<12x128xf32>
    %c1_301 = arith.constant 1 : index
    %c1_302 = arith.constant 1 : index
    %c0_303 = arith.constant 0 : index
    %c0_304 = arith.constant 0 : index
    %340 = vector.load %arg10[%c1_301, %c1_302, %c0_303, %c0_304] : memref<2x12x12x128xf32, #tpu.memory_space<vmem>>, vector<1x1x12x128xf32>
    %341 = vector.shape_cast %340 : vector<1x1x12x128xf32> to vector<12x128xf32>
    %342 = arith.maximumf %339, %341 : vector<12x128xf32>
    %343 = vector.extract_strided_slice %342 {offsets = [0, 0], sizes = [2, 128], strides = [1, 1]} : vector<12x128xf32> to vector<2x128xf32>
    %cst_305 = arith.constant dense<0xFF800000> : vector<128xf32>
    %344 = vector.multi_reduction <maximumf>, %343, %cst_305 [0] : vector<2x128xf32> to vector<128xf32>
    %345 = vector.shape_cast %344 : vector<128xf32> to vector<1x128xf32>
    %c1_306 = arith.constant 1 : index
    %c0_307 = arith.constant 0 : index
    %c0_308 = arith.constant 0 : index
    %c0_309 = arith.constant 0 : index
    %346 = vector.load %arg8[%c1_306, %c0_307, %c0_308, %c0_309] : memref<2x6x6x128xf32, #tpu.memory_space<vmem>>, vector<1x1x1x128xf32>
    %347 = vector.shape_cast %346 : vector<1x1x1x128xf32> to vector<1x128xf32>
    %348 = vector.shape_cast %345 : vector<1x128xf32> to vector<1x1x1x128xf32>
    tpu.vector_store %arg8[%c1_306, %c0_307, %c0_308, %c0_309], %348 {strides = array<i32>} : memref<2x6x6x128xf32, #tpu.memory_space<vmem>>, vector<1x1x1x128xf32>,
    %349 = vector.extract_strided_slice %342 {offsets = [2, 0], sizes = [2, 128], strides = [1, 1]} : vector<12x128xf32> to vector<2x128xf32>
    %cst_310 = arith.constant dense<0xFF800000> : vector<128xf32>
    %350 = vector.multi_reduction <maximumf>, %349, %cst_310 [0] : vector<2x128xf32> to vector<128xf32>
    %351 = vector.shape_cast %350 : vector<128xf32> to vector<1x128xf32>
    %c1_311 = arith.constant 1 : index
    %c0_312 = arith.constant 0 : index
    %c1_313 = arith.constant 1 : index
    %c0_314 = arith.constant 0 : index
    %352 = vector.load %arg8[%c1_311, %c0_312, %c1_313, %c0_314] : memref<2x6x6x128xf32, #tpu.memory_space<vmem>>, vector<1x1x1x128xf32>
    %353 = vector.shape_cast %352 : vector<1x1x1x128xf32> to vector<1x128xf32>
    %354 = vector.shape_cast %351 : vector<1x128xf32> to vector<1x1x1x128xf32>
    tpu.vector_store %arg8[%c1_311, %c0_312, %c1_313, %c0_314], %354 {strides = array<i32>} : memref<2x6x6x128xf32, #tpu.memory_space<vmem>>, vector<1x1x1x128xf32>,
    %355 = vector.extract_strided_slice %342 {offsets = [4, 0], sizes = [2, 128], strides = [1, 1]} : vector<12x128xf32> to vector<2x128xf32>
    %cst_315 = arith.constant dense<0xFF800000> : vector<128xf32>
    %356 = vector.multi_reduction <maximumf>, %355, %cst_315 [0] : vector<2x128xf32> to vector<128xf32>
    %357 = vector.shape_cast %356 : vector<128xf32> to vector<1x128xf32>
    %c1_316 = arith.constant 1 : index
    %c0_317 = arith.constant 0 : index
    %c2_318 = arith.constant 2 : index
    %c0_319 = arith.constant 0 : index
    %358 = vector.load %arg8[%c1_316, %c0_317, %c2_318, %c0_319] : memref<2x6x6x128xf32, #tpu.memory_space<vmem>>, vector<1x1x1x128xf32>
    %359 = vector.shape_cast %358 : vector<1x1x1x128xf32> to vector<1x128xf32>
    %360 = vector.shape_cast %357 : vector<1x128xf32> to vector<1x1x1x128xf32>
    tpu.vector_store %arg8[%c1_316, %c0_317, %c2_318, %c0_319], %360 {strides = array<i32>} : memref<2x6x6x128xf32, #tpu.memory_space<vmem>>, vector<1x1x1x128xf32>,
    %361 = vector.extract_strided_slice %342 {offsets = [6, 0], sizes = [2, 128], strides = [1, 1]} : vector<12x128xf32> to vector<2x128xf32>
    %cst_320 = arith.constant dense<0xFF800000> : vector<128xf32>
    %362 = vector.multi_reduction <maximumf>, %361, %cst_320 [0] : vector<2x128xf32> to vector<128xf32>
    %363 = vector.shape_cast %362 : vector<128xf32> to vector<1x128xf32>
    %c1_321 = arith.constant 1 : index
    %c0_322 = arith.constant 0 : index
    %c3_323 = arith.constant 3 : index
    %c0_324 = arith.constant 0 : index
    %364 = vector.load %arg8[%c1_321, %c0_322, %c3_323, %c0_324] : memref<2x6x6x128xf32, #tpu.memory_space<vmem>>, vector<1x1x1x128xf32>
    %365 = vector.shape_cast %364 : vector<1x1x1x128xf32> to vector<1x128xf32>
    %366 = vector.shape_cast %363 : vector<1x128xf32> to vector<1x1x1x128xf32>
    tpu.vector_store %arg8[%c1_321, %c0_322, %c3_323, %c0_324], %366 {strides = array<i32>} : memref<2x6x6x128xf32, #tpu.memory_space<vmem>>, vector<1x1x1x128xf32>,
    %367 = vector.extract_strided_slice %342 {offsets = [8, 0], sizes = [2, 128], strides = [1, 1]} : vector<12x128xf32> to vector<2x128xf32>
    %cst_325 = arith.constant dense<0xFF800000> : vector<128xf32>
    %368 = vector.multi_reduction <maximumf>, %367, %cst_325 [0] : vector<2x128xf32> to vector<128xf32>
    %369 = vector.shape_cast %368 : vector<128xf32> to vector<1x128xf32>
    %c1_326 = arith.constant 1 : index
    %c0_327 = arith.constant 0 : index
    %c4_328 = arith.constant 4 : index
    %c0_329 = arith.constant 0 : index
    %370 = vector.load %arg8[%c1_326, %c0_327, %c4_328, %c0_329] : memref<2x6x6x128xf32, #tpu.memory_space<vmem>>, vector<1x1x1x128xf32>
    %371 = vector.shape_cast %370 : vector<1x1x1x128xf32> to vector<1x128xf32>
    %372 = vector.shape_cast %369 : vector<1x128xf32> to vector<1x1x1x128xf32>
    tpu.vector_store %arg8[%c1_326, %c0_327, %c4_328, %c0_329], %372 {strides = array<i32>} : memref<2x6x6x128xf32, #tpu.memory_space<vmem>>, vector<1x1x1x128xf32>,
    %373 = vector.extract_strided_slice %342 {offsets = [10, 0], sizes = [2, 128], strides = [1, 1]} : vector<12x128xf32> to vector<2x128xf32>
    %cst_330 = arith.constant dense<0xFF800000> : vector<128xf32>
    %374 = vector.multi_reduction <maximumf>, %373, %cst_330 [0] : vector<2x128xf32> to vector<128xf32>
    %375 = vector.shape_cast %374 : vector<128xf32> to vector<1x128xf32>
    %c1_331 = arith.constant 1 : index
    %c0_332 = arith.constant 0 : index
    %c5_333 = arith.constant 5 : index
    %c0_334 = arith.constant 0 : index
    %376 = vector.load %arg8[%c1_331, %c0_332, %c5_333, %c0_334] : memref<2x6x6x128xf32, #tpu.memory_space<vmem>>, vector<1x1x1x128xf32>
    %377 = vector.shape_cast %376 : vector<1x1x1x128xf32> to vector<1x128xf32>
    %378 = vector.shape_cast %375 : vector<1x128xf32> to vector<1x1x1x128xf32>
    tpu.vector_store %arg8[%c1_331, %c0_332, %c5_333, %c0_334], %378 {strides = array<i32>} : memref<2x6x6x128xf32, #tpu.memory_space<vmem>>, vector<1x1x1x128xf32>,
    %c1_335 = arith.constant 1 : index
    %c2_336 = arith.constant 2 : index
    %c0_337 = arith.constant 0 : index
    %c0_338 = arith.constant 0 : index
    %379 = vector.load %arg10[%c1_335, %c2_336, %c0_337, %c0_338] : memref<2x12x12x128xf32, #tpu.memory_space<vmem>>, vector<1x1x12x128xf32>
    %380 = vector.shape_cast %379 : vector<1x1x12x128xf32> to vector<12x128xf32>
    %c1_339 = arith.constant 1 : index
    %c3_340 = arith.constant 3 : index
    %c0_341 = arith.constant 0 : index
    %c0_342 = arith.constant 0 : index
    %381 = vector.load %arg10[%c1_339, %c3_340, %c0_341, %c0_342] : memref<2x12x12x128xf32, #tpu.memory_space<vmem>>, vector<1x1x12x128xf32>
    %382 = vector.shape_cast %381 : vector<1x1x12x128xf32> to vector<12x128xf32>
    %383 = arith.maximumf %380, %382 : vector<12x128xf32>
    %384 = vector.extract_strided_slice %383 {offsets = [0, 0], sizes = [2, 128], strides = [1, 1]} : vector<12x128xf32> to vector<2x128xf32>
    %cst_343 = arith.constant dense<0xFF800000> : vector<128xf32>
    %385 = vector.multi_reduction <maximumf>, %384, %cst_343 [0] : vector<2x128xf32> to vector<128xf32>
    %386 = vector.shape_cast %385 : vector<128xf32> to vector<1x128xf32>
    %c1_344 = arith.constant 1 : index
    %c1_345 = arith.constant 1 : index
    %c0_346 = arith.constant 0 : index
    %c0_347 = arith.constant 0 : index
    %387 = vector.load %arg8[%c1_344, %c1_345, %c0_346, %c0_347] : memref<2x6x6x128xf32, #tpu.memory_space<vmem>>, vector<1x1x1x128xf32>
    %388 = vector.shape_cast %387 : vector<1x1x1x128xf32> to vector<1x128xf32>
    %389 = vector.shape_cast %386 : vector<1x128xf32> to vector<1x1x1x128xf32>
    tpu.vector_store %arg8[%c1_344, %c1_345, %c0_346, %c0_347], %389 {strides = array<i32>} : memref<2x6x6x128xf32, #tpu.memory_space<vmem>>, vector<1x1x1x128xf32>,
    %390 = vector.extract_strided_slice %383 {offsets = [2, 0], sizes = [2, 128], strides = [1, 1]} : vector<12x128xf32> to vector<2x128xf32>
    %cst_348 = arith.constant dense<0xFF800000> : vector<128xf32>
    %391 = vector.multi_reduction <maximumf>, %390, %cst_348 [0] : vector<2x128xf32> to vector<128xf32>
    %392 = vector.shape_cast %391 : vector<128xf32> to vector<1x128xf32>
    %c1_349 = arith.constant 1 : index
    %c1_350 = arith.constant 1 : index
    %c1_351 = arith.constant 1 : index
    %c0_352 = arith.constant 0 : index
    %393 = vector.load %arg8[%c1_349, %c1_350, %c1_351, %c0_352] : memref<2x6x6x128xf32, #tpu.memory_space<vmem>>, vector<1x1x1x128xf32>
    %394 = vector.shape_cast %393 : vector<1x1x1x128xf32> to vector<1x128xf32>
    %395 = vector.shape_cast %392 : vector<1x128xf32> to vector<1x1x1x128xf32>
    tpu.vector_store %arg8[%c1_349, %c1_350, %c1_351, %c0_352], %395 {strides = array<i32>} : memref<2x6x6x128xf32, #tpu.memory_space<vmem>>, vector<1x1x1x128xf32>,
    %396 = vector.extract_strided_slice %383 {offsets = [4, 0], sizes = [2, 128], strides = [1, 1]} : vector<12x128xf32> to vector<2x128xf32>
    %cst_353 = arith.constant dense<0xFF800000> : vector<128xf32>
    %397 = vector.multi_reduction <maximumf>, %396, %cst_353 [0] : vector<2x128xf32> to vector<128xf32>
    %398 = vector.shape_cast %397 : vector<128xf32> to vector<1x128xf32>
    %c1_354 = arith.constant 1 : index
    %c1_355 = arith.constant 1 : index
    %c2_356 = arith.constant 2 : index
    %c0_357 = arith.constant 0 : index
    %399 = vector.load %arg8[%c1_354, %c1_355, %c2_356, %c0_357] : memref<2x6x6x128xf32, #tpu.memory_space<vmem>>, vector<1x1x1x128xf32>
    %400 = vector.shape_cast %399 : vector<1x1x1x128xf32> to vector<1x128xf32>
    %401 = vector.shape_cast %398 : vector<1x128xf32> to vector<1x1x1x128xf32>
    tpu.vector_store %arg8[%c1_354, %c1_355, %c2_356, %c0_357], %401 {strides = array<i32>} : memref<2x6x6x128xf32, #tpu.memory_space<vmem>>, vector<1x1x1x128xf32>,
    %402 = vector.extract_strided_slice %383 {offsets = [6, 0], sizes = [2, 128], strides = [1, 1]} : vector<12x128xf32> to vector<2x128xf32>
    %cst_358 = arith.constant dense<0xFF800000> : vector<128xf32>
    %403 = vector.multi_reduction <maximumf>, %402, %cst_358 [0] : vector<2x128xf32> to vector<128xf32>
    %404 = vector.shape_cast %403 : vector<128xf32> to vector<1x128xf32>
    %c1_359 = arith.constant 1 : index
    %c1_360 = arith.constant 1 : index
    %c3_361 = arith.constant 3 : index
    %c0_362 = arith.constant 0 : index
    %405 = vector.load %arg8[%c1_359, %c1_360, %c3_361, %c0_362] : memref<2x6x6x128xf32, #tpu.memory_space<vmem>>, vector<1x1x1x128xf32>
    %406 = vector.shape_cast %405 : vector<1x1x1x128xf32> to vector<1x128xf32>
    %407 = vector.shape_cast %404 : vector<1x128xf32> to vector<1x1x1x128xf32>
    tpu.vector_store %arg8[%c1_359, %c1_360, %c3_361, %c0_362], %407 {strides = array<i32>} : memref<2x6x6x128xf32, #tpu.memory_space<vmem>>, vector<1x1x1x128xf32>,
    %408 = vector.extract_strided_slice %383 {offsets = [8, 0], sizes = [2, 128], strides = [1, 1]} : vector<12x128xf32> to vector<2x128xf32>
    %cst_363 = arith.constant dense<0xFF800000> : vector<128xf32>
    %409 = vector.multi_reduction <maximumf>, %408, %cst_363 [0] : vector<2x128xf32> to vector<128xf32>
    %410 = vector.shape_cast %409 : vector<128xf32> to vector<1x128xf32>
    %c1_364 = arith.constant 1 : index
    %c1_365 = arith.constant 1 : index
    %c4_366 = arith.constant 4 : index
    %c0_367 = arith.constant 0 : index
    %411 = vector.load %arg8[%c1_364, %c1_365, %c4_366, %c0_367] : memref<2x6x6x128xf32, #tpu.memory_space<vmem>>, vector<1x1x1x128xf32>
    %412 = vector.shape_cast %411 : vector<1x1x1x128xf32> to vector<1x128xf32>
    %413 = vector.shape_cast %410 : vector<1x128xf32> to vector<1x1x1x128xf32>
    tpu.vector_store %arg8[%c1_364, %c1_365, %c4_366, %c0_367], %413 {strides = array<i32>} : memref<2x6x6x128xf32, #tpu.memory_space<vmem>>, vector<1x1x1x128xf32>,
    %414 = vector.extract_strided_slice %383 {offsets = [10, 0], sizes = [2, 128], strides = [1, 1]} : vector<12x128xf32> to vector<2x128xf32>
    %cst_368 = arith.constant dense<0xFF800000> : vector<128xf32>
    %415 = vector.multi_reduction <maximumf>, %414, %cst_368 [0] : vector<2x128xf32> to vector<128xf32>
    %416 = vector.shape_cast %415 : vector<128xf32> to vector<1x128xf32>
    %c1_369 = arith.constant 1 : index
    %c1_370 = arith.constant 1 : index
    %c5_371 = arith.constant 5 : index
    %c0_372 = arith.constant 0 : index
    %417 = vector.load %arg8[%c1_369, %c1_370, %c5_371, %c0_372] : memref<2x6x6x128xf32, #tpu.memory_space<vmem>>, vector<1x1x1x128xf32>
    %418 = vector.shape_cast %417 : vector<1x1x1x128xf32> to vector<1x128xf32>
    %419 = vector.shape_cast %416 : vector<1x128xf32> to vector<1x1x1x128xf32>
    tpu.vector_store %arg8[%c1_369, %c1_370, %c5_371, %c0_372], %419 {strides = array<i32>} : memref<2x6x6x128xf32, #tpu.memory_space<vmem>>, vector<1x1x1x128xf32>,
    %c1_373 = arith.constant 1 : index
    %c4_374 = arith.constant 4 : index
    %c0_375 = arith.constant 0 : index
    %c0_376 = arith.constant 0 : index
    %420 = vector.load %arg10[%c1_373, %c4_374, %c0_375, %c0_376] : memref<2x12x12x128xf32, #tpu.memory_space<vmem>>, vector<1x1x12x128xf32>
    %421 = vector.shape_cast %420 : vector<1x1x12x128xf32> to vector<12x128xf32>
    %c1_377 = arith.constant 1 : index
    %c5_378 = arith.constant 5 : index
    %c0_379 = arith.constant 0 : index
    %c0_380 = arith.constant 0 : index
    %422 = vector.load %arg10[%c1_377, %c5_378, %c0_379, %c0_380] : memref<2x12x12x128xf32, #tpu.memory_space<vmem>>, vector<1x1x12x128xf32>
    %423 = vector.shape_cast %422 : vector<1x1x12x128xf32> to vector<12x128xf32>
    %424 = arith.maximumf %421, %423 : vector<12x128xf32>
    %425 = vector.extract_strided_slice %424 {offsets = [0, 0], sizes = [2, 128], strides = [1, 1]} : vector<12x128xf32> to vector<2x128xf32>
    %cst_381 = arith.constant dense<0xFF800000> : vector<128xf32>
    %426 = vector.multi_reduction <maximumf>, %425, %cst_381 [0] : vector<2x128xf32> to vector<128xf32>
    %427 = vector.shape_cast %426 : vector<128xf32> to vector<1x128xf32>
    %c1_382 = arith.constant 1 : index
    %c2_383 = arith.constant 2 : index
    %c0_384 = arith.constant 0 : index
    %c0_385 = arith.constant 0 : index
    %428 = vector.load %arg8[%c1_382, %c2_383, %c0_384, %c0_385] : memref<2x6x6x128xf32, #tpu.memory_space<vmem>>, vector<1x1x1x128xf32>
    %429 = vector.shape_cast %428 : vector<1x1x1x128xf32> to vector<1x128xf32>
    %430 = vector.shape_cast %427 : vector<1x128xf32> to vector<1x1x1x128xf32>
    tpu.vector_store %arg8[%c1_382, %c2_383, %c0_384, %c0_385], %430 {strides = array<i32>} : memref<2x6x6x128xf32, #tpu.memory_space<vmem>>, vector<1x1x1x128xf32>,
    %431 = vector.extract_strided_slice %424 {offsets = [2, 0], sizes = [2, 128], strides = [1, 1]} : vector<12x128xf32> to vector<2x128xf32>
    %cst_386 = arith.constant dense<0xFF800000> : vector<128xf32>
    %432 = vector.multi_reduction <maximumf>, %431, %cst_386 [0] : vector<2x128xf32> to vector<128xf32>
    %433 = vector.shape_cast %432 : vector<128xf32> to vector<1x128xf32>
    %c1_387 = arith.constant 1 : index
    %c2_388 = arith.constant 2 : index
    %c1_389 = arith.constant 1 : index
    %c0_390 = arith.constant 0 : index
    %434 = vector.load %arg8[%c1_387, %c2_388, %c1_389, %c0_390] : memref<2x6x6x128xf32, #tpu.memory_space<vmem>>, vector<1x1x1x128xf32>
    %435 = vector.shape_cast %434 : vector<1x1x1x128xf32> to vector<1x128xf32>
    %436 = vector.shape_cast %433 : vector<1x128xf32> to vector<1x1x1x128xf32>
    tpu.vector_store %arg8[%c1_387, %c2_388, %c1_389, %c0_390], %436 {strides = array<i32>} : memref<2x6x6x128xf32, #tpu.memory_space<vmem>>, vector<1x1x1x128xf32>,
    %437 = vector.extract_strided_slice %424 {offsets = [4, 0], sizes = [2, 128], strides = [1, 1]} : vector<12x128xf32> to vector<2x128xf32>
    %cst_391 = arith.constant dense<0xFF800000> : vector<128xf32>
    %438 = vector.multi_reduction <maximumf>, %437, %cst_391 [0] : vector<2x128xf32> to vector<128xf32>
    %439 = vector.shape_cast %438 : vector<128xf32> to vector<1x128xf32>
    %c1_392 = arith.constant 1 : index
    %c2_393 = arith.constant 2 : index
    %c2_394 = arith.constant 2 : index
    %c0_395 = arith.constant 0 : index
    %440 = vector.load %arg8[%c1_392, %c2_393, %c2_394, %c0_395] : memref<2x6x6x128xf32, #tpu.memory_space<vmem>>, vector<1x1x1x128xf32>
    %441 = vector.shape_cast %440 : vector<1x1x1x128xf32> to vector<1x128xf32>
    %442 = vector.shape_cast %439 : vector<1x128xf32> to vector<1x1x1x128xf32>
    tpu.vector_store %arg8[%c1_392, %c2_393, %c2_394, %c0_395], %442 {strides = array<i32>} : memref<2x6x6x128xf32, #tpu.memory_space<vmem>>, vector<1x1x1x128xf32>,
    %443 = vector.extract_strided_slice %424 {offsets = [6, 0], sizes = [2, 128], strides = [1, 1]} : vector<12x128xf32> to vector<2x128xf32>
    %cst_396 = arith.constant dense<0xFF800000> : vector<128xf32>
    %444 = vector.multi_reduction <maximumf>, %443, %cst_396 [0] : vector<2x128xf32> to vector<128xf32>
    %445 = vector.shape_cast %444 : vector<128xf32> to vector<1x128xf32>
    %c1_397 = arith.constant 1 : index
    %c2_398 = arith.constant 2 : index
    %c3_399 = arith.constant 3 : index
    %c0_400 = arith.constant 0 : index
    %446 = vector.load %arg8[%c1_397, %c2_398, %c3_399, %c0_400] : memref<2x6x6x128xf32, #tpu.memory_space<vmem>>, vector<1x1x1x128xf32>
    %447 = vector.shape_cast %446 : vector<1x1x1x128xf32> to vector<1x128xf32>
    %448 = vector.shape_cast %445 : vector<1x128xf32> to vector<1x1x1x128xf32>
    tpu.vector_store %arg8[%c1_397, %c2_398, %c3_399, %c0_400], %448 {strides = array<i32>} : memref<2x6x6x128xf32, #tpu.memory_space<vmem>>, vector<1x1x1x128xf32>,
    %449 = vector.extract_strided_slice %424 {offsets = [8, 0], sizes = [2, 128], strides = [1, 1]} : vector<12x128xf32> to vector<2x128xf32>
    %cst_401 = arith.constant dense<0xFF800000> : vector<128xf32>
    %450 = vector.multi_reduction <maximumf>, %449, %cst_401 [0] : vector<2x128xf32> to vector<128xf32>
    %451 = vector.shape_cast %450 : vector<128xf32> to vector<1x128xf32>
    %c1_402 = arith.constant 1 : index
    %c2_403 = arith.constant 2 : index
    %c4_404 = arith.constant 4 : index
    %c0_405 = arith.constant 0 : index
    %452 = vector.load %arg8[%c1_402, %c2_403, %c4_404, %c0_405] : memref<2x6x6x128xf32, #tpu.memory_space<vmem>>, vector<1x1x1x128xf32>
    %453 = vector.shape_cast %452 : vector<1x1x1x128xf32> to vector<1x128xf32>
    %454 = vector.shape_cast %451 : vector<1x128xf32> to vector<1x1x1x128xf32>
    tpu.vector_store %arg8[%c1_402, %c2_403, %c4_404, %c0_405], %454 {strides = array<i32>} : memref<2x6x6x128xf32, #tpu.memory_space<vmem>>, vector<1x1x1x128xf32>,
    %455 = vector.extract_strided_slice %424 {offsets = [10, 0], sizes = [2, 128], strides = [1, 1]} : vector<12x128xf32> to vector<2x128xf32>
    %cst_406 = arith.constant dense<0xFF800000> : vector<128xf32>
    %456 = vector.multi_reduction <maximumf>, %455, %cst_406 [0] : vector<2x128xf32> to vector<128xf32>
    %457 = vector.shape_cast %456 : vector<128xf32> to vector<1x128xf32>
    %c1_407 = arith.constant 1 : index
    %c2_408 = arith.constant 2 : index
    %c5_409 = arith.constant 5 : index
    %c0_410 = arith.constant 0 : index
    %458 = vector.load %arg8[%c1_407, %c2_408, %c5_409, %c0_410] : memref<2x6x6x128xf32, #tpu.memory_space<vmem>>, vector<1x1x1x128xf32>
    %459 = vector.shape_cast %458 : vector<1x1x1x128xf32> to vector<1x128xf32>
    %460 = vector.shape_cast %457 : vector<1x128xf32> to vector<1x1x1x128xf32>
    tpu.vector_store %arg8[%c1_407, %c2_408, %c5_409, %c0_410], %460 {strides = array<i32>} : memref<2x6x6x128xf32, #tpu.memory_space<vmem>>, vector<1x1x1x128xf32>,
    %c1_411 = arith.constant 1 : index
    %c6_412 = arith.constant 6 : index
    %c0_413 = arith.constant 0 : index
    %c0_414 = arith.constant 0 : index
    %461 = vector.load %arg10[%c1_411, %c6_412, %c0_413, %c0_414] : memref<2x12x12x128xf32, #tpu.memory_space<vmem>>, vector<1x1x12x128xf32>
    %462 = vector.shape_cast %461 : vector<1x1x12x128xf32> to vector<12x128xf32>
    %c1_415 = arith.constant 1 : index
    %c7_416 = arith.constant 7 : index
    %c0_417 = arith.constant 0 : index
    %c0_418 = arith.constant 0 : index
    %463 = vector.load %arg10[%c1_415, %c7_416, %c0_417, %c0_418] : memref<2x12x12x128xf32, #tpu.memory_space<vmem>>, vector<1x1x12x128xf32>
    %464 = vector.shape_cast %463 : vector<1x1x12x128xf32> to vector<12x128xf32>
    %465 = arith.maximumf %462, %464 : vector<12x128xf32>
    %466 = vector.extract_strided_slice %465 {offsets = [0, 0], sizes = [2, 128], strides = [1, 1]} : vector<12x128xf32> to vector<2x128xf32>
    %cst_419 = arith.constant dense<0xFF800000> : vector<128xf32>
    %467 = vector.multi_reduction <maximumf>, %466, %cst_419 [0] : vector<2x128xf32> to vector<128xf32>
    %468 = vector.shape_cast %467 : vector<128xf32> to vector<1x128xf32>
    %c1_420 = arith.constant 1 : index
    %c3_421 = arith.constant 3 : index
    %c0_422 = arith.constant 0 : index
    %c0_423 = arith.constant 0 : index
    %469 = vector.load %arg8[%c1_420, %c3_421, %c0_422, %c0_423] : memref<2x6x6x128xf32, #tpu.memory_space<vmem>>, vector<1x1x1x128xf32>
    %470 = vector.shape_cast %469 : vector<1x1x1x128xf32> to vector<1x128xf32>
    %471 = vector.shape_cast %468 : vector<1x128xf32> to vector<1x1x1x128xf32>
    tpu.vector_store %arg8[%c1_420, %c3_421, %c0_422, %c0_423], %471 {strides = array<i32>} : memref<2x6x6x128xf32, #tpu.memory_space<vmem>>, vector<1x1x1x128xf32>,
    %472 = vector.extract_strided_slice %465 {offsets = [2, 0], sizes = [2, 128], strides = [1, 1]} : vector<12x128xf32> to vector<2x128xf32>
    %cst_424 = arith.constant dense<0xFF800000> : vector<128xf32>
    %473 = vector.multi_reduction <maximumf>, %472, %cst_424 [0] : vector<2x128xf32> to vector<128xf32>
    %474 = vector.shape_cast %473 : vector<128xf32> to vector<1x128xf32>
    %c1_425 = arith.constant 1 : index
    %c3_426 = arith.constant 3 : index
    %c1_427 = arith.constant 1 : index
    %c0_428 = arith.constant 0 : index
    %475 = vector.load %arg8[%c1_425, %c3_426, %c1_427, %c0_428] : memref<2x6x6x128xf32, #tpu.memory_space<vmem>>, vector<1x1x1x128xf32>
    %476 = vector.shape_cast %475 : vector<1x1x1x128xf32> to vector<1x128xf32>
    %477 = vector.shape_cast %474 : vector<1x128xf32> to vector<1x1x1x128xf32>
    tpu.vector_store %arg8[%c1_425, %c3_426, %c1_427, %c0_428], %477 {strides = array<i32>} : memref<2x6x6x128xf32, #tpu.memory_space<vmem>>, vector<1x1x1x128xf32>,
    %478 = vector.extract_strided_slice %465 {offsets = [4, 0], sizes = [2, 128], strides = [1, 1]} : vector<12x128xf32> to vector<2x128xf32>
    %cst_429 = arith.constant dense<0xFF800000> : vector<128xf32>
    %479 = vector.multi_reduction <maximumf>, %478, %cst_429 [0] : vector<2x128xf32> to vector<128xf32>
    %480 = vector.shape_cast %479 : vector<128xf32> to vector<1x128xf32>
    %c1_430 = arith.constant 1 : index
    %c3_431 = arith.constant 3 : index
    %c2_432 = arith.constant 2 : index
    %c0_433 = arith.constant 0 : index
    %481 = vector.load %arg8[%c1_430, %c3_431, %c2_432, %c0_433] : memref<2x6x6x128xf32, #tpu.memory_space<vmem>>, vector<1x1x1x128xf32>
    %482 = vector.shape_cast %481 : vector<1x1x1x128xf32> to vector<1x128xf32>
    %483 = vector.shape_cast %480 : vector<1x128xf32> to vector<1x1x1x128xf32>
    tpu.vector_store %arg8[%c1_430, %c3_431, %c2_432, %c0_433], %483 {strides = array<i32>} : memref<2x6x6x128xf32, #tpu.memory_space<vmem>>, vector<1x1x1x128xf32>,
    %484 = vector.extract_strided_slice %465 {offsets = [6, 0], sizes = [2, 128], strides = [1, 1]} : vector<12x128xf32> to vector<2x128xf32>
    %cst_434 = arith.constant dense<0xFF800000> : vector<128xf32>
    %485 = vector.multi_reduction <maximumf>, %484, %cst_434 [0] : vector<2x128xf32> to vector<128xf32>
    %486 = vector.shape_cast %485 : vector<128xf32> to vector<1x128xf32>
    %c1_435 = arith.constant 1 : index
    %c3_436 = arith.constant 3 : index
    %c3_437 = arith.constant 3 : index
    %c0_438 = arith.constant 0 : index
    %487 = vector.load %arg8[%c1_435, %c3_436, %c3_437, %c0_438] : memref<2x6x6x128xf32, #tpu.memory_space<vmem>>, vector<1x1x1x128xf32>
    %488 = vector.shape_cast %487 : vector<1x1x1x128xf32> to vector<1x128xf32>
    %489 = vector.shape_cast %486 : vector<1x128xf32> to vector<1x1x1x128xf32>
    tpu.vector_store %arg8[%c1_435, %c3_436, %c3_437, %c0_438], %489 {strides = array<i32>} : memref<2x6x6x128xf32, #tpu.memory_space<vmem>>, vector<1x1x1x128xf32>,
    %490 = vector.extract_strided_slice %465 {offsets = [8, 0], sizes = [2, 128], strides = [1, 1]} : vector<12x128xf32> to vector<2x128xf32>
    %cst_439 = arith.constant dense<0xFF800000> : vector<128xf32>
    %491 = vector.multi_reduction <maximumf>, %490, %cst_439 [0] : vector<2x128xf32> to vector<128xf32>
    %492 = vector.shape_cast %491 : vector<128xf32> to vector<1x128xf32>
    %c1_440 = arith.constant 1 : index
    %c3_441 = arith.constant 3 : index
    %c4_442 = arith.constant 4 : index
    %c0_443 = arith.constant 0 : index
    %493 = vector.load %arg8[%c1_440, %c3_441, %c4_442, %c0_443] : memref<2x6x6x128xf32, #tpu.memory_space<vmem>>, vector<1x1x1x128xf32>
    %494 = vector.shape_cast %493 : vector<1x1x1x128xf32> to vector<1x128xf32>
    %495 = vector.shape_cast %492 : vector<1x128xf32> to vector<1x1x1x128xf32>
    tpu.vector_store %arg8[%c1_440, %c3_441, %c4_442, %c0_443], %495 {strides = array<i32>} : memref<2x6x6x128xf32, #tpu.memory_space<vmem>>, vector<1x1x1x128xf32>,
    %496 = vector.extract_strided_slice %465 {offsets = [10, 0], sizes = [2, 128], strides = [1, 1]} : vector<12x128xf32> to vector<2x128xf32>
    %cst_444 = arith.constant dense<0xFF800000> : vector<128xf32>
    %497 = vector.multi_reduction <maximumf>, %496, %cst_444 [0] : vector<2x128xf32> to vector<128xf32>
    %498 = vector.shape_cast %497 : vector<128xf32> to vector<1x128xf32>
    %c1_445 = arith.constant 1 : index
    %c3_446 = arith.constant 3 : index
    %c5_447 = arith.constant 5 : index
    %c0_448 = arith.constant 0 : index
    %499 = vector.load %arg8[%c1_445, %c3_446, %c5_447, %c0_448] : memref<2x6x6x128xf32, #tpu.memory_space<vmem>>, vector<1x1x1x128xf32>
    %500 = vector.shape_cast %499 : vector<1x1x1x128xf32> to vector<1x128xf32>
    %501 = vector.shape_cast %498 : vector<1x128xf32> to vector<1x1x1x128xf32>
    tpu.vector_store %arg8[%c1_445, %c3_446, %c5_447, %c0_448], %501 {strides = array<i32>} : memref<2x6x6x128xf32, #tpu.memory_space<vmem>>, vector<1x1x1x128xf32>,
    %c1_449 = arith.constant 1 : index
    %c8_450 = arith.constant 8 : index
    %c0_451 = arith.constant 0 : index
    %c0_452 = arith.constant 0 : index
    %502 = vector.load %arg10[%c1_449, %c8_450, %c0_451, %c0_452] : memref<2x12x12x128xf32, #tpu.memory_space<vmem>>, vector<1x1x12x128xf32>
    %503 = vector.shape_cast %502 : vector<1x1x12x128xf32> to vector<12x128xf32>
    %c1_453 = arith.constant 1 : index
    %c9_454 = arith.constant 9 : index
    %c0_455 = arith.constant 0 : index
    %c0_456 = arith.constant 0 : index
    %504 = vector.load %arg10[%c1_453, %c9_454, %c0_455, %c0_456] : memref<2x12x12x128xf32, #tpu.memory_space<vmem>>, vector<1x1x12x128xf32>
    %505 = vector.shape_cast %504 : vector<1x1x12x128xf32> to vector<12x128xf32>
    %506 = arith.maximumf %503, %505 : vector<12x128xf32>
    %507 = vector.extract_strided_slice %506 {offsets = [0, 0], sizes = [2, 128], strides = [1, 1]} : vector<12x128xf32> to vector<2x128xf32>
    %cst_457 = arith.constant dense<0xFF800000> : vector<128xf32>
    %508 = vector.multi_reduction <maximumf>, %507, %cst_457 [0] : vector<2x128xf32> to vector<128xf32>
    %509 = vector.shape_cast %508 : vector<128xf32> to vector<1x128xf32>
    %c1_458 = arith.constant 1 : index
    %c4_459 = arith.constant 4 : index
    %c0_460 = arith.constant 0 : index
    %c0_461 = arith.constant 0 : index
    %510 = vector.load %arg8[%c1_458, %c4_459, %c0_460, %c0_461] : memref<2x6x6x128xf32, #tpu.memory_space<vmem>>, vector<1x1x1x128xf32>
    %511 = vector.shape_cast %510 : vector<1x1x1x128xf32> to vector<1x128xf32>
    %512 = vector.shape_cast %509 : vector<1x128xf32> to vector<1x1x1x128xf32>
    tpu.vector_store %arg8[%c1_458, %c4_459, %c0_460, %c0_461], %512 {strides = array<i32>} : memref<2x6x6x128xf32, #tpu.memory_space<vmem>>, vector<1x1x1x128xf32>,
    %513 = vector.extract_strided_slice %506 {offsets = [2, 0], sizes = [2, 128], strides = [1, 1]} : vector<12x128xf32> to vector<2x128xf32>
    %cst_462 = arith.constant dense<0xFF800000> : vector<128xf32>
    %514 = vector.multi_reduction <maximumf>, %513, %cst_462 [0] : vector<2x128xf32> to vector<128xf32>
    %515 = vector.shape_cast %514 : vector<128xf32> to vector<1x128xf32>
    %c1_463 = arith.constant 1 : index
    %c4_464 = arith.constant 4 : index
    %c1_465 = arith.constant 1 : index
    %c0_466 = arith.constant 0 : index
    %516 = vector.load %arg8[%c1_463, %c4_464, %c1_465, %c0_466] : memref<2x6x6x128xf32, #tpu.memory_space<vmem>>, vector<1x1x1x128xf32>
    %517 = vector.shape_cast %516 : vector<1x1x1x128xf32> to vector<1x128xf32>
    %518 = vector.shape_cast %515 : vector<1x128xf32> to vector<1x1x1x128xf32>
    tpu.vector_store %arg8[%c1_463, %c4_464, %c1_465, %c0_466], %518 {strides = array<i32>} : memref<2x6x6x128xf32, #tpu.memory_space<vmem>>, vector<1x1x1x128xf32>,
    %519 = vector.extract_strided_slice %506 {offsets = [4, 0], sizes = [2, 128], strides = [1, 1]} : vector<12x128xf32> to vector<2x128xf32>
    %cst_467 = arith.constant dense<0xFF800000> : vector<128xf32>
    %520 = vector.multi_reduction <maximumf>, %519, %cst_467 [0] : vector<2x128xf32> to vector<128xf32>
    %521 = vector.shape_cast %520 : vector<128xf32> to vector<1x128xf32>
    %c1_468 = arith.constant 1 : index
    %c4_469 = arith.constant 4 : index
    %c2_470 = arith.constant 2 : index
    %c0_471 = arith.constant 0 : index
    %522 = vector.load %arg8[%c1_468, %c4_469, %c2_470, %c0_471] : memref<2x6x6x128xf32, #tpu.memory_space<vmem>>, vector<1x1x1x128xf32>
    %523 = vector.shape_cast %522 : vector<1x1x1x128xf32> to vector<1x128xf32>
    %524 = vector.shape_cast %521 : vector<1x128xf32> to vector<1x1x1x128xf32>
    tpu.vector_store %arg8[%c1_468, %c4_469, %c2_470, %c0_471], %524 {strides = array<i32>} : memref<2x6x6x128xf32, #tpu.memory_space<vmem>>, vector<1x1x1x128xf32>,
    %525 = vector.extract_strided_slice %506 {offsets = [6, 0], sizes = [2, 128], strides = [1, 1]} : vector<12x128xf32> to vector<2x128xf32>
    %cst_472 = arith.constant dense<0xFF800000> : vector<128xf32>
    %526 = vector.multi_reduction <maximumf>, %525, %cst_472 [0] : vector<2x128xf32> to vector<128xf32>
    %527 = vector.shape_cast %526 : vector<128xf32> to vector<1x128xf32>
    %c1_473 = arith.constant 1 : index
    %c4_474 = arith.constant 4 : index
    %c3_475 = arith.constant 3 : index
    %c0_476 = arith.constant 0 : index
    %528 = vector.load %arg8[%c1_473, %c4_474, %c3_475, %c0_476] : memref<2x6x6x128xf32, #tpu.memory_space<vmem>>, vector<1x1x1x128xf32>
    %529 = vector.shape_cast %528 : vector<1x1x1x128xf32> to vector<1x128xf32>
    %530 = vector.shape_cast %527 : vector<1x128xf32> to vector<1x1x1x128xf32>
    tpu.vector_store %arg8[%c1_473, %c4_474, %c3_475, %c0_476], %530 {strides = array<i32>} : memref<2x6x6x128xf32, #tpu.memory_space<vmem>>, vector<1x1x1x128xf32>,
    %531 = vector.extract_strided_slice %506 {offsets = [8, 0], sizes = [2, 128], strides = [1, 1]} : vector<12x128xf32> to vector<2x128xf32>
    %cst_477 = arith.constant dense<0xFF800000> : vector<128xf32>
    %532 = vector.multi_reduction <maximumf>, %531, %cst_477 [0] : vector<2x128xf32> to vector<128xf32>
    %533 = vector.shape_cast %532 : vector<128xf32> to vector<1x128xf32>
    %c1_478 = arith.constant 1 : index
    %c4_479 = arith.constant 4 : index
    %c4_480 = arith.constant 4 : index
    %c0_481 = arith.constant 0 : index
    %534 = vector.load %arg8[%c1_478, %c4_479, %c4_480, %c0_481] : memref<2x6x6x128xf32, #tpu.memory_space<vmem>>, vector<1x1x1x128xf32>
    %535 = vector.shape_cast %534 : vector<1x1x1x128xf32> to vector<1x128xf32>
    %536 = vector.shape_cast %533 : vector<1x128xf32> to vector<1x1x1x128xf32>
    tpu.vector_store %arg8[%c1_478, %c4_479, %c4_480, %c0_481], %536 {strides = array<i32>} : memref<2x6x6x128xf32, #tpu.memory_space<vmem>>, vector<1x1x1x128xf32>,
    %537 = vector.extract_strided_slice %506 {offsets = [10, 0], sizes = [2, 128], strides = [1, 1]} : vector<12x128xf32> to vector<2x128xf32>
    %cst_482 = arith.constant dense<0xFF800000> : vector<128xf32>
    %538 = vector.multi_reduction <maximumf>, %537, %cst_482 [0] : vector<2x128xf32> to vector<128xf32>
    %539 = vector.shape_cast %538 : vector<128xf32> to vector<1x128xf32>
    %c1_483 = arith.constant 1 : index
    %c4_484 = arith.constant 4 : index
    %c5_485 = arith.constant 5 : index
    %c0_486 = arith.constant 0 : index
    %540 = vector.load %arg8[%c1_483, %c4_484, %c5_485, %c0_486] : memref<2x6x6x128xf32, #tpu.memory_space<vmem>>, vector<1x1x1x128xf32>
    %541 = vector.shape_cast %540 : vector<1x1x1x128xf32> to vector<1x128xf32>
    %542 = vector.shape_cast %539 : vector<1x128xf32> to vector<1x1x1x128xf32>
    tpu.vector_store %arg8[%c1_483, %c4_484, %c5_485, %c0_486], %542 {strides = array<i32>} : memref<2x6x6x128xf32, #tpu.memory_space<vmem>>, vector<1x1x1x128xf32>,
    %c1_487 = arith.constant 1 : index
    %c10_488 = arith.constant 10 : index
    %c0_489 = arith.constant 0 : index
    %c0_490 = arith.constant 0 : index
    %543 = vector.load %arg10[%c1_487, %c10_488, %c0_489, %c0_490] : memref<2x12x12x128xf32, #tpu.memory_space<vmem>>, vector<1x1x12x128xf32>
    %544 = vector.shape_cast %543 : vector<1x1x12x128xf32> to vector<12x128xf32>
    %c1_491 = arith.constant 1 : index
    %c11_492 = arith.constant 11 : index
    %c0_493 = arith.constant 0 : index
    %c0_494 = arith.constant 0 : index
    %545 = vector.load %arg10[%c1_491, %c11_492, %c0_493, %c0_494] : memref<2x12x12x128xf32, #tpu.memory_space<vmem>>, vector<1x1x12x128xf32>
    %546 = vector.shape_cast %545 : vector<1x1x12x128xf32> to vector<12x128xf32>
    %547 = arith.maximumf %544, %546 : vector<12x128xf32>
    %548 = vector.extract_strided_slice %547 {offsets = [0, 0], sizes = [2, 128], strides = [1, 1]} : vector<12x128xf32> to vector<2x128xf32>
    %cst_495 = arith.constant dense<0xFF800000> : vector<128xf32>
    %549 = vector.multi_reduction <maximumf>, %548, %cst_495 [0] : vector<2x128xf32> to vector<128xf32>
    %550 = vector.shape_cast %549 : vector<128xf32> to vector<1x128xf32>
    %c1_496 = arith.constant 1 : index
    %c5_497 = arith.constant 5 : index
    %c0_498 = arith.constant 0 : index
    %c0_499 = arith.constant 0 : index
    %551 = vector.load %arg8[%c1_496, %c5_497, %c0_498, %c0_499] : memref<2x6x6x128xf32, #tpu.memory_space<vmem>>, vector<1x1x1x128xf32>
    %552 = vector.shape_cast %551 : vector<1x1x1x128xf32> to vector<1x128xf32>
    %553 = vector.shape_cast %550 : vector<1x128xf32> to vector<1x1x1x128xf32>
    tpu.vector_store %arg8[%c1_496, %c5_497, %c0_498, %c0_499], %553 {strides = array<i32>} : memref<2x6x6x128xf32, #tpu.memory_space<vmem>>, vector<1x1x1x128xf32>,
    %554 = vector.extract_strided_slice %547 {offsets = [2, 0], sizes = [2, 128], strides = [1, 1]} : vector<12x128xf32> to vector<2x128xf32>
    %cst_500 = arith.constant dense<0xFF800000> : vector<128xf32>
    %555 = vector.multi_reduction <maximumf>, %554, %cst_500 [0] : vector<2x128xf32> to vector<128xf32>
    %556 = vector.shape_cast %555 : vector<128xf32> to vector<1x128xf32>
    %c1_501 = arith.constant 1 : index
    %c5_502 = arith.constant 5 : index
    %c1_503 = arith.constant 1 : index
    %c0_504 = arith.constant 0 : index
    %557 = vector.load %arg8[%c1_501, %c5_502, %c1_503, %c0_504] : memref<2x6x6x128xf32, #tpu.memory_space<vmem>>, vector<1x1x1x128xf32>
    %558 = vector.shape_cast %557 : vector<1x1x1x128xf32> to vector<1x128xf32>
    %559 = vector.shape_cast %556 : vector<1x128xf32> to vector<1x1x1x128xf32>
    tpu.vector_store %arg8[%c1_501, %c5_502, %c1_503, %c0_504], %559 {strides = array<i32>} : memref<2x6x6x128xf32, #tpu.memory_space<vmem>>, vector<1x1x1x128xf32>,
    %560 = vector.extract_strided_slice %547 {offsets = [4, 0], sizes = [2, 128], strides = [1, 1]} : vector<12x128xf32> to vector<2x128xf32>
    %cst_505 = arith.constant dense<0xFF800000> : vector<128xf32>
    %561 = vector.multi_reduction <maximumf>, %560, %cst_505 [0] : vector<2x128xf32> to vector<128xf32>
    %562 = vector.shape_cast %561 : vector<128xf32> to vector<1x128xf32>
    %c1_506 = arith.constant 1 : index
    %c5_507 = arith.constant 5 : index
    %c2_508 = arith.constant 2 : index
    %c0_509 = arith.constant 0 : index
    %563 = vector.load %arg8[%c1_506, %c5_507, %c2_508, %c0_509] : memref<2x6x6x128xf32, #tpu.memory_space<vmem>>, vector<1x1x1x128xf32>
    %564 = vector.shape_cast %563 : vector<1x1x1x128xf32> to vector<1x128xf32>
    %565 = vector.shape_cast %562 : vector<1x128xf32> to vector<1x1x1x128xf32>
    tpu.vector_store %arg8[%c1_506, %c5_507, %c2_508, %c0_509], %565 {strides = array<i32>} : memref<2x6x6x128xf32, #tpu.memory_space<vmem>>, vector<1x1x1x128xf32>,
    %566 = vector.extract_strided_slice %547 {offsets = [6, 0], sizes = [2, 128], strides = [1, 1]} : vector<12x128xf32> to vector<2x128xf32>
    %cst_510 = arith.constant dense<0xFF800000> : vector<128xf32>
    %567 = vector.multi_reduction <maximumf>, %566, %cst_510 [0] : vector<2x128xf32> to vector<128xf32>
    %568 = vector.shape_cast %567 : vector<128xf32> to vector<1x128xf32>
    %c1_511 = arith.constant 1 : index
    %c5_512 = arith.constant 5 : index
    %c3_513 = arith.constant 3 : index
    %c0_514 = arith.constant 0 : index
    %569 = vector.load %arg8[%c1_511, %c5_512, %c3_513, %c0_514] : memref<2x6x6x128xf32, #tpu.memory_space<vmem>>, vector<1x1x1x128xf32>
    %570 = vector.shape_cast %569 : vector<1x1x1x128xf32> to vector<1x128xf32>
    %571 = vector.shape_cast %568 : vector<1x128xf32> to vector<1x1x1x128xf32>
    tpu.vector_store %arg8[%c1_511, %c5_512, %c3_513, %c0_514], %571 {strides = array<i32>} : memref<2x6x6x128xf32, #tpu.memory_space<vmem>>, vector<1x1x1x128xf32>,
    %572 = vector.extract_strided_slice %547 {offsets = [8, 0], sizes = [2, 128], strides = [1, 1]} : vector<12x128xf32> to vector<2x128xf32>
    %cst_515 = arith.constant dense<0xFF800000> : vector<128xf32>
    %573 = vector.multi_reduction <maximumf>, %572, %cst_515 [0] : vector<2x128xf32> to vector<128xf32>
    %574 = vector.shape_cast %573 : vector<128xf32> to vector<1x128xf32>
    %c1_516 = arith.constant 1 : index
    %c5_517 = arith.constant 5 : index
    %c4_518 = arith.constant 4 : index
    %c0_519 = arith.constant 0 : index
    %575 = vector.load %arg8[%c1_516, %c5_517, %c4_518, %c0_519] : memref<2x6x6x128xf32, #tpu.memory_space<vmem>>, vector<1x1x1x128xf32>
    %576 = vector.shape_cast %575 : vector<1x1x1x128xf32> to vector<1x128xf32>
    %577 = vector.shape_cast %574 : vector<1x128xf32> to vector<1x1x1x128xf32>
    tpu.vector_store %arg8[%c1_516, %c5_517, %c4_518, %c0_519], %577 {strides = array<i32>} : memref<2x6x6x128xf32, #tpu.memory_space<vmem>>, vector<1x1x1x128xf32>,
    %578 = vector.extract_strided_slice %547 {offsets = [10, 0], sizes = [2, 128], strides = [1, 1]} : vector<12x128xf32> to vector<2x128xf32>
    %cst_520 = arith.constant dense<0xFF800000> : vector<128xf32>
    %579 = vector.multi_reduction <maximumf>, %578, %cst_520 [0] : vector<2x128xf32> to vector<128xf32>
    %580 = vector.shape_cast %579 : vector<128xf32> to vector<1x128xf32>
    %c1_521 = arith.constant 1 : index
    %c5_522 = arith.constant 5 : index
    %c5_523 = arith.constant 5 : index
    %c0_524 = arith.constant 0 : index
    %581 = vector.load %arg8[%c1_521, %c5_522, %c5_523, %c0_524] : memref<2x6x6x128xf32, #tpu.memory_space<vmem>>, vector<1x1x1x128xf32>
    %582 = vector.shape_cast %581 : vector<1x1x1x128xf32> to vector<1x128xf32>
    %583 = vector.shape_cast %580 : vector<1x128xf32> to vector<1x1x1x128xf32>
    tpu.vector_store %arg8[%c1_521, %c5_522, %c5_523, %c0_524], %583 {strides = array<i32>} : memref<2x6x6x128xf32, #tpu.memory_space<vmem>>, vector<1x1x1x128xf32>,
    return
  }
  func.func @transform_0(%arg0: i32) -> (i32, i32, i32, i32) {
    %c0_i32 = arith.constant 0 : i32
    %c0_i32_0 = arith.constant 0 : i32
    %c0_i32_1 = arith.constant 0 : i32
    %c0_i32_2 = arith.constant 0 : i32
    %c0_i32_3 = arith.constant 0 : i32
    return %c0_i32, %c0_i32_0, %c0_i32_1, %c0_i32_2 : i32, i32, i32, i32
  }
  func.func @transform_1(%arg0: i32) -> (i32, i32, i32) {
    %c0_i32 = arith.constant 0 : i32
    %c0_i32_0 = arith.constant 0 : i32
    %c0_i32_1 = arith.constant 0 : i32
    %c0_i32_2 = arith.constant 0 : i32
    return %c0_i32, %c0_i32_0, %c0_i32_1 : i32, i32, i32
  }
  func.func @transform_2(%arg0: i32) -> (i32, i32, i32) {
    %c0_i32 = arith.constant 0 : i32
    %c0_i32_0 = arith.constant 0 : i32
    %c0_i32_1 = arith.constant 0 : i32
    %c0_i32_2 = arith.constant 0 : i32
    return %c0_i32, %c0_i32_0, %c0_i32_1 : i32, i32, i32
  }
  func.func @transform_3(%arg0: i32) -> (i32, i32) {
    %c0_i32 = arith.constant 0 : i32
    %c0_i32_0 = arith.constant 0 : i32
    %c0_i32_1 = arith.constant 0 : i32
    return %c0_i32, %c0_i32_0 : i32, i32
  }
  func.func @transform_4(%arg0: i32) -> (i32, i32) {
    %c0_i32 = arith.constant 0 : i32
    %c0_i32_0 = arith.constant 0 : i32
    %c0_i32_1 = arith.constant 0 : i32
    return %c0_i32, %c0_i32_0 : i32, i32
  }
  func.func @transform_5(%arg0: i32) -> (i32, i32) {
    %c0_i32 = arith.constant 0 : i32
    %c0_i32_0 = arith.constant 0 : i32
    %c0_i32_1 = arith.constant 0 : i32
    return %c0_i32, %c0_i32_0 : i32, i32
  }
  func.func @transform_6(%arg0: i32) -> (i32, i32) {
    %c0_i32 = arith.constant 0 : i32
    %c0_i32_0 = arith.constant 0 : i32
    %c0_i32_1 = arith.constant 0 : i32
    return %c0_i32, %c0_i32_0 : i32, i32
  }
  func.func @transform_7(%arg0: i32) -> (i32, i32, i32, i32) {
    %c0_i32 = arith.constant 0 : i32
    %c0_i32_0 = arith.constant 0 : i32
    %c0_i32_1 = arith.constant 0 : i32
    %c0_i32_2 = arith.constant 0 : i32
    %c0_i32_3 = arith.constant 0 : i32
    return %c0_i32, %c0_i32_0, %c0_i32_1, %c0_i32_2 : i32, i32, i32, i32
  }
}

</mosaic_0001>

<bundles_post_ra>
// kernel: unet_decoder_forward.1
= control target key start
LH: loop header
LB: loop body
LE: loop exit
PB: predicated region body
PF: predicated region fallthrough
CT: control target
= control target key end

     0   :  { %v6737_v0 = vmov 0.0   ;;  %s6786_s24 = smov 0   ;;  %s8604_s0 = inlined_call_operand.vmem [shape: f32[2,16,16,128], index: 0, kind: input, shape index: {}]   ;;  %s8605_s1 = inlined_call_operand.vmem [shape: bf16[3,384,128], index: 1, kind: input, shape index: {}]   ;;  %s8606_s2 = inlined_call_operand.vmem [shape: bf16[3,384,128], index: 2, kind: input, shape index: {}]   ;;  %s8607_s3 = inlined_call_operand.vmem [shape: f32[1,128], index: 3, kind: input, shape index: {}]   ;;  %s8608_s4 = inlined_call_operand.vmem [shape: f32[1,128], index: 4, kind: input, shape index: {}]   ;;  %s8609_s5 = inlined_call_operand.vmem [shape: f32[1,128], index: 5, kind: input, shape index: {}]   ;;  %s8610_s6 = inlined_call_operand.vmem [shape: f32[1,128], index: 6, kind: input, shape index: {}]   ;;  %s8611_s7 = inlined_call_operand.vmem [shape: f32[2,6,6,128], index: 7, kind: output, shape index: {}]  }
   0x1   :  { %27 = vst [vmem:[#allocation4] sm:$0x1] %v6737_v0  ;;  %28 = vst [vmem:[#allocation5] sm:$0x1] %v6737_v0 }
   0x2   :  { %29 = vst [vmem:[#allocation6] sm:$0x1] %v6737_v0  ;;  %30 = vst [vmem:[#allocation7] sm:$0x1] %v6737_v0 }
   0x3 LB: > { %v6413_v1 = vld [vmem:[%s8605_s1 + $0x138] sm:$0xff]   ;;  %v6738_v2 = vmov 0.0   ;;  %vm6739_vm0 = vmmov 0   ;;  %v6416_v5 = vld [vmem:[%s8605_s1 + $0x130] sm:$0xff]   ;;  %v6419_v8 = vld [vmem:[%s8605_s1 + $0x128] sm:$0xff]   ;;  %s4944_s12 = sshll.u32 %s6723_s24, 4  ;;  %s6723_s24 = sphi %s6786_s24, %s36_s24  }
   0x4   : > { %6132 = vmatprep.subr.bf16.mxu1 %v6738_v2  ;;  %v6414_v3 = vld [vmem:[%s8605_s1 + $0x178] sm:$0xff]   ;;  %5760 = vmatprep.subr.bf16.mxu0 %v6413_v1  ;;  %v6417_v6 = vld [vmem:[%s8605_s1 + $0x170] sm:$0xff]   ;;  %v6420_v9 = vld [vmem:[%s8605_s1 + $0x168] sm:$0xff]   ;;  %s6862_s21 = scalar_lea.vmem %s8604_s0, %s4944_s12  ;;  %vm902_vm1 = vcmask 1045504   ;;  %s36_s24 = sadd.s32 1, %s6723_s24  }
   0x5   : > { %v6415_v4 = vld [vmem:[%s8605_s1 + $0xf8] sm:$0xff]   ;;  %6148 = vmatprep.mubr.msk.bf16.mxu1 %vm6739_vm0, %v6738_v2  ;;  %6133 = vmatpush3.bf16.msra.mxu1 %v6414_v3  ;;  %v6418_v7 = vld [vmem:[%s8605_s1 + $0xf0] sm:$0xff]   ;;  %v6421_v10 = vld [vmem:[%s8605_s1 + $0xe8] sm:$0xff]   ;;  %p33_p0 = scmp.ge.s32.totalorder %s36_s24, 14  }
   0x6   : > { %5761 = vmatpush3.bf16.msra.mxu0 %v6415_v4  ;;  %6134 = vmatprep.subr.bf16.mxu1 %v6738_v2  ;;  %v6422_v11 = vld [vmem:[%s8605_s1 + $0x120] sm:$0xff]   ;;  %v6425_v14 = vld [vmem:[%s8605_s1 + $0x118] sm:$0xff]   ;;  %v6428_v17 = vld [vmem:[%s8605_s1 + $0x110] sm:$0xff]  }
   0x7   : > { %5762 = vmatprep.subr.bf16.mxu0 %v6416_v5  ;;  %v6423_v12 = vld [vmem:[%s8605_s1 + $0x160] sm:$0xff]   ;;  %v6426_v15 = vld [vmem:[%s8605_s1 + $0x158] sm:$0xff]   ;;  %v6429_v18 = vld [vmem:[%s8605_s1 + $0x150] sm:$0xff]  }
   0x8   : > { %v6424_v13 = vld [vmem:[%s8605_s1 + $0xe0] sm:$0xff]   ;;  %v6427_v16 = vld [vmem:[%s8605_s1 + $0xd8] sm:$0xff]   ;;  %v6430_v19 = vld [vmem:[%s8605_s1 + $0xd0] sm:$0xff]  }
   0x9   : > { %6135 = vmatpush3.bf16.msra.mxu1 %v6417_v6  ;;  %v6431_v20 = vld [vmem:[%s8605_s1 + $0x108] sm:$0xff]   ;;  %v4948_v23 = vld [vmem:[%s6862_s21 + $0x11] sm:$0xff]  ;;  %v4949_v24 = vld [vmem:[%s6862_s21 + $0x19] sm:$0x3f] }
   0xa   : > { %5763 = vmatpush3.bf16.msra.mxu0 %v6418_v7  ;;  %6136 = vmatprep.subr.bf16.mxu1 %v6738_v2  ;;  %v6432_v21 = vld [vmem:[%s8605_s1 + $0x148] sm:$0xff]   ;;  %v6434_v25 = vld [vmem:[%s8605_s1 + $0x100] sm:$0xff]   ;;  %v106_v27 = vpack.c.bf16 %v4949_v24, %v4948_v23  ;;  %v4950_v28 = vld [vmem:[%s6862_s21 + $0x12] sm:$0xff] }
   0xb   : > { %5764 = vmatprep.subr.bf16.mxu0 %v6419_v8  ;;  %v6433_v22 = vld [vmem:[%s8605_s1 + $0xc8] sm:$0xff]   ;;  %v6435_v26 = vld [vmem:[%s8605_s1 + $0x140] sm:$0xff]   ;;  %v4951_v30 = vld [vmem:[%s6862_s21 + $0x1a] sm:$0x3f] }
   0xc   : > { %v6436_v29 = vld [vmem:[%s8605_s1 + $0xc0] sm:$0xff]   ;;  %333 = vmatprep.mubr.bf16.mxu0 %v106_v27  ;;  %v4946_v31 = vld [vmem:[%s6862_s21 + $0x10] sm:$0xff]  ;;  %v4947_v32 = vld [vmem:[%s6862_s21 + $0x18] sm:$0x3f]  ;;  %v107_v34 = vpack.c.bf16 %v4951_v30, %v4950_v28 }
   0xd   : > { %6137 = vmatpush3.bf16.msra.mxu1 %v6420_v9  ;;  %v6437_v33 = vld [vmem:[%s8605_s1 + $0x78] sm:$0xff]   ;;  %v105_v35 = vpack.c.bf16 %v4947_v32, %v4946_v31  ;;  %v6440_v38 = vld [vmem:[%s8605_s1 + $0x70] sm:$0xff]   ;;  %v6443_v41 = vld [vmem:[%s8605_s1 + $0x68] sm:$0xff]  }
   0xe   : > { %5765 = vmatpush3.bf16.msra.mxu0 %v6421_v10  ;;  %6138 = vmatprep.subr.bf16.mxu1 %v6738_v2  ;;  %v6438_v36 = vld [vmem:[%s8605_s1 + $0xb8] sm:$0xff]   ;;  %v6441_v39 = vld [vmem:[%s8605_s1 + $0xb0] sm:$0xff]   ;;  %v6444_v42 = vld [vmem:[%s8605_s1 + $0xa8] sm:$0xff]  }
   0xf   : > { %5766 = vmatprep.subr.bf16.mxu0 %v6422_v11  ;;  %v6439_v37 = vld [vmem:[%s8605_s1 + $0x38] sm:$0xff]   ;;  %v6442_v40 = vld [vmem:[%s8605_s1 + $0x30] sm:$0xff]   ;;  %v6445_v43 = vld [vmem:[%s8605_s1 + $0x28] sm:$0xff]  }
  0x10   : > { %v6446_v44 = vld [vmem:[%s8605_s1 + $0x60] sm:$0xff]   ;;  %v6449_v47 = vld [vmem:[%s8605_s1 + $0x58] sm:$0xff]   ;;  %v6452_v50 = vld [vmem:[%s8605_s1 + $0x50] sm:$0xff]  }
  0x11   : > { %6139 = vmatpush3.bf16.msra.mxu1 %v6423_v12  ;;  %v6447_v45 = vld [vmem:[%s8605_s1 + $0xa0] sm:$0xff]   ;;  %v6450_v48 = vld [vmem:[%s8605_s1 + $0x98] sm:$0xff]   ;;  %v42_v52 = vld [vmem:[%s6862_s21 + $0x9] sm:$0x3f] }
  0x12   : > { %5767 = vmatpush3.bf16.msra.mxu0 %v6424_v13  ;;  %6140 = vmatprep.subr.bf16.mxu1 %v6738_v2  ;;  %v6448_v46 = vld [vmem:[%s8605_s1 + $0x20] sm:$0xff]   ;;  %v6451_v49 = vld [vmem:[%s8605_s1 + $0x18] sm:$0xff]   ;;  %v6453_v53 = vld [vmem:[%s8605_s1 + $0x90] sm:$0xff]  }
  0x13   : > { %5768 = vmatprep.subr.bf16.mxu0 %v6425_v14  ;;  %v41_v51 = vld [vmem:[%s6862_s21 + $0x1] sm:$0xff]  ;;  %v6454_v55 = vld [vmem:[%s8605_s1 + $0x10] sm:$0xff]   ;;  %v44_v63 = vld [vmem:[%s6862_s21 + $0xa] sm:$0x3f] }
  0x14   : > { %v46_v54 = vpack.c.bf16 %v42_v52, %v41_v51  ;;  %v6455_v56 = vld [vmem:[%s8605_s1 + $0x48] sm:$0xff]   ;;  %v6458_v59 = vld [vmem:[%s8605_s1 + $0x40] sm:$0xff]   ;;  %v6461_v3 = vld [vmem:[%s8605_s1 + $0x1f8] sm:$0xff]  }
  0x15   : > { %6141 = vmatpush3.bf16.msra.mxu1 %v6426_v15  ;;  %v6456_v57 = vld [vmem:[%s8605_s1 + $0x88] sm:$0xff]   ;;  %v6459_v60 = vld [vmem:[%s8605_s1 + $0x80] sm:$0xff]   ;;  %v6462_v6 = vld [vmem:[%s8605_s1 + $0x238] sm:$0xff]  }
  0x16   : > { %5769 = vmatpush3.bf16.msra.mxu0 %v6427_v16  ;;  %6142 = vmatprep.subr.bf16.mxu1 %v6738_v2  ;;  %v6457_v58 = vld [vmem:[%s8605_s1 + $0x8] sm:$0xff]   ;;  %v6460_v62 = vld [vmem:[%s8605_s1] sm:$0xff]   ;;  %v6463_v7 = vld [vmem:[%s8605_s1 + $0x1b8] sm:$0xff]  }
  0x17   : > { %5770 = vmatprep.subr.bf16.mxu0 %v6428_v17  ;;  %v43_v61 = vld [vmem:[%s6862_s21 + $0x2] sm:$0xff]  ;;  %v6464_v8 = vld [vmem:[%s8605_s1 + $0x1f0] sm:$0xff]   ;;  %v5054_v32 = vld [vmem:[%s6862_s21 + $0x2a] sm:$0x3f] }
  0x18   : > { %v39_v0 = vld [vmem:[%s6862_s21] sm:$0xff]  ;;  %v40_v1 = vld [vmem:[%s6862_s21 + $0x8] sm:$0x3f]  ;;  %v47_v4 = vpack.c.bf16 %v44_v63, %v43_v61  ;;  %v6465_v9 = vld [vmem:[%s8605_s1 + $0x230] sm:$0xff]  }
  0x19   : > { %6143 = vmatpush3.bf16.msra.mxu1 %v6429_v18  ;;  %v45_v5 = vpack.c.bf16 %v40_v1, %v39_v0  ;;  %v6466_v10 = vld [vmem:[%s8605_s1 + $0x1b0] sm:$0xff]   ;;  %v6467_v11 = vld [vmem:[%s8605_s1 + $0x1e8] sm:$0xff]   ;;  %v6470_v14 = vld [vmem:[%s8605_s1 + $0x1e0] sm:$0xff]  }
  0x1a   : > { %5771 = vmatpush3.bf16.msra.mxu0 %v6430_v19  ;;  %6144 = vmatprep.subr.bf16.mxu1 %v6738_v2  ;;  %v6468_v12 = vld [vmem:[%s8605_s1 + $0x228] sm:$0xff]   ;;  %v6471_v15 = vld [vmem:[%s8605_s1 + $0x220] sm:$0xff]   ;;  %v6473_v19 = vld [vmem:[%s8605_s1 + $0x1d8] sm:$0xff]  }
  0x1b   : > { %5772 = vmatprep.subr.bf16.mxu0 %v6431_v20  ;;  %v6469_v13 = vld [vmem:[%s8605_s1 + $0x1a8] sm:$0xff]   ;;  %v6472_v16 = vld [vmem:[%s8605_s1 + $0x1a0] sm:$0xff]   ;;  %v6476_v23 = vld [vmem:[%s8605_s1 + $0x1d0] sm:$0xff]  }
  0x1c   : > { %v5051_v17 = vld [vmem:[%s6862_s21 + $0x21] sm:$0xff]  ;;  %v5052_v18 = vld [vmem:[%s6862_s21 + $0x29] sm:$0x3f]  ;;  %v6477_v24 = vld [vmem:[%s8605_s1 + $0x210] sm:$0xff]  }
  0x1d   : > { %6145 = vmatpush3.bf16.msra.mxu1 %v6432_v21  ;;  %v619_v20 = vpack.c.bf16 %v5052_v18, %v5051_v17  ;;  %v6474_v21 = vld [vmem:[%s8605_s1 + $0x218] sm:$0xff]   ;;  %v6480_v27 = vld [vmem:[%s8605_s1 + $0x208] sm:$0xff]   ;;  %v6483_v30 = vld [vmem:[%s8605_s1 + $0x200] sm:$0xff]  }
  0x1e   : > { %5773 = vmatpush3.bf16.msra.mxu0 %v6433_v22  ;;  %6146 = vmatprep.subr.bf16.mxu1 %v6738_v2  ;;  %v6475_v22 = vld [vmem:[%s8605_s1 + $0x198] sm:$0xff]   ;;  %v6481_v28 = vld [vmem:[%s8605_s1 + $0x188] sm:$0xff]  }
  0x1f   : > { %5774 = vmatprep.subr.bf16.mxu0 %v6434_v25  ;;  %v6478_v25 = vld [vmem:[%s8605_s1 + $0x190] sm:$0xff]   ;;  %v5053_v31 = vld [vmem:[%s6862_s21 + $0x22] sm:$0xff] }
  0x21   : > { %6147 = vmatpush3.bf16.msra.mxu1 %v6435_v26  ;;  %v6479_v26 = vld [vmem:[%s8605_s1 + $0x1c8] sm:$0xff]  }
  0x22   : > { %5775 = vmatpush3.bf16.msra.mxu0 %v6436_v29  ;;  %6152 = vmatprep.subr.bf16.mxu1 %v6738_v2  ;;  %v6482_v29 = vld [vmem:[%s8605_s1 + $0x1c0] sm:$0xff]  }
  0x23   : > { %5791 = vmatprep.subr.bf16.mxu0 %v6437_v33  ;;  %v6484_v33 = vld [vmem:[%s8605_s1 + $0x180] sm:$0xff]  }
  0x24   : > { %6149 = vmatmul.mubr.bf16.vlgmr.msra.gmra.mxu1 %v107_v34  ;;  %v5049_v34 = vld [vmem:[%s6862_s21 + $0x20] sm:$0xff] }
  0x25   : > { %334 = vmatmul.mubr.bf16.vlgmr.msra.gmra.mxu0 %v105_v35  ;;  %6153 = vmatpush3.bf16.msra.mxu1 %v6438_v36  ;;  %v5050_v35 = vld [vmem:[%s6862_s21 + $0x28] sm:$0x3f]  ;;  %v620_v36 = vpack.c.bf16 %v5054_v32, %v5053_v31  ;;  %s898_s21 = scalar_lea.vmem [#allocation2], %s4944_s12  ;;  %v913_v32 = vld [vmem:[#allocation5] sm:$0x1]  ;;  %s7070_s12 = smov (%p33_p0), 0  }
  0x26   : > { %5792 = vmatpush3.bf16.msra.mxu0 %v6439_v37  ;;  %6154 = vmatprep.subr.bf16.mxu1 %v6738_v2  ;;  %v618_v37 = vpack.c.bf16 %v5050_v35, %v5049_v34 }
  0x27   : > { %5793 = vmatprep.subr.bf16.mxu0 %v6440_v38  ;;  %6168 = vmatprep.mubr.msk.bf16.mxu1 %vm6739_vm0, %v6738_v2 }
  0x28   : > { %559 = vmatprep.mubr.bf16.mxu0 %v46_v54 }
  0x29   : > { %6155 = vmatpush3.bf16.msra.mxu1 %v6441_v39 }
  0x2a   : > { %5794 = vmatpush3.bf16.msra.mxu0 %v6442_v40  ;;  %6156 = vmatprep.subr.bf16.mxu1 %v6738_v2 }
  0x2b   : > { %5795 = vmatprep.subr.bf16.mxu0 %v6443_v41 }
  0x2d   : > { %6157 = vmatpush3.bf16.msra.mxu1 %v6444_v42 }
  0x2e   : > { %5796 = vmatpush3.bf16.msra.mxu0 %v6445_v43  ;;  %6158 = vmatprep.subr.bf16.mxu1 %v6738_v2 }
  0x2f   : > { %5797 = vmatprep.subr.bf16.mxu0 %v6446_v44 }
  0x31   : > { %6159 = vmatpush3.bf16.msra.mxu1 %v6447_v45 }
  0x32   : > { %5798 = vmatpush3.bf16.msra.mxu0 %v6448_v46  ;;  %6160 = vmatprep.subr.bf16.mxu1 %v6738_v2 }
  0x33   : > { %5799 = vmatprep.subr.bf16.mxu0 %v6449_v47 }
  0x35   : > { %6161 = vmatpush3.bf16.msra.mxu1 %v6450_v48 }
  0x36   : > { %5800 = vmatpush3.bf16.msra.mxu0 %v6451_v49  ;;  %6162 = vmatprep.subr.bf16.mxu1 %v6738_v2 }
  0x37   : > { %5801 = vmatprep.subr.bf16.mxu0 %v6452_v50 }
  0x39   : > { %6163 = vmatpush3.bf16.msra.mxu1 %v6453_v53 }
  0x3a   : > { %5802 = vmatpush3.bf16.msra.mxu0 %v6454_v55  ;;  %6164 = vmatprep.subr.bf16.mxu1 %v6738_v2 }
  0x3b   : > { %5803 = vmatprep.subr.bf16.mxu0 %v6455_v56 }
  0x3d   : > { %6165 = vmatpush3.bf16.msra.mxu1 %v6456_v57 }
  0x3e   : > { %5804 = vmatpush3.bf16.msra.mxu0 %v6457_v58  ;;  %6166 = vmatprep.subr.bf16.mxu1 %v6738_v2 }
  0x3f   : > { %5805 = vmatprep.subr.bf16.mxu0 %v6458_v59 }
  0x41   : > { %6167 = vmatpush3.bf16.msra.mxu1 %v6459_v60 }
  0x42   : > { %5806 = vmatpush3.bf16.msra.mxu0 %v6460_v62  ;;  %6172 = vmatprep.subr.bf16.mxu1 %v6738_v2 }
  0x43   : > { %5822 = vmatprep.subr.bf16.mxu0 %v6461_v3 }
  0x44   : > { %6169 = vmatmul.mubr.bf16.vlgmr.msra.gmra.mxu1 %v47_v4 }
  0x45   : > { %560 = vmatmul.mubr.bf16.vlgmr.msra.gmra.mxu0 %v45_v5  ;;  %6173 = vmatpush3.bf16.msra.mxu1 %v6462_v6 }
  0x46   : > { %5823 = vmatpush3.bf16.msra.mxu0 %v6463_v7  ;;  %6174 = vmatprep.subr.bf16.mxu1 %v6738_v2 }
  0x47   : > { %5824 = vmatprep.subr.bf16.mxu0 %v6464_v8  ;;  %6188 = vmatprep.mubr.msk.bf16.mxu1 %vm6739_vm0, %v6738_v2 }
  0x48   : > { %846 = vmatprep.mubr.bf16.mxu0 %v619_v20 }
  0x49   : > { %6175 = vmatpush3.bf16.msra.mxu1 %v6465_v9 }
  0x4a   : > { %5825 = vmatpush3.bf16.msra.mxu0 %v6466_v10  ;;  %6176 = vmatprep.subr.bf16.mxu1 %v6738_v2 }
  0x4b   : > { %5826 = vmatprep.subr.bf16.mxu0 %v6467_v11 }
  0x4d   : > { %6177 = vmatpush3.bf16.msra.mxu1 %v6468_v12 }
  0x4e   : > { %5827 = vmatpush3.bf16.msra.mxu0 %v6469_v13  ;;  %6178 = vmatprep.subr.bf16.mxu1 %v6738_v2 }
  0x4f   : > { %5828 = vmatprep.subr.bf16.mxu0 %v6470_v14 }
  0x51   : > { %6179 = vmatpush3.bf16.msra.mxu1 %v6471_v15 }
  0x52   : > { %5829 = vmatpush3.bf16.msra.mxu0 %v6472_v16  ;;  %6180 = vmatprep.subr.bf16.mxu1 %v6738_v2 }
  0x53   : > { %5830 = vmatprep.subr.bf16.mxu0 %v6473_v19 }
  0x55   : > { %6181 = vmatpush3.bf16.msra.mxu1 %v6474_v21 }
  0x56   : > { %5831 = vmatpush3.bf16.msra.mxu0 %v6475_v22  ;;  %6182 = vmatprep.subr.bf16.mxu1 %v6738_v2 }
  0x57   : > { %5832 = vmatprep.subr.bf16.mxu0 %v6476_v23 }
  0x59   : > { %6183 = vmatpush3.bf16.msra.mxu1 %v6477_v24 }
  0x5a   : > { %5833 = vmatpush3.bf16.msra.mxu0 %v6478_v25  ;;  %6184 = vmatprep.subr.bf16.mxu1 %v6738_v2 }
  0x5b   : > { %5834 = vmatprep.subr.bf16.mxu0 %v6479_v26 }
  0x5d   : > { %6185 = vmatpush3.bf16.msra.mxu1 %v6480_v27 }
  0x5e   : > { %5835 = vmatpush3.bf16.msra.mxu0 %v6481_v28  ;;  %6186 = vmatprep.subr.bf16.mxu1 %v6738_v2 }
  0x5f   : > { %5836 = vmatprep.subr.bf16.mxu0 %v6482_v29  ;;  %v901_v29 = vld [vmem:[#allocation4] sm:$0x1] }
  0x61   : > { %6187 = vmatpush3.bf16.msra.mxu1 %v6483_v30 }
  0x62   : > { %5837 = vmatpush3.bf16.msra.mxu0 %v6484_v33 }
  0x64   : > { %6189 = vmatmul.mubr.bf16.vlgmr.msra.gmra.mxu1 %v620_v36 }
  0x65   : > { %847 = vmatmul.mubr.bf16.vlgmr.msra.gmra.mxu0 %v618_v37 }
  0xe4   : > { %v376_v38 = vpop.f32.mrf.mxu1 }
  0xe5   : > { %v5776_v44 = vpop.f32.mrf.mxu0 }
  0xe6   : > { %v6150_v39 = vpop.f32.mrf.mxu1 }
  0xe7   : > { %v5777_v46 = vpop.f32.mrf.mxu0 }
  0xe8   : > { %v379_v40 = vpop.f32.mrf.mxu1  ;;  %v5778_v52 = vadd.f32 %v5777_v46, %v5776_v44 }
  0xe9   : > { %v5779_v47 = vpop.f32.mrf.mxu0 }
  0xea   : > { %v6151_v41 = vpop.f32.mrf.mxu1  ;;  %v377_v55 = vadd.f32 %v5778_v52, %v376_v38 }
  0xeb   : > { %v5780_v48 = vpop.f32.mrf.mxu0 }
  0xec   : > { %v5781_v56 = vadd.f32 %v5780_v48, %v5779_v47 }
  0xee   : > { %v380_v63 = vadd.f32 %v5781_v56, %v379_v40 }
 0x104   : > { %v602_v42 = vpop.f32.mrf.mxu1 }
 0x105   : > { %v5807_v49 = vpop.f32.mrf.mxu0 }
 0x106   : > { %v6170_v43 = vpop.f32.mrf.mxu1 }
 0x107   : > { %v5808_v50 = vpop.f32.mrf.mxu0 }
 0x108   : > { %v605_v2 = vpop.f32.mrf.mxu1  ;;  %v5809_v53 = vadd.f32 %v5808_v50, %v5807_v49 }
 0x109   : > { %v5810_v51 = vpop.f32.mrf.mxu0 }
 0x10a   : > { %v6171_v45 = vpop.f32.mrf.mxu1  ;;  %v562_v59 = vadd.f32 %v5809_v53, %v377_v55 }
 0x10b   : > { %v5811_v54 = vpop.f32.mrf.mxu0 }
 0x10c   : > { %v5812_v60 = vadd.f32 %v5811_v54, %v5810_v51  ;;  %v603_v4 = vadd.f32 %v602_v42, %v562_v59 }
 0x10e   : > { %v565_v5 = vadd.f32 %v5812_v60, %v380_v63 }
 0x110   : > { %v606_v11 = vadd.f32 %v605_v2, %v565_v5 }
 0x124   : > { %v889_v57 = vpop.f32.mrf.mxu1 }
 0x125   : > { %v5838_v58 = vpop.f32.mrf.mxu0 }
 0x126   : > { %v6190_v61 = vpop.f32.mrf.mxu1 }
 0x127   : > { %v5839_v62 = vpop.f32.mrf.mxu0 }
 0x128   : > { %v5840_v0 = vadd.f32 %v5839_v62, %v5838_v58  ;;  %v892_v1 = vpop.f32.mrf.mxu1 }
 0x129   : > { %v5841_v3 = vpop.f32.mrf.mxu0 }
 0x12a   : > { %v890_v6 = vadd.f32 %v5840_v0, %v889_v57  ;;  %v6191_v7 = vpop.f32.mrf.mxu1 }
 0x12b   : > { %v5842_v8 = vpop.f32.mrf.mxu0 }
 0x12c   : > { %v896_v9 = vadd.f32 %v890_v6, %v603_v4  ;;  %v5843_v10 = vadd.f32 %v5842_v8, %v5841_v3 }
 0x12e   : > { %899 = vst [vmem:[%s898_s21] sm:$0xff] %v896_v9  ;;  %v893_v12 = vadd.f32 %v5843_v10, %v892_v1  ;;  %v914_v16 = vmul.f32 %v896_v9, %v896_v9 }
 0x130   : > { %v897_v13 = vadd.f32 %v893_v12, %v606_v11 }
 0x132   : > { %900 = vst [vmem:[%s898_s21 + $0x8] sm:$0x3f] %v897_v13  ;;  %v903_v14 = vsel %vm902_vm1, %v897_v13, 0.0  ;;  %v915_v15 = vmul.f32 %v897_v13, %v897_v13 }
 0x133   : > { %v904_v17 = vadd.f32 %v903_v14, %v896_v9 }
 0x134   : > { %v916_v18 = vsel %vm902_vm1, %v915_v15, 0.0 }
 0x135   : > { %v905_v19 = vrot.slane %v904_v17, 4  ;;  %v917_v20 = vadd.f32 %v916_v18, %v914_v16 }
 0x137   : > { %v906_v21 = vadd.f32 %v905_v19, %v904_v17  ;;  %v918_v22 = vrot.slane %v917_v20, 4 }
 0x139   : > { %v907_v23 = vrot.slane %v906_v21, 2  ;;  %v919_v24 = vadd.f32 %v918_v22, %v917_v20 }
 0x13b   : > { %v908_v25 = vadd.f32 %v907_v23, %v906_v21  ;;  %v920_v26 = vrot.slane %v919_v24, 2 }
 0x13d   : > { %v909_v27 = vrot.slane %v908_v25, 1  ;;  %v921_v28 = vadd.f32 %v920_v26, %v919_v24 }
 0x13f   : > { %v910_v30 = vadd.f32 %v909_v27, %v908_v25  ;;  %v922_v31 = vrot.slane %v921_v28, 1 }
 0x141   : > { %v911_v33 = vadd.f32 %v910_v30, %v901_v29  ;;  %v923_v34 = vadd.f32 %v922_v31, %v921_v28  ;;  %35 = sbr.rel (!%p33_p0) target bundleno = 3 (0x3), region = 135 }
 0x143   : > { %912 = vst [vmem:[#allocation4] sm:$0x1] %v911_v33  ;;  %v924_v35 = vadd.f32 %v923_v34, %v913_v32 }
 0x145   : > { %925 = vst [vmem:[#allocation5] sm:$0x1] %v924_v35 }
 0x146 LB: > { %v6485_v36 = vld [vmem:[%s8605_s1 + $0x138] sm:$0xff]   ;;  %v6740_v37 = vmov 0.0   ;;  %vm6741_vm2 = vmmov 0   ;;  %v6488_v40 = vld [vmem:[%s8605_s1 + $0x130] sm:$0xff]   ;;  %v6491_v43 = vld [vmem:[%s8605_s1 + $0x128] sm:$0xff]   ;;  %s5127_s16 = sshll.u32 %s6727_s12, 4  ;;  %s6727_s12 = sphi %s7070_s12, %s931_s12  }
 0x147   : > { %6192 = vmatprep.subr.bf16.mxu1 %v6740_v37  ;;  %v6486_v38 = vld [vmem:[%s8605_s1 + $0x178] sm:$0xff]   ;;  %5853 = vmatprep.subr.bf16.mxu0 %v6485_v36  ;;  %v6489_v41 = vld [vmem:[%s8605_s1 + $0x170] sm:$0xff]   ;;  %v6492_v2 = vld [vmem:[%s8605_s1 + $0x168] sm:$0xff]   ;;  %s7146_s27 = scalar_lea.vmem %s8604_s0, %s5127_s16  ;;  %s931_s12 = sadd.s32 1, %s6727_s12  }
 0x148   : > { %v6487_v39 = vld [vmem:[%s8605_s1 + $0xf8] sm:$0xff]   ;;  %6208 = vmatprep.mubr.msk.bf16.mxu1 %vm6741_vm2, %v6740_v37  ;;  %6193 = vmatpush3.bf16.msra.mxu1 %v6486_v38  ;;  %v6490_v42 = vld [vmem:[%s8605_s1 + $0xf0] sm:$0xff]   ;;  %v6493_v44 = vld [vmem:[%s8605_s1 + $0xe8] sm:$0xff]   ;;  %p928_p1 = scmp.ge.s32.totalorder %s931_s12, 14  }
 0x149   : > { %5854 = vmatpush3.bf16.msra.mxu0 %v6487_v39  ;;  %6194 = vmatprep.subr.bf16.mxu1 %v6740_v37  ;;  %v6494_v45 = vld [vmem:[%s8605_s1 + $0x120] sm:$0xff]   ;;  %v6497_v48 = vld [vmem:[%s8605_s1 + $0x118] sm:$0xff]   ;;  %v6500_v51 = vld [vmem:[%s8605_s1 + $0x110] sm:$0xff]   ;;  %s7480_s0 = smov (%p928_p1), 0  }
 0x14a   : > { %5855 = vmatprep.subr.bf16.mxu0 %v6488_v40  ;;  %v6495_v46 = vld [vmem:[%s8605_s1 + $0x160] sm:$0xff]   ;;  %v6498_v49 = vld [vmem:[%s8605_s1 + $0x158] sm:$0xff]   ;;  %v6501_v52 = vld [vmem:[%s8605_s1 + $0x150] sm:$0xff]  }
 0x14b   : > { %v6496_v47 = vld [vmem:[%s8605_s1 + $0xe0] sm:$0xff]   ;;  %v6499_v50 = vld [vmem:[%s8605_s1 + $0xd8] sm:$0xff]   ;;  %v6502_v53 = vld [vmem:[%s8605_s1 + $0xd0] sm:$0xff]  }
 0x14c   : > { %6195 = vmatpush3.bf16.msra.mxu1 %v6489_v41  ;;  %v6503_v54 = vld [vmem:[%s8605_s1 + $0x108] sm:$0xff]   ;;  %v5137_v57 = vld [vmem:[%s7146_s27 + $0x111] sm:$0xff]  ;;  %v5138_v58 = vld [vmem:[%s7146_s27 + $0x119] sm:$0x3f] }
 0x14d   : > { %5856 = vmatpush3.bf16.msra.mxu0 %v6490_v42  ;;  %6196 = vmatprep.subr.bf16.mxu1 %v6740_v37  ;;  %v6504_v55 = vld [vmem:[%s8605_s1 + $0x148] sm:$0xff]   ;;  %v6506_v59 = vld [vmem:[%s8605_s1 + $0x100] sm:$0xff]   ;;  %v1003_v61 = vpack.c.bf16 %v5138_v58, %v5137_v57  ;;  %v5139_v62 = vld [vmem:[%s7146_s27 + $0x112] sm:$0xff] }
 0x14e   : > { %5857 = vmatprep.subr.bf16.mxu0 %v6491_v43  ;;  %v6505_v56 = vld [vmem:[%s8605_s1 + $0xc8] sm:$0xff]   ;;  %v6507_v60 = vld [vmem:[%s8605_s1 + $0x140] sm:$0xff]   ;;  %v5140_v0 = vld [vmem:[%s7146_s27 + $0x11a] sm:$0x3f] }
 0x14f   : > { %v6508_v63 = vld [vmem:[%s8605_s1 + $0xc0] sm:$0xff]   ;;  %1230 = vmatprep.mubr.bf16.mxu0 %v1003_v61  ;;  %v5135_v1 = vld [vmem:[%s7146_s27 + $0x110] sm:$0xff]  ;;  %v5136_v3 = vld [vmem:[%s7146_s27 + $0x118] sm:$0x3f]  ;;  %v1004_v5 = vpack.c.bf16 %v5140_v0, %v5139_v62 }
 0x150   : > { %6197 = vmatpush3.bf16.msra.mxu1 %v6492_v2  ;;  %v6509_v4 = vld [vmem:[%s8605_s1 + $0x78] sm:$0xff]   ;;  %v1002_v6 = vpack.c.bf16 %v5136_v3, %v5135_v1  ;;  %v6512_v9 = vld [vmem:[%s8605_s1 + $0x70] sm:$0xff]   ;;  %v6515_v12 = vld [vmem:[%s8605_s1 + $0x68] sm:$0xff]  }
 0x151   : > { %5858 = vmatpush3.bf16.msra.mxu0 %v6493_v44  ;;  %6198 = vmatprep.subr.bf16.mxu1 %v6740_v37  ;;  %v6510_v7 = vld [vmem:[%s8605_s1 + $0xb8] sm:$0xff]   ;;  %v6513_v10 = vld [vmem:[%s8605_s1 + $0xb0] sm:$0xff]   ;;  %v6516_v13 = vld [vmem:[%s8605_s1 + $0xa8] sm:$0xff]  }
 0x152   : > { %5859 = vmatprep.subr.bf16.mxu0 %v6494_v45  ;;  %v6511_v8 = vld [vmem:[%s8605_s1 + $0x38] sm:$0xff]   ;;  %v6514_v11 = vld [vmem:[%s8605_s1 + $0x30] sm:$0xff]   ;;  %v6517_v14 = vld [vmem:[%s8605_s1 + $0x28] sm:$0xff]  }
 0x153   : > { %v6518_v15 = vld [vmem:[%s8605_s1 + $0x60] sm:$0xff]   ;;  %v6521_v18 = vld [vmem:[%s8605_s1 + $0x58] sm:$0xff]   ;;  %v6524_v21 = vld [vmem:[%s8605_s1 + $0x50] sm:$0xff]  }
 0x154   : > { %6199 = vmatpush3.bf16.msra.mxu1 %v6495_v46  ;;  %v6519_v16 = vld [vmem:[%s8605_s1 + $0xa0] sm:$0xff]   ;;  %v6522_v19 = vld [vmem:[%s8605_s1 + $0x98] sm:$0xff]   ;;  %v5131_v23 = vld [vmem:[%s7146_s27 + $0x109] sm:$0x3f] }
 0x155   : > { %5860 = vmatpush3.bf16.msra.mxu0 %v6496_v47  ;;  %6200 = vmatprep.subr.bf16.mxu1 %v6740_v37  ;;  %v6520_v17 = vld [vmem:[%s8605_s1 + $0x20] sm:$0xff]   ;;  %v6523_v20 = vld [vmem:[%s8605_s1 + $0x18] sm:$0xff]   ;;  %v6525_v24 = vld [vmem:[%s8605_s1 + $0x90] sm:$0xff]  }
 0x156   : > { %5861 = vmatprep.subr.bf16.mxu0 %v6497_v48  ;;  %v5130_v22 = vld [vmem:[%s7146_s27 + $0x101] sm:$0xff]  ;;  %v6526_v26 = vld [vmem:[%s8605_s1 + $0x10] sm:$0xff]   ;;  %v5133_v34 = vld [vmem:[%s7146_s27 + $0x10a] sm:$0x3f] }
 0x157   : > { %v942_v25 = vpack.c.bf16 %v5131_v23, %v5130_v22  ;;  %v6527_v27 = vld [vmem:[%s8605_s1 + $0x48] sm:$0xff]   ;;  %v6530_v30 = vld [vmem:[%s8605_s1 + $0x40] sm:$0xff]   ;;  %v6533_v38 = vld [vmem:[%s8605_s1 + $0x1f8] sm:$0xff]  }
 0x158   : > { %6201 = vmatpush3.bf16.msra.mxu1 %v6498_v49  ;;  %v6528_v28 = vld [vmem:[%s8605_s1 + $0x88] sm:$0xff]   ;;  %v6531_v31 = vld [vmem:[%s8605_s1 + $0x80] sm:$0xff]   ;;  %v6534_v41 = vld [vmem:[%s8605_s1 + $0x238] sm:$0xff]  }
 0x159   : > { %5862 = vmatpush3.bf16.msra.mxu0 %v6499_v50  ;;  %6202 = vmatprep.subr.bf16.mxu1 %v6740_v37  ;;  %v6529_v29 = vld [vmem:[%s8605_s1 + $0x8] sm:$0xff]   ;;  %v6532_v33 = vld [vmem:[%s8605_s1] sm:$0xff]   ;;  %v6535_v42 = vld [vmem:[%s8605_s1 + $0x1b8] sm:$0xff]  }
 0x15a   : > { %5863 = vmatprep.subr.bf16.mxu0 %v6500_v51  ;;  %v5132_v32 = vld [vmem:[%s7146_s27 + $0x102] sm:$0xff]  ;;  %v6536_v43 = vld [vmem:[%s8605_s1 + $0x1f0] sm:$0xff]   ;;  %v5243_v3 = vld [vmem:[%s7146_s27 + $0x12a] sm:$0x3f] }
 0x15b   : > { %v5128_v35 = vld [vmem:[%s7146_s27 + $0x100] sm:$0xff]  ;;  %v5129_v36 = vld [vmem:[%s7146_s27 + $0x108] sm:$0x3f]  ;;  %v943_v39 = vpack.c.bf16 %v5133_v34, %v5132_v32  ;;  %v6537_v2 = vld [vmem:[%s8605_s1 + $0x230] sm:$0xff]  }
 0x15c   : > { %6203 = vmatpush3.bf16.msra.mxu1 %v6501_v52  ;;  %v941_v40 = vpack.c.bf16 %v5129_v36, %v5128_v35  ;;  %v6538_v44 = vld [vmem:[%s8605_s1 + $0x1b0] sm:$0xff]   ;;  %v6539_v45 = vld [vmem:[%s8605_s1 + $0x1e8] sm:$0xff]   ;;  %v6542_v48 = vld [vmem:[%s8605_s1 + $0x1e0] sm:$0xff]  }
 0x15d   : > { %5864 = vmatpush3.bf16.msra.mxu0 %v6502_v53  ;;  %6204 = vmatprep.subr.bf16.mxu1 %v6740_v37  ;;  %v6540_v46 = vld [vmem:[%s8605_s1 + $0x228] sm:$0xff]   ;;  %v6543_v49 = vld [vmem:[%s8605_s1 + $0x220] sm:$0xff]   ;;  %v6545_v53 = vld [vmem:[%s8605_s1 + $0x1d8] sm:$0xff]  }
 0x15e   : > { %5865 = vmatprep.subr.bf16.mxu0 %v6503_v54  ;;  %v6541_v47 = vld [vmem:[%s8605_s1 + $0x1a8] sm:$0xff]   ;;  %v6544_v50 = vld [vmem:[%s8605_s1 + $0x1a0] sm:$0xff]   ;;  %v6548_v57 = vld [vmem:[%s8605_s1 + $0x1d0] sm:$0xff]  }
 0x15f   : > { %v5240_v51 = vld [vmem:[%s7146_s27 + $0x121] sm:$0xff]  ;;  %v5241_v52 = vld [vmem:[%s7146_s27 + $0x129] sm:$0x3f]  ;;  %v6549_v58 = vld [vmem:[%s8605_s1 + $0x210] sm:$0xff]  }
 0x160   : > { %6205 = vmatpush3.bf16.msra.mxu1 %v6504_v55  ;;  %v1517_v54 = vpack.c.bf16 %v5241_v52, %v5240_v51  ;;  %v6546_v55 = vld [vmem:[%s8605_s1 + $0x218] sm:$0xff]   ;;  %v6552_v61 = vld [vmem:[%s8605_s1 + $0x208] sm:$0xff]   ;;  %v6555_v0 = vld [vmem:[%s8605_s1 + $0x200] sm:$0xff]  }
 0x161   : > { %5866 = vmatpush3.bf16.msra.mxu0 %v6505_v56  ;;  %6206 = vmatprep.subr.bf16.mxu1 %v6740_v37  ;;  %v6547_v56 = vld [vmem:[%s8605_s1 + $0x198] sm:$0xff]   ;;  %v6553_v62 = vld [vmem:[%s8605_s1 + $0x188] sm:$0xff]  }
 0x162   : > { %5867 = vmatprep.subr.bf16.mxu0 %v6506_v59  ;;  %v6550_v59 = vld [vmem:[%s8605_s1 + $0x190] sm:$0xff]   ;;  %v5242_v1 = vld [vmem:[%s7146_s27 + $0x122] sm:$0xff] }
 0x164   : > { %6207 = vmatpush3.bf16.msra.mxu1 %v6507_v60  ;;  %v6551_v60 = vld [vmem:[%s8605_s1 + $0x1c8] sm:$0xff]  }
 0x165   : > { %5868 = vmatpush3.bf16.msra.mxu0 %v6508_v63  ;;  %6212 = vmatprep.subr.bf16.mxu1 %v6740_v37  ;;  %v6554_v63 = vld [vmem:[%s8605_s1 + $0x1c0] sm:$0xff]  }
 0x166   : > { %5884 = vmatprep.subr.bf16.mxu0 %v6509_v4  ;;  %v6556_v4 = vld [vmem:[%s8605_s1 + $0x180] sm:$0xff]  }
 0x167   : > { %6209 = vmatmul.mubr.bf16.vlgmr.msra.gmra.mxu1 %v1004_v5  ;;  %v5238_v5 = vld [vmem:[%s7146_s27 + $0x120] sm:$0xff] }
 0x168   : > { %1231 = vmatmul.mubr.bf16.vlgmr.msra.gmra.mxu0 %v1002_v6  ;;  %6213 = vmatpush3.bf16.msra.mxu1 %v6510_v7  ;;  %v5239_v6 = vld [vmem:[%s7146_s27 + $0x128] sm:$0x3f]  ;;  %v1518_v7 = vpack.c.bf16 %v5243_v3, %v5242_v1  ;;  %s4900_s27 = scalar_lea.vmem [#allocation2], %s5127_s16  ;;  %v1812_v3 = vld [vmem:[#allocation5] sm:$0x1] }
 0x169   : > { %5885 = vmatpush3.bf16.msra.mxu0 %v6511_v8  ;;  %6214 = vmatprep.subr.bf16.mxu1 %v6740_v37  ;;  %v1516_v8 = vpack.c.bf16 %v5239_v6, %v5238_v5 }
 0x16a   : > { %5886 = vmatprep.subr.bf16.mxu0 %v6512_v9  ;;  %6228 = vmatprep.mubr.msk.bf16.mxu1 %vm6741_vm2, %v6740_v37 }
 0x16b   : > { %1456 = vmatprep.mubr.bf16.mxu0 %v942_v25 }
 0x16c   : > { %6215 = vmatpush3.bf16.msra.mxu1 %v6513_v10 }
 0x16d   : > { %5887 = vmatpush3.bf16.msra.mxu0 %v6514_v11  ;;  %6216 = vmatprep.subr.bf16.mxu1 %v6740_v37 }
 0x16e   : > { %5888 = vmatprep.subr.bf16.mxu0 %v6515_v12 }
 0x170   : > { %6217 = vmatpush3.bf16.msra.mxu1 %v6516_v13 }
 0x171   : > { %5889 = vmatpush3.bf16.msra.mxu0 %v6517_v14  ;;  %6218 = vmatprep.subr.bf16.mxu1 %v6740_v37 }
 0x172   : > { %5890 = vmatprep.subr.bf16.mxu0 %v6518_v15 }
 0x174   : > { %6219 = vmatpush3.bf16.msra.mxu1 %v6519_v16 }
 0x175   : > { %5891 = vmatpush3.bf16.msra.mxu0 %v6520_v17  ;;  %6220 = vmatprep.subr.bf16.mxu1 %v6740_v37 }
 0x176   : > { %5892 = vmatprep.subr.bf16.mxu0 %v6521_v18 }
 0x178   : > { %6221 = vmatpush3.bf16.msra.mxu1 %v6522_v19 }
 0x179   : > { %5893 = vmatpush3.bf16.msra.mxu0 %v6523_v20  ;;  %6222 = vmatprep.subr.bf16.mxu1 %v6740_v37 }
 0x17a   : > { %5894 = vmatprep.subr.bf16.mxu0 %v6524_v21 }
 0x17c   : > { %6223 = vmatpush3.bf16.msra.mxu1 %v6525_v24 }
 0x17d   : > { %5895 = vmatpush3.bf16.msra.mxu0 %v6526_v26  ;;  %6224 = vmatprep.subr.bf16.mxu1 %v6740_v37 }
 0x17e   : > { %5896 = vmatprep.subr.bf16.mxu0 %v6527_v27 }
 0x180   : > { %6225 = vmatpush3.bf16.msra.mxu1 %v6528_v28 }
 0x181   : > { %5897 = vmatpush3.bf16.msra.mxu0 %v6529_v29  ;;  %6226 = vmatprep.subr.bf16.mxu1 %v6740_v37 }
 0x182   : > { %5898 = vmatprep.subr.bf16.mxu0 %v6530_v30 }
 0x184   : > { %6227 = vmatpush3.bf16.msra.mxu1 %v6531_v31 }
 0x185   : > { %5899 = vmatpush3.bf16.msra.mxu0 %v6532_v33  ;;  %6232 = vmatprep.subr.bf16.mxu1 %v6740_v37 }
 0x186   : > { %5915 = vmatprep.subr.bf16.mxu0 %v6533_v38 }
 0x187   : > { %6229 = vmatmul.mubr.bf16.vlgmr.msra.gmra.mxu1 %v943_v39 }
 0x188   : > { %1457 = vmatmul.mubr.bf16.vlgmr.msra.gmra.mxu0 %v941_v40  ;;  %6233 = vmatpush3.bf16.msra.mxu1 %v6534_v41 }
 0x189   : > { %5916 = vmatpush3.bf16.msra.mxu0 %v6535_v42  ;;  %6234 = vmatprep.subr.bf16.mxu1 %v6740_v37 }
 0x18a   : > { %5917 = vmatprep.subr.bf16.mxu0 %v6536_v43  ;;  %6248 = vmatprep.mubr.msk.bf16.mxu1 %vm6741_vm2, %v6740_v37 }
 0x18b   : > { %1744 = vmatprep.mubr.bf16.mxu0 %v1517_v54 }
 0x18c   : > { %6235 = vmatpush3.bf16.msra.mxu1 %v6537_v2 }
 0x18d   : > { %5918 = vmatpush3.bf16.msra.mxu0 %v6538_v44  ;;  %6236 = vmatprep.subr.bf16.mxu1 %v6740_v37 }
 0x18e   : > { %5919 = vmatprep.subr.bf16.mxu0 %v6539_v45 }
 0x190   : > { %6237 = vmatpush3.bf16.msra.mxu1 %v6540_v46 }
 0x191   : > { %5920 = vmatpush3.bf16.msra.mxu0 %v6541_v47  ;;  %6238 = vmatprep.subr.bf16.mxu1 %v6740_v37 }
 0x192   : > { %5921 = vmatprep.subr.bf16.mxu0 %v6542_v48 }
 0x194   : > { %6239 = vmatpush3.bf16.msra.mxu1 %v6543_v49 }
 0x195   : > { %5922 = vmatpush3.bf16.msra.mxu0 %v6544_v50  ;;  %6240 = vmatprep.subr.bf16.mxu1 %v6740_v37 }
 0x196   : > { %5923 = vmatprep.subr.bf16.mxu0 %v6545_v53 }
 0x198   : > { %6241 = vmatpush3.bf16.msra.mxu1 %v6546_v55 }
 0x199   : > { %5924 = vmatpush3.bf16.msra.mxu0 %v6547_v56  ;;  %6242 = vmatprep.subr.bf16.mxu1 %v6740_v37 }
 0x19a   : > { %5925 = vmatprep.subr.bf16.mxu0 %v6548_v57 }
 0x19c   : > { %6243 = vmatpush3.bf16.msra.mxu1 %v6549_v58 }
 0x19d   : > { %5926 = vmatpush3.bf16.msra.mxu0 %v6550_v59  ;;  %6244 = vmatprep.subr.bf16.mxu1 %v6740_v37 }
 0x19e   : > { %5927 = vmatprep.subr.bf16.mxu0 %v6551_v60 }
 0x1a0   : > { %6245 = vmatpush3.bf16.msra.mxu1 %v6552_v61 }
 0x1a1   : > { %5928 = vmatpush3.bf16.msra.mxu0 %v6553_v62  ;;  %6246 = vmatprep.subr.bf16.mxu1 %v6740_v37 }
 0x1a2   : > { %5929 = vmatprep.subr.bf16.mxu0 %v6554_v63  ;;  %v1800_v63 = vld [vmem:[#allocation4] sm:$0x1] }
 0x1a4   : > { %6247 = vmatpush3.bf16.msra.mxu1 %v6555_v0 }
 0x1a5   : > { %5930 = vmatpush3.bf16.msra.mxu0 %v6556_v4 }
 0x1a7   : > { %6249 = vmatmul.mubr.bf16.vlgmr.msra.gmra.mxu1 %v1518_v7 }
 0x1a8   : > { %1745 = vmatmul.mubr.bf16.vlgmr.msra.gmra.mxu0 %v1516_v8 }
 0x227   : > { %v1273_v9 = vpop.f32.mrf.mxu1 }
 0x228   : > { %v5869_v15 = vpop.f32.mrf.mxu0 }
 0x229   : > { %v6210_v10 = vpop.f32.mrf.mxu1 }
 0x22a   : > { %v5870_v17 = vpop.f32.mrf.mxu0 }
 0x22b   : > { %v1276_v11 = vpop.f32.mrf.mxu1  ;;  %v5871_v23 = vadd.f32 %v5870_v17, %v5869_v15  ;;  %v1831_v15 = vld [vmem:[%s8607_s3] sm:$0x1] (%p928_p1) }
 0x22c   : > { %v5872_v18 = vpop.f32.mrf.mxu0 }
 0x22d   : > { %v6211_v12 = vpop.f32.mrf.mxu1  ;;  %v1274_v26 = vadd.f32 %v5871_v23, %v1273_v9 }
 0x22e   : > { %v5873_v19 = vpop.f32.mrf.mxu0 }
 0x22f   : > { %v5874_v27 = vadd.f32 %v5873_v19, %v5872_v18  ;;  %v1835_v19 = vld [vmem:[%s8608_s4] sm:$0x1] (%p928_p1) }
 0x231   : > { %v1277_v34 = vadd.f32 %v5874_v27, %v1276_v11 }
 0x247   : > { %v1499_v13 = vpop.f32.mrf.mxu1 }
 0x248   : > { %v5900_v20 = vpop.f32.mrf.mxu0 }
 0x249   : > { %v6230_v14 = vpop.f32.mrf.mxu1 }
 0x24a   : > { %v5901_v21 = vpop.f32.mrf.mxu0  ;;  %v1867_v14 = vlaneseq (%p928_p1) }
 0x24b   : > { %v1502_v37 = vpop.f32.mrf.mxu1  ;;  %v5902_v24 = vadd.f32 %v5901_v21, %v5900_v20 }
 0x24c   : > { %v5903_v22 = vpop.f32.mrf.mxu0 }
 0x24d   : > { %v6231_v16 = vpop.f32.mrf.mxu1  ;;  %v1459_v30 = vadd.f32 %v5902_v24, %v1274_v26 }
 0x24e   : > { %v5904_v25 = vpop.f32.mrf.mxu0 }
 0x24f   : > { %v5905_v31 = vadd.f32 %v5904_v25, %v5903_v22  ;;  %v1500_v39 = vadd.f32 %v1499_v13, %v1459_v30 }
 0x251   : > { %v1462_v40 = vadd.f32 %v5905_v31, %v1277_v34 }
 0x253   : > { %v1503_v45 = vadd.f32 %v1502_v37, %v1462_v40  ;;  %v1868_v37 = vshrl.u32 (%p928_p1), %v1867_v14, 7 }
 0x255   :  { %v7357_v16 = vsub.s32 (%p928_p1), 0, %v1868_v37 }
 0x267   : > { %v1787_v28 = vpop.f32.mrf.mxu1 }
 0x268   : > { %v5931_v29 = vpop.f32.mrf.mxu0 }
 0x269   : > { %v6250_v32 = vpop.f32.mrf.mxu1 }
 0x26a   : > { %v5932_v33 = vpop.f32.mrf.mxu0 }
 0x26b   : > { %v5933_v35 = vadd.f32 %v5932_v33, %v5931_v29  ;;  %v1790_v36 = vpop.f32.mrf.mxu1 }
 0x26c   : > { %v5934_v38 = vpop.f32.mrf.mxu0 }
 0x26d   : > { %v1788_v41 = vadd.f32 %v5933_v35, %v1787_v28  ;;  %v6251_v42 = vpop.f32.mrf.mxu1 }
 0x26e   : > { %v5935_v43 = vpop.f32.mrf.mxu0 }
 0x26f   : > { %v1794_v2 = vadd.f32 %v1788_v41, %v1500_v39  ;;  %v5936_v44 = vadd.f32 %v5935_v43, %v5934_v38 }
 0x271   : > { %5317 = vst [vmem:[%s4900_s27 + $0xe0] sm:$0xff] %v1794_v2  ;;  %v1791_v46 = vadd.f32 %v5936_v44, %v1790_v36  ;;  %v1813_v50 = vmul.f32 %v1794_v2, %v1794_v2 }
 0x273   : > { %v1795_v47 = vadd.f32 %v1791_v46, %v1503_v45 }
 0x275   : > { %5318 = vst [vmem:[%s4900_s27 + $0xe8] sm:$0x3f] %v1795_v47  ;;  %v1802_v48 = vsel %vm902_vm1, %v1795_v47, 0.0  ;;  %v1814_v49 = vmul.f32 %v1795_v47, %v1795_v47 }
 0x276   : > { %v1803_v51 = vadd.f32 %v1802_v48, %v1794_v2 }
 0x277   : > { %v1815_v52 = vsel %vm902_vm1, %v1814_v49, 0.0 }
 0x278   : > { %v1804_v53 = vrot.slane %v1803_v51, 4  ;;  %v1816_v54 = vadd.f32 %v1815_v52, %v1813_v50 }
 0x27a   : > { %v1805_v55 = vadd.f32 %v1804_v53, %v1803_v51  ;;  %v1817_v56 = vrot.slane %v1816_v54, 4 }
 0x27c   : > { %v1806_v57 = vrot.slane %v1805_v55, 2  ;;  %v1818_v58 = vadd.f32 %v1817_v56, %v1816_v54  ;;  %v1838_v20 = vld [vmem:[#allocation2] sm:$0xff] (%p928_p1)  ;;  %v1839_v21 = vld [vmem:[#allocation2 + $0x8] sm:$0x3f] (%p928_p1)  ;;  %v1840_v22 = vld [vmem:[#allocation2 + $0x10] sm:$0xff] (%p928_p1) }
 0x27d   :  { %v1841_v23 = vld [vmem:[#allocation2 + $0x18] sm:$0x3f] (%p928_p1)  ;;  %v1842_v24 = vld [vmem:[#allocation2 + $0x20] sm:$0xff] (%p928_p1)  ;;  %v1843_v27 = vld [vmem:[#allocation2 + $0x28] sm:$0x3f] (%p928_p1) }
 0x27e   : > { %v1807_v59 = vadd.f32 %v1806_v57, %v1805_v55  ;;  %v1819_v60 = vrot.slane %v1818_v58, 2  ;;  %v1844_v28 = vld [vmem:[#allocation2 + $0x30] sm:$0xff] (%p928_p1)  ;;  %v1845_v29 = vld [vmem:[#allocation2 + $0x38] sm:$0x3f] (%p928_p1)  ;;  %v1846_v30 = vld [vmem:[#allocation2 + $0x40] sm:$0xff] (%p928_p1) }
 0x27f   :  { %v1847_v31 = vld [vmem:[#allocation2 + $0x48] sm:$0x3f] (%p928_p1)  ;;  %v1848_v32 = vld [vmem:[#allocation2 + $0x50] sm:$0xff] (%p928_p1)  ;;  %v1849_v38 = vld [vmem:[#allocation2 + $0x58] sm:$0x3f] (%p928_p1) }
 0x280   : > { %v1808_v61 = vrot.slane %v1807_v59, 1  ;;  %v1820_v62 = vadd.f32 %v1819_v60, %v1818_v58  ;;  %v1850_v39 = vld [vmem:[#allocation2 + $0x60] sm:$0xff] (%p928_p1)  ;;  %v1851_v40 = vld [vmem:[#allocation2 + $0x68] sm:$0x3f] (%p928_p1)  ;;  %v1852_v60 = vld [vmem:[#allocation2 + $0x70] sm:$0xff] (%p928_p1) }
 0x282   : > { %v1809_v0 = vadd.f32 %v1808_v61, %v1807_v59  ;;  %v1821_v1 = vrot.slane %v1820_v62, 1 }
 0x284   : > { %v1810_v4 = vadd.f32 %v1809_v0, %v1800_v63  ;;  %v1822_v5 = vadd.f32 %v1821_v1, %v1820_v62  ;;  %930 = sbr.rel (!%p928_p1) target bundleno = 326 (0x146), region = 146  ;;  %v1853_v1 = vld [vmem:[#allocation2 + $0x78] sm:$0x3f] (%p928_p1) }
 0x286   : > { %1811 = vst [vmem:[#allocation4] sm:$0x1] %v1810_v4  ;;  %v1823_v6 = vadd.f32 %v1822_v5, %v1812_v3 }
 0x288   : > { %1824 = vst [vmem:[#allocation5] sm:$0x1] %v1823_v6 }
 0x28d   :  { %v1825_v7 = vld [vmem:[#allocation4] sm:$0x1] }
 0x28e   :  { %v1826_v9 = vmul.f32 0.0025510204, %v1825_v7 }
 0x28f   :  { %v1827_v8 = vld [vmem:[#allocation5] sm:$0x1] }
 0x290   :  { %v1828_v10 = vmul.f32 0.0025510204, %v1827_v8  ;;  %v1829_v11 = vmul.f32 %v1826_v9, %v1826_v9 }
 0x292   :  { %v1830_v12 = vsub.f32 %v1828_v10, %v1829_v11  ;;  %v1854_v11 = vld [vmem:[#allocation2 + $0x80] sm:$0xff] }
 0x294   :  { %v1832_v13 = vadd.f32 1e-05, %v1830_v12  ;;  %v1856_v12 = vld [vmem:[#allocation2 + $0x90] sm:$0xff] }
 0x296   :  { %6557 = vrsqrt.f32 %v1832_v13 }
 0x2a3   :  { %v6558_v17 = vpop.eup %6557 }
 0x2a4   :  { %v1834_v18 = vmul.f32 %v6558_v17, %v1831_v15  ;;  %v1855_v17 = vld [vmem:[#allocation2 + $0x88] sm:$0x3f] }
 0x2a6   :  { %v1836_v25 = vmul.f32 %v1834_v18, %v1826_v9  ;;  %v7363_v26 = vrot.slane %v1834_v18, %v7357_v16  ;;  %v1857_v18 = vld [vmem:[#allocation2 + $0x98] sm:$0x3f] }
 0x2a8   :  { %v1837_v33 = vsub.f32 %v1835_v19, %v1836_v25  ;;  %v1872_v34 = vmul.f32 %v7363_v26, %v1838_v20  ;;  %v1873_v35 = vmul.f32 %v7363_v26, %v1839_v21  ;;  %v1874_v36 = vmul.f32 %v7363_v26, %v1840_v22  ;;  %v1858_v19 = vld [vmem:[#allocation2 + $0xa0] sm:$0xff] }
 0x2a9   :  { %v1875_v41 = vmul.f32 %v7363_v26, %v1841_v23  ;;  %v1876_v42 = vmul.f32 %v7363_v26, %v1842_v24  ;;  %v1877_v43 = vmul.f32 %v7363_v26, %v1843_v27  ;;  %v1878_v2 = vmul.f32 %v7363_v26, %v1844_v28  ;;  %v1859_v24 = vld [vmem:[#allocation2 + $0xa8] sm:$0x3f] }
 0x2aa   :  { %v7373_v44 = vrot.slane %v1837_v33, %v7357_v16  ;;  %v1879_v45 = vmul.f32 %v7363_v26, %v1845_v29  ;;  %v1880_v46 = vmul.f32 %v7363_v26, %v1846_v30  ;;  %v1881_v47 = vmul.f32 %v7363_v26, %v1847_v31 }
 0x2ab   :  { %v1882_v48 = vmul.f32 %v7363_v26, %v1848_v32  ;;  %v1883_v49 = vmul.f32 %v7363_v26, %v1849_v38  ;;  %v1884_v50 = vmul.f32 %v7363_v26, %v1850_v39  ;;  %v1885_v51 = vmul.f32 %v7363_v26, %v1851_v40 }
 0x2ac   :  { %v1906_v52 = vadd.f32 %v7373_v44, %v1872_v34  ;;  %v1907_v53 = vadd.f32 %v7373_v44, %v1873_v35  ;;  %v1908_v54 = vadd.f32 %v7373_v44, %v1874_v36  ;;  %v1909_v55 = vadd.f32 %v7373_v44, %v1875_v41  ;;  %v1860_v34 = vld [vmem:[#allocation2 + $0xb0] sm:$0xff]  ;;  %v1861_v35 = vld [vmem:[#allocation2 + $0xb8] sm:$0x3f] }
 0x2ad   :  { %v1910_v56 = vadd.f32 %v7373_v44, %v1876_v42  ;;  %v1911_v57 = vadd.f32 %v7373_v44, %v1877_v43  ;;  %v1912_v58 = vadd.f32 %v7373_v44, %v1878_v2  ;;  %v1913_v59 = vadd.f32 %v7373_v44, %v1879_v45  ;;  %v1862_v45 = vld [vmem:[#allocation2 + $0xc0] sm:$0xff] }
 0x2ae   :  { %v1934_v61 = vmax.f32 %v1906_v52, 0.0  ;;  %v1935_v62 = vmax.f32 %v1907_v53, 0.0  ;;  %v1936_v63 = vmax.f32 %v1908_v54, 0.0  ;;  %v1937_v0 = vmax.f32 %v1909_v55, 0.0  ;;  %v1865_v52 = vld [vmem:[#allocation2 + $0xd8] sm:$0x3f] }
 0x2af   :  { %v1938_v3 = vmax.f32 %v1910_v56, 0.0  ;;  %v1939_v4 = vmax.f32 %v1911_v57, 0.0  ;;  %v1940_v5 = vmax.f32 %v1912_v58, 0.0  ;;  %v1941_v6 = vmax.f32 %v1913_v59, 0.0  ;;  %v1991_v53 = vld [vmem:[#allocation2 + $0xe0] sm:$0xff] }
 0x2b0   :  { %1962 = vst [vmem:[#allocation2] sm:$0xff] %v1934_v61  ;;  %1963 = vst [vmem:[#allocation2 + $0x8] sm:$0x3f] %v1935_v62  ;;  %v1914_v7 = vadd.f32 %v7373_v44, %v1880_v46  ;;  %v1915_v8 = vadd.f32 %v7373_v44, %v1881_v47  ;;  %v1916_v9 = vadd.f32 %v7373_v44, %v1882_v48  ;;  %v1863_v46 = vld [vmem:[#allocation2 + $0xc8] sm:$0x3f] }
 0x2b1   :  { %1964 = vst [vmem:[#allocation2 + $0x10] sm:$0xff] %v1936_v63  ;;  %1965 = vst [vmem:[#allocation2 + $0x18] sm:$0x3f] %v1937_v0  ;;  %v1917_v10 = vadd.f32 %v7373_v44, %v1883_v49  ;;  %v1918_v13 = vadd.f32 %v7373_v44, %v1884_v50  ;;  %v1919_v14 = vadd.f32 %v7373_v44, %v1885_v51  ;;  %v1864_v51 = vld [vmem:[#allocation2 + $0xd0] sm:$0xff]  ;;  %v1992_v58 = vld [vmem:[#allocation2 + $0xe8] sm:$0x3f] }
 0x2b2   :  { %1966 = vst [vmem:[#allocation2 + $0x20] sm:$0xff] %v1938_v3  ;;  %1967 = vst [vmem:[#allocation2 + $0x28] sm:$0x3f] %v1939_v4  ;;  %v1886_v37 = vmul.f32 %v7363_v26, %v1852_v60  ;;  %v1887_v15 = vmul.f32 %v7363_v26, %v1853_v1  ;;  %v1942_v20 = vmax.f32 %v1914_v7, 0.0  ;;  %v1943_v21 = vmax.f32 %v1915_v8, 0.0  ;;  %v1993_v4 = vld [vmem:[#allocation2 + $0xf0] sm:$0xff] }
 0x2b3   :  { %1968 = vst [vmem:[#allocation2 + $0x30] sm:$0xff] %v1940_v5  ;;  %1969 = vst [vmem:[#allocation2 + $0x38] sm:$0x3f] %v1941_v6  ;;  %v1944_v22 = vmax.f32 %v1916_v9, 0.0  ;;  %v1945_v23 = vmax.f32 %v1917_v10, 0.0  ;;  %v1946_v25 = vmax.f32 %v1918_v13, 0.0  ;;  %v1888_v30 = vmul.f32 %v7363_v26, %v1854_v11 }
 0x2b4   :  { %v1947_v27 = vmax.f32 %v1919_v14, 0.0  ;;  %v1920_v28 = vadd.f32 %v7373_v44, %v1886_v37  ;;  %v1921_v29 = vadd.f32 %v7373_v44, %v1887_v15  ;;  %1970 = vst [vmem:[#allocation2 + $0x40] sm:$0xff] %v1942_v20  ;;  %1971 = vst [vmem:[#allocation2 + $0x48] sm:$0x3f] %v1943_v21  ;;  %v1889_v31 = vmul.f32 %v7363_v26, %v1855_v17  ;;  %v1994_v5 = vld [vmem:[#allocation2 + $0xf8] sm:$0x3f] }
 0x2b5   :  { %1972 = vst [vmem:[#allocation2 + $0x50] sm:$0xff] %v1944_v22  ;;  %1973 = vst [vmem:[#allocation2 + $0x58] sm:$0x3f] %v1945_v23  ;;  %v1890_v32 = vmul.f32 %v7363_v26, %v1856_v12  ;;  %v1891_v33 = vmul.f32 %v7363_v26, %v1857_v18  ;;  %v1892_v39 = vmul.f32 %v7363_v26, %v1858_v19  ;;  %v1995_v14 = vld [vmem:[#allocation2 + $0x100] sm:$0xff]  ;;  %v1996_v37 = vld [vmem:[#allocation2 + $0x108] sm:$0x3f] }
 0x2b6   :  { %1974 = vst [vmem:[#allocation2 + $0x60] sm:$0xff] %v1946_v25  ;;  %1975 = vst [vmem:[#allocation2 + $0x68] sm:$0x3f] %v1947_v27  ;;  %v1948_v36 = vmax.f32 %v1920_v28, 0.0  ;;  %v1949_v38 = vmax.f32 %v1921_v29, 0.0  ;;  %v1893_v40 = vmul.f32 %v7363_v26, %v1859_v24  ;;  %v1922_v41 = vadd.f32 %v7373_v44, %v1888_v30  ;;  %v1997_v20 = vld [vmem:[#allocation2 + $0x110] sm:$0xff] }
 0x2b7   :  { %v1923_v42 = vadd.f32 %v7373_v44, %v1889_v31  ;;  %v1924_v43 = vadd.f32 %v7373_v44, %v1890_v32  ;;  %v1925_v2 = vadd.f32 %v7373_v44, %v1891_v33  ;;  %v1926_v47 = vadd.f32 %v7373_v44, %v1892_v39  ;;  %v1998_v21 = vld [vmem:[#allocation2 + $0x118] sm:$0x3f]  ;;  %v1999_v22 = vld [vmem:[#allocation2 + $0x120] sm:$0xff]  ;;  %v2000_v28 = vld [vmem:[#allocation2 + $0x128] sm:$0x3f] }
 0x2b8   :  { %1976 = vst [vmem:[#allocation2 + $0x70] sm:$0xff] %v1948_v36  ;;  %1977 = vst [vmem:[#allocation2 + $0x78] sm:$0x3f] %v1949_v38  ;;  %v1927_v48 = vadd.f32 %v7373_v44, %v1893_v40  ;;  %v1894_v49 = vmul.f32 %v7363_v26, %v1860_v34  ;;  %v1895_v50 = vmul.f32 %v7363_v26, %v1861_v35  ;;  %v1950_v54 = vmax.f32 %v1922_v41, 0.0  ;;  %v2001_v38 = vld [vmem:[#allocation2 + $0x130] sm:$0xff] }
 0x2b9   :  { %v1951_v55 = vmax.f32 %v1923_v42, 0.0  ;;  %v1952_v56 = vmax.f32 %v1924_v43, 0.0  ;;  %v1953_v57 = vmax.f32 %v1925_v2, 0.0  ;;  %v1954_v59 = vmax.f32 %v1926_v47, 0.0  ;;  %v2002_v39 = vld [vmem:[#allocation2 + $0x138] sm:$0x3f] }
 0x2ba   :  { %v1955_v60 = vmax.f32 %v1927_v48, 0.0  ;;  %v1928_v61 = vadd.f32 %v7373_v44, %v1894_v49  ;;  %v1929_v62 = vadd.f32 %v7373_v44, %v1895_v50  ;;  %1978 = vst [vmem:[#allocation2 + $0x80] sm:$0xff] %v1950_v54  ;;  %v1896_v63 = vmul.f32 %v7363_v26, %v1862_v45  ;;  %v2003_v48 = vld [vmem:[#allocation2 + $0x140] sm:$0xff]  ;;  %v2004_v49 = vld [vmem:[#allocation2 + $0x148] sm:$0x3f]  ;;  %v2005_v54 = vld [vmem:[#allocation2 + $0x150] sm:$0xff] }
 0x2bb   :  { %1979 = vst [vmem:[#allocation2 + $0x88] sm:$0x3f] %v1951_v55  ;;  %1980 = vst [vmem:[#allocation2 + $0x90] sm:$0xff] %v1952_v56  ;;  %v1897_v0 = vmul.f32 %v7363_v26, %v1863_v46  ;;  %v1898_v1 = vmul.f32 %v7363_v26, %v1864_v51  ;;  %v1899_v3 = vmul.f32 %v7363_v26, %v1865_v52  ;;  %v2006_v55 = vld [vmem:[#allocation2 + $0x158] sm:$0x3f]  ;;  %v2007_v56 = vld [vmem:[#allocation2 + $0x160] sm:$0xff] }
 0x2bc   :  { %1981 = vst [vmem:[#allocation2 + $0x98] sm:$0x3f] %v1953_v57  ;;  %1982 = vst [vmem:[#allocation2 + $0xa0] sm:$0xff] %v1954_v59  ;;  %v1956_v6 = vmax.f32 %v1928_v61, 0.0  ;;  %v1957_v7 = vmax.f32 %v1929_v62, 0.0  ;;  %v2019_v8 = vmul.f32 %v1991_v53, %v7363_v26  ;;  %v2020_v9 = vmul.f32 %v1992_v58, %v7363_v26 }
 0x2bd   :  { %1983 = vst [vmem:[#allocation2 + $0xa8] sm:$0x3f] %v1955_v60  ;;  %v1930_v10 = vadd.f32 %v7373_v44, %v1896_v63  ;;  %v1931_v11 = vadd.f32 %v7373_v44, %v1897_v0  ;;  %v1932_v12 = vadd.f32 %v7373_v44, %v1898_v1  ;;  %v1933_v13 = vadd.f32 %v7373_v44, %v1899_v3  ;;  %v2008_v61 = vld [vmem:[#allocation2 + $0x168] sm:$0x3f] }
 0x2be   :  { %1984 = vst [vmem:[#allocation2 + $0xb0] sm:$0xff] %v1956_v6  ;;  %1985 = vst [vmem:[#allocation2 + $0xb8] sm:$0x3f] %v1957_v7  ;;  %v2047_v15 = vadd.f32 %v2019_v8, %v7373_v44  ;;  %v2048_v17 = vadd.f32 %v2020_v9, %v7373_v44  ;;  %v2021_v18 = vmul.f32 %v1993_v4, %v7363_v26  ;;  %v2009_v7 = vld [vmem:[#allocation2 + $0x170] sm:$0xff]  ;;  %v2010_v8 = vld [vmem:[#allocation2 + $0x178] sm:$0x3f] }
 0x2bf   :  { %v2022_v19 = vmul.f32 %v1994_v5, %v7363_v26  ;;  %v1958_v23 = vmax.f32 %v1930_v10, 0.0  ;;  %v1959_v24 = vmax.f32 %v1931_v11, 0.0  ;;  %v1960_v25 = vmax.f32 %v1932_v12, 0.0 }
 0x2c0   :  { %v1961_v27 = vmax.f32 %v1933_v13, 0.0  ;;  %v2075_v29 = vmax.f32 %v2047_v15, 0.0  ;;  %v2076_v30 = vmax.f32 %v2048_v17, 0.0  ;;  %v2049_v31 = vadd.f32 %v2021_v18, %v7373_v44  ;;  %v2011_v17 = vld [vmem:[#allocation2 + $0x180] sm:$0xff]  ;;  %v2012_v18 = vld [vmem:[#allocation2 + $0x188] sm:$0x3f] }
 0x2c1   :  { %v2050_v32 = vadd.f32 %v2022_v19, %v7373_v44  ;;  %1986 = vst [vmem:[#allocation2 + $0xc0] sm:$0xff] %v1958_v23  ;;  %1987 = vst [vmem:[#allocation2 + $0xc8] sm:$0x3f] %v1959_v24  ;;  %v2023_v33 = vmul.f32 %v1995_v14, %v7363_v26  ;;  %v2024_v34 = vmul.f32 %v1996_v37, %v7363_v26  ;;  %v2013_v23 = vld [vmem:[#allocation2 + $0x190] sm:$0xff]  ;;  %v2014_v24 = vld [vmem:[#allocation2 + $0x198] sm:$0x3f] }
 0x2c2   :  { %1988 = vst [vmem:[#allocation2 + $0xd0] sm:$0xff] %v1960_v25  ;;  %1989 = vst [vmem:[#allocation2 + $0xd8] sm:$0x3f] %v1961_v27  ;;  %v2025_v35 = vmul.f32 %v1997_v20, %v7363_v26  ;;  %v2026_v36 = vmul.f32 %v1998_v21, %v7363_v26  ;;  %v2077_v40 = vmax.f32 %v2049_v31, 0.0  ;;  %v2027_v42 = vmul.f32 %v1999_v22, %v7363_v26  ;;  %v2015_v25 = vld [vmem:[#allocation2 + $0x1a0] sm:$0xff] }
 0x2c3   :  { %2103 = vst [vmem:[#allocation2 + $0xe0] sm:$0xff] %v2075_v29  ;;  %2104 = vst [vmem:[#allocation2 + $0xe8] sm:$0x3f] %v2076_v30  ;;  %v2078_v41 = vmax.f32 %v2050_v32, 0.0  ;;  %v2028_v43 = vmul.f32 %v2000_v28, %v7363_v26  ;;  %v2051_v2 = vadd.f32 %v2023_v33, %v7373_v44  ;;  %v2052_v45 = vadd.f32 %v2024_v34, %v7373_v44  ;;  %v2016_v31 = vld [vmem:[#allocation2 + $0x1a8] sm:$0x3f] }
 0x2c4   :  { %v2053_v46 = vadd.f32 %v2025_v35, %v7373_v44  ;;  %v2054_v47 = vadd.f32 %v2026_v36, %v7373_v44  ;;  %2105 = vst [vmem:[#allocation2 + $0xf0] sm:$0xff] %v2077_v40  ;;  %v2055_v50 = vadd.f32 %v2027_v42, %v7373_v44  ;;  %v2029_v52 = vmul.f32 %v2001_v38, %v7363_v26  ;;  %v2018_v42 = vld [vmem:[#allocation2 + $0x1b8] sm:$0x3f] }
 0x2c5   :  { %2106 = vst [vmem:[#allocation2 + $0xf8] sm:$0x3f] %v2078_v41  ;;  %v2056_v51 = vadd.f32 %v2028_v43, %v7373_v44  ;;  %v2030_v53 = vmul.f32 %v2002_v39, %v7363_v26  ;;  %v2079_v57 = vmax.f32 %v2051_v2, 0.0  ;;  %v2080_v58 = vmax.f32 %v2052_v45, 0.0  ;;  %v2017_v41 = vld [vmem:[#allocation2 + $0x1b0] sm:$0xff] }
 0x2c6   :  { %v2081_v59 = vmax.f32 %v2053_v46, 0.0  ;;  %v2082_v60 = vmax.f32 %v2054_v47, 0.0  ;;  %v2083_v62 = vmax.f32 %v2055_v50, 0.0  ;;  %v2057_v0 = vadd.f32 %v2029_v52, %v7373_v44 }
 0x2c7   :  { %v2084_v63 = vmax.f32 %v2056_v51, 0.0  ;;  %v2058_v1 = vadd.f32 %v2030_v53, %v7373_v44  ;;  %2107 = vst [vmem:[#allocation2 + $0x100] sm:$0xff] %v2079_v57  ;;  %2108 = vst [vmem:[#allocation2 + $0x108] sm:$0x3f] %v2080_v58  ;;  %v2031_v3 = vmul.f32 %v2003_v48, %v7363_v26  ;;  %v2032_v4 = vmul.f32 %v2004_v49, %v7363_v26 }
 0x2c8   :  { %2109 = vst [vmem:[#allocation2 + $0x110] sm:$0xff] %v2081_v59  ;;  %2110 = vst [vmem:[#allocation2 + $0x118] sm:$0x3f] %v2082_v60  ;;  %v2033_v5 = vmul.f32 %v2005_v54, %v7363_v26  ;;  %v2034_v6 = vmul.f32 %v2006_v55, %v7363_v26  ;;  %v2085_v9 = vmax.f32 %v2057_v0, 0.0  ;;  %v2035_v11 = vmul.f32 %v2007_v56, %v7363_v26 }
 0x2c9   :  { %2111 = vst [vmem:[#allocation2 + $0x120] sm:$0xff] %v2083_v62  ;;  %2112 = vst [vmem:[#allocation2 + $0x128] sm:$0x3f] %v2084_v63  ;;  %v2086_v10 = vmax.f32 %v2058_v1, 0.0  ;;  %v2036_v12 = vmul.f32 %v2008_v61, %v7363_v26  ;;  %v2059_v13 = vadd.f32 %v2031_v3, %v7373_v44  ;;  %v2060_v14 = vadd.f32 %v2032_v4, %v7373_v44 }
 0x2ca   :  { %v2061_v37 = vadd.f32 %v2033_v5, %v7373_v44  ;;  %v2062_v15 = vadd.f32 %v2034_v6, %v7373_v44  ;;  %2113 = vst [vmem:[#allocation2 + $0x130] sm:$0xff] %v2085_v9  ;;  %v2063_v19 = vadd.f32 %v2035_v11, %v7373_v44  ;;  %v2037_v21 = vmul.f32 %v2009_v7, %v7363_v26 }
 0x2cb   :  { %2114 = vst [vmem:[#allocation2 + $0x138] sm:$0x3f] %v2086_v10  ;;  %v2064_v20 = vadd.f32 %v2036_v12, %v7373_v44  ;;  %v2038_v22 = vmul.f32 %v2010_v8, %v7363_v26  ;;  %v2087_v27 = vmax.f32 %v2059_v13, 0.0  ;;  %v2088_v28 = vmax.f32 %v2060_v14, 0.0 }
 0x2cc   :  { %v2089_v29 = vmax.f32 %v2061_v37, 0.0  ;;  %v2090_v30 = vmax.f32 %v2062_v15, 0.0  ;;  %v2091_v32 = vmax.f32 %v2063_v19, 0.0  ;;  %v2065_v34 = vadd.f32 %v2037_v21, %v7373_v44 }
 0x2cd   :  { %v2092_v33 = vmax.f32 %v2064_v20, 0.0  ;;  %v2066_v35 = vadd.f32 %v2038_v22, %v7373_v44  ;;  %2115 = vst [vmem:[#allocation2 + $0x140] sm:$0xff] %v2087_v27  ;;  %2116 = vst [vmem:[#allocation2 + $0x148] sm:$0x3f] %v2088_v28  ;;  %v2039_v36 = vmul.f32 %v2011_v17, %v7363_v26  ;;  %v2040_v38 = vmul.f32 %v2012_v18, %v7363_v26 }
 0x2ce   :  { %2117 = vst [vmem:[#allocation2 + $0x150] sm:$0xff] %v2089_v29  ;;  %2118 = vst [vmem:[#allocation2 + $0x158] sm:$0x3f] %v2090_v30  ;;  %v2041_v39 = vmul.f32 %v2013_v23, %v7363_v26  ;;  %v2042_v40 = vmul.f32 %v2014_v24, %v7363_v26  ;;  %v2093_v43 = vmax.f32 %v2065_v34, 0.0  ;;  %v2043_v45 = vmul.f32 %v2015_v25, %v7363_v26 }
 0x2cf   :  { %2119 = vst [vmem:[#allocation2 + $0x160] sm:$0xff] %v2091_v32  ;;  %2120 = vst [vmem:[#allocation2 + $0x168] sm:$0x3f] %v2092_v33  ;;  %v2094_v2 = vmax.f32 %v2066_v35, 0.0  ;;  %v2044_v46 = vmul.f32 %v2016_v31, %v7363_v26  ;;  %v2067_v47 = vadd.f32 %v2039_v36, %v7373_v44  ;;  %v2068_v48 = vadd.f32 %v2040_v38, %v7373_v44 }
 0x2d0   :  { %v2069_v49 = vadd.f32 %v2041_v39, %v7373_v44  ;;  %v2070_v50 = vadd.f32 %v2042_v40, %v7373_v44  ;;  %2121 = vst [vmem:[#allocation2 + $0x170] sm:$0xff] %v2093_v43  ;;  %v2071_v51 = vadd.f32 %v2043_v45, %v7373_v44  ;;  %v2045_v53 = vmul.f32 %v2017_v41, %v7363_v26 }
 0x2d1   :  { %2122 = vst [vmem:[#allocation2 + $0x178] sm:$0x3f] %v2094_v2  ;;  %v2072_v52 = vadd.f32 %v2044_v46, %v7373_v44  ;;  %v2046_v54 = vmul.f32 %v2018_v42, %v7363_v26  ;;  %v2095_v55 = vmax.f32 %v2067_v47, 0.0  ;;  %v2096_v56 = vmax.f32 %v2068_v48, 0.0 }
 0x2d2   :  { %v2097_v57 = vmax.f32 %v2069_v49, 0.0  ;;  %v2098_v58 = vmax.f32 %v2070_v50, 0.0  ;;  %v2099_v59 = vmax.f32 %v2071_v51, 0.0  ;;  %v2073_v61 = vadd.f32 %v2045_v53, %v7373_v44 }
 0x2d3   :  { %v2100_v60 = vmax.f32 %v2072_v52, 0.0  ;;  %v2074_v62 = vadd.f32 %v2046_v54, %v7373_v44  ;;  %2123 = vst [vmem:[#allocation2 + $0x180] sm:$0xff] %v2095_v55  ;;  %2124 = vst [vmem:[#allocation2 + $0x188] sm:$0x3f] %v2096_v56 }
 0x2d4   :  { %2125 = vst [vmem:[#allocation2 + $0x190] sm:$0xff] %v2097_v57  ;;  %2126 = vst [vmem:[#allocation2 + $0x198] sm:$0x3f] %v2098_v58  ;;  %v2101_v63 = vmax.f32 %v2073_v61, 0.0 }
 0x2d5   :  { %2127 = vst [vmem:[#allocation2 + $0x1a0] sm:$0xff] %v2099_v59  ;;  %2128 = vst [vmem:[#allocation2 + $0x1a8] sm:$0x3f] %v2100_v60  ;;  %v2102_v0 = vmax.f32 %v2074_v62, 0.0 }
 0x2d6   :  { %2129 = vst [vmem:[#allocation2 + $0x1b0] sm:$0xff] %v2101_v63 }
 0x2d7   :  { %2130 = vst [vmem:[#allocation2 + $0x1b8] sm:$0x3f] %v2102_v0 }
 0x2d8 LB: > { %v6559_v26 = vld [vmem:[%s8606_s2 + $0x138] sm:$0xff]   ;;  %v6742_v44 = vmov 0.0   ;;  %vm6743_vm3 = vmmov 0   ;;  %v6562_v4 = vld [vmem:[%s8606_s2 + $0x130] sm:$0xff]   ;;  %v6565_v7 = vld [vmem:[%s8606_s2 + $0x128] sm:$0xff]   ;;  %s5319_s15 = sshll.u32 %s6731_s0, 4  ;;  %s6731_s0 = sphi %s7480_s0, %s2136_s0  }
 0x2d9   : > { %6252 = vmatprep.subr.bf16.mxu1 %v6742_v44  ;;  %v6560_v1 = vld [vmem:[%s8606_s2 + $0x178] sm:$0xff]   ;;  %5946 = vmatprep.subr.bf16.mxu0 %v6559_v26  ;;  %v6563_v5 = vld [vmem:[%s8606_s2 + $0x170] sm:$0xff]   ;;  %v6566_v8 = vld [vmem:[%s8606_s2 + $0x168] sm:$0xff]   ;;  %s7560_s29 = scalar_lea.vmem [#allocation2], %s5319_s15  ;;  %vm3002_vm4 = vcmask 1043456   ;;  %s2136_s0 = sadd.s32 1, %s6731_s0  }
 0x2da   : > { %v6561_v3 = vld [vmem:[%s8606_s2 + $0xf8] sm:$0xff]   ;;  %6268 = vmatprep.mubr.msk.bf16.mxu1 %vm6743_vm3, %v6742_v44  ;;  %6253 = vmatpush3.bf16.msra.mxu1 %v6560_v1  ;;  %v6564_v6 = vld [vmem:[%s8606_s2 + $0xf0] sm:$0xff]   ;;  %v6567_v9 = vld [vmem:[%s8606_s2 + $0xe8] sm:$0xff]   ;;  %p2133_p2 = scmp.ge.s32.totalorder %s2136_s0, 12  }
 0x2db   : > { %5947 = vmatpush3.bf16.msra.mxu0 %v6561_v3  ;;  %6254 = vmatprep.subr.bf16.mxu1 %v6742_v44  ;;  %v6568_v10 = vld [vmem:[%s8606_s2 + $0x120] sm:$0xff]   ;;  %v6571_v13 = vld [vmem:[%s8606_s2 + $0x118] sm:$0xff]   ;;  %v6574_v15 = vld [vmem:[%s8606_s2 + $0x110] sm:$0xff]  }
 0x2dc   : > { %5948 = vmatprep.subr.bf16.mxu0 %v6562_v4  ;;  %v6569_v11 = vld [vmem:[%s8606_s2 + $0x160] sm:$0xff]   ;;  %v6572_v14 = vld [vmem:[%s8606_s2 + $0x158] sm:$0xff]   ;;  %v6575_v17 = vld [vmem:[%s8606_s2 + $0x150] sm:$0xff]  }
 0x2dd   : > { %v6570_v12 = vld [vmem:[%s8606_s2 + $0xe0] sm:$0xff]   ;;  %v6573_v37 = vld [vmem:[%s8606_s2 + $0xd8] sm:$0xff]   ;;  %v6576_v18 = vld [vmem:[%s8606_s2 + $0xd0] sm:$0xff]  }
 0x2de   : > { %6255 = vmatpush3.bf16.msra.mxu1 %v6563_v5  ;;  %v6577_v19 = vld [vmem:[%s8606_s2 + $0x108] sm:$0xff]   ;;  %v5323_v22 = vld [vmem:[%s7560_s29 + $0x11] sm:$0xff]  ;;  %v5324_v23 = vld [vmem:[%s7560_s29 + $0x19] sm:$0xf] }
 0x2df   : > { %5949 = vmatpush3.bf16.msra.mxu0 %v6564_v6  ;;  %6256 = vmatprep.subr.bf16.mxu1 %v6742_v44  ;;  %v6578_v20 = vld [vmem:[%s8606_s2 + $0x148] sm:$0xff]   ;;  %v6580_v24 = vld [vmem:[%s8606_s2 + $0x100] sm:$0xff]   ;;  %v2206_v27 = vpack.c.bf16 %v5324_v23, %v5323_v22  ;;  %v5325_v28 = vld [vmem:[%s7560_s29 + $0x12] sm:$0xff] }
 0x2e0   : > { %5950 = vmatprep.subr.bf16.mxu0 %v6565_v7  ;;  %v6579_v21 = vld [vmem:[%s8606_s2 + $0xc8] sm:$0xff]   ;;  %v6581_v25 = vld [vmem:[%s8606_s2 + $0x140] sm:$0xff]   ;;  %v5326_v30 = vld [vmem:[%s7560_s29 + $0x1a] sm:$0xf] }
 0x2e1   : > { %v6582_v29 = vld [vmem:[%s8606_s2 + $0xc0] sm:$0xff]   ;;  %2433 = vmatprep.mubr.bf16.mxu0 %v2206_v27  ;;  %v5321_v31 = vld [vmem:[%s7560_s29 + $0x10] sm:$0xff]  ;;  %v5322_v32 = vld [vmem:[%s7560_s29 + $0x18] sm:$0xf]  ;;  %v2207_v34 = vpack.c.bf16 %v5326_v30, %v5325_v28 }
 0x2e2   : > { %6257 = vmatpush3.bf16.msra.mxu1 %v6566_v8  ;;  %v6583_v33 = vld [vmem:[%s8606_s2 + $0x78] sm:$0xff]   ;;  %v2205_v35 = vpack.c.bf16 %v5322_v32, %v5321_v31  ;;  %v6586_v39 = vld [vmem:[%s8606_s2 + $0x70] sm:$0xff]   ;;  %v6589_v42 = vld [vmem:[%s8606_s2 + $0x68] sm:$0xff]  }
 0x2e3   : > { %5951 = vmatpush3.bf16.msra.mxu0 %v6567_v9  ;;  %6258 = vmatprep.subr.bf16.mxu1 %v6742_v44  ;;  %v6584_v36 = vld [vmem:[%s8606_s2 + $0xb8] sm:$0xff]   ;;  %v6587_v40 = vld [vmem:[%s8606_s2 + $0xb0] sm:$0xff]   ;;  %v6590_v43 = vld [vmem:[%s8606_s2 + $0xa8] sm:$0xff]  }
 0x2e4   : > { %5952 = vmatprep.subr.bf16.mxu0 %v6568_v10  ;;  %v6585_v38 = vld [vmem:[%s8606_s2 + $0x38] sm:$0xff]   ;;  %v6588_v41 = vld [vmem:[%s8606_s2 + $0x30] sm:$0xff]   ;;  %v6591_v2 = vld [vmem:[%s8606_s2 + $0x28] sm:$0xff]  }
 0x2e5   : > { %v6592_v45 = vld [vmem:[%s8606_s2 + $0x60] sm:$0xff]   ;;  %v6595_v48 = vld [vmem:[%s8606_s2 + $0x58] sm:$0xff]   ;;  %v6598_v51 = vld [vmem:[%s8606_s2 + $0x50] sm:$0xff]  }
 0x2e6   : > { %6259 = vmatpush3.bf16.msra.mxu1 %v6569_v11  ;;  %v6593_v46 = vld [vmem:[%s8606_s2 + $0xa0] sm:$0xff]   ;;  %v6596_v49 = vld [vmem:[%s8606_s2 + $0x98] sm:$0xff]   ;;  %v2142_v53 = vld [vmem:[%s7560_s29 + $0x9] sm:$0xf] }
 0x2e7   : > { %5953 = vmatpush3.bf16.msra.mxu0 %v6570_v12  ;;  %6260 = vmatprep.subr.bf16.mxu1 %v6742_v44  ;;  %v6594_v47 = vld [vmem:[%s8606_s2 + $0x20] sm:$0xff]   ;;  %v6597_v50 = vld [vmem:[%s8606_s2 + $0x18] sm:$0xff]   ;;  %v6599_v54 = vld [vmem:[%s8606_s2 + $0x90] sm:$0xff]  }
 0x2e8   : > { %5954 = vmatprep.subr.bf16.mxu0 %v6571_v13  ;;  %v2141_v52 = vld [vmem:[%s7560_s29 + $0x1] sm:$0xff]  ;;  %v6600_v56 = vld [vmem:[%s8606_s2 + $0x10] sm:$0xff]   ;;  %v2144_v0 = vld [vmem:[%s7560_s29 + $0xa] sm:$0xf] }
 0x2e9   : > { %v2146_v55 = vpack.c.bf16 %v2142_v53, %v2141_v52  ;;  %v6601_v57 = vld [vmem:[%s8606_s2 + $0x48] sm:$0xff]   ;;  %v6604_v60 = vld [vmem:[%s8606_s2 + $0x40] sm:$0xff]   ;;  %v6607_v3 = vld [vmem:[%s8606_s2 + $0x1f8] sm:$0xff]  }
 0x2ea   : > { %6261 = vmatpush3.bf16.msra.mxu1 %v6572_v14  ;;  %v6602_v58 = vld [vmem:[%s8606_s2 + $0x88] sm:$0xff]   ;;  %v6605_v61 = vld [vmem:[%s8606_s2 + $0x80] sm:$0xff]   ;;  %v6608_v6 = vld [vmem:[%s8606_s2 + $0x238] sm:$0xff]  }
 0x2eb   : > { %5955 = vmatpush3.bf16.msra.mxu0 %v6573_v37  ;;  %6262 = vmatprep.subr.bf16.mxu1 %v6742_v44  ;;  %v6603_v59 = vld [vmem:[%s8606_s2 + $0x8] sm:$0xff]   ;;  %v6606_v63 = vld [vmem:[%s8606_s2] sm:$0xff]   ;;  %v6609_v7 = vld [vmem:[%s8606_s2 + $0x1b8] sm:$0xff]  }
 0x2ec   : > { %5956 = vmatprep.subr.bf16.mxu0 %v6574_v15  ;;  %v2143_v62 = vld [vmem:[%s7560_s29 + $0x2] sm:$0xff]  ;;  %v6610_v8 = vld [vmem:[%s8606_s2 + $0x1f0] sm:$0xff]   ;;  %v6621_v22 = vld [vmem:[%s8606_s2 + $0x198] sm:$0xff]  }
 0x2ed   : > { %v2139_v26 = vld [vmem:[%s7560_s29] sm:$0xff]  ;;  %v2140_v1 = vld [vmem:[%s7560_s29 + $0x8] sm:$0xf]  ;;  %v2147_v4 = vpack.c.bf16 %v2144_v0, %v2143_v62  ;;  %v6611_v9 = vld [vmem:[%s8606_s2 + $0x230] sm:$0xff]  }
 0x2ee   : > { %6263 = vmatpush3.bf16.msra.mxu1 %v6575_v17  ;;  %v2145_v5 = vpack.c.bf16 %v2140_v1, %v2139_v26  ;;  %v6612_v10 = vld [vmem:[%s8606_s2 + $0x1b0] sm:$0xff]   ;;  %v6613_v11 = vld [vmem:[%s8606_s2 + $0x1e8] sm:$0xff]   ;;  %v6616_v14 = vld [vmem:[%s8606_s2 + $0x1e0] sm:$0xff]  }
 0x2ef   : > { %5957 = vmatpush3.bf16.msra.mxu0 %v6576_v18  ;;  %6264 = vmatprep.subr.bf16.mxu1 %v6742_v44  ;;  %v6614_v12 = vld [vmem:[%s8606_s2 + $0x228] sm:$0xff]   ;;  %v6617_v37 = vld [vmem:[%s8606_s2 + $0x220] sm:$0xff]   ;;  %v6622_v23 = vld [vmem:[%s8606_s2 + $0x1d0] sm:$0xff]  }
 0x2f0   : > { %5958 = vmatprep.subr.bf16.mxu0 %v6577_v19  ;;  %v6615_v13 = vld [vmem:[%s8606_s2 + $0x1a8] sm:$0xff]   ;;  %v6618_v15 = vld [vmem:[%s8606_s2 + $0x1a0] sm:$0xff]   ;;  %v6619_v19 = vld [vmem:[%s8606_s2 + $0x1d8] sm:$0xff]  }
 0x2f1   : > { %v5426_v17 = vld [vmem:[%s7560_s29 + $0x21] sm:$0xff]  ;;  %v5427_v18 = vld [vmem:[%s7560_s29 + $0x29] sm:$0xf] }
 0x2f2   : > { %6265 = vmatpush3.bf16.msra.mxu1 %v6578_v20  ;;  %v2719_v20 = vpack.c.bf16 %v5427_v18, %v5426_v17  ;;  %v6625_v27 = vld [vmem:[%s8606_s2 + $0x1c8] sm:$0xff]   ;;  %v6628_v30 = vld [vmem:[%s8606_s2 + $0x1c0] sm:$0xff]  }
 0x2f3   : > { %5959 = vmatpush3.bf16.msra.mxu0 %v6579_v21  ;;  %6266 = vmatprep.subr.bf16.mxu1 %v6742_v44  ;;  %v6620_v21 = vld [vmem:[%s8606_s2 + $0x218] sm:$0xff]   ;;  %v6626_v28 = vld [vmem:[%s8606_s2 + $0x208] sm:$0xff]   ;;  %v6629_v31 = vld [vmem:[%s8606_s2 + $0x200] sm:$0xff]  }
 0x2f4   : > { %5960 = vmatprep.subr.bf16.mxu0 %v6580_v24  ;;  %v6623_v24 = vld [vmem:[%s8606_s2 + $0x210] sm:$0xff]   ;;  %v5428_v32 = vld [vmem:[%s7560_s29 + $0x22] sm:$0xff] }
 0x2f6   : > { %6267 = vmatpush3.bf16.msra.mxu1 %v6581_v25  ;;  %v6624_v25 = vld [vmem:[%s8606_s2 + $0x190] sm:$0xff]  }
 0x2f7   : > { %5961 = vmatpush3.bf16.msra.mxu0 %v6582_v29  ;;  %6272 = vmatprep.subr.bf16.mxu1 %v6742_v44  ;;  %v6627_v29 = vld [vmem:[%s8606_s2 + $0x188] sm:$0xff]  }
 0x2f8   : > { %5977 = vmatprep.subr.bf16.mxu0 %v6583_v33  ;;  %v5429_v33 = vld [vmem:[%s7560_s29 + $0x2a] sm:$0xf] }
 0x2f9   : > { %6269 = vmatmul.mubr.bf16.vlgmr.msra.gmra.mxu1 %v2207_v34  ;;  %v6630_v34 = vld [vmem:[%s8606_s2 + $0x180] sm:$0xff]  }
 0x2fa   : > { %2434 = vmatmul.mubr.bf16.vlgmr.msra.gmra.mxu0 %v2205_v35  ;;  %6273 = vmatpush3.bf16.msra.mxu1 %v6584_v36  ;;  %v5424_v35 = vld [vmem:[%s7560_s29 + $0x20] sm:$0xff]  ;;  %v5425_v36 = vld [vmem:[%s7560_s29 + $0x28] sm:$0xf]  ;;  %s2998_s29 = scalar_lea.vmem [#allocation3], %s5319_s15  ;;  %s7761_s15 = smov (%p2133_p2), 0  }
 0x2fb   : > { %5978 = vmatpush3.bf16.msra.mxu0 %v6585_v38  ;;  %6274 = vmatprep.subr.bf16.mxu1 %v6742_v44  ;;  %v2720_v38 = vpack.c.bf16 %v5429_v33, %v5428_v32 }
 0x2fc   : > { %5979 = vmatprep.subr.bf16.mxu0 %v6586_v39  ;;  %6288 = vmatprep.mubr.msk.bf16.mxu1 %vm6743_vm3, %v6742_v44  ;;  %v2718_v39 = vpack.c.bf16 %v5425_v36, %v5424_v35 }
 0x2fd   : > { %2659 = vmatprep.mubr.bf16.mxu0 %v2146_v55 }
 0x2fe   : > { %6275 = vmatpush3.bf16.msra.mxu1 %v6587_v40 }
 0x2ff   : > { %5980 = vmatpush3.bf16.msra.mxu0 %v6588_v41  ;;  %6276 = vmatprep.subr.bf16.mxu1 %v6742_v44 }
 0x300   : > { %5981 = vmatprep.subr.bf16.mxu0 %v6589_v42 }
 0x302   : > { %6277 = vmatpush3.bf16.msra.mxu1 %v6590_v43 }
 0x303   : > { %5982 = vmatpush3.bf16.msra.mxu0 %v6591_v2  ;;  %6278 = vmatprep.subr.bf16.mxu1 %v6742_v44 }
 0x304   : > { %5983 = vmatprep.subr.bf16.mxu0 %v6592_v45 }
 0x306   : > { %6279 = vmatpush3.bf16.msra.mxu1 %v6593_v46 }
 0x307   : > { %5984 = vmatpush3.bf16.msra.mxu0 %v6594_v47  ;;  %6280 = vmatprep.subr.bf16.mxu1 %v6742_v44 }
 0x308   : > { %5985 = vmatprep.subr.bf16.mxu0 %v6595_v48 }
 0x30a   : > { %6281 = vmatpush3.bf16.msra.mxu1 %v6596_v49 }
 0x30b   : > { %5986 = vmatpush3.bf16.msra.mxu0 %v6597_v50  ;;  %6282 = vmatprep.subr.bf16.mxu1 %v6742_v44 }
 0x30c   : > { %5987 = vmatprep.subr.bf16.mxu0 %v6598_v51 }
 0x30e   : > { %6283 = vmatpush3.bf16.msra.mxu1 %v6599_v54 }
 0x30f   : > { %5988 = vmatpush3.bf16.msra.mxu0 %v6600_v56  ;;  %6284 = vmatprep.subr.bf16.mxu1 %v6742_v44 }
 0x310   : > { %5989 = vmatprep.subr.bf16.mxu0 %v6601_v57 }
 0x312   : > { %6285 = vmatpush3.bf16.msra.mxu1 %v6602_v58 }
 0x313   : > { %5990 = vmatpush3.bf16.msra.mxu0 %v6603_v59  ;;  %6286 = vmatprep.subr.bf16.mxu1 %v6742_v44 }
 0x314   : > { %5991 = vmatprep.subr.bf16.mxu0 %v6604_v60 }
 0x316   : > { %6287 = vmatpush3.bf16.msra.mxu1 %v6605_v61 }
 0x317   : > { %5992 = vmatpush3.bf16.msra.mxu0 %v6606_v63  ;;  %6292 = vmatprep.subr.bf16.mxu1 %v6742_v44 }
 0x318   : > { %6008 = vmatprep.subr.bf16.mxu0 %v6607_v3 }
 0x319   : > { %6289 = vmatmul.mubr.bf16.vlgmr.msra.gmra.mxu1 %v2147_v4 }
 0x31a   : > { %2660 = vmatmul.mubr.bf16.vlgmr.msra.gmra.mxu0 %v2145_v5  ;;  %6293 = vmatpush3.bf16.msra.mxu1 %v6608_v6 }
 0x31b   : > { %6009 = vmatpush3.bf16.msra.mxu0 %v6609_v7  ;;  %6294 = vmatprep.subr.bf16.mxu1 %v6742_v44 }
 0x31c   : > { %6010 = vmatprep.subr.bf16.mxu0 %v6610_v8  ;;  %6308 = vmatprep.mubr.msk.bf16.mxu1 %vm6743_vm3, %v6742_v44 }
 0x31d   : > { %2946 = vmatprep.mubr.bf16.mxu0 %v2719_v20 }
 0x31e   : > { %6295 = vmatpush3.bf16.msra.mxu1 %v6611_v9 }
 0x31f   : > { %6011 = vmatpush3.bf16.msra.mxu0 %v6612_v10  ;;  %6296 = vmatprep.subr.bf16.mxu1 %v6742_v44 }
 0x320   : > { %6012 = vmatprep.subr.bf16.mxu0 %v6613_v11 }
 0x322   : > { %6297 = vmatpush3.bf16.msra.mxu1 %v6614_v12 }
 0x323   : > { %6013 = vmatpush3.bf16.msra.mxu0 %v6615_v13  ;;  %6298 = vmatprep.subr.bf16.mxu1 %v6742_v44 }
 0x324   : > { %6014 = vmatprep.subr.bf16.mxu0 %v6616_v14 }
 0x326   : > { %6299 = vmatpush3.bf16.msra.mxu1 %v6617_v37 }
 0x327   : > { %6015 = vmatpush3.bf16.msra.mxu0 %v6618_v15  ;;  %6300 = vmatprep.subr.bf16.mxu1 %v6742_v44 }
 0x328   : > { %6016 = vmatprep.subr.bf16.mxu0 %v6619_v19 }
 0x32a   : > { %6301 = vmatpush3.bf16.msra.mxu1 %v6620_v21 }
 0x32b   : > { %6017 = vmatpush3.bf16.msra.mxu0 %v6621_v22  ;;  %6302 = vmatprep.subr.bf16.mxu1 %v6742_v44 }
 0x32c   : > { %6018 = vmatprep.subr.bf16.mxu0 %v6622_v23 }
 0x32e   : > { %6303 = vmatpush3.bf16.msra.mxu1 %v6623_v24 }
 0x32f   : > { %6019 = vmatpush3.bf16.msra.mxu0 %v6624_v25  ;;  %6304 = vmatprep.subr.bf16.mxu1 %v6742_v44 }
 0x330   : > { %6020 = vmatprep.subr.bf16.mxu0 %v6625_v27 }
 0x332   : > { %6305 = vmatpush3.bf16.msra.mxu1 %v6626_v28 }
 0x333   : > { %6021 = vmatpush3.bf16.msra.mxu0 %v6627_v29  ;;  %6306 = vmatprep.subr.bf16.mxu1 %v6742_v44 }
 0x334   : > { %6022 = vmatprep.subr.bf16.mxu0 %v6628_v30 }
 0x336   : > { %6307 = vmatpush3.bf16.msra.mxu1 %v6629_v31  ;;  %v3001_v31 = vld [vmem:[#allocation6] sm:$0x1] }
 0x337   : > { %6023 = vmatpush3.bf16.msra.mxu0 %v6630_v34  ;;  %v3013_v34 = vld [vmem:[#allocation7] sm:$0x1] }
 0x339   : > { %6309 = vmatmul.mubr.bf16.vlgmr.msra.gmra.mxu1 %v2720_v38 }
 0x33a   : > { %2947 = vmatmul.mubr.bf16.vlgmr.msra.gmra.mxu0 %v2718_v39 }
 0x3b9   : > { %v2476_v40 = vpop.f32.mrf.mxu1 }
 0x3ba   : > { %v5962_v46 = vpop.f32.mrf.mxu0 }
 0x3bb   : > { %v6270_v41 = vpop.f32.mrf.mxu1 }
 0x3bc   : > { %v5963_v48 = vpop.f32.mrf.mxu0 }
 0x3bd   : > { %v2479_v42 = vpop.f32.mrf.mxu1  ;;  %v5964_v54 = vadd.f32 %v5963_v48, %v5962_v46 }
 0x3be   : > { %v5965_v49 = vpop.f32.mrf.mxu0 }
 0x3bf   : > { %v6271_v43 = vpop.f32.mrf.mxu1  ;;  %v2477_v57 = vadd.f32 %v5964_v54, %v2476_v40 }
 0x3c0   : > { %v5966_v50 = vpop.f32.mrf.mxu0 }
 0x3c1   : > { %v5967_v58 = vadd.f32 %v5966_v50, %v5965_v49 }
 0x3c3   : > { %v2480_v26 = vadd.f32 %v5967_v58, %v2479_v42 }
 0x3d9   : > { %v2702_v2 = vpop.f32.mrf.mxu1 }
 0x3da   : > { %v5993_v51 = vpop.f32.mrf.mxu0 }
 0x3db   : > { %v6290_v45 = vpop.f32.mrf.mxu1 }
 0x3dc   : > { %v5994_v52 = vpop.f32.mrf.mxu0 }
 0x3dd   : > { %v2705_v44 = vpop.f32.mrf.mxu1  ;;  %v5995_v55 = vadd.f32 %v5994_v52, %v5993_v51 }
 0x3de   : > { %v5996_v53 = vpop.f32.mrf.mxu0 }
 0x3df   : > { %v6291_v47 = vpop.f32.mrf.mxu1  ;;  %v2662_v61 = vadd.f32 %v5995_v55, %v2477_v57 }
 0x3e0   : > { %v5997_v56 = vpop.f32.mrf.mxu0 }
 0x3e1   : > { %v5998_v62 = vadd.f32 %v5997_v56, %v5996_v53  ;;  %v2703_v5 = vadd.f32 %v2702_v2, %v2662_v61 }
 0x3e3   : > { %v2665_v6 = vadd.f32 %v5998_v62, %v2480_v26 }
 0x3e5   : > { %v2706_v12 = vadd.f32 %v2705_v44, %v2665_v6 }
 0x3f9   : > { %v2989_v59 = vpop.f32.mrf.mxu1 }
 0x3fa   : > { %v6024_v60 = vpop.f32.mrf.mxu0 }
 0x3fb   : > { %v6310_v63 = vpop.f32.mrf.mxu1 }
 0x3fc   : > { %v6025_v0 = vpop.f32.mrf.mxu0 }
 0x3fd   : > { %v6026_v1 = vadd.f32 %v6025_v0, %v6024_v60  ;;  %v2992_v3 = vpop.f32.mrf.mxu1 }
 0x3fe   : > { %v6027_v4 = vpop.f32.mrf.mxu0 }
 0x3ff   : > { %v2990_v7 = vadd.f32 %v6026_v1, %v2989_v59  ;;  %v6311_v8 = vpop.f32.mrf.mxu1 }
 0x400   : > { %v6028_v9 = vpop.f32.mrf.mxu0 }
 0x401   : > { %v2996_v10 = vadd.f32 %v2990_v7, %v2703_v5  ;;  %v6029_v11 = vadd.f32 %v6028_v9, %v6027_v4 }
 0x403   : > { %2999 = vst [vmem:[%s2998_s29] sm:$0xff] %v2996_v10  ;;  %v2993_v13 = vadd.f32 %v6029_v11, %v2992_v3  ;;  %v3014_v17 = vmul.f32 %v2996_v10, %v2996_v10 }
 0x405   : > { %v2997_v14 = vadd.f32 %v2993_v13, %v2706_v12 }
 0x407   : > { %3000 = vst [vmem:[%s2998_s29 + $0x8] sm:$0xf] %v2997_v14  ;;  %v3003_v37 = vsel %vm3002_vm4, %v2997_v14, 0.0  ;;  %v3015_v15 = vmul.f32 %v2997_v14, %v2997_v14 }
 0x408   : > { %v3004_v18 = vadd.f32 %v3003_v37, %v2996_v10 }
 0x409   : > { %v3016_v19 = vsel %vm3002_vm4, %v3015_v15, 0.0 }
 0x40a   : > { %v3005_v20 = vrot.slane %v3004_v18, 4  ;;  %v3017_v21 = vadd.f32 %v3016_v19, %v3014_v17 }
 0x40c   : > { %v3006_v22 = vadd.f32 %v3005_v20, %v3004_v18  ;;  %v3018_v23 = vrot.slane %v3017_v21, 4 }
 0x40e   : > { %v3007_v24 = vrot.slane %v3006_v22, 2  ;;  %v3019_v25 = vadd.f32 %v3018_v23, %v3017_v21 }
 0x410   : > { %v3008_v27 = vadd.f32 %v3007_v24, %v3006_v22  ;;  %v3020_v28 = vrot.slane %v3019_v25, 2 }
 0x412   : > { %v3009_v29 = vrot.slane %v3008_v27, 1  ;;  %v3021_v30 = vadd.f32 %v3020_v28, %v3019_v25 }
 0x414   : > { %v3010_v32 = vadd.f32 %v3009_v29, %v3008_v27  ;;  %v3022_v33 = vrot.slane %v3021_v30, 1 }
 0x416   : > { %v3011_v35 = vadd.f32 %v3010_v32, %v3001_v31  ;;  %v3023_v36 = vadd.f32 %v3022_v33, %v3021_v30  ;;  %2135 = sbr.rel (!%p2133_p2) target bundleno = 728 (0x2d8), region = 157 }
 0x418   : > { %3012 = vst [vmem:[#allocation6] sm:$0x1] %v3011_v35  ;;  %v3024_v38 = vadd.f32 %v3023_v36, %v3013_v34 }
 0x41a   : > { %3025 = vst [vmem:[#allocation7] sm:$0x1] %v3024_v38 }
 0x41b LB: > { %v6631_v39 = vld [vmem:[%s8606_s2 + $0x138] sm:$0xff]   ;;  %v6744_v40 = vmov 0.0   ;;  %vm6745_vm5 = vmmov 0   ;;  %v6634_v43 = vld [vmem:[%s8606_s2 + $0x130] sm:$0xff]   ;;  %v6637_v44 = vld [vmem:[%s8606_s2 + $0x128] sm:$0xff]   ;;  %s5502_s11 = sshll.u32 %s6735_s15, 4  ;;  %s6735_s15 = sphi %s7761_s15, %s3031_s15  }
 0x41c   : > { %6312 = vmatprep.subr.bf16.mxu1 %v6744_v40  ;;  %v6632_v41 = vld [vmem:[%s8606_s2 + $0x178] sm:$0xff]   ;;  %6039 = vmatprep.subr.bf16.mxu0 %v6631_v39  ;;  %v6635_v2 = vld [vmem:[%s8606_s2 + $0x170] sm:$0xff]   ;;  %v6638_v46 = vld [vmem:[%s8606_s2 + $0x168] sm:$0xff]   ;;  %s7841_s28 = scalar_lea.vmem [#allocation2], %s5502_s11  ;;  %s3031_s15 = sadd.s32 1, %s6735_s15  }
 0x41d   : > { %v6633_v42 = vld [vmem:[%s8606_s2 + $0xf8] sm:$0xff]   ;;  %6328 = vmatprep.mubr.msk.bf16.mxu1 %vm6745_vm5, %v6744_v40  ;;  %6313 = vmatpush3.bf16.msra.mxu1 %v6632_v41  ;;  %v6636_v45 = vld [vmem:[%s8606_s2 + $0xf0] sm:$0xff]   ;;  %v6639_v47 = vld [vmem:[%s8606_s2 + $0xe8] sm:$0xff]   ;;  %p3028_p3 = scmp.ge.s32.totalorder %s3031_s15, 12  }
 0x41e   : > { %6040 = vmatpush3.bf16.msra.mxu0 %v6633_v42  ;;  %6314 = vmatprep.subr.bf16.mxu1 %v6744_v40  ;;  %v6640_v48 = vld [vmem:[%s8606_s2 + $0x120] sm:$0xff]   ;;  %v6643_v51 = vld [vmem:[%s8606_s2 + $0x118] sm:$0xff]   ;;  %v6646_v54 = vld [vmem:[%s8606_s2 + $0x110] sm:$0xff]   ;;  %vm4198_vm6 = vcmask (%p3028_p3), 1041408   ;;  %vm4207_vm7 = vcmask (%p3028_p3), 1043458   ;;  %vm4216_vm8 = vcmask (%p3028_p3), 1045508  }
 0x41f   : > { %6041 = vmatprep.subr.bf16.mxu0 %v6634_v43  ;;  %v6641_v49 = vld [vmem:[%s8606_s2 + $0x160] sm:$0xff]   ;;  %v6644_v52 = vld [vmem:[%s8606_s2 + $0x158] sm:$0xff]   ;;  %v6647_v55 = vld [vmem:[%s8606_s2 + $0x150] sm:$0xff]   ;;  %vm4225_vm9 = vcmask (%p3028_p3), 1047558  }
 0x420   : > { %v6642_v50 = vld [vmem:[%s8606_s2 + $0xe0] sm:$0xff]   ;;  %v6645_v53 = vld [vmem:[%s8606_s2 + $0xd8] sm:$0xff]   ;;  %v6648_v56 = vld [vmem:[%s8606_s2 + $0xd0] sm:$0xff]  }
 0x421   : > { %6315 = vmatpush3.bf16.msra.mxu1 %v6635_v2  ;;  %v6649_v57 = vld [vmem:[%s8606_s2 + $0x108] sm:$0xff]   ;;  %v5512_v60 = vld [vmem:[%s7841_s28 + $0xf1] sm:$0xff]  ;;  %v5513_v61 = vld [vmem:[%s7841_s28 + $0xf9] sm:$0xf] }
 0x422   : > { %6042 = vmatpush3.bf16.msra.mxu0 %v6636_v45  ;;  %6316 = vmatprep.subr.bf16.mxu1 %v6744_v40  ;;  %v6650_v58 = vld [vmem:[%s8606_s2 + $0x148] sm:$0xff]   ;;  %v6652_v62 = vld [vmem:[%s8606_s2 + $0x100] sm:$0xff]   ;;  %v3103_v0 = vpack.c.bf16 %v5513_v61, %v5512_v60  ;;  %v5514_v26 = vld [vmem:[%s7841_s28 + $0xf2] sm:$0xff] }
 0x423   : > { %6043 = vmatprep.subr.bf16.mxu0 %v6637_v44  ;;  %v6651_v59 = vld [vmem:[%s8606_s2 + $0xc8] sm:$0xff]   ;;  %v6653_v63 = vld [vmem:[%s8606_s2 + $0x140] sm:$0xff]   ;;  %v5515_v3 = vld [vmem:[%s7841_s28 + $0xfa] sm:$0xf] }
 0x424   : > { %v6654_v1 = vld [vmem:[%s8606_s2 + $0xc0] sm:$0xff]   ;;  %3330 = vmatprep.mubr.bf16.mxu0 %v3103_v0  ;;  %v5510_v4 = vld [vmem:[%s7841_s28 + $0xf0] sm:$0xff]  ;;  %v5511_v5 = vld [vmem:[%s7841_s28 + $0xf8] sm:$0xf]  ;;  %v3104_v7 = vpack.c.bf16 %v5515_v3, %v5514_v26 }
 0x425   : > { %6317 = vmatpush3.bf16.msra.mxu1 %v6638_v46  ;;  %v6655_v6 = vld [vmem:[%s8606_s2 + $0x78] sm:$0xff]   ;;  %v3102_v8 = vpack.c.bf16 %v5511_v5, %v5510_v4  ;;  %v6658_v11 = vld [vmem:[%s8606_s2 + $0x70] sm:$0xff]   ;;  %v6661_v14 = vld [vmem:[%s8606_s2 + $0x68] sm:$0xff]  }
 0x426   : > { %6044 = vmatpush3.bf16.msra.mxu0 %v6639_v47  ;;  %6318 = vmatprep.subr.bf16.mxu1 %v6744_v40  ;;  %v6656_v9 = vld [vmem:[%s8606_s2 + $0xb8] sm:$0xff]   ;;  %v6659_v12 = vld [vmem:[%s8606_s2 + $0xb0] sm:$0xff]   ;;  %v6662_v37 = vld [vmem:[%s8606_s2 + $0xa8] sm:$0xff]  }
 0x427   : > { %6045 = vmatprep.subr.bf16.mxu0 %v6640_v48  ;;  %v6657_v10 = vld [vmem:[%s8606_s2 + $0x38] sm:$0xff]   ;;  %v6660_v13 = vld [vmem:[%s8606_s2 + $0x30] sm:$0xff]   ;;  %v6663_v15 = vld [vmem:[%s8606_s2 + $0x28] sm:$0xff]  }
 0x428   : > { %v6664_v17 = vld [vmem:[%s8606_s2 + $0x60] sm:$0xff]   ;;  %v6667_v20 = vld [vmem:[%s8606_s2 + $0x58] sm:$0xff]   ;;  %v6670_v23 = vld [vmem:[%s8606_s2 + $0x50] sm:$0xff]  }
 0x429   : > { %6319 = vmatpush3.bf16.msra.mxu1 %v6641_v49  ;;  %v6665_v18 = vld [vmem:[%s8606_s2 + $0xa0] sm:$0xff]   ;;  %v6668_v21 = vld [vmem:[%s8606_s2 + $0x98] sm:$0xff]   ;;  %v5506_v25 = vld [vmem:[%s7841_s28 + $0xe9] sm:$0xf] }
 0x42a   : > { %6046 = vmatpush3.bf16.msra.mxu0 %v6642_v50  ;;  %6320 = vmatprep.subr.bf16.mxu1 %v6744_v40  ;;  %v6666_v19 = vld [vmem:[%s8606_s2 + $0x20] sm:$0xff]   ;;  %v6669_v22 = vld [vmem:[%s8606_s2 + $0x18] sm:$0xff]   ;;  %v6671_v27 = vld [vmem:[%s8606_s2 + $0x90] sm:$0xff]  }
 0x42b   : > { %6047 = vmatprep.subr.bf16.mxu0 %v6643_v51  ;;  %v5505_v24 = vld [vmem:[%s7841_s28 + $0xe1] sm:$0xff]  ;;  %v6672_v29 = vld [vmem:[%s8606_s2 + $0x10] sm:$0xff]   ;;  %v5508_v38 = vld [vmem:[%s7841_s28 + $0xea] sm:$0xf] }
 0x42c   : > { %v3042_v28 = vpack.c.bf16 %v5506_v25, %v5505_v24  ;;  %v6673_v30 = vld [vmem:[%s8606_s2 + $0x48] sm:$0xff]   ;;  %v6676_v33 = vld [vmem:[%s8606_s2 + $0x40] sm:$0xff]   ;;  %v6679_v42 = vld [vmem:[%s8606_s2 + $0x1f8] sm:$0xff]  }
 0x42d   : > { %6321 = vmatpush3.bf16.msra.mxu1 %v6644_v52  ;;  %v6674_v31 = vld [vmem:[%s8606_s2 + $0x88] sm:$0xff]   ;;  %v6677_v34 = vld [vmem:[%s8606_s2 + $0x80] sm:$0xff]   ;;  %v6680_v45 = vld [vmem:[%s8606_s2 + $0x238] sm:$0xff]  }
 0x42e   : > { %6048 = vmatpush3.bf16.msra.mxu0 %v6645_v53  ;;  %6322 = vmatprep.subr.bf16.mxu1 %v6744_v40  ;;  %v6675_v32 = vld [vmem:[%s8606_s2 + $0x8] sm:$0xff]   ;;  %v6678_v36 = vld [vmem:[%s8606_s2] sm:$0xff]   ;;  %v6681_v44 = vld [vmem:[%s8606_s2 + $0x1b8] sm:$0xff]  }
 0x42f   : > { %6049 = vmatprep.subr.bf16.mxu0 %v6646_v54  ;;  %v5507_v35 = vld [vmem:[%s7841_s28 + $0xe2] sm:$0xff]  ;;  %v6682_v46 = vld [vmem:[%s8606_s2 + $0x1f0] sm:$0xff]   ;;  %v6693_v60 = vld [vmem:[%s8606_s2 + $0x198] sm:$0xff]  }
 0x430   : > { %v5503_v39 = vld [vmem:[%s7841_s28 + $0xe0] sm:$0xff]  ;;  %v5504_v41 = vld [vmem:[%s7841_s28 + $0xe8] sm:$0xf]  ;;  %v3043_v43 = vpack.c.bf16 %v5508_v38, %v5507_v35  ;;  %v6683_v47 = vld [vmem:[%s8606_s2 + $0x230] sm:$0xff]  }
 0x431   : > { %6323 = vmatpush3.bf16.msra.mxu1 %v6647_v55  ;;  %v3041_v2 = vpack.c.bf16 %v5504_v41, %v5503_v39  ;;  %v6684_v48 = vld [vmem:[%s8606_s2 + $0x1b0] sm:$0xff]   ;;  %v6685_v49 = vld [vmem:[%s8606_s2 + $0x1e8] sm:$0xff]   ;;  %v6688_v52 = vld [vmem:[%s8606_s2 + $0x1e0] sm:$0xff]  }
 0x432   : > { %6050 = vmatpush3.bf16.msra.mxu0 %v6648_v56  ;;  %6324 = vmatprep.subr.bf16.mxu1 %v6744_v40  ;;  %v6686_v50 = vld [vmem:[%s8606_s2 + $0x228] sm:$0xff]   ;;  %v6689_v53 = vld [vmem:[%s8606_s2 + $0x220] sm:$0xff]   ;;  %v6694_v61 = vld [vmem:[%s8606_s2 + $0x1d0] sm:$0xff]  }
 0x433   : > { %6051 = vmatprep.subr.bf16.mxu0 %v6649_v57  ;;  %v6687_v51 = vld [vmem:[%s8606_s2 + $0x1a8] sm:$0xff]   ;;  %v6690_v54 = vld [vmem:[%s8606_s2 + $0x1a0] sm:$0xff]   ;;  %v6691_v57 = vld [vmem:[%s8606_s2 + $0x1d8] sm:$0xff]  }
 0x434   : > { %v5615_v55 = vld [vmem:[%s7841_s28 + $0x101] sm:$0xff]  ;;  %v5616_v56 = vld [vmem:[%s7841_s28 + $0x109] sm:$0xf] }
 0x435   : > { %6325 = vmatpush3.bf16.msra.mxu1 %v6650_v58  ;;  %v3617_v58 = vpack.c.bf16 %v5616_v56, %v5615_v55  ;;  %v6697_v0 = vld [vmem:[%s8606_s2 + $0x1c8] sm:$0xff]   ;;  %v6700_v3 = vld [vmem:[%s8606_s2 + $0x1c0] sm:$0xff]  }
 0x436   : > { %6052 = vmatpush3.bf16.msra.mxu0 %v6651_v59  ;;  %6326 = vmatprep.subr.bf16.mxu1 %v6744_v40  ;;  %v6692_v59 = vld [vmem:[%s8606_s2 + $0x218] sm:$0xff]   ;;  %v6698_v26 = vld [vmem:[%s8606_s2 + $0x208] sm:$0xff]   ;;  %v6701_v4 = vld [vmem:[%s8606_s2 + $0x200] sm:$0xff]  }
 0x437   : > { %6053 = vmatprep.subr.bf16.mxu0 %v6652_v62  ;;  %v6695_v62 = vld [vmem:[%s8606_s2 + $0x210] sm:$0xff]   ;;  %v5617_v5 = vld [vmem:[%s7841_s28 + $0x102] sm:$0xff] }
 0x439   : > { %6327 = vmatpush3.bf16.msra.mxu1 %v6653_v63  ;;  %v6696_v63 = vld [vmem:[%s8606_s2 + $0x190] sm:$0xff]  }
 0x43a   : > { %6054 = vmatpush3.bf16.msra.mxu0 %v6654_v1  ;;  %6332 = vmatprep.subr.bf16.mxu1 %v6744_v40  ;;  %v6699_v1 = vld [vmem:[%s8606_s2 + $0x188] sm:$0xff]  }
 0x43b   : > { %6070 = vmatprep.subr.bf16.mxu0 %v6655_v6  ;;  %v5618_v6 = vld [vmem:[%s7841_s28 + $0x10a] sm:$0xf] }
 0x43c   : > { %6329 = vmatmul.mubr.bf16.vlgmr.msra.gmra.mxu1 %v3104_v7  ;;  %v6702_v7 = vld [vmem:[%s8606_s2 + $0x180] sm:$0xff]  }
 0x43d   : > { %3331 = vmatmul.mubr.bf16.vlgmr.msra.gmra.mxu0 %v3102_v8  ;;  %6333 = vmatpush3.bf16.msra.mxu1 %v6656_v9  ;;  %v5613_v8 = vld [vmem:[%s7841_s28 + $0x100] sm:$0xff]  ;;  %v5614_v9 = vld [vmem:[%s7841_s28 + $0x108] sm:$0xf]  ;;  %s4922_s28 = scalar_lea.vmem [#allocation3], %s5502_s11 }
 0x43e   : > { %6071 = vmatpush3.bf16.msra.mxu0 %v6657_v10  ;;  %6334 = vmatprep.subr.bf16.mxu1 %v6744_v40  ;;  %v3618_v10 = vpack.c.bf16 %v5618_v6, %v5617_v5 }
 0x43f   : > { %6072 = vmatprep.subr.bf16.mxu0 %v6658_v11  ;;  %6348 = vmatprep.mubr.msk.bf16.mxu1 %vm6745_vm5, %v6744_v40  ;;  %v3616_v11 = vpack.c.bf16 %v5614_v9, %v5613_v8 }
 0x440   : > { %3556 = vmatprep.mubr.bf16.mxu0 %v3042_v28 }
 0x441   : > { %6335 = vmatpush3.bf16.msra.mxu1 %v6659_v12 }
 0x442   : > { %6073 = vmatpush3.bf16.msra.mxu0 %v6660_v13  ;;  %6336 = vmatprep.subr.bf16.mxu1 %v6744_v40 }
 0x443   : > { %6074 = vmatprep.subr.bf16.mxu0 %v6661_v14 }
 0x445   : > { %6337 = vmatpush3.bf16.msra.mxu1 %v6662_v37 }
 0x446   : > { %6075 = vmatpush3.bf16.msra.mxu0 %v6663_v15  ;;  %6338 = vmatprep.subr.bf16.mxu1 %v6744_v40 }
 0x447   : > { %6076 = vmatprep.subr.bf16.mxu0 %v6664_v17 }
 0x449   : > { %6339 = vmatpush3.bf16.msra.mxu1 %v6665_v18 }
 0x44a   : > { %6077 = vmatpush3.bf16.msra.mxu0 %v6666_v19  ;;  %6340 = vmatprep.subr.bf16.mxu1 %v6744_v40 }
 0x44b   : > { %6078 = vmatprep.subr.bf16.mxu0 %v6667_v20 }
 0x44d   : > { %6341 = vmatpush3.bf16.msra.mxu1 %v6668_v21 }
 0x44e   : > { %6079 = vmatpush3.bf16.msra.mxu0 %v6669_v22  ;;  %6342 = vmatprep.subr.bf16.mxu1 %v6744_v40 }
 0x44f   : > { %6080 = vmatprep.subr.bf16.mxu0 %v6670_v23 }
 0x451   : > { %6343 = vmatpush3.bf16.msra.mxu1 %v6671_v27 }
 0x452   : > { %6081 = vmatpush3.bf16.msra.mxu0 %v6672_v29  ;;  %6344 = vmatprep.subr.bf16.mxu1 %v6744_v40 }
 0x453   : > { %6082 = vmatprep.subr.bf16.mxu0 %v6673_v30 }
 0x455   : > { %6345 = vmatpush3.bf16.msra.mxu1 %v6674_v31 }
 0x456   : > { %6083 = vmatpush3.bf16.msra.mxu0 %v6675_v32  ;;  %6346 = vmatprep.subr.bf16.mxu1 %v6744_v40 }
 0x457   : > { %6084 = vmatprep.subr.bf16.mxu0 %v6676_v33 }
 0x459   : > { %6347 = vmatpush3.bf16.msra.mxu1 %v6677_v34 }
 0x45a   : > { %6085 = vmatpush3.bf16.msra.mxu0 %v6678_v36  ;;  %6352 = vmatprep.subr.bf16.mxu1 %v6744_v40 }
 0x45b   : > { %6101 = vmatprep.subr.bf16.mxu0 %v6679_v42 }
 0x45c   : > { %6349 = vmatmul.mubr.bf16.vlgmr.msra.gmra.mxu1 %v3043_v43 }
 0x45d   : > { %3557 = vmatmul.mubr.bf16.vlgmr.msra.gmra.mxu0 %v3041_v2  ;;  %6353 = vmatpush3.bf16.msra.mxu1 %v6680_v45 }
 0x45e   : > { %6102 = vmatpush3.bf16.msra.mxu0 %v6681_v44  ;;  %6354 = vmatprep.subr.bf16.mxu1 %v6744_v40 }
 0x45f   : > { %6103 = vmatprep.subr.bf16.mxu0 %v6682_v46  ;;  %6368 = vmatprep.mubr.msk.bf16.mxu1 %vm6745_vm5, %v6744_v40 }
 0x460   : > { %3844 = vmatprep.mubr.bf16.mxu0 %v3617_v58 }
 0x461   : > { %6355 = vmatpush3.bf16.msra.mxu1 %v6683_v47 }
 0x462   : > { %6104 = vmatpush3.bf16.msra.mxu0 %v6684_v48  ;;  %6356 = vmatprep.subr.bf16.mxu1 %v6744_v40 }
 0x463   : > { %6105 = vmatprep.subr.bf16.mxu0 %v6685_v49 }
 0x465   : > { %6357 = vmatpush3.bf16.msra.mxu1 %v6686_v50 }
 0x466   : > { %6106 = vmatpush3.bf16.msra.mxu0 %v6687_v51  ;;  %6358 = vmatprep.subr.bf16.mxu1 %v6744_v40 }
 0x467   : > { %6107 = vmatprep.subr.bf16.mxu0 %v6688_v52 }
 0x469   : > { %6359 = vmatpush3.bf16.msra.mxu1 %v6689_v53 }
 0x46a   : > { %6108 = vmatpush3.bf16.msra.mxu0 %v6690_v54  ;;  %6360 = vmatprep.subr.bf16.mxu1 %v6744_v40 }
 0x46b   : > { %6109 = vmatprep.subr.bf16.mxu0 %v6691_v57 }
 0x46d   : > { %6361 = vmatpush3.bf16.msra.mxu1 %v6692_v59 }
 0x46e   : > { %6110 = vmatpush3.bf16.msra.mxu0 %v6693_v60  ;;  %6362 = vmatprep.subr.bf16.mxu1 %v6744_v40 }
 0x46f   : > { %6111 = vmatprep.subr.bf16.mxu0 %v6694_v61 }
 0x471   : > { %6363 = vmatpush3.bf16.msra.mxu1 %v6695_v62 }
 0x472   : > { %6112 = vmatpush3.bf16.msra.mxu0 %v6696_v63  ;;  %6364 = vmatprep.subr.bf16.mxu1 %v6744_v40 }
 0x473   : > { %6113 = vmatprep.subr.bf16.mxu0 %v6697_v0 }
 0x475   : > { %6365 = vmatpush3.bf16.msra.mxu1 %v6698_v26 }
 0x476   : > { %6114 = vmatpush3.bf16.msra.mxu0 %v6699_v1  ;;  %6366 = vmatprep.subr.bf16.mxu1 %v6744_v40 }
 0x477   : > { %6115 = vmatprep.subr.bf16.mxu0 %v6700_v3 }
 0x479   : > { %6367 = vmatpush3.bf16.msra.mxu1 %v6701_v4  ;;  %v3900_v4 = vld [vmem:[#allocation6] sm:$0x1] }
 0x47a   : > { %6116 = vmatpush3.bf16.msra.mxu0 %v6702_v7  ;;  %v3912_v7 = vld [vmem:[#allocation7] sm:$0x1] }
 0x47c   : > { %6369 = vmatmul.mubr.bf16.vlgmr.msra.gmra.mxu1 %v3618_v10 }
 0x47d   : > { %3845 = vmatmul.mubr.bf16.vlgmr.msra.gmra.mxu0 %v3616_v11 }
 0x4fc   : > { %v3373_v12 = vpop.f32.mrf.mxu1 }
 0x4fd   : > { %v6055_v18 = vpop.f32.mrf.mxu0 }
 0x4fe   : > { %v6330_v13 = vpop.f32.mrf.mxu1 }
 0x4ff   : > { %v6056_v20 = vpop.f32.mrf.mxu0 }
 0x500   : > { %v3376_v14 = vpop.f32.mrf.mxu1  ;;  %v6057_v27 = vadd.f32 %v6056_v20, %v6055_v18  ;;  %v3935_v20 = vld [vmem:[%s8610_s6] sm:$0x1] (%p3028_p3) }
 0x501   : > { %v6058_v21 = vpop.f32.mrf.mxu0 }
 0x502   : > { %v6331_v37 = vpop.f32.mrf.mxu1  ;;  %v3374_v30 = vadd.f32 %v6057_v27, %v3373_v12 }
 0x503   : > { %v6059_v22 = vpop.f32.mrf.mxu0 }
 0x504   : > { %v6060_v31 = vadd.f32 %v6059_v22, %v6058_v21 }
 0x506   : > { %v3377_v39 = vadd.f32 %v6060_v31, %v3376_v14 }
 0x51c   : > { %v3599_v15 = vpop.f32.mrf.mxu1 }
 0x51d   : > { %v6086_v23 = vpop.f32.mrf.mxu0 }
 0x51e   : > { %v6350_v17 = vpop.f32.mrf.mxu1 }
 0x51f   : > { %v6087_v24 = vpop.f32.mrf.mxu0 }
 0x520   : > { %v3602_v40 = vpop.f32.mrf.mxu1  ;;  %v6088_v28 = vadd.f32 %v6087_v24, %v6086_v23 }
 0x521   : > { %v6089_v25 = vpop.f32.mrf.mxu0 }
 0x522   : > { %v6351_v19 = vpop.f32.mrf.mxu1  ;;  %v3559_v34 = vadd.f32 %v6088_v28, %v3374_v30 }
 0x523   : > { %v6090_v29 = vpop.f32.mrf.mxu0 }
 0x524   : > { %v6091_v35 = vadd.f32 %v6090_v29, %v6089_v25  ;;  %v3600_v2 = vadd.f32 %v3599_v15, %v3559_v34 }
 0x526   : > { %v3562_v45 = vadd.f32 %v6091_v35, %v3377_v39 }
 0x528   : > { %v3603_v50 = vadd.f32 %v3602_v40, %v3562_v45  ;;  %v3931_v40 = vld [vmem:[%s8609_s5] sm:$0x1] (%p3028_p3) }
 0x53c   : > { %v3887_v32 = vpop.f32.mrf.mxu1 }
 0x53d   : > { %v6117_v33 = vpop.f32.mrf.mxu0 }
 0x53e   : > { %v6370_v36 = vpop.f32.mrf.mxu1 }
 0x53f   : > { %v6118_v38 = vpop.f32.mrf.mxu0 }
 0x540   : > { %v6119_v41 = vadd.f32 %v6118_v38, %v6117_v33  ;;  %v3890_v42 = vpop.f32.mrf.mxu1 }
 0x541   : > { %v6120_v43 = vpop.f32.mrf.mxu0 }
 0x542   : > { %v3888_v44 = vadd.f32 %v6119_v41, %v3887_v32  ;;  %v6371_v46 = vpop.f32.mrf.mxu1 }
 0x543   : > { %v6121_v47 = vpop.f32.mrf.mxu0 }
 0x544   : > { %v3894_v48 = vadd.f32 %v3888_v44, %v3600_v2  ;;  %v6122_v49 = vadd.f32 %v6121_v47, %v6120_v43 }
 0x546   : > { %5692 = vst [vmem:[%s4922_s28 + $0xc0] sm:$0xff] %v3894_v48  ;;  %v3891_v51 = vadd.f32 %v6122_v49, %v3890_v42  ;;  %v3913_v55 = vmul.f32 %v3894_v48, %v3894_v48 }
 0x548   : > { %v3895_v52 = vadd.f32 %v3891_v51, %v3603_v50 }
 0x54a   : > { %5693 = vst [vmem:[%s4922_s28 + $0xc8] sm:$0xf] %v3895_v52  ;;  %v3902_v53 = vsel %vm3002_vm4, %v3895_v52, 0.0  ;;  %v3914_v54 = vmul.f32 %v3895_v52, %v3895_v52 }
 0x54b   : > { %v3903_v56 = vadd.f32 %v3902_v53, %v3894_v48 }
 0x54c   : > { %v3915_v57 = vsel %vm3002_vm4, %v3914_v54, 0.0 }
 0x54d   : > { %v3904_v58 = vrot.slane %v3903_v56, 4  ;;  %v3916_v59 = vadd.f32 %v3915_v57, %v3913_v55 }
 0x54f   : > { %v3905_v60 = vadd.f32 %v3904_v58, %v3903_v56  ;;  %v3917_v61 = vrot.slane %v3916_v59, 4 }
 0x551   : > { %v3906_v62 = vrot.slane %v3905_v60, 2  ;;  %v3918_v63 = vadd.f32 %v3917_v61, %v3916_v59  ;;  %v3938_v21 = vld [vmem:[#allocation3] sm:$0xff] (%p3028_p3)  ;;  %v3939_v22 = vld [vmem:[#allocation3 + $0x8] sm:$0xf] (%p3028_p3)  ;;  %v3940_v23 = vld [vmem:[#allocation3 + $0x10] sm:$0xff] (%p3028_p3) }
 0x552   :  { %v3941_v24 = vld [vmem:[#allocation3 + $0x18] sm:$0xf] (%p3028_p3)  ;;  %v3942_v25 = vld [vmem:[#allocation3 + $0x20] sm:$0xff] (%p3028_p3)  ;;  %v3943_v29 = vld [vmem:[#allocation3 + $0x28] sm:$0xf] (%p3028_p3) }
 0x553   : > { %v3907_v0 = vadd.f32 %v3906_v62, %v3905_v60  ;;  %v3919_v26 = vrot.slane %v3918_v63, 2  ;;  %v3944_v30 = vld [vmem:[#allocation3 + $0x30] sm:$0xff] (%p3028_p3)  ;;  %v3945_v31 = vld [vmem:[#allocation3 + $0x38] sm:$0xf] (%p3028_p3)  ;;  %v3946_v32 = vld [vmem:[#allocation3 + $0x40] sm:$0xff] (%p3028_p3) }
 0x554   :  { %v3947_v33 = vld [vmem:[#allocation3 + $0x48] sm:$0xf] (%p3028_p3)  ;;  %v3948_v34 = vld [vmem:[#allocation3 + $0x50] sm:$0xff] (%p3028_p3)  ;;  %v3949_v41 = vld [vmem:[#allocation3 + $0x58] sm:$0xf] (%p3028_p3) }
 0x555   : > { %v3908_v1 = vrot.slane %v3907_v0, 1  ;;  %v3920_v3 = vadd.f32 %v3919_v26, %v3918_v63  ;;  %v3950_v42 = vld [vmem:[#allocation3 + $0x60] sm:$0xff] (%p3028_p3)  ;;  %v3951_v43 = vld [vmem:[#allocation3 + $0x68] sm:$0xf] (%p3028_p3)  ;;  %v3952_v62 = vld [vmem:[#allocation3 + $0x70] sm:$0xff] (%p3028_p3) }
 0x557   : > { %v3909_v5 = vadd.f32 %v3908_v1, %v3907_v0  ;;  %v3921_v6 = vrot.slane %v3920_v3, 1 }
 0x559   : > { %v3910_v8 = vadd.f32 %v3909_v5, %v3900_v4  ;;  %v3922_v9 = vadd.f32 %v3921_v6, %v3920_v3  ;;  %3030 = sbr.rel (!%p3028_p3) target bundleno = 1051 (0x41b), region = 168  ;;  %v3953_v3 = vld [vmem:[#allocation3 + $0x78] sm:$0xf] (%p3028_p3) }
 0x55b   : > { %3911 = vst [vmem:[#allocation6] sm:$0x1] %v3910_v8  ;;  %v3923_v10 = vadd.f32 %v3922_v9, %v3912_v7 }
 0x55d   : > { %3924 = vst [vmem:[#allocation7] sm:$0x1] %v3923_v10 }
 0x562   :  { %v3925_v11 = vld [vmem:[#allocation6] sm:$0x1] }
 0x563   :  { %v3926_v13 = vmul.f32 0.0034722222, %v3925_v11 }
 0x564   :  { %v3927_v12 = vld [vmem:[#allocation7] sm:$0x1] }
 0x565   :  { %v3928_v14 = vmul.f32 0.0034722222, %v3927_v12  ;;  %v3929_v37 = vmul.f32 %v3926_v13, %v3926_v13  ;;  %v3954_v12 = vld [vmem:[#allocation3 + $0x80] sm:$0xff] }
 0x567   :  { %v3930_v15 = vsub.f32 %v3928_v14, %v3929_v37 }
 0x569   :  { %v3932_v17 = vadd.f32 1e-05, %v3930_v15 }
 0x56b   :  { %6703 = vrsqrt.f32 %v3932_v17 }
 0x578   :  { %v6704_v18 = vpop.eup %6703 }
 0x579   :  { %v3934_v19 = vmul.f32 %v6704_v18, %v3931_v40  ;;  %v3955_v40 = vld [vmem:[#allocation3 + $0x88] sm:$0xf]  ;;  %v3957_v18 = vld [vmem:[#allocation3 + $0x98] sm:$0xf] }
 0x57b   :  { %v3936_v27 = vmul.f32 %v3934_v19, %v3926_v13  ;;  %v8049_v28 = vrot.slane %v3934_v19, %v7357_v16  ;;  %v3956_v13 = vld [vmem:[#allocation3 + $0x90] sm:$0xff]  ;;  %v3958_v19 = vld [vmem:[#allocation3 + $0xa0] sm:$0xff] }
 0x57d   :  { %v3937_v35 = vsub.f32 %v3935_v20, %v3936_v27  ;;  %v3968_v36 = vmul.f32 %v8049_v28, %v3938_v21  ;;  %v3969_v38 = vmul.f32 %v8049_v28, %v3939_v22  ;;  %v3970_v39 = vmul.f32 %v8049_v28, %v3940_v23 }
 0x57e   :  { %v3971_v2 = vmul.f32 %v8049_v28, %v3941_v24  ;;  %v3972_v45 = vmul.f32 %v8049_v28, %v3942_v25  ;;  %v3973_v44 = vmul.f32 %v8049_v28, %v3943_v29  ;;  %v3974_v46 = vmul.f32 %v8049_v28, %v3944_v30  ;;  %v3959_v24 = vld [vmem:[#allocation3 + $0xa8] sm:$0xf] }
 0x57f   :  { %v8059_v47 = vrot.slane %v3937_v35, %v7357_v16  ;;  %v3975_v48 = vmul.f32 %v8049_v28, %v3945_v31  ;;  %v3976_v49 = vmul.f32 %v8049_v28, %v3946_v32  ;;  %v3977_v50 = vmul.f32 %v8049_v28, %v3947_v33  ;;  %v3960_v35 = vld [vmem:[#allocation3 + $0xb0] sm:$0xff] }
 0x580   :  { %v3978_v51 = vmul.f32 %v8049_v28, %v3948_v34  ;;  %v3979_v52 = vmul.f32 %v8049_v28, %v3949_v41  ;;  %v3980_v53 = vmul.f32 %v8049_v28, %v3950_v42  ;;  %v3981_v54 = vmul.f32 %v8049_v28, %v3951_v43 }
 0x581   :  { %v8069_v55 = vadd.f32 %v8059_v47, %v3968_v36  ;;  %v3999_v16 = vadd.f32 %v8059_v47, %v3969_v38  ;;  %v8073_v56 = vadd.f32 %v8059_v47, %v3970_v39  ;;  %v4001_v57 = vadd.f32 %v8059_v47, %v3971_v2  ;;  %v3961_v36 = vld [vmem:[#allocation3 + $0xb8] sm:$0xf] }
 0x582   :  { %v8077_v58 = vadd.f32 %v8059_v47, %v3972_v45  ;;  %v4003_v59 = vadd.f32 %v8059_v47, %v3973_v44  ;;  %v8081_v60 = vadd.f32 %v8059_v47, %v3974_v46  ;;  %v4005_v61 = vadd.f32 %v8059_v47, %v3975_v48  ;;  %v4071_v46 = vld [vmem:[#allocation3 + $0xc0] sm:$0xff]  ;;  %v4072_v48 = vld [vmem:[#allocation3 + $0xc8] sm:$0xf] }
 0x583   :  { %v4022_v63 = vmax.f32 %v8069_v55, 0.0  ;;  %v4023_v0 = vmax.f32 %v3999_v16, 0.0  ;;  %v4024_v26 = vmax.f32 %v8073_v56, 0.0  ;;  %v4025_v1 = vmax.f32 %v4001_v57, 0.0  ;;  %v4075_v16 = vld [vmem:[#allocation3 + $0xe0] sm:$0xff] }
 0x584   :  { %v4026_v4 = vmax.f32 %v8077_v58, 0.0  ;;  %v4027_v5 = vmax.f32 %v4003_v59, 0.0  ;;  %v4028_v6 = vmax.f32 %v8081_v60, 0.0  ;;  %v4029_v7 = vmax.f32 %v4005_v61, 0.0 }
 0x585   :  { %4046 = vst [vmem:[#allocation3] sm:$0xff] %v4022_v63  ;;  %4047 = vst [vmem:[#allocation3 + $0x8] sm:$0xf] %v4023_v0  ;;  %v8093_v8 = vadd.f32 %v8059_v47, %v3976_v49  ;;  %v4007_v9 = vadd.f32 %v8059_v47, %v3977_v50  ;;  %v8097_v10 = vadd.f32 %v8059_v47, %v3978_v51  ;;  %v4076_v0 = vld [vmem:[#allocation3 + $0xe8] sm:$0xf] }
 0x586   :  { %4048 = vst [vmem:[#allocation3 + $0x10] sm:$0xff] %v4024_v26  ;;  %4049 = vst [vmem:[#allocation3 + $0x18] sm:$0xf] %v4025_v1  ;;  %v4009_v11 = vadd.f32 %v8059_v47, %v3979_v52  ;;  %v8105_v14 = vadd.f32 %v8059_v47, %v3980_v53  ;;  %v4011_v37 = vadd.f32 %v8059_v47, %v3981_v54  ;;  %v4073_v53 = vld [vmem:[#allocation3 + $0xd0] sm:$0xff]  ;;  %v4074_v54 = vld [vmem:[#allocation3 + $0xd8] sm:$0xf] }
 0x587   :  { %4050 = vst [vmem:[#allocation3 + $0x20] sm:$0xff] %v4026_v4  ;;  %4051 = vst [vmem:[#allocation3 + $0x28] sm:$0xf] %v4027_v5  ;;  %v3982_v15 = vmul.f32 %v8049_v28, %v3952_v62  ;;  %v3983_v17 = vmul.f32 %v8049_v28, %v3953_v3  ;;  %v4030_v20 = vmax.f32 %v8093_v8, 0.0  ;;  %v4031_v21 = vmax.f32 %v4007_v9, 0.0 }
 0x588   :  { %4052 = vst [vmem:[#allocation3 + $0x30] sm:$0xff] %v4028_v6  ;;  %4053 = vst [vmem:[#allocation3 + $0x38] sm:$0xf] %v4029_v7  ;;  %v4032_v22 = vmax.f32 %v8097_v10, 0.0  ;;  %v4033_v23 = vmax.f32 %v4009_v11, 0.0  ;;  %v4034_v25 = vmax.f32 %v8105_v14, 0.0  ;;  %v3984_v31 = vmul.f32 %v8049_v28, %v3954_v12 }
 0x589   :  { %v4035_v27 = vmax.f32 %v4011_v37, 0.0  ;;  %v8114_v29 = vadd.f32 %v8059_v47, %v3982_v15  ;;  %v4013_v30 = vadd.f32 %v8059_v47, %v3983_v17  ;;  %4054 = vst [vmem:[#allocation3 + $0x40] sm:$0xff] %v4030_v20  ;;  %4055 = vst [vmem:[#allocation3 + $0x48] sm:$0xf] %v4031_v21  ;;  %v3985_v32 = vmul.f32 %v8049_v28, %v3955_v40  ;;  %v4077_v37 = vld [vmem:[#allocation3 + $0xf0] sm:$0xff] }
 0x58a   :  { %4056 = vst [vmem:[#allocation3 + $0x50] sm:$0xff] %v4032_v22  ;;  %4057 = vst [vmem:[#allocation3 + $0x58] sm:$0xf] %v4033_v23  ;;  %v3986_v33 = vmul.f32 %v8049_v28, %v3956_v13  ;;  %v3987_v34 = vmul.f32 %v8049_v28, %v3957_v18  ;;  %v3988_v41 = vmul.f32 %v8049_v28, %v3958_v19  ;;  %v4078_v15 = vld [vmem:[#allocation3 + $0xf8] sm:$0xf] }
 0x58b   :  { %4058 = vst [vmem:[#allocation3 + $0x60] sm:$0xff] %v4034_v25  ;;  %4059 = vst [vmem:[#allocation3 + $0x68] sm:$0xf] %v4035_v27  ;;  %v4036_v38 = vmax.f32 %v8114_v29, 0.0  ;;  %v4037_v39 = vmax.f32 %v4013_v30, 0.0  ;;  %v3989_v42 = vmul.f32 %v8049_v28, %v3959_v24  ;;  %v8131_v43 = vadd.f32 %v8059_v47, %v3984_v31  ;;  %v4079_v30 = vld [vmem:[#allocation3 + $0x100] sm:$0xff] }
 0x58c   :  { %v4015_v2 = vadd.f32 %v8059_v47, %v3985_v32  ;;  %v8135_v45 = vadd.f32 %v8059_v47, %v3986_v33  ;;  %v4017_v44 = vadd.f32 %v8059_v47, %v3987_v34  ;;  %v8141_v49 = vadd.f32 %v8059_v47, %v3988_v41  ;;  %v4080_v31 = vld [vmem:[#allocation3 + $0x108] sm:$0xf]  ;;  %v4083_v41 = vld [vmem:[#allocation3 + $0x120] sm:$0xff] }
 0x58d   :  { %4060 = vst [vmem:[#allocation3 + $0x70] sm:$0xff] %v4036_v38  ;;  %4061 = vst [vmem:[#allocation3 + $0x78] sm:$0xf] %v4037_v39  ;;  %v4019_v50 = vadd.f32 %v8059_v47, %v3989_v42  ;;  %v3990_v51 = vmul.f32 %v8049_v28, %v3960_v35  ;;  %v3991_v52 = vmul.f32 %v8049_v28, %v3961_v36  ;;  %v4038_v57 = vmax.f32 %v8131_v43, 0.0  ;;  %v4081_v36 = vld [vmem:[#allocation3 + $0x110] sm:$0xff] }
 0x58e   :  { %v4039_v59 = vmax.f32 %v4015_v2, 0.0  ;;  %v4040_v61 = vmax.f32 %v8135_v45, 0.0  ;;  %v4041_v62 = vmax.f32 %v4017_v44, 0.0  ;;  %v4042_v1 = vmax.f32 %v8141_v49, 0.0  ;;  %v4082_v39 = vld [vmem:[#allocation3 + $0x118] sm:$0xf] }
 0x58f   :  { %v4043_v3 = vmax.f32 %v4019_v50, 0.0  ;;  %v8150_v5 = vadd.f32 %v8059_v47, %v3990_v51  ;;  %v4021_v7 = vadd.f32 %v8059_v47, %v3991_v52  ;;  %4062 = vst [vmem:[#allocation3 + $0x80] sm:$0xff] %v4038_v57  ;;  %v4095_v9 = vmul.f32 %v4071_v46, %v8049_v28 }
 0x590   :  { %4063 = vst [vmem:[#allocation3 + $0x88] sm:$0xf] %v4039_v59  ;;  %4064 = vst [vmem:[#allocation3 + $0x90] sm:$0xff] %v4040_v61  ;;  %v4096_v11 = vmul.f32 %v4072_v48, %v8049_v28  ;;  %v4097_v12 = vmul.f32 %v4073_v53, %v8049_v28  ;;  %v4098_v13 = vmul.f32 %v4074_v54, %v8049_v28  ;;  %v4084_v48 = vld [vmem:[#allocation3 + $0x128] sm:$0xf] }
 0x591   :  { %4065 = vst [vmem:[#allocation3 + $0x98] sm:$0xf] %v4041_v62  ;;  %4066 = vst [vmem:[#allocation3 + $0xa0] sm:$0xff] %v4042_v1  ;;  %v4044_v17 = vmax.f32 %v8150_v5, 0.0  ;;  %v4045_v40 = vmax.f32 %v4021_v7, 0.0  ;;  %v4099_v18 = vmul.f32 %v4075_v16, %v8049_v28  ;;  %v4100_v19 = vmul.f32 %v4076_v0, %v8049_v28  ;;  %v4085_v0 = vld [vmem:[#allocation3 + $0x130] sm:$0xff] }
 0x592   :  { %4067 = vst [vmem:[#allocation3 + $0xa8] sm:$0xf] %v4043_v3  ;;  %v8167_v21 = vadd.f32 %v4095_v9, %v8059_v47  ;;  %v4120_v23 = vadd.f32 %v4096_v11, %v8059_v47  ;;  %v8171_v24 = vadd.f32 %v4097_v12, %v8059_v47  ;;  %v4122_v27 = vadd.f32 %v4098_v13, %v8059_v47  ;;  %v4086_v3 = vld [vmem:[#allocation3 + $0x138] sm:$0xf] }
 0x593   :  { %4068 = vst [vmem:[#allocation3 + $0xb0] sm:$0xff] %v4044_v17  ;;  %4069 = vst [vmem:[#allocation3 + $0xb8] sm:$0xf] %v4045_v40  ;;  %v8177_v32 = vadd.f32 %v4099_v18, %v8059_v47  ;;  %v4124_v33 = vadd.f32 %v4100_v19, %v8059_v47  ;;  %v4101_v34 = vmul.f32 %v4077_v37, %v8049_v28  ;;  %v4087_v18 = vld [vmem:[#allocation3 + $0x140] sm:$0xff]  ;;  %v4088_v19 = vld [vmem:[#allocation3 + $0x148] sm:$0xf] }
 0x594   :  { %v4102_v35 = vmul.f32 %v4078_v15, %v8049_v28  ;;  %v4143_v42 = vmax.f32 %v8167_v21, 0.0  ;;  %v4144_v2 = vmax.f32 %v4120_v23, 0.0  ;;  %v4145_v44 = vmax.f32 %v8171_v24, 0.0 }
 0x595   :  { %v4146_v46 = vmax.f32 %v4122_v27, 0.0  ;;  %v4147_v50 = vmax.f32 %v8177_v32, 0.0  ;;  %v4148_v51 = vmax.f32 %v4124_v33, 0.0  ;;  %v8186_v52 = vadd.f32 %v4101_v34, %v8059_v47  ;;  %v4089_v33 = vld [vmem:[#allocation3 + $0x150] sm:$0xff]  ;;  %v4090_v34 = vld [vmem:[#allocation3 + $0x158] sm:$0xf] }
 0x596   :  { %v4126_v53 = vadd.f32 %v4102_v35, %v8059_v47  ;;  %4167 = vst [vmem:[#allocation3 + $0xc0] sm:$0xff] %v4143_v42  ;;  %4168 = vst [vmem:[#allocation3 + $0xc8] sm:$0xf] %v4144_v2  ;;  %v4103_v54 = vmul.f32 %v4079_v30, %v8049_v28  ;;  %v4104_v16 = vmul.f32 %v4080_v31, %v8049_v28  ;;  %v4091_v35 = vld [vmem:[#allocation3 + $0x160] sm:$0xff] }
 0x597   :  { %4169 = vst [vmem:[#allocation3 + $0xd0] sm:$0xff] %v4145_v44  ;;  %4170 = vst [vmem:[#allocation3 + $0xd8] sm:$0xf] %v4146_v46  ;;  %v4105_v59 = vmul.f32 %v4081_v36, %v8049_v28  ;;  %v4106_v62 = vmul.f32 %v4082_v39, %v8049_v28  ;;  %v4149_v7 = vmax.f32 %v8186_v52, 0.0  ;;  %v4107_v11 = vmul.f32 %v4083_v41, %v8049_v28  ;;  %v4092_v46 = vld [vmem:[#allocation3 + $0x168] sm:$0xf] }
 0x598   :  { %4171 = vst [vmem:[#allocation3 + $0xe0] sm:$0xff] %v4147_v50  ;;  %4172 = vst [vmem:[#allocation3 + $0xe8] sm:$0xf] %v4148_v51  ;;  %v4150_v9 = vmax.f32 %v4126_v53, 0.0  ;;  %v4108_v12 = vmul.f32 %v4084_v48, %v8049_v28  ;;  %v8203_v13 = vadd.f32 %v4103_v54, %v8059_v47  ;;  %v4128_v37 = vadd.f32 %v4104_v16, %v8059_v47 }
 0x599   :  { %v8207_v15 = vadd.f32 %v4105_v59, %v8059_v47  ;;  %v4130_v40 = vadd.f32 %v4106_v62, %v8059_v47  ;;  %4173 = vst [vmem:[#allocation3 + $0xf0] sm:$0xff] %v4149_v7  ;;  %v4131_v23 = vadd.f32 %v4107_v11, %v8059_v47  ;;  %v4109_v30 = vmul.f32 %v4085_v0, %v8049_v28 }
 0x59a   :  { %4174 = vst [vmem:[#allocation3 + $0xf8] sm:$0xf] %v4150_v9  ;;  %v4132_v27 = vadd.f32 %v4108_v12, %v8059_v47  ;;  %v4110_v31 = vmul.f32 %v4086_v3, %v8049_v28  ;;  %v4151_v36 = vmax.f32 %v8203_v13, 0.0  ;;  %v4152_v39 = vmax.f32 %v4128_v37, 0.0  ;;  %v4093_v3 = vld [vmem:[#allocation3 + $0x170] sm:$0xff] }
 0x59b   :  { %v4153_v41 = vmax.f32 %v8207_v15, 0.0  ;;  %v4154_v2 = vmax.f32 %v4130_v40, 0.0  ;;  %v4155_v48 = vmax.f32 %v4131_v23, 0.0  ;;  %v4133_v53 = vadd.f32 %v4109_v30, %v8059_v47  ;;  %v4094_v9 = vld [vmem:[#allocation3 + $0x178] sm:$0xf] }
 0x59c   :  { %v4156_v51 = vmax.f32 %v4132_v27, 0.0  ;;  %v4134_v54 = vadd.f32 %v4110_v31, %v8059_v47  ;;  %4175 = vst [vmem:[#allocation3 + $0x100] sm:$0xff] %v4151_v36  ;;  %4176 = vst [vmem:[#allocation3 + $0x108] sm:$0xf] %v4152_v39  ;;  %v4111_v16 = vmul.f32 %v4087_v18, %v8049_v28  ;;  %v4112_v59 = vmul.f32 %v4088_v19, %v8049_v28  ;;  %v4192_v30 = vld [vmem:[#allocation3 + $0x8] sm:$0xf] }
 0x59d   :  { %4177 = vst [vmem:[#allocation3 + $0x110] sm:$0xff] %v4153_v41  ;;  %4178 = vst [vmem:[#allocation3 + $0x118] sm:$0xf] %v4154_v2  ;;  %v4113_v62 = vmul.f32 %v4089_v33, %v8049_v28  ;;  %v4114_v0 = vmul.f32 %v4090_v34, %v8049_v28  ;;  %v4157_v11 = vmax.f32 %v4133_v53, 0.0  ;;  %v4115_v37 = vmul.f32 %v4091_v35, %v8049_v28  ;;  %v4195_v31 = vld [vmem:[#allocation3 + $0x18] sm:$0xf] }
 0x59e   :  { %4179 = vst [vmem:[#allocation3 + $0x120] sm:$0xff] %v4155_v48  ;;  %4180 = vst [vmem:[#allocation3 + $0x128] sm:$0xf] %v4156_v51  ;;  %v4158_v12 = vmax.f32 %v4134_v54, 0.0  ;;  %v4116_v40 = vmul.f32 %v4092_v46, %v8049_v28  ;;  %v4135_v23 = vadd.f32 %v4111_v16, %v8059_v47  ;;  %v4136_v18 = vadd.f32 %v4112_v59, %v8059_v47  ;;  %v4252_v2 = vld [vmem:[#allocation3 + $0x28] sm:$0xf] }
 0x59f   :  { %v4137_v19 = vadd.f32 %v4113_v62, %v8059_v47  ;;  %v4138_v27 = vadd.f32 %v4114_v0, %v8059_v47  ;;  %4181 = vst [vmem:[#allocation3 + $0x130] sm:$0xff] %v4157_v11  ;;  %v4139_v33 = vadd.f32 %v4115_v37, %v8059_v47  ;;  %v4117_v35 = vmul.f32 %v4093_v3, %v8049_v28  ;;  %v4255_v46 = vld [vmem:[#allocation3 + $0x38] sm:$0xf]  ;;  %v4309_v48 = vld [vmem:[#allocation3 + $0x48] sm:$0xf] }
 0x5a0   :  { %4182 = vst [vmem:[#allocation3 + $0x138] sm:$0xf] %v4158_v12  ;;  %v4140_v34 = vadd.f32 %v4116_v40, %v8059_v47  ;;  %v4118_v39 = vmul.f32 %v4094_v9, %v8049_v28  ;;  %v4159_v51 = vmax.f32 %v4135_v23, 0.0  ;;  %v4160_v53 = vmax.f32 %v4136_v18, 0.0  ;;  %v4312_v59 = vld [vmem:[#allocation3 + $0x58] sm:$0xf] }
 0x5a1   :  { %v4161_v54 = vmax.f32 %v4137_v19, 0.0  ;;  %v4162_v16 = vmax.f32 %v4138_v27, 0.0  ;;  %v4163_v62 = vmax.f32 %v4139_v33, 0.0  ;;  %v4141_v11 = vadd.f32 %v4117_v35, %v8059_v47 }
 0x5a2   :  { %v4164_v0 = vmax.f32 %v4140_v34, 0.0  ;;  %v4142_v12 = vadd.f32 %v4118_v39, %v8059_v47  ;;  %4183 = vst [vmem:[#allocation3 + $0x140] sm:$0xff] %v4159_v51  ;;  %4184 = vst [vmem:[#allocation3 + $0x148] sm:$0xf] %v4160_v53  ;;  %v4196_v28 = vmax.f32 %v4022_v63, %v4024_v26  ;;  %v4197_v3 = vmax.f32 %v4192_v30, %v4195_v31 }
 0x5a3   :  { %4185 = vst [vmem:[#allocation3 + $0x150] sm:$0xff] %v4161_v54  ;;  %4186 = vst [vmem:[#allocation3 + $0x158] sm:$0xf] %v4162_v16  ;;  %v8248_v9 = vmax.f32 %v4026_v4, %v4028_v6  ;;  %v8250_v37 = vmax.f32 %v4252_v2, %v4255_v46  ;;  %v4165_v47 = vmax.f32 %v4141_v11, 0.0  ;;  %v8256_v56 = vmax.f32 %v4030_v20, %v4032_v22 }
 0x5a4   :  { %4187 = vst [vmem:[#allocation3 + $0x160] sm:$0xff] %v4163_v62  ;;  %4188 = vst [vmem:[#allocation3 + $0x168] sm:$0xf] %v4164_v0  ;;  %v4166_v40 = vmax.f32 %v4142_v12, 0.0  ;;  %v8258_v55 = vmax.f32 %v4309_v48, %v4312_v59  ;;  %v4199_v60 = vsel %vm4198_vm6, %v4196_v28, -inf  ;;  %v4208_v58 = vsel %vm4207_vm7, %v4196_v28, -inf }
 0x5a5   :  { %v4217_v63 = vsel %vm4216_vm8, %v4196_v28, -inf  ;;  %v4226_v26 = vsel %vm4225_vm9, %v4196_v28, -inf  ;;  %4189 = vst [vmem:[#allocation3 + $0x170] sm:$0xff] %v4165_v47  ;;  %v4200_v4 = vrot.slane %v4199_v60, 4  ;;  %v4209_v6 = vrot.slane %v4208_v58, 4 }
 0x5a6   :  { %4190 = vst [vmem:[#allocation3 + $0x178] sm:$0xf] %v4166_v40  ;;  %v4218_v23 = vrot.slane %v4217_v63, 4  ;;  %v4227_v10 = vrot.slane %v4226_v26, 4  ;;  %v4234_v8 = vsel %vm4198_vm6, %v4197_v3, -inf  ;;  %v4242_v20 = vsel %vm4207_vm7, %v4197_v3, -inf }
 0x5a7   :  { %v4258_v22 = vsel %vm4198_vm6, %v8248_v9, -inf  ;;  %v4267_v18 = vsel %vm4207_vm7, %v8248_v9, -inf  ;;  %v4201_v19 = vmax.f32 %v4199_v60, %v4200_v4  ;;  %v4210_v27 = vmax.f32 %v4208_v58, %v4209_v6 }
 0x5a8   :  { %v4219_v30 = vmax.f32 %v4217_v63, %v4218_v23  ;;  %v4228_v31 = vmax.f32 %v4226_v26, %v4227_v10  ;;  %v4235_v33 = vrot.slane %v4234_v8, 4  ;;  %v4243_v34 = vrot.slane %v4242_v20, 4 }
 0x5a9   :  { %v4259_v35 = vrot.slane %v4258_v22, 4  ;;  %v4268_v39 = vrot.slane %v4267_v18, 4  ;;  %v4202_v2 = vrot.slane %v4201_v19, 2  ;;  %v4211_v46 = vrot.slane %v4210_v27, 2 }
 0x5aa   :  { %v4220_v48 = vrot.slane %v4219_v30, 2  ;;  %v4229_v51 = vrot.slane %v4228_v31, 2  ;;  %v4236_v53 = vmax.f32 %v4234_v8, %v4235_v33  ;;  %v4244_v54 = vmax.f32 %v4242_v20, %v4243_v34 }
 0x5ab   :  { %v4260_v16 = vmax.f32 %v4258_v22, %v4259_v35  ;;  %v4269_v59 = vmax.f32 %v4267_v18, %v4268_v39  ;;  %v4203_v62 = vmax.f32 %v4201_v19, %v4202_v2  ;;  %v4212_v0 = vmax.f32 %v4210_v27, %v4211_v46 }
 0x5ac   :  { %v4221_v11 = vmax.f32 %v4219_v30, %v4220_v48  ;;  %v4230_v12 = vmax.f32 %v4228_v31, %v4229_v51  ;;  %v4237_v28 = vrot.slane %v4236_v53, 2  ;;  %v4245_v3 = vrot.slane %v4244_v54, 2 }
 0x5ad   :  { %v4261_v47 = vrot.slane %v4260_v16, 2  ;;  %v4270_v40 = vrot.slane %v4269_v59, 2  ;;  %v4204_v60 = vrot.slane %v4203_v62, 1  ;;  %v4213_v58 = vrot.slane %v4212_v0, 1 }
 0x5ae   :  { %v4222_v63 = vrot.slane %v4221_v11, 1  ;;  %v4231_v26 = vrot.slane %v4230_v12, 1  ;;  %v4238_v4 = vmax.f32 %v4236_v53, %v4237_v28  ;;  %v4246_v6 = vmax.f32 %v4244_v54, %v4245_v3 }
 0x5af   :  { %v4262_v23 = vmax.f32 %v4260_v16, %v4261_v47  ;;  %v4271_v10 = vmax.f32 %v4269_v59, %v4270_v40  ;;  %v4205_v8 = vmax.f32 %v4203_v62, %v4204_v60  ;;  %v4214_v20 = vmax.f32 %v4212_v0, %v4213_v58 }
 0x5b0   :  { %v4223_v22 = vmax.f32 %v4221_v11, %v4222_v63  ;;  %v4232_v18 = vmax.f32 %v4230_v12, %v4231_v26  ;;  %v4239_v19 = vrot.slane %v4238_v4, 1  ;;  %v4247_v27 = vrot.slane %v4246_v6, 1 }
 0x5b1   :  { %v4263_v30 = vrot.slane %v4262_v23, 1  ;;  %v4272_v31 = vrot.slane %v4271_v10, 1  ;;  %4206 = vst [vmem:[%s8611_s7] sm:$0x1] %v4205_v8  ;;  %4215 = vst [vmem:[%s8611_s7 + $0x1] sm:$0x1] %v4214_v20  ;;  %v4275_v33 = vsel %vm4216_vm8, %v8248_v9, -inf }
 0x5b2   :  { %4224 = vst [vmem:[%s8611_s7 + $0x2] sm:$0x1] %v4223_v22  ;;  %4233 = vst [vmem:[%s8611_s7 + $0x3] sm:$0x1] %v4232_v18  ;;  %v4283_v34 = vsel %vm4225_vm9, %v8248_v9, -inf  ;;  %v4291_v35 = vsel %vm4198_vm6, %v8250_v37, -inf  ;;  %v4240_v2 = vmax.f32 %v4238_v4, %v4239_v19  ;;  %v4248_v46 = vmax.f32 %v4246_v6, %v4247_v27 }
 0x5b3   :  { %v4299_v39 = vsel %vm4207_vm7, %v8250_v37, -inf  ;;  %v4264_v48 = vmax.f32 %v4262_v23, %v4263_v30  ;;  %v4273_v51 = vmax.f32 %v4271_v10, %v4272_v31  ;;  %v4276_v53 = vrot.slane %v4275_v33, 4 }
 0x5b4   :  { %v4284_v54 = vrot.slane %v4283_v34, 4  ;;  %v4292_v16 = vrot.slane %v4291_v35, 4  ;;  %v4300_v59 = vrot.slane %v4299_v39, 4  ;;  %4241 = vst [vmem:[%s8611_s7 + $0x4] sm:$0x1] %v4240_v2  ;;  %v4315_v9 = vsel %vm4198_vm6, %v8256_v56, -inf }
 0x5b5   :  { %4249 = vst [vmem:[%s8611_s7 + $0x5] sm:$0x1] %v4248_v46  ;;  %5694 = vst [vmem:[%s8611_s7 + $0x8] sm:$0x1] %v4264_v48  ;;  %v4324_v37 = vsel %vm4207_vm7, %v8256_v56, -inf  ;;  %v4332_v62 = vsel %vm4216_vm8, %v8256_v56, -inf  ;;  %v4277_v11 = vmax.f32 %v4275_v33, %v4276_v53 }
 0x5b6   :  { %5695 = vst [vmem:[%s8611_s7 + $0x9] sm:$0x1] %v4273_v51  ;;  %v4340_v0 = vsel %vm4225_vm9, %v8256_v56, -inf  ;;  %v4285_v12 = vmax.f32 %v4283_v34, %v4284_v54  ;;  %v4293_v28 = vmax.f32 %v4291_v35, %v4292_v16  ;;  %v4301_v3 = vmax.f32 %v4299_v39, %v4300_v59  ;;  %v4366_v54 = vld [vmem:[#allocation3 + $0x68] sm:$0xf] }
 0x5b7   :  { %v4316_v47 = vrot.slane %v4315_v9, 4  ;;  %v4325_v40 = vrot.slane %v4324_v37, 4  ;;  %v4333_v60 = vrot.slane %v4332_v62, 4  ;;  %v4341_v58 = vrot.slane %v4340_v0, 4  ;;  %v4369_v16 = vld [vmem:[#allocation3 + $0x78] sm:$0xf] }
 0x5b8   :  { %v4278_v63 = vrot.slane %v4277_v11, 2  ;;  %v4286_v26 = vrot.slane %v4285_v12, 2  ;;  %v4294_v4 = vrot.slane %v4293_v28, 2  ;;  %v4302_v6 = vrot.slane %v4301_v3, 2 }
 0x5b9   :  { %v4317_v23 = vmax.f32 %v4315_v9, %v4316_v47  ;;  %v4326_v10 = vmax.f32 %v4324_v37, %v4325_v40  ;;  %v4334_v8 = vmax.f32 %v4332_v62, %v4333_v60  ;;  %v4342_v20 = vmax.f32 %v4340_v0, %v4341_v58 }
 0x5ba   :  { %v4279_v22 = vmax.f32 %v4277_v11, %v4278_v63  ;;  %v4287_v18 = vmax.f32 %v4285_v12, %v4286_v26  ;;  %v4295_v19 = vmax.f32 %v4293_v28, %v4294_v4  ;;  %v4303_v56 = vmax.f32 %v4301_v3, %v4302_v6 }
 0x5bb   :  { %v4318_v27 = vrot.slane %v4317_v23, 2  ;;  %v4327_v30 = vrot.slane %v4326_v10, 2  ;;  %v4335_v31 = vrot.slane %v4334_v8, 2  ;;  %v4343_v33 = vrot.slane %v4342_v20, 2 }
 0x5bc   :  { %v4280_v34 = vrot.slane %v4279_v22, 1  ;;  %v4288_v35 = vrot.slane %v4287_v18, 1  ;;  %v4296_v39 = vrot.slane %v4295_v19, 1  ;;  %v4304_v2 = vrot.slane %v4303_v56, 1 }
 0x5bd   :  { %v4319_v46 = vmax.f32 %v4317_v23, %v4318_v27  ;;  %v4328_v48 = vmax.f32 %v4326_v10, %v4327_v30  ;;  %v4336_v51 = vmax.f32 %v4334_v8, %v4335_v31  ;;  %v4344_v53 = vmax.f32 %v4342_v20, %v4343_v33 }
 0x5be   :  { %v4281_v59 = vmax.f32 %v4279_v22, %v4280_v34  ;;  %v4289_v9 = vmax.f32 %v4287_v18, %v4288_v35  ;;  %v4297_v37 = vmax.f32 %v4295_v19, %v4296_v39  ;;  %v4305_v62 = vmax.f32 %v4303_v56, %v4304_v2 }
 0x5bf   :  { %v4320_v0 = vrot.slane %v4319_v46, 1  ;;  %v4329_v11 = vrot.slane %v4328_v48, 1  ;;  %v4337_v12 = vrot.slane %v4336_v51, 1  ;;  %v4345_v28 = vrot.slane %v4344_v53, 1 }
 0x5c0   :  { %5696 = vst [vmem:[%s8611_s7 + $0xa] sm:$0x1] %v4281_v59  ;;  %5697 = vst [vmem:[%s8611_s7 + $0xb] sm:$0x1] %v4289_v9  ;;  %v4348_v3 = vsel %vm4198_vm6, %v8258_v55, -inf  ;;  %v4356_v47 = vsel %vm4207_vm7, %v8258_v55, -inf  ;;  %v4370_v40 = vmax.f32 %v4034_v25, %v4036_v38  ;;  %v4371_v60 = vmax.f32 %v4366_v54, %v4369_v16 }
 0x5c1   :  { %5698 = vst [vmem:[%s8611_s7 + $0xc] sm:$0x1] %v4297_v37  ;;  %5699 = vst [vmem:[%s8611_s7 + $0xd] sm:$0x1] %v4305_v62  ;;  %v4321_v58 = vmax.f32 %v4319_v46, %v4320_v0  ;;  %v4330_v63 = vmax.f32 %v4328_v48, %v4329_v11  ;;  %v4338_v26 = vmax.f32 %v4336_v51, %v4337_v12  ;;  %v4349_v6 = vrot.slane %v4348_v3, 4 }
 0x5c2   :  { %v4346_v4 = vmax.f32 %v4344_v53, %v4345_v28  ;;  %v4357_v23 = vrot.slane %v4356_v47, 4  ;;  %v4372_v10 = vsel %vm4198_vm6, %v4370_v40, -inf  ;;  %v4381_v8 = vsel %vm4207_vm7, %v4370_v40, -inf }
 0x5c3   :  { %5700 = vst [vmem:[%s8611_s7 + $0x10] sm:$0x1] %v4321_v58  ;;  %5701 = vst [vmem:[%s8611_s7 + $0x11] sm:$0x1] %v4330_v63  ;;  %v4373_v14 = vrot.slane %v4372_v10, 4  ;;  %v4382_v25 = vrot.slane %v4381_v8, 4  ;;  %v4350_v55 = vmax.f32 %v4348_v3, %v4349_v6 }
 0x5c4   :  { %5702 = vst [vmem:[%s8611_s7 + $0x12] sm:$0x1] %v4338_v26  ;;  %5703 = vst [vmem:[%s8611_s7 + $0x13] sm:$0x1] %v4346_v4  ;;  %v4389_v29 = vsel %vm4216_vm8, %v4370_v40, -inf  ;;  %v4397_v38 = vsel %vm4225_vm9, %v4370_v40, -inf  ;;  %v4358_v20 = vmax.f32 %v4356_v47, %v4357_v23 }
 0x5c5   :  { %v4390_v22 = vrot.slane %v4389_v29, 4  ;;  %v4398_v18 = vrot.slane %v4397_v38, 4  ;;  %v4374_v19 = vmax.f32 %v4372_v10, %v4373_v14  ;;  %v4383_v56 = vmax.f32 %v4381_v8, %v4382_v25  ;;  %v4423_v3 = vld [vmem:[#allocation3 + $0x88] sm:$0xf]  ;;  %v4426_v63 = vld [vmem:[#allocation3 + $0x98] sm:$0xf] }
 0x5c6   :  { %v4405_v27 = vsel %vm4198_vm6, %v4371_v60, -inf  ;;  %v4413_v30 = vsel %vm4207_vm7, %v4371_v60, -inf  ;;  %v4351_v31 = vrot.slane %v4350_v55, 2  ;;  %v4359_v33 = vrot.slane %v4358_v20, 2  ;;  %v4480_v10 = vld [vmem:[#allocation3 + $0xa8] sm:$0xf] }
 0x5c7   :  { %v4391_v34 = vmax.f32 %v4389_v29, %v4390_v22  ;;  %v4399_v35 = vmax.f32 %v4397_v38, %v4398_v18  ;;  %v4375_v39 = vrot.slane %v4374_v19, 2  ;;  %v4384_v2 = vrot.slane %v4383_v56, 2  ;;  %v4483_v8 = vld [vmem:[#allocation3 + $0xb8] sm:$0xf] }
 0x5c8   :  { %v4406_v46 = vrot.slane %v4405_v27, 4  ;;  %v4414_v48 = vrot.slane %v4413_v30, 4  ;;  %v4352_v51 = vmax.f32 %v4350_v55, %v4351_v31  ;;  %v4360_v53 = vmax.f32 %v4358_v20, %v4359_v33 }
 0x5c9   :  { %v4392_v54 = vrot.slane %v4391_v34, 2  ;;  %v4400_v16 = vrot.slane %v4399_v35, 2  ;;  %v4376_v59 = vmax.f32 %v4374_v19, %v4375_v39  ;;  %v4385_v9 = vmax.f32 %v4383_v56, %v4384_v2 }
 0x5ca   :  { %v4407_v37 = vmax.f32 %v4405_v27, %v4406_v46  ;;  %v4415_v62 = vmax.f32 %v4413_v30, %v4414_v48  ;;  %v4353_v0 = vrot.slane %v4352_v51, 1  ;;  %v4361_v11 = vrot.slane %v4360_v53, 1 }
 0x5cb   :  { %v4393_v12 = vmax.f32 %v4391_v34, %v4392_v54  ;;  %v4401_v28 = vmax.f32 %v4399_v35, %v4400_v16  ;;  %v4377_v47 = vrot.slane %v4376_v59, 1  ;;  %v4386_v40 = vrot.slane %v4385_v9, 1 }
 0x5cc   :  { %v4408_v60 = vrot.slane %v4407_v37, 2  ;;  %v4416_v58 = vrot.slane %v4415_v62, 2  ;;  %v4354_v26 = vmax.f32 %v4352_v51, %v4353_v0  ;;  %v4362_v4 = vmax.f32 %v4360_v53, %v4361_v11 }
 0x5cd   :  { %v4394_v6 = vrot.slane %v4393_v12, 1  ;;  %v4402_v23 = vrot.slane %v4401_v28, 1  ;;  %v4378_v14 = vmax.f32 %v4376_v59, %v4377_v47  ;;  %v4387_v25 = vmax.f32 %v4385_v9, %v4386_v40 }
 0x5ce   :  { %v4409_v29 = vmax.f32 %v4407_v37, %v4408_v60  ;;  %v4417_v38 = vmax.f32 %v4415_v62, %v4416_v58  ;;  %5704 = vst [vmem:[%s8611_s7 + $0x14] sm:$0x1] %v4354_v26  ;;  %5705 = vst [vmem:[%s8611_s7 + $0x15] sm:$0x1] %v4362_v4  ;;  %v4427_v22 = vmax.f32 %v4038_v57, %v4040_v61 }
 0x5cf   :  { %v4395_v55 = vmax.f32 %v4393_v12, %v4394_v6  ;;  %v4403_v20 = vmax.f32 %v4401_v28, %v4402_v23  ;;  %v4428_v18 = vmax.f32 %v4423_v3, %v4426_v63  ;;  %5706 = vst [vmem:[%s8611_s7 + $0x18] sm:$0x1] %v4378_v14  ;;  %5707 = vst [vmem:[%s8611_s7 + $0x19] sm:$0x1] %v4387_v25 }
 0x5d0   :  { %v4410_v19 = vrot.slane %v4409_v29, 1  ;;  %v4418_v56 = vrot.slane %v4417_v38, 1  ;;  %v8368_v27 = vmax.f32 %v4042_v1, %v4044_v17  ;;  %v8370_v45 = vmax.f32 %v4480_v10, %v4483_v8 }
 0x5d1   :  { %5708 = vst [vmem:[%s8611_s7 + $0x1a] sm:$0x1] %v4395_v55  ;;  %5709 = vst [vmem:[%s8611_s7 + $0x1b] sm:$0x1] %v4403_v20  ;;  %v4429_v43 = vsel %vm4198_vm6, %v4427_v22, -inf  ;;  %v4438_v57 = vsel %vm4207_vm7, %v4427_v22, -inf }
 0x5d2   :  { %v4446_v61 = vsel %vm4216_vm8, %v4427_v22, -inf  ;;  %v4454_v49 = vsel %vm4225_vm9, %v4427_v22, -inf  ;;  %v4411_v1 = vmax.f32 %v4409_v29, %v4410_v19  ;;  %v4419_v5 = vmax.f32 %v4417_v38, %v4418_v56 }
 0x5d3   :  { %v4430_v17 = vrot.slane %v4429_v43, 4  ;;  %v4439_v30 = vrot.slane %v4438_v57, 4  ;;  %v4447_v31 = vrot.slane %v4446_v61, 4  ;;  %v4455_v33 = vrot.slane %v4454_v49, 4 }
 0x5d4   :  { %v4462_v34 = vsel %vm4198_vm6, %v4428_v18, -inf  ;;  %v4470_v35 = vsel %vm4207_vm7, %v4428_v18, -inf  ;;  %5710 = vst [vmem:[%s8611_s7 + $0x1c] sm:$0x1] %v4411_v1  ;;  %5711 = vst [vmem:[%s8611_s7 + $0x1d] sm:$0x1] %v4419_v5 }
 0x5d5   :  { %v4431_v39 = vmax.f32 %v4429_v43, %v4430_v17  ;;  %v4440_v2 = vmax.f32 %v4438_v57, %v4439_v30  ;;  %v4463_v46 = vrot.slane %v4462_v34, 4  ;;  %v4471_v48 = vrot.slane %v4470_v35, 4 }
 0x5d6   :  { %v4448_v51 = vmax.f32 %v4446_v61, %v4447_v31  ;;  %v4456_v53 = vmax.f32 %v4454_v49, %v4455_v33  ;;  %v4486_v54 = vsel %vm4198_vm6, %v8368_v27, -inf  ;;  %v4495_v16 = vsel %vm4207_vm7, %v8368_v27, -inf  ;;  %v4536_v61 = vld [vmem:[#allocation3 + $0xc8] sm:$0xf]  ;;  %v4539_v49 = vld [vmem:[#allocation3 + $0xd8] sm:$0xf] }
 0x5d7   :  { %v4432_v59 = vrot.slane %v4431_v39, 2  ;;  %v4441_v9 = vrot.slane %v4440_v2, 2  ;;  %v4464_v37 = vmax.f32 %v4462_v34, %v4463_v46  ;;  %v4472_v62 = vmax.f32 %v4470_v35, %v4471_v48 }
 0x5d8   :  { %v4449_v0 = vrot.slane %v4448_v51, 2  ;;  %v4457_v11 = vrot.slane %v4456_v53, 2  ;;  %v4487_v12 = vrot.slane %v4486_v54, 4  ;;  %v4496_v28 = vrot.slane %v4495_v16, 4 }
 0x5d9   :  { %v4433_v3 = vmax.f32 %v4431_v39, %v4432_v59  ;;  %v4442_v47 = vmax.f32 %v4440_v2, %v4441_v9  ;;  %v4465_v40 = vrot.slane %v4464_v37, 2  ;;  %v4473_v60 = vrot.slane %v4472_v62, 2 }
 0x5da   :  { %v4450_v58 = vmax.f32 %v4448_v51, %v4449_v0  ;;  %v4458_v63 = vmax.f32 %v4456_v53, %v4457_v11  ;;  %v4488_v26 = vmax.f32 %v4486_v54, %v4487_v12  ;;  %v4497_v4 = vmax.f32 %v4495_v16, %v4496_v28 }
 0x5db   :  { %v4434_v6 = vrot.slane %v4433_v3, 1  ;;  %v4443_v23 = vrot.slane %v4442_v47, 1  ;;  %v4466_v10 = vmax.f32 %v4464_v37, %v4465_v40  ;;  %v4474_v8 = vmax.f32 %v4472_v62, %v4473_v60 }
 0x5dc   :  { %v4451_v14 = vrot.slane %v4450_v58, 1  ;;  %v4459_v25 = vrot.slane %v4458_v63, 1  ;;  %v4489_v29 = vrot.slane %v4488_v26, 2  ;;  %v4498_v38 = vrot.slane %v4497_v4, 2 }
 0x5dd   :  { %v4435_v55 = vmax.f32 %v4433_v3, %v4434_v6  ;;  %v4444_v20 = vmax.f32 %v4442_v47, %v4443_v23  ;;  %v4467_v22 = vrot.slane %v4466_v10, 1  ;;  %v4475_v18 = vrot.slane %v4474_v8, 1 }
 0x5de   :  { %v4452_v19 = vmax.f32 %v4450_v58, %v4451_v14  ;;  %v4460_v56 = vmax.f32 %v4458_v63, %v4459_v25  ;;  %v4490_v43 = vmax.f32 %v4488_v26, %v4489_v29  ;;  %v4499_v57 = vmax.f32 %v4497_v4, %v4498_v38 }
 0x5df   :  { %5712 = vst [vmem:[%s8611_s7 + $0x20] sm:$0x1] %v4435_v55  ;;  %5713 = vst [vmem:[%s8611_s7 + $0x21] sm:$0x1] %v4444_v20  ;;  %v4468_v1 = vmax.f32 %v4466_v10, %v4467_v22  ;;  %v4476_v5 = vmax.f32 %v4474_v8, %v4475_v18  ;;  %v4503_v17 = vsel %vm4216_vm8, %v8368_v27, -inf  ;;  %v4511_v30 = vsel %vm4225_vm9, %v8368_v27, -inf }
 0x5e0   :  { %5714 = vst [vmem:[%s8611_s7 + $0x22] sm:$0x1] %v4452_v19  ;;  %5715 = vst [vmem:[%s8611_s7 + $0x23] sm:$0x1] %v4460_v56  ;;  %v4491_v31 = vrot.slane %v4490_v43, 1  ;;  %v4500_v33 = vrot.slane %v4499_v57, 1  ;;  %v4540_v2 = vmax.f32 %v4143_v42, %v4145_v44  ;;  %v4541_v46 = vmax.f32 %v4536_v61, %v4539_v49 }
 0x5e1   :  { %v4504_v34 = vrot.slane %v4503_v17, 4  ;;  %v4512_v35 = vrot.slane %v4511_v30, 4  ;;  %5716 = vst [vmem:[%s8611_s7 + $0x24] sm:$0x1] %v4468_v1  ;;  %5717 = vst [vmem:[%s8611_s7 + $0x25] sm:$0x1] %v4476_v5 }
 0x5e2   :  { %v4519_v27 = vsel %vm4198_vm6, %v8370_v45, -inf  ;;  %v4527_v39 = vsel %vm4207_vm7, %v8370_v45, -inf  ;;  %v4492_v48 = vmax.f32 %v4490_v43, %v4491_v31  ;;  %v4501_v51 = vmax.f32 %v4499_v57, %v4500_v33  ;;  %v4593_v43 = vld [vmem:[#allocation3 + $0xe8] sm:$0xf]  ;;  %v4596_v5 = vld [vmem:[#allocation3 + $0xf8] sm:$0xf] }
 0x5e3   :  { %v4505_v53 = vmax.f32 %v4503_v17, %v4504_v34  ;;  %v4513_v54 = vmax.f32 %v4511_v30, %v4512_v35  ;;  %v4520_v16 = vrot.slane %v4519_v27, 4  ;;  %v4528_v59 = vrot.slane %v4527_v39, 4  ;;  %v4650_v34 = vld [vmem:[#allocation3 + $0x108] sm:$0xf]  ;;  %v4653_v35 = vld [vmem:[#allocation3 + $0x118] sm:$0xf] }
 0x5e4   :  { %v4542_v9 = vsel %vm4198_vm6, %v4540_v2, -inf  ;;  %v4551_v37 = vsel %vm4207_vm7, %v4540_v2, -inf  ;;  %5718 = vst [vmem:[%s8611_s7 + $0x28] sm:$0x1] %v4492_v48  ;;  %5719 = vst [vmem:[%s8611_s7 + $0x29] sm:$0x1] %v4501_v51  ;;  %v8464_v52 = vmax.f32 %v4650_v34, %v4653_v35 }
 0x5e5   :  { %v4506_v21 = vrot.slane %v4505_v53, 2  ;;  %v4514_v24 = vrot.slane %v4513_v54, 2  ;;  %v4543_v42 = vrot.slane %v4542_v9, 4  ;;  %v4552_v44 = vrot.slane %v4551_v37, 4 }
 0x5e6   :  { %v4521_v45 = vmax.f32 %v4519_v27, %v4520_v16  ;;  %v4529_v62 = vmax.f32 %v4527_v39, %v4528_v59  ;;  %v4559_v0 = vsel %vm4216_vm8, %v4540_v2, -inf  ;;  %v4567_v11 = vsel %vm4225_vm9, %v4540_v2, -inf }
 0x5e7   :  { %v4507_v12 = vmax.f32 %v4505_v53, %v4506_v21  ;;  %v4515_v28 = vmax.f32 %v4513_v54, %v4514_v24  ;;  %v4544_v3 = vmax.f32 %v4542_v9, %v4543_v42  ;;  %v4553_v47 = vmax.f32 %v4551_v37, %v4552_v44 }
 0x5e8   :  { %v4522_v40 = vrot.slane %v4521_v45, 2  ;;  %v4530_v60 = vrot.slane %v4529_v62, 2  ;;  %v4560_v58 = vrot.slane %v4559_v0, 4  ;;  %v4568_v63 = vrot.slane %v4567_v11, 4 }
 0x5e9   :  { %v4508_v26 = vrot.slane %v4507_v12, 1  ;;  %v4516_v4 = vrot.slane %v4515_v28, 1  ;;  %v4545_v6 = vrot.slane %v4544_v3, 2  ;;  %v4554_v23 = vrot.slane %v4553_v47, 2 }
 0x5ea   :  { %v4523_v10 = vmax.f32 %v4521_v45, %v4522_v40  ;;  %v4531_v8 = vmax.f32 %v4529_v62, %v4530_v60  ;;  %v4561_v14 = vmax.f32 %v4559_v0, %v4560_v58  ;;  %v4569_v25 = vmax.f32 %v4567_v11, %v4568_v63 }
 0x5eb   :  { %v4509_v29 = vmax.f32 %v4507_v12, %v4508_v26  ;;  %v4517_v38 = vmax.f32 %v4515_v28, %v4516_v4  ;;  %v4546_v55 = vmax.f32 %v4544_v3, %v4545_v6  ;;  %v4555_v20 = vmax.f32 %v4553_v47, %v4554_v23 }
 0x5ec   :  { %v4524_v22 = vrot.slane %v4523_v10, 1  ;;  %v4532_v18 = vrot.slane %v4531_v8, 1  ;;  %v4562_v19 = vrot.slane %v4561_v14, 2  ;;  %v4570_v56 = vrot.slane %v4569_v25, 2 }
 0x5ed   :  { %5720 = vst [vmem:[%s8611_s7 + $0x2a] sm:$0x1] %v4509_v29  ;;  %5721 = vst [vmem:[%s8611_s7 + $0x2b] sm:$0x1] %v4517_v38  ;;  %v4547_v57 = vrot.slane %v4546_v55, 1  ;;  %v4556_v61 = vrot.slane %v4555_v20, 1  ;;  %v4597_v53 = vmax.f32 %v4147_v50, %v4149_v7  ;;  %v4598_v54 = vmax.f32 %v4593_v43, %v4596_v5 }
 0x5ee   :  { %v4575_v49 = vsel %vm4198_vm6, %v4541_v46, -inf  ;;  %v4583_v1 = vsel %vm4207_vm7, %v4541_v46, -inf  ;;  %v4525_v17 = vmax.f32 %v4523_v10, %v4524_v22  ;;  %v4533_v30 = vmax.f32 %v4531_v8, %v4532_v18 }
 0x5ef   :  { %v4563_v31 = vmax.f32 %v4561_v14, %v4562_v19  ;;  %v4571_v33 = vmax.f32 %v4569_v25, %v4570_v56  ;;  %v4548_v27 = vmax.f32 %v4546_v55, %v4547_v57  ;;  %v4557_v39 = vmax.f32 %v4555_v20, %v4556_v61 }
 0x5f0   :  { %v4576_v2 = vrot.slane %v4575_v49, 4  ;;  %v4584_v48 = vrot.slane %v4583_v1, 4  ;;  %5722 = vst [vmem:[%s8611_s7 + $0x2c] sm:$0x1] %v4525_v17  ;;  %5723 = vst [vmem:[%s8611_s7 + $0x2d] sm:$0x1] %v4533_v30  ;;  %v8462_v9 = vmax.f32 %v4151_v36, %v4153_v41 }
 0x5f1   :  { %v4564_v46 = vrot.slane %v4563_v31, 1  ;;  %v4572_v51 = vrot.slane %v4571_v33, 1  ;;  %5724 = vst [vmem:[%s8611_s7 + $0x30] sm:$0x1] %v4548_v27  ;;  %5725 = vst [vmem:[%s8611_s7 + $0x31] sm:$0x1] %v4557_v39 }
 0x5f2   :  { %v4577_v16 = vmax.f32 %v4575_v49, %v4576_v2  ;;  %v4585_v59 = vmax.f32 %v4583_v1, %v4584_v48  ;;  %v4599_v7 = vsel %vm4198_vm6, %v4597_v53, -inf  ;;  %v4608_v37 = vsel %vm4207_vm7, %v4597_v53, -inf  ;;  %v4707_v27 = vld [vmem:[#allocation3 + $0x128] sm:$0xf] }
 0x5f3   :  { %v4565_v32 = vmax.f32 %v4563_v31, %v4564_v46  ;;  %v4573_v50 = vmax.f32 %v4571_v33, %v4572_v51  ;;  %v4600_v42 = vrot.slane %v4599_v7, 4  ;;  %v4609_v44 = vrot.slane %v4608_v37, 4  ;;  %v4706_v51 = vld [vmem:[#allocation3 + $0x120] sm:$0xff] }
 0x5f4   :  { %v4578_v21 = vrot.slane %v4577_v16, 2  ;;  %v4586_v24 = vrot.slane %v4585_v59, 2  ;;  %v4616_v13 = vsel %vm4216_vm8, %v4597_v53, -inf  ;;  %v4624_v15 = vsel %vm4225_vm9, %v4597_v53, -inf  ;;  %v4709_v53 = vld [vmem:[#allocation3 + $0x130] sm:$0xff] }
 0x5f5   :  { %5726 = vst [vmem:[%s8611_s7 + $0x32] sm:$0x1] %v4565_v32  ;;  %5727 = vst [vmem:[%s8611_s7 + $0x33] sm:$0x1] %v4573_v50  ;;  %v4632_v36 = vsel %vm4198_vm6, %v4598_v54, -inf  ;;  %v4640_v41 = vsel %vm4207_vm7, %v4598_v54, -inf  ;;  %v4601_v0 = vmax.f32 %v4599_v7, %v4600_v42  ;;  %v4610_v11 = vmax.f32 %v4608_v37, %v4609_v44 }
 0x5f6   :  { %v4579_v45 = vmax.f32 %v4577_v16, %v4578_v21  ;;  %v4587_v62 = vmax.f32 %v4585_v59, %v4586_v24  ;;  %v4617_v12 = vrot.slane %v4616_v13, 4  ;;  %v4625_v28 = vrot.slane %v4624_v15, 4  ;;  %v4710_v54 = vld [vmem:[#allocation3 + $0x138] sm:$0xf] }
 0x5f7   :  { %v4633_v3 = vrot.slane %v4632_v36, 4  ;;  %v4641_v47 = vrot.slane %v4640_v41, 4  ;;  %v4602_v58 = vrot.slane %v4601_v0, 2  ;;  %v4611_v63 = vrot.slane %v4610_v11, 2 }
 0x5f8   :  { %v4580_v40 = vrot.slane %v4579_v45, 1  ;;  %v4588_v60 = vrot.slane %v4587_v62, 1  ;;  %v4618_v26 = vmax.f32 %v4616_v13, %v4617_v12  ;;  %v4626_v4 = vmax.f32 %v4624_v15, %v4625_v28 }
 0x5f9   :  { %v4634_v6 = vmax.f32 %v4632_v36, %v4633_v3  ;;  %v4642_v23 = vmax.f32 %v4640_v41, %v4641_v47  ;;  %v4603_v14 = vmax.f32 %v4601_v0, %v4602_v58  ;;  %v4612_v25 = vmax.f32 %v4610_v11, %v4611_v63 }
 0x5fa   :  { %v4581_v10 = vmax.f32 %v4579_v45, %v4580_v40  ;;  %v4589_v8 = vmax.f32 %v4587_v62, %v4588_v60  ;;  %v4619_v29 = vrot.slane %v4618_v26, 2  ;;  %v4627_v38 = vrot.slane %v4626_v4, 2 }
 0x5fb   :  { %v4635_v55 = vrot.slane %v4634_v6, 2  ;;  %v4643_v20 = vrot.slane %v4642_v23, 2  ;;  %v4604_v22 = vrot.slane %v4603_v14, 1  ;;  %v4613_v18 = vrot.slane %v4612_v25, 1 }
 0x5fc   :  { %5728 = vst [vmem:[%s8611_s7 + $0x34] sm:$0x1] %v4581_v10  ;;  %5729 = vst [vmem:[%s8611_s7 + $0x35] sm:$0x1] %v4589_v8  ;;  %v4656_v19 = vsel %vm4198_vm6, %v8462_v9, -inf  ;;  %v4665_v56 = vsel %vm4207_vm7, %v8462_v9, -inf  ;;  %v4620_v43 = vmax.f32 %v4618_v26, %v4619_v29  ;;  %v4628_v57 = vmax.f32 %v4626_v4, %v4627_v38 }
 0x5fd   :  { %v4636_v61 = vmax.f32 %v4634_v6, %v4635_v55  ;;  %v4644_v49 = vmax.f32 %v4642_v23, %v4643_v20  ;;  %v4605_v1 = vmax.f32 %v4603_v14, %v4604_v22  ;;  %v4614_v5 = vmax.f32 %v4612_v25, %v4613_v18 }
 0x5fe   :  { %v4657_v17 = vrot.slane %v4656_v19, 4  ;;  %v4666_v30 = vrot.slane %v4665_v56, 4  ;;  %v4621_v31 = vrot.slane %v4620_v43, 1  ;;  %v4629_v33 = vrot.slane %v4628_v57, 1 }
 0x5ff   :  { %v4637_v34 = vrot.slane %v4636_v61, 1  ;;  %v4645_v35 = vrot.slane %v4644_v49, 1  ;;  %5730 = vst [vmem:[%s8611_s7 + $0x38] sm:$0x1] %v4605_v1  ;;  %5731 = vst [vmem:[%s8611_s7 + $0x39] sm:$0x1] %v4614_v5  ;;  %v4711_v44 = vmax.f32 %v4706_v51, %v4709_v53  ;;  %v4712_v13 = vmax.f32 %v4707_v27, %v4710_v54 }
 0x600   :  { %v4658_v39 = vmax.f32 %v4656_v19, %v4657_v17  ;;  %v4667_v2 = vmax.f32 %v4665_v56, %v4666_v30  ;;  %v4673_v48 = vsel %vm4216_vm8, %v8462_v9, -inf  ;;  %v4681_v46 = vsel %vm4225_vm9, %v8462_v9, -inf }
 0x601   :  { %v4622_v16 = vmax.f32 %v4620_v43, %v4621_v31  ;;  %v4630_v59 = vmax.f32 %v4628_v57, %v4629_v33  ;;  %v4638_v32 = vmax.f32 %v4636_v61, %v4637_v34  ;;  %v4646_v50 = vmax.f32 %v4644_v49, %v4645_v35  ;;  %v4763_v31 = vld [vmem:[#allocation3 + $0x140] sm:$0xff]  ;;  %v4766_v33 = vld [vmem:[#allocation3 + $0x150] sm:$0xff] }
 0x602   :  { %v4659_v7 = vrot.slane %v4658_v39, 2  ;;  %v4668_v37 = vrot.slane %v4667_v2, 2  ;;  %v4674_v21 = vrot.slane %v4673_v48, 4  ;;  %v4682_v24 = vrot.slane %v4681_v46, 4 }
 0x603   :  { %5732 = vst [vmem:[%s8611_s7 + $0x3a] sm:$0x1] %v4622_v16  ;;  %5733 = vst [vmem:[%s8611_s7 + $0x3b] sm:$0x1] %v4630_v59  ;;  %v4689_v9 = vsel %vm4198_vm6, %v8464_v52, -inf  ;;  %v4697_v42 = vsel %vm4207_vm7, %v8464_v52, -inf }
 0x604   :  { %5734 = vst [vmem:[%s8611_s7 + $0x3c] sm:$0x1] %v4638_v32  ;;  %5735 = vst [vmem:[%s8611_s7 + $0x3d] sm:$0x1] %v4646_v50  ;;  %v4660_v15 = vmax.f32 %v4658_v39, %v4659_v7  ;;  %v4669_v36 = vmax.f32 %v4667_v2, %v4668_v37  ;;  %v4675_v41 = vmax.f32 %v4673_v48, %v4674_v21  ;;  %v4690_v62 = vrot.slane %v4689_v9, 4 }
 0x605   :  { %v4683_v45 = vmax.f32 %v4681_v46, %v4682_v24  ;;  %v4698_v0 = vrot.slane %v4697_v42, 4  ;;  %v4713_v11 = vsel %vm4198_vm6, %v4711_v44, -inf  ;;  %v4722_v12 = vsel %vm4207_vm7, %v4711_v44, -inf  ;;  %v4764_v2 = vld [vmem:[#allocation3 + $0x148] sm:$0xf] }
 0x606   :  { %v4661_v28 = vrot.slane %v4660_v15, 1  ;;  %v4670_v3 = vrot.slane %v4669_v36, 1  ;;  %v4676_v47 = vrot.slane %v4675_v41, 2  ;;  %v4691_v60 = vmax.f32 %v4689_v9, %v4690_v62  ;;  %v4767_v48 = vld [vmem:[#allocation3 + $0x158] sm:$0xf] }
 0x607   :  { %v4684_v40 = vrot.slane %v4683_v45, 2  ;;  %v4699_v58 = vmax.f32 %v4697_v42, %v4698_v0  ;;  %v4714_v63 = vrot.slane %v4713_v11, 4  ;;  %v4723_v52 = vrot.slane %v4722_v12, 4 }
 0x608   :  { %v4662_v26 = vmax.f32 %v4660_v15, %v4661_v28  ;;  %v4671_v4 = vmax.f32 %v4669_v36, %v4670_v3  ;;  %v4677_v6 = vmax.f32 %v4675_v41, %v4676_v47  ;;  %v4692_v10 = vrot.slane %v4691_v60, 2 }
 0x609   :  { %v4685_v23 = vmax.f32 %v4683_v45, %v4684_v40  ;;  %v4700_v8 = vrot.slane %v4699_v58, 2  ;;  %v4715_v14 = vmax.f32 %v4713_v11, %v4714_v63  ;;  %v4724_v25 = vmax.f32 %v4722_v12, %v4723_v52 }
 0x60a   :  { %5736 = vst [vmem:[%s8611_s7 + $0x40] sm:$0x1] %v4662_v26  ;;  %5737 = vst [vmem:[%s8611_s7 + $0x41] sm:$0x1] %v4671_v4  ;;  %v4678_v29 = vrot.slane %v4677_v6, 1  ;;  %v4730_v55 = vsel %vm4216_vm8, %v4711_v44, -inf  ;;  %v4693_v22 = vmax.f32 %v4691_v60, %v4692_v10  ;;  %v4768_v21 = vmax.f32 %v4763_v31, %v4766_v33 }
 0x60b   :  { %v4686_v38 = vrot.slane %v4685_v23, 1  ;;  %v4738_v20 = vsel %vm4225_vm9, %v4711_v44, -inf  ;;  %v4701_v18 = vmax.f32 %v4699_v58, %v4700_v8  ;;  %v4716_v19 = vrot.slane %v4715_v14, 2  ;;  %v4821_v10 = vld [vmem:[#allocation3 + $0x168] sm:$0xf] }
 0x60c   :  { %v4725_v56 = vrot.slane %v4724_v25, 2  ;;  %v4679_v43 = vmax.f32 %v4677_v6, %v4678_v29  ;;  %v4731_v61 = vrot.slane %v4730_v55, 4  ;;  %v4739_v49 = vrot.slane %v4738_v20, 4 }
 0x60d   :  { %v4687_v57 = vmax.f32 %v4685_v23, %v4686_v38  ;;  %v4694_v1 = vrot.slane %v4693_v22, 1  ;;  %v4702_v5 = vrot.slane %v4701_v18, 1  ;;  %v4717_v17 = vmax.f32 %v4715_v14, %v4716_v19  ;;  %v4820_v38 = vld [vmem:[#allocation3 + $0x160] sm:$0xff] }
 0x60e   :  { %v4726_v30 = vmax.f32 %v4724_v25, %v4725_v56  ;;  %5738 = vst [vmem:[%s8611_s7 + $0x42] sm:$0x1] %v4679_v43  ;;  %v4732_v34 = vmax.f32 %v4730_v55, %v4731_v61  ;;  %v4740_v35 = vmax.f32 %v4738_v20, %v4739_v49  ;;  %v4746_v27 = vsel %vm4198_vm6, %v4712_v13, -inf  ;;  %v4823_v55 = vld [vmem:[#allocation3 + $0x170] sm:$0xff]  ;;  %v4824_v56 = vld [vmem:[#allocation3 + $0x178] sm:$0xf] }
 0x60f   :  { %5739 = vst [vmem:[%s8611_s7 + $0x43] sm:$0x1] %v4687_v57  ;;  %v4754_v39 = vsel %vm4207_vm7, %v4712_v13, -inf  ;;  %v4695_v46 = vmax.f32 %v4693_v22, %v4694_v1  ;;  %v4703_v51 = vmax.f32 %v4701_v18, %v4702_v5  ;;  %v4718_v53 = vrot.slane %v4717_v17, 1 }
 0x610   :  { %v4727_v54 = vrot.slane %v4726_v30, 1  ;;  %v4733_v16 = vrot.slane %v4732_v34, 2  ;;  %v4741_v59 = vrot.slane %v4740_v35, 2  ;;  %v4747_v32 = vrot.slane %v4746_v27, 4 }
 0x611   :  { %v4755_v50 = vrot.slane %v4754_v39, 4  ;;  %5740 = vst [vmem:[%s8611_s7 + $0x44] sm:$0x1] %v4695_v46  ;;  %5741 = vst [vmem:[%s8611_s7 + $0x45] sm:$0x1] %v4703_v51  ;;  %v4719_v7 = vmax.f32 %v4717_v17, %v4718_v53  ;;  %v4769_v24 = vmax.f32 %v4764_v2, %v4767_v48  ;;  %v4770_v15 = vsel %vm4198_vm6, %v4768_v21, -inf }
 0x612   :  { %v4728_v37 = vmax.f32 %v4726_v30, %v4727_v54  ;;  %v4734_v9 = vmax.f32 %v4732_v34, %v4733_v16  ;;  %v4742_v42 = vmax.f32 %v4740_v35, %v4741_v59  ;;  %v4748_v44 = vmax.f32 %v4746_v27, %v4747_v32 }
 0x613   :  { %v4756_v13 = vmax.f32 %v4754_v39, %v4755_v50  ;;  %5742 = vst [vmem:[%s8611_s7 + $0x48] sm:$0x1] %v4719_v7  ;;  %v4779_v36 = vsel %vm4207_vm7, %v4768_v21, -inf  ;;  %v4787_v41 = vsel %vm4216_vm8, %v4768_v21, -inf  ;;  %v4795_v45 = vsel %vm4225_vm9, %v4768_v21, -inf }
 0x614   :  { %5743 = vst [vmem:[%s8611_s7 + $0x49] sm:$0x1] %v4728_v37  ;;  %v4735_v62 = vrot.slane %v4734_v9, 1  ;;  %v4743_v0 = vrot.slane %v4742_v42, 1  ;;  %v4749_v11 = vrot.slane %v4748_v44, 2  ;;  %v4771_v28 = vrot.slane %v4770_v15, 4 }
 0x615   :  { %v4757_v12 = vrot.slane %v4756_v13, 2  ;;  %v4780_v3 = vrot.slane %v4779_v36, 4  ;;  %v4788_v47 = vrot.slane %v4787_v41, 4  ;;  %v4796_v40 = vrot.slane %v4795_v45, 4 }
 0x616   :  { %v4736_v60 = vmax.f32 %v4734_v9, %v4735_v62  ;;  %v4744_v58 = vmax.f32 %v4742_v42, %v4743_v0  ;;  %v4750_v63 = vmax.f32 %v4748_v44, %v4749_v11  ;;  %v4772_v26 = vmax.f32 %v4770_v15, %v4771_v28 }
 0x617   :  { %v4758_v52 = vmax.f32 %v4756_v13, %v4757_v12  ;;  %v4781_v4 = vmax.f32 %v4779_v36, %v4780_v3  ;;  %v4789_v6 = vmax.f32 %v4787_v41, %v4788_v47  ;;  %v4797_v23 = vmax.f32 %v4795_v45, %v4796_v40 }
 0x618   :  { %5744 = vst [vmem:[%s8611_s7 + $0x4a] sm:$0x1] %v4736_v60  ;;  %5745 = vst [vmem:[%s8611_s7 + $0x4b] sm:$0x1] %v4744_v58  ;;  %v4751_v8 = vrot.slane %v4750_v63, 1  ;;  %v4803_v25 = vsel %vm4198_vm6, %v4769_v24, -inf  ;;  %v4825_v34 = vmax.f32 %v4820_v38, %v4823_v55  ;;  %v4826_v35 = vmax.f32 %v4821_v10, %v4824_v56 }
 0x619   :  { %v4759_v14 = vrot.slane %v4758_v52, 1  ;;  %v4811_v29 = vsel %vm4207_vm7, %v4769_v24, -inf  ;;  %v4773_v20 = vrot.slane %v4772_v26, 2  ;;  %v4782_v22 = vrot.slane %v4781_v4, 2 }
 0x61a   :  { %v4790_v18 = vrot.slane %v4789_v6, 2  ;;  %v4798_v19 = vrot.slane %v4797_v23, 2  ;;  %v4752_v43 = vmax.f32 %v4750_v63, %v4751_v8  ;;  %v4804_v61 = vrot.slane %v4803_v25, 4 }
 0x61b   :  { %v4760_v57 = vmax.f32 %v4758_v52, %v4759_v14  ;;  %v4812_v49 = vrot.slane %v4811_v29, 4  ;;  %v4774_v1 = vmax.f32 %v4772_v26, %v4773_v20  ;;  %v4783_v5 = vmax.f32 %v4781_v4, %v4782_v22 }
 0x61c   :  { %v4791_v17 = vmax.f32 %v4789_v6, %v4790_v18  ;;  %v4799_v30 = vmax.f32 %v4797_v23, %v4798_v19  ;;  %5746 = vst [vmem:[%s8611_s7 + $0x4c] sm:$0x1] %v4752_v43  ;;  %v4805_v31 = vmax.f32 %v4803_v25, %v4804_v61  ;;  %v4827_v53 = vsel %vm4198_vm6, %v4825_v34, -inf }
 0x61d   :  { %5747 = vst [vmem:[%s8611_s7 + $0x4d] sm:$0x1] %v4760_v57  ;;  %v4813_v33 = vmax.f32 %v4811_v29, %v4812_v49  ;;  %v4775_v27 = vrot.slane %v4774_v1, 1  ;;  %v4784_v39 = vrot.slane %v4783_v5, 1  ;;  %v4836_v54 = vsel %vm4207_vm7, %v4825_v34, -inf }
 0x61e   :  { %v4792_v2 = vrot.slane %v4791_v17, 1  ;;  %v4800_v48 = vrot.slane %v4799_v30, 1  ;;  %v4806_v46 = vrot.slane %v4805_v31, 2  ;;  %v4828_v21 = vrot.slane %v4827_v53, 4 }
 0x61f   :  { %v4814_v51 = vrot.slane %v4813_v33, 2  ;;  %v4776_v16 = vmax.f32 %v4774_v1, %v4775_v27  ;;  %v4785_v59 = vmax.f32 %v4783_v5, %v4784_v39  ;;  %v4837_v24 = vrot.slane %v4836_v54, 4 }
 0x620   :  { %v4793_v32 = vmax.f32 %v4791_v17, %v4792_v2  ;;  %v4801_v50 = vmax.f32 %v4799_v30, %v4800_v48  ;;  %v4807_v7 = vmax.f32 %v4805_v31, %v4806_v46  ;;  %v4844_v9 = vsel %vm4216_vm8, %v4825_v34, -inf }
 0x621   :  { %v4815_v37 = vmax.f32 %v4813_v33, %v4814_v51  ;;  %5748 = vst [vmem:[%s8611_s7 + $0x50] sm:$0x1] %v4776_v16  ;;  %5749 = vst [vmem:[%s8611_s7 + $0x51] sm:$0x1] %v4785_v59  ;;  %v4852_v42 = vsel %vm4225_vm9, %v4825_v34, -inf  ;;  %v4860_v44 = vsel %vm4198_vm6, %v4826_v35, -inf  ;;  %v4829_v41 = vmax.f32 %v4827_v53, %v4828_v21 }
 0x622   :  { %5750 = vst [vmem:[%s8611_s7 + $0x52] sm:$0x1] %v4793_v32  ;;  %5751 = vst [vmem:[%s8611_s7 + $0x53] sm:$0x1] %v4801_v50  ;;  %v4868_v13 = vsel %vm4207_vm7, %v4826_v35, -inf  ;;  %v4808_v15 = vrot.slane %v4807_v7, 1  ;;  %v4838_v45 = vmax.f32 %v4836_v54, %v4837_v24 }
 0x623   :  { %v4816_v36 = vrot.slane %v4815_v37, 1  ;;  %v4845_v62 = vrot.slane %v4844_v9, 4  ;;  %v4853_v0 = vrot.slane %v4852_v42, 4  ;;  %v4861_v11 = vrot.slane %v4860_v44, 4 }
 0x624   :  { %v4869_v12 = vrot.slane %v4868_v13, 4  ;;  %v4809_v28 = vmax.f32 %v4807_v7, %v4808_v15  ;;  %v4830_v47 = vrot.slane %v4829_v41, 2  ;;  %v4839_v40 = vrot.slane %v4838_v45, 2 }
 0x625   :  { %v4817_v3 = vmax.f32 %v4815_v37, %v4816_v36  ;;  %v4846_v60 = vmax.f32 %v4844_v9, %v4845_v62  ;;  %v4854_v58 = vmax.f32 %v4852_v42, %v4853_v0  ;;  %v4862_v63 = vmax.f32 %v4860_v44, %v4861_v11 }
 0x626   :  { %v4870_v52 = vmax.f32 %v4868_v13, %v4869_v12  ;;  %5752 = vst [vmem:[%s8611_s7 + $0x54] sm:$0x1] %v4809_v28  ;;  %v4831_v26 = vmax.f32 %v4829_v41, %v4830_v47  ;;  %v4840_v4 = vmax.f32 %v4838_v45, %v4839_v40 }
 0x627   :  { %5753 = vst [vmem:[%s8611_s7 + $0x55] sm:$0x1] %v4817_v3  ;;  %v4847_v6 = vrot.slane %v4846_v60, 2  ;;  %v4855_v23 = vrot.slane %v4854_v58, 2  ;;  %v4863_v10 = vrot.slane %v4862_v63, 2 }
 0x628   :  { %v4871_v8 = vrot.slane %v4870_v52, 2  ;;  %v4832_v14 = vrot.slane %v4831_v26, 1  ;;  %v4841_v25 = vrot.slane %v4840_v4, 1 }
 0x629   :  { %v4848_v29 = vmax.f32 %v4846_v60, %v4847_v6  ;;  %v4856_v38 = vmax.f32 %v4854_v58, %v4855_v23  ;;  %v4864_v55 = vmax.f32 %v4862_v63, %v4863_v10 }
 0x62a   :  { %v4872_v20 = vmax.f32 %v4870_v52, %v4871_v8  ;;  %v4833_v22 = vmax.f32 %v4831_v26, %v4832_v14  ;;  %v4842_v18 = vmax.f32 %v4840_v4, %v4841_v25 }
 0x62b   :  { %v4849_v19 = vrot.slane %v4848_v29, 1  ;;  %v4857_v56 = vrot.slane %v4856_v38, 1  ;;  %v4865_v43 = vrot.slane %v4864_v55, 1 }
 0x62c   :  { %v4873_v57 = vrot.slane %v4872_v20, 1  ;;  %5754 = vst [vmem:[%s8611_s7 + $0x58] sm:$0x1] %v4833_v22  ;;  %5755 = vst [vmem:[%s8611_s7 + $0x59] sm:$0x1] %v4842_v18 }
 0x62d   :  { %v4850_v61 = vmax.f32 %v4848_v29, %v4849_v19  ;;  %v4858_v49 = vmax.f32 %v4856_v38, %v4857_v56  ;;  %v4866_v1 = vmax.f32 %v4864_v55, %v4865_v43 }
 0x62e   :  { %v4874_v5 = vmax.f32 %v4872_v20, %v4873_v57 }
 0x62f   :  { %5756 = vst [vmem:[%s8611_s7 + $0x5a] sm:$0x1] %v4850_v61  ;;  %5757 = vst [vmem:[%s8611_s7 + $0x5b] sm:$0x1] %v4858_v49 }
 0x630   :  { %5758 = vst [vmem:[%s8611_s7 + $0x5c] sm:$0x1] %v4866_v1  ;;  %5759 = vst [vmem:[%s8611_s7 + $0x5d] sm:$0x1] %v4874_v5 }

</bundles_post_ra>
